<compile_context>
chip_gen: v6e
topology: v6e:2x2x1
jax: 0.10.0
libtpu: 0.0.40
codegen_flags: <defaults>
</compile_context>

<pallas_src>
import functools

import jax
import jax.numpy as jnp
from jax.experimental import pallas as pl
from jax.experimental.pallas import tpu as pltpu


# ----------------------------------------------------------------------------
# Kernel 1: layer-1 matmul (62208 -> 1024) + bias + ReLU
#   bf16 weights, f32 accumulation directly in the resident output block.
# ----------------------------------------------------------------------------
def _linear_relu_kernel(a_ref, w_ref, b_ref, o_ref):
    k = pl.program_id(2)

    @pl.when(k == 0)
    def _():
        o_ref[...] = jnp.zeros_like(o_ref)

    a = a_ref[...].astype(jnp.bfloat16)
    o_ref[...] += jnp.dot(a, w_ref[...], preferred_element_type=jnp.float32)

    @pl.when(k == pl.num_programs(2) - 1)
    def _():
        o_ref[...] = jnp.maximum(o_ref[...] + b_ref[...], 0.0)


def linear_relu(x, w_bf16, b_f32, *, tm, tn, tk,
                vmem_limit_bytes=40 * 1024 * 1024):
    """y = relu(x @ w + b); x:(M,K) f32, w:(K,N) bf16, b:(1,N) f32."""
    M, K = x.shape
    Kw, N = w_bf16.shape
    assert K == Kw and M % tm == 0 and N % tn == 0 and K % tk == 0

    grid = (M // tm, N // tn, K // tk)
    cost = pl.CostEstimate(
        flops=2 * M * K * N,
        transcendentals=0,
        bytes_accessed=M * K * 4 + K * N * 2 + N * 4 + M * N * 4,
    )
    return pl.pallas_call(
        _linear_relu_kernel,
        out_shape=jax.ShapeDtypeStruct((M, N), jnp.float32),
        grid_spec=pltpu.PrefetchScalarGridSpec(
            num_scalar_prefetch=0,
            grid=grid,
            in_specs=[
                pl.BlockSpec((tm, tk), lambda i, j, k: (i, k)),
                pl.BlockSpec((tk, tn), lambda i, j, k: (k, j)),
                pl.BlockSpec((1, tn), lambda i, j, k: (0, j)),
            ],
            out_specs=pl.BlockSpec((tm, tn), lambda i, j, k: (i, j)),
        ),
        compiler_params=pltpu.CompilerParams(
            dimension_semantics=("parallel", "parallel", "arbitrary"),
            vmem_limit_bytes=vmem_limit_bytes,
        ),
        cost_estimate=cost,
    )(x, w_bf16, b_f32)


# ----------------------------------------------------------------------------
# Kernel 2: fused tail — Linear(1024,512)+ReLU -> Linear(512,256)+ReLU
#           -> Linear(256,9 padded to 128)+ReLU -> log_softmax
# All three weight matrices stay resident in VMEM (constant block index).
# ----------------------------------------------------------------------------
def _tail_kernel(h_ref, w2_ref, b2_ref, w3_ref, b3_ref, w4_ref, b4_ref,
                 o_ref, *, n_valid):
    h = h_ref[...].astype(jnp.bfloat16)
    h2 = jnp.maximum(
        jnp.dot(h, w2_ref[...], preferred_element_type=jnp.float32)
        + b2_ref[...], 0.0)
    h3 = jnp.maximum(
        jnp.dot(h2.astype(jnp.bfloat16), w3_ref[...],
                preferred_element_type=jnp.float32) + b3_ref[...], 0.0)
    z = jnp.maximum(
        jnp.dot(h3.astype(jnp.bfloat16), w4_ref[...],
                preferred_element_type=jnp.float32) + b4_ref[...], 0.0)
    # mask padded logits so they don't contribute to the softmax
    col = jax.lax.broadcasted_iota(jnp.int32, z.shape, 1)
    z = jnp.where(col < n_valid, z, jnp.float32(-1e30))
    m = jnp.max(z, axis=-1, keepdims=True)
    e = jnp.exp(z - m)
    s = jnp.sum(e, axis=-1, keepdims=True)
    o_ref[...] = (z - m - jnp.log(s)).astype(o_ref.dtype)


def tail_fused(h, w2, b2, w3, b3, w4, b4, *, tm, n_valid):
    M, K1 = h.shape
    N2 = w2.shape[1]
    N3 = w3.shape[1]
    Np = w4.shape[1]
    assert M % tm == 0
    grid = (M // tm,)
    return pl.pallas_call(
        functools.partial(_tail_kernel, n_valid=n_valid),
        out_shape=jax.ShapeDtypeStruct((M, Np), jnp.float32),
        grid_spec=pltpu.PrefetchScalarGridSpec(
            num_scalar_prefetch=0,
            grid=grid,
            in_specs=[
                pl.BlockSpec((tm, K1), lambda i: (i, 0)),
                pl.BlockSpec((K1, N2), lambda i: (0, 0)),
                pl.BlockSpec((1, N2), lambda i: (0, 0)),
                pl.BlockSpec((N2, N3), lambda i: (0, 0)),
                pl.BlockSpec((1, N3), lambda i: (0, 0)),
                pl.BlockSpec((N3, Np), lambda i: (0, 0)),
                pl.BlockSpec((1, Np), lambda i: (0, 0)),
            ],
            out_specs=pl.BlockSpec((tm, Np), lambda i: (i, 0)),
        ),
        compiler_params=pltpu.CompilerParams(
            dimension_semantics=("parallel",),
        ),
    )(h, w2, b2, w3, b3, w4, b4)


# ----------------------------------------------------------------------------
# Parameter construction (deterministic, PyTorch-default-style init)
# ----------------------------------------------------------------------------
def init_linear(key, fan_in, fan_out):
    kw, kb = jax.random.split(key)
    bound = 1.0 / jnp.sqrt(jnp.float32(fan_in))
    # stored as (in, out) = PyTorch weight.T; weights bf16, biases f32
    w = jax.random.uniform(kw, (fan_in, fan_out), jnp.float32, -bound, bound)
    b = jax.random.uniform(kb, (1, fan_out), jnp.float32, -bound, bound)
    return w.astype(jnp.bfloat16), b


def make_params(key):
    k1, k2, k3, k4 = jax.random.split(key, 4)
    p = {}
    p["w1"], p["b1"] = init_linear(k1, 62208, 1024)
    p["w2"], p["b2"] = init_linear(k2, 1024, 512)
    p["w3"], p["b3"] = init_linear(k3, 512, 256)
    w4, b4 = init_linear(k4, 256, 9)
    # pad the tiny last layer to 128 lanes
    p["w4"] = jnp.pad(w4, ((0, 0), (0, 128 - 9)))
    p["b4"] = jnp.pad(b4, ((0, 0), (0, 128 - 9)))
    return p


# ----------------------------------------------------------------------------
# Forward pass
# ----------------------------------------------------------------------------
@jax.jit
def forward(params, x):
    # x.view(-1, 243, 16, 16).view(B, -1)
    x = x.reshape(-1, 243 * 16 * 16).astype(jnp.float32)
    B = x.shape[0]

    # row tiling: one block for small batches, 128-row tiles for large batches
    if B <= 128:
        M = max(8, ((B + 7) // 8) * 8)
        tm = M
    else:
        tm = 128
        M = ((B + tm - 1) // tm) * tm
    x = jnp.pad(x, ((0, M - B), (0, 0)))

    # layer 1: big weight stream.  tk=6912 -> 9 reduction steps; tn=512 ->
    # two N blocks so the parallel axis can be split across v7x TensorCores.
    h = linear_relu(x, params["w1"], params["b1"], tm=tm, tn=512, tk=6912)

    # layers 2..4 + log_softmax, fused (weights resident in VMEM)
    out_pad = tail_fused(h, params["w2"], params["b2"],
                         params["w3"], params["b3"],
                         params["w4"], params["b4"],
                         tm=tm, n_valid=9)
    return out_pad[:B, :9]


if __name__ == "__main__":
    key = jax.random.PRNGKey(0)
    kx, kp = jax.random.split(key)

    # input consistent with the module: x.view(-1, 243, 16, 16) -> B=2
    x = jax.random.normal(kx, (2, 243, 16, 16), dtype=jnp.float32)
    params = make_params(kp)

    out = forward(params, x)
    out = jax.block_until_ready(out)

    assert out.shape == (2, 9), out.shape
    # sanity: rows of log_softmax should exponentiate-sum to 1
    row_sums = jnp.sum(jnp.exp(out), axis=-1)
    assert jnp.allclose(row_sums, 1.0, atol=1e-4), row_sums

    print("KERNEL_OK")
</pallas_src>

<mosaic_0001>
module attributes {stable_mosaic.version = 11 : i64} {
  func.func @_linear_relu_kernel(%arg0: i32, %arg1: i32, %arg2: i32, %arg3: memref<8x6912xf32, #tpu.memory_space<vmem>>, %arg4: memref<6912x512xbf16, #tpu.memory_space<vmem>>, %arg5: memref<1x512xf32, #tpu.memory_space<vmem>>, %arg6: memref<8x512xf32, #tpu.memory_space<vmem>>) attributes {dimension_semantics = [#tpu.dimension_semantics<parallel>, #tpu.dimension_semantics<parallel>, #tpu.dimension_semantics<arbitrary>], iteration_bounds = array<i64: 1, 2, 9>, scalar_prefetch = 0 : i64, scratch_operands = 0 : i64, tpu.core_type = #tpu.core_type<tc>, window_params = [{transform_indices = @transform_0, window_bounds = array<i64: 8, 6912>}, {transform_indices = @transform_1, window_bounds = array<i64: 6912, 512>}, {transform_indices = @transform_2, window_bounds = array<i64: 1, 512>}, {transform_indices = @transform_3, window_bounds = array<i64: 8, 512>}]} {
    %c0_i32 = arith.constant 0 : i32
    %0 = arith.cmpi eq, %arg2, %c0_i32 : i32
    %1 = arith.extui %0 : i1 to i32
    %c0_i32_0 = arith.constant 0 : i32
    %2 = arith.cmpi ne, %1, %c0_i32_0 : i32
    scf.if %2 {
      %cst_9 = arith.constant 0.000000e+00 : f32
      %13 = vector.broadcast %cst_9 : f32 to vector<8x512xf32>
      %c0_10 = arith.constant 0 : index
      %c0_11 = arith.constant 0 : index
      %14 = vector.load %arg6[%c0_10, %c0_11] : memref<8x512xf32, #tpu.memory_space<vmem>>, vector<8x512xf32>
      tpu.vector_store %arg6[%c0_10, %c0_11], %13 {strides = array<i32>} : memref<8x512xf32, #tpu.memory_space<vmem>>, vector<8x512xf32>,
    } else {
    }
    %c0 = arith.constant 0 : index
    %c0_1 = arith.constant 0 : index
    %3 = vector.load %arg3[%c0, %c0_1] : memref<8x6912xf32, #tpu.memory_space<vmem>>, vector<8x6912xf32>
    %4 = arith.truncf %3 : vector<8x6912xf32> to vector<8x6912xbf16>
    %c0_2 = arith.constant 0 : index
    %c0_3 = arith.constant 0 : index
    %5 = vector.load %arg6[%c0_2, %c0_3] : memref<8x512xf32, #tpu.memory_space<vmem>>, vector<8x512xf32>
    %c0_4 = arith.constant 0 : index
    %c0_5 = arith.constant 0 : index
    %6 = vector.load %arg4[%c0_4, %c0_5] : memref<6912x512xbf16, #tpu.memory_space<vmem>>, vector<6912x512xbf16>
    %cst = arith.constant dense<0.000000e+00> : vector<8x512xf32>
    %7 = tpu.matmul %4, %6, %cst {dimension_numbers = #tpu.dot_dimension_numbers<[1], [0], [0], [1], [0, 0, 1, 1], [], []>} : vector<8x6912xbf16>, vector<6912x512xbf16>, vector<8x512xf32> -> vector<8x512xf32>
    %8 = arith.addf %5, %7 : vector<8x512xf32>
    %c0_6 = arith.constant 0 : index
    %c0_7 = arith.constant 0 : index
    %9 = vector.load %arg6[%c0_6, %c0_7] : memref<8x512xf32, #tpu.memory_space<vmem>>, vector<8x512xf32>
    tpu.vector_store %arg6[%c0_6, %c0_7], %8 {strides = array<i32>} : memref<8x512xf32, #tpu.memory_space<vmem>>, vector<8x512xf32>,
    %c8_i32 = arith.constant 8 : i32
    %10 = arith.cmpi eq, %arg2, %c8_i32 : i32
    %11 = arith.extui %10 : i1 to i32
    %c0_i32_8 = arith.constant 0 : i32
    %12 = arith.cmpi ne, %11, %c0_i32_8 : i32
    scf.if %12 {
      %c0_9 = arith.constant 0 : index
      %c0_10 = arith.constant 0 : index
      %13 = vector.load %arg6[%c0_9, %c0_10] : memref<8x512xf32, #tpu.memory_space<vmem>>, vector<8x512xf32>
      %c0_11 = arith.constant 0 : index
      %c0_12 = arith.constant 0 : index
      %14 = vector.load %arg5[%c0_11, %c0_12] : memref<1x512xf32, #tpu.memory_space<vmem>>, vector<1x512xf32>
      %15 = vector.broadcast %14 : vector<1x512xf32> to vector<8x512xf32>
      %16 = arith.addf %13, %15 : vector<8x512xf32>
      %cst_13 = arith.constant 0.000000e+00 : f32
      %17 = vector.broadcast %cst_13 : f32 to vector<8x512xf32>
      %18 = arith.maximumf %16, %17 : vector<8x512xf32>
      %c0_14 = arith.constant 0 : index
      %c0_15 = arith.constant 0 : index
      %19 = vector.load %arg6[%c0_14, %c0_15] : memref<8x512xf32, #tpu.memory_space<vmem>>, vector<8x512xf32>
      tpu.vector_store %arg6[%c0_14, %c0_15], %18 {strides = array<i32>} : memref<8x512xf32, #tpu.memory_space<vmem>>, vector<8x512xf32>,
    } else {
    }
    return
  }
  func.func @transform_0(%arg0: i32, %arg1: i32, %arg2: i32) -> (i32, i32) {
    %c0_i32 = arith.constant 0 : i32
    return %arg0, %arg2 : i32, i32
  }
  func.func @transform_1(%arg0: i32, %arg1: i32, %arg2: i32) -> (i32, i32) {
    %c0_i32 = arith.constant 0 : i32
    return %arg2, %arg1 : i32, i32
  }
  func.func @transform_2(%arg0: i32, %arg1: i32, %arg2: i32) -> (i32, i32) {
    %c0_i32 = arith.constant 0 : i32
    %c0_i32_0 = arith.constant 0 : i32
    return %c0_i32, %arg1 : i32, i32
  }
  func.func @transform_3(%arg0: i32, %arg1: i32, %arg2: i32) -> (i32, i32) {
    %c0_i32 = arith.constant 0 : i32
    return %arg0, %arg1 : i32, i32
  }
}

module attributes {stable_mosaic.version = 11 : i64} {
  func.func @_tail_kernel(%arg0: i32, %arg1: memref<8x1024xf32, #tpu.memory_space<vmem>>, %arg2: memref<1024x512xbf16, #tpu.memory_space<vmem>>, %arg3: memref<1x512xf32, #tpu.memory_space<vmem>>, %arg4: memref<512x256xbf16, #tpu.memory_space<vmem>>, %arg5: memref<1x256xf32, #tpu.memory_space<vmem>>, %arg6: memref<256x128xbf16, #tpu.memory_space<vmem>>, %arg7: memref<1x128xf32, #tpu.memory_space<vmem>>, %arg8: memref<8x128xf32, #tpu.memory_space<vmem>>) attributes {dimension_semantics = [#tpu.dimension_semantics<parallel>], iteration_bounds = array<i64: 1>, scalar_prefetch = 0 : i64, scratch_operands = 0 : i64, tpu.core_type = #tpu.core_type<tc>, window_params = [{transform_indices = @transform_0, window_bounds = array<i64: 8, 1024>}, {pipeline_mode = #tpu.pipeline_mode<synchronous>, transform_indices = @transform_1, window_bounds = array<i64: 1024, 512>}, {pipeline_mode = #tpu.pipeline_mode<synchronous>, transform_indices = @transform_2, window_bounds = array<i64: 1, 512>}, {pipeline_mode = #tpu.pipeline_mode<synchronous>, transform_indices = @transform_3, window_bounds = array<i64: 512, 256>}, {pipeline_mode = #tpu.pipeline_mode<synchronous>, transform_indices = @transform_4, window_bounds = array<i64: 1, 256>}, {pipeline_mode = #tpu.pipeline_mode<synchronous>, transform_indices = @transform_5, window_bounds = array<i64: 256, 128>}, {pipeline_mode = #tpu.pipeline_mode<synchronous>, transform_indices = @transform_6, window_bounds = array<i64: 1, 128>}, {transform_indices = @transform_7, window_bounds = array<i64: 8, 128>}]} {
    %c0 = arith.constant 0 : index
    %c0_0 = arith.constant 0 : index
    %0 = vector.load %arg1[%c0, %c0_0] : memref<8x1024xf32, #tpu.memory_space<vmem>>, vector<8x1024xf32>
    %1 = arith.truncf %0 : vector<8x1024xf32> to vector<8x1024xbf16>
    %c0_1 = arith.constant 0 : index
    %c0_2 = arith.constant 0 : index
    %2 = vector.load %arg2[%c0_1, %c0_2] : memref<1024x512xbf16, #tpu.memory_space<vmem>>, vector<1024x512xbf16>
    %cst = arith.constant dense<0.000000e+00> : vector<8x512xf32>
    %3 = tpu.matmul %1, %2, %cst {dimension_numbers = #tpu.dot_dimension_numbers<[1], [0], [0], [1], [0, 0, 1, 1], [], []>} : vector<8x1024xbf16>, vector<1024x512xbf16>, vector<8x512xf32> -> vector<8x512xf32>
    %c0_3 = arith.constant 0 : index
    %c0_4 = arith.constant 0 : index
    %4 = vector.load %arg3[%c0_3, %c0_4] : memref<1x512xf32, #tpu.memory_space<vmem>>, vector<1x512xf32>
    %5 = vector.broadcast %4 : vector<1x512xf32> to vector<8x512xf32>
    %6 = arith.addf %3, %5 : vector<8x512xf32>
    %cst_5 = arith.constant 0.000000e+00 : f32
    %7 = vector.broadcast %cst_5 : f32 to vector<8x512xf32>
    %8 = arith.maximumf %6, %7 : vector<8x512xf32>
    %9 = arith.truncf %8 : vector<8x512xf32> to vector<8x512xbf16>
    %c0_6 = arith.constant 0 : index
    %c0_7 = arith.constant 0 : index
    %10 = vector.load %arg4[%c0_6, %c0_7] : memref<512x256xbf16, #tpu.memory_space<vmem>>, vector<512x256xbf16>
    %cst_8 = arith.constant dense<0.000000e+00> : vector<8x256xf32>
    %11 = tpu.matmul %9, %10, %cst_8 {dimension_numbers = #tpu.dot_dimension_numbers<[1], [0], [0], [1], [0, 0, 1, 1], [], []>} : vector<8x512xbf16>, vector<512x256xbf16>, vector<8x256xf32> -> vector<8x256xf32>
    %c0_9 = arith.constant 0 : index
    %c0_10 = arith.constant 0 : index
    %12 = vector.load %arg5[%c0_9, %c0_10] : memref<1x256xf32, #tpu.memory_space<vmem>>, vector<1x256xf32>
    %13 = vector.broadcast %12 : vector<1x256xf32> to vector<8x256xf32>
    %14 = arith.addf %11, %13 : vector<8x256xf32>
    %cst_11 = arith.constant 0.000000e+00 : f32
    %15 = vector.broadcast %cst_11 : f32 to vector<8x256xf32>
    %16 = arith.maximumf %14, %15 : vector<8x256xf32>
    %17 = arith.truncf %16 : vector<8x256xf32> to vector<8x256xbf16>
    %c0_12 = arith.constant 0 : index
    %c0_13 = arith.constant 0 : index
    %18 = vector.load %arg6[%c0_12, %c0_13] : memref<256x128xbf16, #tpu.memory_space<vmem>>, vector<256x128xbf16>
    %cst_14 = arith.constant dense<0.000000e+00> : vector<8x128xf32>
    %19 = tpu.matmul %17, %18, %cst_14 {dimension_numbers = #tpu.dot_dimension_numbers<[1], [0], [0], [1], [0, 0, 1, 1], [], []>} : vector<8x256xbf16>, vector<256x128xbf16>, vector<8x128xf32> -> vector<8x128xf32>
    %c0_15 = arith.constant 0 : index
    %c0_16 = arith.constant 0 : index
    %20 = vector.load %arg7[%c0_15, %c0_16] : memref<1x128xf32, #tpu.memory_space<vmem>>, vector<1x128xf32>
    %21 = vector.broadcast %20 : vector<1x128xf32> to vector<8x128xf32>
    %22 = arith.addf %19, %21 : vector<8x128xf32>
    %cst_17 = arith.constant 0.000000e+00 : f32
    %23 = vector.broadcast %cst_17 : f32 to vector<8x128xf32>
    %24 = arith.maximumf %22, %23 : vector<8x128xf32>
    %25 = tpu.iota {dimensions = array<i32: 1>} : vector<8x128xi32>
    %c9_i32 = arith.constant 9 : i32
    %26 = vector.broadcast %c9_i32 : i32 to vector<8x128xi32>
    %27 = arith.cmpi slt, %25, %26 : vector<8x128xi32>
    %cst_18 = arith.constant -1.000000e+30 : f32
    %28 = vector.broadcast %cst_18 : f32 to vector<8x128xf32>
    %29 = arith.select %27, %24, %28 : vector<8x128xi1>, vector<8x128xf32>
    %cst_19 = arith.constant dense<0xFF800000> : vector<8xf32>
    %30 = vector.multi_reduction <maximumf>, %29, %cst_19 [1] : vector<8x128xf32> to vector<8xf32>
    %31 = vector.shape_cast %30 : vector<8xf32> to vector<8x1xf32>
    %32 = vector.broadcast %31 : vector<8x1xf32> to vector<8x128xf32>
    %33 = arith.subf %29, %32 : vector<8x128xf32>
    %34 = math.exp %33 : vector<8x128xf32>
    %cst_20 = arith.constant dense<0.000000e+00> : vector<8xf32>
    %35 = vector.multi_reduction <add>, %34, %cst_20 [1] : vector<8x128xf32> to vector<8xf32>
    %36 = vector.shape_cast %35 : vector<8xf32> to vector<8x1xf32>
    %37 = vector.broadcast %31 : vector<8x1xf32> to vector<8x128xf32>
    %38 = arith.subf %29, %37 : vector<8x128xf32>
    %39 = math.log %36 : vector<8x1xf32>
    %40 = vector.broadcast %39 : vector<8x1xf32> to vector<8x128xf32>
    %41 = arith.subf %38, %40 : vector<8x128xf32>
    %c0_21 = arith.constant 0 : index
    %c0_22 = arith.constant 0 : index
    %42 = vector.load %arg8[%c0_21, %c0_22] : memref<8x128xf32, #tpu.memory_space<vmem>>, vector<8x128xf32>
    tpu.vector_store %arg8[%c0_21, %c0_22], %41 {strides = array<i32>} : memref<8x128xf32, #tpu.memory_space<vmem>>, vector<8x128xf32>,
    return
  }
  func.func @transform_0(%arg0: i32) -> (i32, i32) {
    %c0_i32 = arith.constant 0 : i32
    %c0_i32_0 = arith.constant 0 : i32
    return %arg0, %c0_i32 : i32, i32
  }
  func.func @transform_1(%arg0: i32) -> (i32, i32) {
    %c0_i32 = arith.constant 0 : i32
    %c0_i32_0 = arith.constant 0 : i32
    %c0_i32_1 = arith.constant 0 : i32
    return %c0_i32, %c0_i32_0 : i32, i32
  }
  func.func @transform_2(%arg0: i32) -> (i32, i32) {
    %c0_i32 = arith.constant 0 : i32
    %c0_i32_0 = arith.constant 0 : i32
    %c0_i32_1 = arith.constant 0 : i32
    return %c0_i32, %c0_i32_0 : i32, i32
  }
  func.func @transform_3(%arg0: i32) -> (i32, i32) {
    %c0_i32 = arith.constant 0 : i32
    %c0_i32_0 = arith.constant 0 : i32
    %c0_i32_1 = arith.constant 0 : i32
    return %c0_i32, %c0_i32_0 : i32, i32
  }
  func.func @transform_4(%arg0: i32) -> (i32, i32) {
    %c0_i32 = arith.constant 0 : i32
    %c0_i32_0 = arith.constant 0 : i32
    %c0_i32_1 = arith.constant 0 : i32
    return %c0_i32, %c0_i32_0 : i32, i32
  }
  func.func @transform_5(%arg0: i32) -> (i32, i32) {
    %c0_i32 = arith.constant 0 : i32
    %c0_i32_0 = arith.constant 0 : i32
    %c0_i32_1 = arith.constant 0 : i32
    return %c0_i32, %c0_i32_0 : i32, i32
  }
  func.func @transform_6(%arg0: i32) -> (i32, i32) {
    %c0_i32 = arith.constant 0 : i32
    %c0_i32_0 = arith.constant 0 : i32
    %c0_i32_1 = arith.constant 0 : i32
    return %c0_i32, %c0_i32_0 : i32, i32
  }
  func.func @transform_7(%arg0: i32) -> (i32, i32) {
    %c0_i32 = arith.constant 0 : i32
    %c0_i32_0 = arith.constant 0 : i32
    return %arg0, %c0_i32 : i32, i32
  }
}

</mosaic_0001>

<bundles_post_ra>
// kernel: forward.3
= control target key start
LH: loop header
LB: loop body
LE: loop exit
PB: predicated region body
PF: predicated region fallthrough
CT: control target
= control target key end

     0   :  { %s4623_s1 = inlined_call_operand.vmem [shape: bf16[1024,512], index: 1, kind: input, shape index: {}]   ;;  %s4624_s0 = inlined_call_operand.vmem [shape: f32[8,1024], index: 0, kind: input, shape index: {}]   ;;  %s4625_s3 = inlined_call_operand.vmem [shape: bf16[512,256], index: 3, kind: input, shape index: {}]   ;;  %s4626_s2 = inlined_call_operand.vmem [shape: f32[1,512], index: 2, kind: input, shape index: {}]   ;;  %s4627_s5 = inlined_call_operand.vmem [shape: bf16[256,128], index: 5, kind: input, shape index: {}]   ;;  %s4628_s4 = inlined_call_operand.vmem [shape: f32[1,256], index: 4, kind: input, shape index: {}]   ;;  %s4629_s6 = inlined_call_operand.vmem [shape: f32[1,128], index: 6, kind: input, shape index: {}]   ;;  %s4630_s7 = inlined_call_operand.vmem [shape: f32[8,128], index: 7, kind: output, shape index: {}]  }
   0x1   :  { %v2973_v0 = vld [vmem:[%s4623_s1 + $0xe4] ss:$16 sps:$4 sm:$0xff]   ;;  %v2977_v2 = vld [vmem:[%s4623_s1 + $0xe0] ss:$16 sps:$4 sm:$0xff]   ;;  %v28_v46 = vld [vmem:[%s4624_s0 + $0x8] sm:$0xff] }
   0x2   :  { %v2975_v1 = vld [vmem:[%s4623_s1 + $0x2e4] ss:$16 sps:$4 sm:$0xff]   ;;  %1601 = vmatprep.subr.bf16.mxu0 %v2973_v0  ;;  %v2978_v3 = vld [vmem:[%s4623_s1 + $0x2e0] ss:$16 sps:$4 sm:$0xff]   ;;  %v3660_v49 = vpack.c.bf16 %v28_v46, %v28_v46  ;;  %v30_v50 = vld [vmem:[%s4624_s0 + $0x18] sm:$0xff] }
   0x3   :  { %1642 = vmatprep.subr.bf16.mxu1 %v2975_v1  ;;  %v2979_v4 = vld [vmem:[%s4623_s1 + $0xc4] ss:$16 sps:$4 sm:$0xff]   ;;  %1602 = vmatpush1.bf16.msra.mxu0 %v2977_v2  ;;  %v2983_v6 = vld [vmem:[%s4623_s1 + $0xc0] ss:$16 sps:$4 sm:$0xff]   ;;  %v3668_v52 = vpack.c.bf16 %v30_v50, %v30_v50 }
   0x4   :  { %1643 = vmatpush1.bf16.msra.mxu1 %v2978_v3  ;;  %v2981_v5 = vld [vmem:[%s4623_s1 + $0x2c4] ss:$16 sps:$4 sm:$0xff]   ;;  %1603 = vmatprep.subr.bf16.mxu0 %v2979_v4  ;;  %v2984_v7 = vld [vmem:[%s4623_s1 + $0x2c0] ss:$16 sps:$4 sm:$0xff]  }
   0x5   :  { %1644 = vmatprep.subr.bf16.mxu1 %v2981_v5  ;;  %v2985_v8 = vld [vmem:[%s4623_s1 + $0xa4] ss:$16 sps:$4 sm:$0xff]   ;;  %v2989_v10 = vld [vmem:[%s4623_s1 + $0xa0] ss:$16 sps:$4 sm:$0xff]   ;;  %1633 = vmatprep.mubr.bf16.mxu0 %v3660_v49 }
   0x6   :  { %v2987_v9 = vld [vmem:[%s4623_s1 + $0x2a4] ss:$16 sps:$4 sm:$0xff]   ;;  %v2990_v11 = vld [vmem:[%s4623_s1 + $0x2a0] ss:$16 sps:$4 sm:$0xff]   ;;  %1674 = vmatprep.mubr.bf16.mxu1 %v3668_v52 }
   0x7   :  { %1604 = vmatpush1.bf16.msra.mxu0 %v2983_v6  ;;  %v2991_v12 = vld [vmem:[%s4623_s1 + $0x84] ss:$16 sps:$4 sm:$0xff]   ;;  %v2995_v14 = vld [vmem:[%s4623_s1 + $0x80] ss:$16 sps:$4 sm:$0xff]  }
   0x8   :  { %1645 = vmatpush1.bf16.msra.mxu1 %v2984_v7  ;;  %1605 = vmatprep.subr.bf16.mxu0 %v2985_v8  ;;  %v2993_v13 = vld [vmem:[%s4623_s1 + $0x284] ss:$16 sps:$4 sm:$0xff]   ;;  %v2996_v15 = vld [vmem:[%s4623_s1 + $0x280] ss:$16 sps:$4 sm:$0xff]  }
   0x9   :  { %1646 = vmatprep.subr.bf16.mxu1 %v2987_v9  ;;  %v2997_v16 = vld [vmem:[%s4623_s1 + $0x64] ss:$16 sps:$4 sm:$0xff]   ;;  %v3001_v18 = vld [vmem:[%s4623_s1 + $0x60] ss:$16 sps:$4 sm:$0xff]  }
   0xa   :  { %v2999_v17 = vld [vmem:[%s4623_s1 + $0x264] ss:$16 sps:$4 sm:$0xff]   ;;  %v3002_v19 = vld [vmem:[%s4623_s1 + $0x260] ss:$16 sps:$4 sm:$0xff]  }
   0xb   :  { %1606 = vmatpush1.bf16.msra.mxu0 %v2989_v10  ;;  %v3003_v20 = vld [vmem:[%s4623_s1 + $0x44] ss:$16 sps:$4 sm:$0xff]   ;;  %v3007_v22 = vld [vmem:[%s4623_s1 + $0x40] ss:$16 sps:$4 sm:$0xff]  }
   0xc   :  { %1647 = vmatpush1.bf16.msra.mxu1 %v2990_v11  ;;  %1607 = vmatprep.subr.bf16.mxu0 %v2991_v12  ;;  %v3005_v21 = vld [vmem:[%s4623_s1 + $0x244] ss:$16 sps:$4 sm:$0xff]   ;;  %v3008_v23 = vld [vmem:[%s4623_s1 + $0x240] ss:$16 sps:$4 sm:$0xff]  }
   0xd   :  { %1648 = vmatprep.subr.bf16.mxu1 %v2993_v13  ;;  %v3009_v24 = vld [vmem:[%s4623_s1 + $0x24] ss:$16 sps:$4 sm:$0xff]   ;;  %v3013_v26 = vld [vmem:[%s4623_s1 + $0x20] ss:$16 sps:$4 sm:$0xff]  }
   0xe   :  { %v3011_v25 = vld [vmem:[%s4623_s1 + $0x224] ss:$16 sps:$4 sm:$0xff]   ;;  %v3014_v27 = vld [vmem:[%s4623_s1 + $0x220] ss:$16 sps:$4 sm:$0xff]  }
   0xf   :  { %1608 = vmatpush1.bf16.msra.mxu0 %v2995_v14  ;;  %v3015_v28 = vld [vmem:[%s4623_s1 + $0x4] ss:$16 sps:$4 sm:$0xff]   ;;  %v3019_v30 = vld [vmem:[%s4623_s1] ss:$16 sps:$4 sm:$0xff]  }
  0x10   :  { %1649 = vmatpush1.bf16.msra.mxu1 %v2996_v15  ;;  %1609 = vmatprep.subr.bf16.mxu0 %v2997_v16  ;;  %v3017_v29 = vld [vmem:[%s4623_s1 + $0x204] ss:$16 sps:$4 sm:$0xff]   ;;  %v3020_v31 = vld [vmem:[%s4623_s1 + $0x200] ss:$16 sps:$4 sm:$0xff]  }
  0x11   :  { %1650 = vmatprep.subr.bf16.mxu1 %v2999_v17  ;;  %v3021_v32 = vld [vmem:[%s4623_s1 + $0x1e4] ss:$16 sps:$4 sm:$0xff]   ;;  %v3025_v34 = vld [vmem:[%s4623_s1 + $0x1e0] ss:$16 sps:$4 sm:$0xff]  }
  0x12   :  { %v3023_v33 = vld [vmem:[%s4623_s1 + $0x3e4] ss:$16 sps:$4 sm:$0xff]   ;;  %v3026_v35 = vld [vmem:[%s4623_s1 + $0x3e0] ss:$16 sps:$4 sm:$0xff]  }
  0x13   :  { %1610 = vmatpush1.bf16.msra.mxu0 %v3001_v18  ;;  %v3027_v36 = vld [vmem:[%s4623_s1 + $0x1c4] ss:$16 sps:$4 sm:$0xff]   ;;  %v3031_v38 = vld [vmem:[%s4623_s1 + $0x1c0] ss:$16 sps:$4 sm:$0xff]  }
  0x14   :  { %1651 = vmatpush1.bf16.msra.mxu1 %v3002_v19  ;;  %1611 = vmatprep.subr.bf16.mxu0 %v3003_v20  ;;  %v3029_v37 = vld [vmem:[%s4623_s1 + $0x3c4] ss:$16 sps:$4 sm:$0xff]   ;;  %v3032_v39 = vld [vmem:[%s4623_s1 + $0x3c0] ss:$16 sps:$4 sm:$0xff]  }
  0x15   :  { %1652 = vmatprep.subr.bf16.mxu1 %v3005_v21  ;;  %v3033_v40 = vld [vmem:[%s4623_s1 + $0x1a4] ss:$16 sps:$4 sm:$0xff]   ;;  %v3037_v42 = vld [vmem:[%s4623_s1 + $0x1a0] ss:$16 sps:$4 sm:$0xff]  }
  0x16   :  { %v3035_v41 = vld [vmem:[%s4623_s1 + $0x3a4] ss:$16 sps:$4 sm:$0xff]   ;;  %v3038_v43 = vld [vmem:[%s4623_s1 + $0x3a0] ss:$16 sps:$4 sm:$0xff]  }
  0x17   :  { %1612 = vmatpush1.bf16.msra.mxu0 %v3007_v22  ;;  %v3039_v44 = vld [vmem:[%s4623_s1 + $0x184] ss:$16 sps:$4 sm:$0xff]   ;;  %v3043_v47 = vld [vmem:[%s4623_s1 + $0x180] ss:$16 sps:$4 sm:$0xff]  }
  0x18   :  { %1653 = vmatpush1.bf16.msra.mxu1 %v3008_v23  ;;  %1613 = vmatprep.subr.bf16.mxu0 %v3009_v24  ;;  %v3041_v45 = vld [vmem:[%s4623_s1 + $0x384] ss:$16 sps:$4 sm:$0xff]   ;;  %v3044_v48 = vld [vmem:[%s4623_s1 + $0x380] ss:$16 sps:$4 sm:$0xff]  }
  0x19   :  { %1654 = vmatprep.subr.bf16.mxu1 %v3011_v25  ;;  %v3045_v51 = vld [vmem:[%s4623_s1 + $0x164] ss:$16 sps:$4 sm:$0xff]   ;;  %v3049_v54 = vld [vmem:[%s4623_s1 + $0x160] ss:$16 sps:$4 sm:$0xff]  }
  0x1a   :  { %v3047_v53 = vld [vmem:[%s4623_s1 + $0x364] ss:$16 sps:$4 sm:$0xff]   ;;  %v3050_v55 = vld [vmem:[%s4623_s1 + $0x360] ss:$16 sps:$4 sm:$0xff]  }
  0x1b   :  { %1614 = vmatpush1.bf16.msra.mxu0 %v3013_v26  ;;  %v3051_v56 = vld [vmem:[%s4623_s1 + $0x144] ss:$16 sps:$4 sm:$0xff]   ;;  %v3055_v58 = vld [vmem:[%s4623_s1 + $0x140] ss:$16 sps:$4 sm:$0xff]  }
  0x1c   :  { %1655 = vmatpush1.bf16.msra.mxu1 %v3014_v27  ;;  %1615 = vmatprep.subr.bf16.mxu0 %v3015_v28  ;;  %v3053_v57 = vld [vmem:[%s4623_s1 + $0x344] ss:$16 sps:$4 sm:$0xff]   ;;  %v3056_v59 = vld [vmem:[%s4623_s1 + $0x340] ss:$16 sps:$4 sm:$0xff]  }
  0x1d   :  { %1656 = vmatprep.subr.bf16.mxu1 %v3017_v29  ;;  %v3057_v60 = vld [vmem:[%s4623_s1 + $0x124] ss:$16 sps:$4 sm:$0xff]   ;;  %v3061_v62 = vld [vmem:[%s4623_s1 + $0x120] ss:$16 sps:$4 sm:$0xff]  }
  0x1e   :  { %v3059_v61 = vld [vmem:[%s4623_s1 + $0x324] ss:$16 sps:$4 sm:$0xff]   ;;  %v3062_v63 = vld [vmem:[%s4623_s1 + $0x320] ss:$16 sps:$4 sm:$0xff]  }
  0x1f   :  { %1616 = vmatpush1.bf16.msra.mxu0 %v3019_v30  ;;  %v3063_v0 = vld [vmem:[%s4623_s1 + $0x104] ss:$16 sps:$4 sm:$0xff]   ;;  %v3067_v2 = vld [vmem:[%s4623_s1 + $0x100] ss:$16 sps:$4 sm:$0xff]  }
  0x20   :  { %1657 = vmatpush1.bf16.msra.mxu1 %v3020_v31  ;;  %1617 = vmatprep.subr.bf16.mxu0 %v3021_v32  ;;  %v3065_v1 = vld [vmem:[%s4623_s1 + $0x304] ss:$16 sps:$4 sm:$0xff]   ;;  %v3068_v3 = vld [vmem:[%s4623_s1 + $0x300] ss:$16 sps:$4 sm:$0xff]  }
  0x21   :  { %1658 = vmatprep.subr.bf16.mxu1 %v3023_v33  ;;  %v27_v4 = vld [vmem:[%s4624_s0] sm:$0xff]  ;;  %v29_v5 = vld [vmem:[%s4624_s0 + $0x10] sm:$0xff] }
  0x22   :  { %v3071_v6 = vld [vmem:[%s4623_s1 + $0x4e4] ss:$16 sps:$4 sm:$0xff]   ;;  %v3729_v8 = vpack.c.bf16 %v27_v4, %v27_v4  ;;  %v3731_v9 = vpack.c.bf16 %v29_v5, %v29_v5  ;;  %v3069_v10 = vld [vmem:[%s4623_s1 + $0x4e0] ss:$16 sps:$4 sm:$0xff]  }
  0x23   :  { %1618 = vmatpush2.bf16.msra.mxu0 %v3025_v34  ;;  %v3074_v7 = vld [vmem:[%s4623_s1 + $0x6e4] ss:$16 sps:$4 sm:$0xff]   ;;  %v3072_v11 = vld [vmem:[%s4623_s1 + $0x6e0] ss:$16 sps:$4 sm:$0xff]   ;;  %v32_v34 = vld [vmem:[%s4624_s0 + $0x28] sm:$0xff] }
  0x24   :  { %1659 = vmatpush2.bf16.msra.mxu1 %v3026_v35  ;;  %1619 = vmatprep.subr.bf16.mxu0 %v3027_v36  ;;  %v3077_v12 = vld [vmem:[%s4623_s1 + $0x4c4] ss:$16 sps:$4 sm:$0xff]   ;;  %v3075_v14 = vld [vmem:[%s4623_s1 + $0x4c0] ss:$16 sps:$4 sm:$0xff]  }
  0x25   :  { %1660 = vmatprep.subr.bf16.mxu1 %v3029_v37  ;;  %v3080_v13 = vld [vmem:[%s4623_s1 + $0x6c4] ss:$16 sps:$4 sm:$0xff]   ;;  %v3078_v15 = vld [vmem:[%s4623_s1 + $0x6c0] ss:$16 sps:$4 sm:$0xff]   ;;  %v3816_v37 = vpack.c.bf16 %v32_v34, %v32_v34  ;;  %v3191_v34 = vld [vmem:[%s4623_s1 + $0x6c] ss:$16 sps:$4 sm:$0xff]  }
  0x26   :  { %v3083_v16 = vld [vmem:[%s4623_s1 + $0x4a4] ss:$16 sps:$4 sm:$0xff]   ;;  %v3081_v18 = vld [vmem:[%s4623_s1 + $0x4a0] ss:$16 sps:$4 sm:$0xff]  }
  0x27   :  { %1620 = vmatpush2.bf16.msra.mxu0 %v3031_v38  ;;  %v3086_v17 = vld [vmem:[%s4623_s1 + $0x6a4] ss:$16 sps:$4 sm:$0xff]   ;;  %v3084_v19 = vld [vmem:[%s4623_s1 + $0x6a0] ss:$16 sps:$4 sm:$0xff]   ;;  %v34_v38 = vld [vmem:[%s4624_s0 + $0x38] sm:$0xff] }
  0x28   :  { %1661 = vmatpush2.bf16.msra.mxu1 %v3032_v39  ;;  %1621 = vmatprep.subr.bf16.mxu0 %v3033_v40  ;;  %v3089_v20 = vld [vmem:[%s4623_s1 + $0x484] ss:$16 sps:$4 sm:$0xff]   ;;  %v3087_v22 = vld [vmem:[%s4623_s1 + $0x480] ss:$16 sps:$4 sm:$0xff]   ;;  %v3824_v40 = vpack.c.bf16 %v34_v38, %v34_v38  ;;  %v3192_v38 = vld [vmem:[%s4623_s1 + $0x268] ss:$16 sps:$4 sm:$0xff]  }
  0x29   :  { %1662 = vmatprep.subr.bf16.mxu1 %v3035_v41  ;;  %v3092_v21 = vld [vmem:[%s4623_s1 + $0x684] ss:$16 sps:$4 sm:$0xff]   ;;  %v3090_v23 = vld [vmem:[%s4623_s1 + $0x680] ss:$16 sps:$4 sm:$0xff]  }
  0x2a   :  { %v3095_v24 = vld [vmem:[%s4623_s1 + $0x464] ss:$16 sps:$4 sm:$0xff]   ;;  %v3093_v26 = vld [vmem:[%s4623_s1 + $0x460] ss:$16 sps:$4 sm:$0xff]  }
  0x2b   :  { %1622 = vmatpush2.bf16.msra.mxu0 %v3037_v42  ;;  %v3098_v25 = vld [vmem:[%s4623_s1 + $0x664] ss:$16 sps:$4 sm:$0xff]   ;;  %v3096_v27 = vld [vmem:[%s4623_s1 + $0x660] ss:$16 sps:$4 sm:$0xff]  }
  0x2c   :  { %1663 = vmatpush2.bf16.msra.mxu1 %v3038_v43  ;;  %1623 = vmatprep.subr.bf16.mxu0 %v3039_v44  ;;  %v3101_v28 = vld [vmem:[%s4623_s1 + $0x444] ss:$16 sps:$4 sm:$0xff]   ;;  %v3099_v30 = vld [vmem:[%s4623_s1 + $0x440] ss:$16 sps:$4 sm:$0xff]  }
  0x2d   :  { %1664 = vmatprep.subr.bf16.mxu1 %v3041_v45  ;;  %v3104_v29 = vld [vmem:[%s4623_s1 + $0x644] ss:$16 sps:$4 sm:$0xff]   ;;  %v3102_v31 = vld [vmem:[%s4623_s1 + $0x640] ss:$16 sps:$4 sm:$0xff]  }
  0x2e   :  { %v3107_v32 = vld [vmem:[%s4623_s1 + $0x424] ss:$16 sps:$4 sm:$0xff]   ;;  %v3105_v35 = vld [vmem:[%s4623_s1 + $0x420] ss:$16 sps:$4 sm:$0xff]  }
  0x2f   :  { %1624 = vmatpush2.bf16.msra.mxu0 %v3043_v47  ;;  %v3110_v33 = vld [vmem:[%s4623_s1 + $0x624] ss:$16 sps:$4 sm:$0xff]   ;;  %v3108_v36 = vld [vmem:[%s4623_s1 + $0x620] ss:$16 sps:$4 sm:$0xff]  }
  0x30   :  { %1665 = vmatpush2.bf16.msra.mxu1 %v3044_v48  ;;  %1625 = vmatprep.subr.bf16.mxu0 %v3045_v51  ;;  %v3113_v39 = vld [vmem:[%s4623_s1 + $0x404] ss:$16 sps:$4 sm:$0xff]   ;;  %v3111_v42 = vld [vmem:[%s4623_s1 + $0x400] ss:$16 sps:$4 sm:$0xff]  }
  0x31   :  { %1666 = vmatprep.subr.bf16.mxu1 %v3047_v53  ;;  %v3116_v41 = vld [vmem:[%s4623_s1 + $0x604] ss:$16 sps:$4 sm:$0xff]   ;;  %v3114_v43 = vld [vmem:[%s4623_s1 + $0x600] ss:$16 sps:$4 sm:$0xff]  }
  0x32   :  { %v3119_v44 = vld [vmem:[%s4623_s1 + $0x5e4] ss:$16 sps:$4 sm:$0xff]   ;;  %v3117_v46 = vld [vmem:[%s4623_s1 + $0x5e0] ss:$16 sps:$4 sm:$0xff]  }
  0x33   :  { %1626 = vmatpush2.bf16.msra.mxu0 %v3049_v54  ;;  %v3122_v45 = vld [vmem:[%s4623_s1 + $0x7e4] ss:$16 sps:$4 sm:$0xff]   ;;  %v3120_v47 = vld [vmem:[%s4623_s1 + $0x7e0] ss:$16 sps:$4 sm:$0xff]  }
  0x34   :  { %1667 = vmatpush2.bf16.msra.mxu1 %v3050_v55  ;;  %1627 = vmatprep.subr.bf16.mxu0 %v3051_v56  ;;  %v3125_v48 = vld [vmem:[%s4623_s1 + $0x5c4] ss:$16 sps:$4 sm:$0xff]   ;;  %v3123_v51 = vld [vmem:[%s4623_s1 + $0x5c0] ss:$16 sps:$4 sm:$0xff]  }
  0x35   :  { %1668 = vmatprep.subr.bf16.mxu1 %v3053_v57  ;;  %v3128_v50 = vld [vmem:[%s4623_s1 + $0x7c4] ss:$16 sps:$4 sm:$0xff]   ;;  %v3126_v53 = vld [vmem:[%s4623_s1 + $0x7c0] ss:$16 sps:$4 sm:$0xff]  }
  0x36   :  { %v3131_v54 = vld [vmem:[%s4623_s1 + $0x5a4] ss:$16 sps:$4 sm:$0xff]   ;;  %v3129_v56 = vld [vmem:[%s4623_s1 + $0x5a0] ss:$16 sps:$4 sm:$0xff]  }
  0x37   :  { %1628 = vmatpush2.bf16.msra.mxu0 %v3055_v58  ;;  %v3134_v55 = vld [vmem:[%s4623_s1 + $0x7a4] ss:$16 sps:$4 sm:$0xff]   ;;  %v3132_v57 = vld [vmem:[%s4623_s1 + $0x7a0] ss:$16 sps:$4 sm:$0xff]  }
  0x38   :  { %1669 = vmatpush2.bf16.msra.mxu1 %v3056_v59  ;;  %1629 = vmatprep.subr.bf16.mxu0 %v3057_v60  ;;  %v3137_v58 = vld [vmem:[%s4623_s1 + $0x584] ss:$16 sps:$4 sm:$0xff]   ;;  %v3135_v60 = vld [vmem:[%s4623_s1 + $0x580] ss:$16 sps:$4 sm:$0xff]  }
  0x39   :  { %1670 = vmatprep.subr.bf16.mxu1 %v3059_v61  ;;  %v3140_v59 = vld [vmem:[%s4623_s1 + $0x784] ss:$16 sps:$4 sm:$0xff]   ;;  %v3138_v61 = vld [vmem:[%s4623_s1 + $0x780] ss:$16 sps:$4 sm:$0xff]  }
  0x3a   :  { %v3147_v4 = vld [vmem:[%s4623_s1 + $0x540] ss:$16 sps:$4 sm:$0xff]  }
  0x3b   :  { %1630 = vmatpush2.bf16.msra.mxu0 %v3061_v62  ;;  %v3143_v62 = vld [vmem:[%s4623_s1 + $0x564] ss:$16 sps:$4 sm:$0xff]   ;;  %v3150_v5 = vld [vmem:[%s4623_s1 + $0x740] ss:$16 sps:$4 sm:$0xff]  }
  0x3c   :  { %1671 = vmatpush2.bf16.msra.mxu1 %v3062_v63  ;;  %1631 = vmatprep.subr.bf16.mxu0 %v3063_v0  ;;  %v3146_v63 = vld [vmem:[%s4623_s1 + $0x764] ss:$16 sps:$4 sm:$0xff]   ;;  %v3141_v0 = vld [vmem:[%s4623_s1 + $0x560] ss:$16 sps:$4 sm:$0xff]  }
  0x3d   :  { %1672 = vmatprep.subr.bf16.mxu1 %v3065_v1  ;;  %v3144_v1 = vld [vmem:[%s4623_s1 + $0x760] ss:$16 sps:$4 sm:$0xff]  }
  0x3f   :  { %1632 = vmatpush2.bf16.msra.mxu0 %v3067_v2  ;;  %v3149_v2 = vld [vmem:[%s4623_s1 + $0x544] ss:$16 sps:$4 sm:$0xff]  }
  0x40   :  { %1673 = vmatpush2.bf16.msra.mxu1 %v3068_v3  ;;  %1683 = vmatprep.subr.bf16.mxu0 %v3071_v6  ;;  %v3152_v3 = vld [vmem:[%s4623_s1 + $0x744] ss:$16 sps:$4 sm:$0xff]  }
  0x41   :  { %1724 = vmatprep.subr.bf16.mxu1 %v3074_v7  ;;  %v3155_v6 = vld [vmem:[%s4623_s1 + $0x524] ss:$16 sps:$4 sm:$0xff]  }
  0x42   :  { %1634 = vmatmul.mubr.bf16.vlgmr.msra.gmra.mxu0 %v3729_v8  ;;  %v3158_v7 = vld [vmem:[%s4623_s1 + $0x724] ss:$16 sps:$4 sm:$0xff]  }
  0x43   :  { %1675 = vmatmul.mubr.bf16.vlgmr.msra.gmra.mxu1 %v3731_v9  ;;  %1684 = vmatpush1.bf16.msra.mxu0 %v3069_v10  ;;  %v3153_v10 = vld [vmem:[%s4623_s1 + $0x520] ss:$16 sps:$4 sm:$0xff]  }
  0x44   :  { %1725 = vmatpush1.bf16.msra.mxu1 %v3072_v11  ;;  %1685 = vmatprep.subr.bf16.mxu0 %v3077_v12  ;;  %v3156_v11 = vld [vmem:[%s4623_s1 + $0x720] ss:$16 sps:$4 sm:$0xff]   ;;  %v3161_v12 = vld [vmem:[%s4623_s1 + $0x504] ss:$16 sps:$4 sm:$0xff]  }
  0x45   :  { %1726 = vmatprep.subr.bf16.mxu1 %v3080_v13  ;;  %1715 = vmatprep.mubr.bf16.mxu0 %v3816_v37  ;;  %v3164_v13 = vld [vmem:[%s4623_s1 + $0x704] ss:$16 sps:$4 sm:$0xff]  }
  0x46   :  { %1756 = vmatprep.mubr.bf16.mxu1 %v3824_v40 }
  0x47   :  { %1686 = vmatpush1.bf16.msra.mxu0 %v3075_v14  ;;  %v3159_v14 = vld [vmem:[%s4623_s1 + $0x500] ss:$16 sps:$4 sm:$0xff]  }
  0x48   :  { %1727 = vmatpush1.bf16.msra.mxu1 %v3078_v15  ;;  %1687 = vmatprep.subr.bf16.mxu0 %v3083_v16  ;;  %v3162_v15 = vld [vmem:[%s4623_s1 + $0x700] ss:$16 sps:$4 sm:$0xff]  }
  0x49   :  { %1728 = vmatprep.subr.bf16.mxu1 %v3086_v17  ;;  %v31_v16 = vld [vmem:[%s4624_s0 + $0x20] sm:$0xff]  ;;  %v33_v17 = vld [vmem:[%s4624_s0 + $0x30] sm:$0xff] }
  0x4b   :  { %1688 = vmatpush1.bf16.msra.mxu0 %v3081_v18  ;;  %v3167_v18 = vld [vmem:[%s4623_s1 + $0xec] ss:$16 sps:$4 sm:$0xff]  }
  0x4c   :  { %1729 = vmatpush1.bf16.msra.mxu1 %v3084_v19  ;;  %1689 = vmatprep.subr.bf16.mxu0 %v3089_v20  ;;  %v3170_v19 = vld [vmem:[%s4623_s1 + $0x2ec] ss:$16 sps:$4 sm:$0xff]   ;;  %v3945_v20 = vpack.c.bf16 %v31_v16, %v31_v16 }
  0x4d   :  { %1730 = vmatprep.subr.bf16.mxu1 %v3092_v21  ;;  %v3947_v21 = vpack.c.bf16 %v33_v17, %v33_v17  ;;  %v3251_v16 = vld [vmem:[%s4623_s1 + $0x12c] ss:$16 sps:$4 sm:$0xff]  }
  0x4e   :  { %v3254_v17 = vld [vmem:[%s4623_s1 + $0x32c] ss:$16 sps:$4 sm:$0xff]  }
  0x4f   :  { %1690 = vmatpush1.bf16.msra.mxu0 %v3087_v22  ;;  %v3165_v22 = vld [vmem:[%s4623_s1 + $0xe8] ss:$16 sps:$4 sm:$0xff]  }
  0x50   :  { %1731 = vmatpush1.bf16.msra.mxu1 %v3090_v23  ;;  %1691 = vmatprep.subr.bf16.mxu0 %v3095_v24  ;;  %v3168_v23 = vld [vmem:[%s4623_s1 + $0x2e8] ss:$16 sps:$4 sm:$0xff]   ;;  %v3173_v24 = vld [vmem:[%s4623_s1 + $0xcc] ss:$16 sps:$4 sm:$0xff]  }
  0x51   :  { %1732 = vmatprep.subr.bf16.mxu1 %v3098_v25  ;;  %v3176_v25 = vld [vmem:[%s4623_s1 + $0x2cc] ss:$16 sps:$4 sm:$0xff]  }
  0x53   :  { %1692 = vmatpush1.bf16.msra.mxu0 %v3093_v26  ;;  %v3171_v26 = vld [vmem:[%s4623_s1 + $0xc8] ss:$16 sps:$4 sm:$0xff]  }
  0x54   :  { %1733 = vmatpush1.bf16.msra.mxu1 %v3096_v27  ;;  %1693 = vmatprep.subr.bf16.mxu0 %v3101_v28  ;;  %v3174_v27 = vld [vmem:[%s4623_s1 + $0x2c8] ss:$16 sps:$4 sm:$0xff]   ;;  %v3179_v28 = vld [vmem:[%s4623_s1 + $0xac] ss:$16 sps:$4 sm:$0xff]  }
  0x55   :  { %1734 = vmatprep.subr.bf16.mxu1 %v3104_v29  ;;  %v3182_v29 = vld [vmem:[%s4623_s1 + $0x2ac] ss:$16 sps:$4 sm:$0xff]  }
  0x57   :  { %1694 = vmatpush1.bf16.msra.mxu0 %v3099_v30  ;;  %v3177_v30 = vld [vmem:[%s4623_s1 + $0xa8] ss:$16 sps:$4 sm:$0xff]  }
  0x58   :  { %1735 = vmatpush1.bf16.msra.mxu1 %v3102_v31  ;;  %1695 = vmatprep.subr.bf16.mxu0 %v3107_v32  ;;  %v3180_v31 = vld [vmem:[%s4623_s1 + $0x2a8] ss:$16 sps:$4 sm:$0xff]   ;;  %v3185_v32 = vld [vmem:[%s4623_s1 + $0x8c] ss:$16 sps:$4 sm:$0xff]  }
  0x59   :  { %1736 = vmatprep.subr.bf16.mxu1 %v3110_v33  ;;  %v3186_v33 = vld [vmem:[%s4623_s1 + $0x288] ss:$16 sps:$4 sm:$0xff]  }
  0x5b   :  { %1696 = vmatpush1.bf16.msra.mxu0 %v3105_v35  ;;  %v3194_v35 = vld [vmem:[%s4623_s1 + $0x26c] ss:$16 sps:$4 sm:$0xff]  }
  0x5c   :  { %1737 = vmatpush1.bf16.msra.mxu1 %v3108_v36  ;;  %1697 = vmatprep.subr.bf16.mxu0 %v3113_v39  ;;  %v3189_v36 = vld [vmem:[%s4623_s1 + $0x68] ss:$16 sps:$4 sm:$0xff]   ;;  %v3197_v39 = vld [vmem:[%s4623_s1 + $0x4c] ss:$16 sps:$4 sm:$0xff]  }
  0x5d   :  { %1738 = vmatprep.subr.bf16.mxu1 %v3116_v41  ;;  %v3200_v41 = vld [vmem:[%s4623_s1 + $0x24c] ss:$16 sps:$4 sm:$0xff]  }
  0x5f   :  { %1698 = vmatpush1.bf16.msra.mxu0 %v3111_v42  ;;  %v3195_v42 = vld [vmem:[%s4623_s1 + $0x48] ss:$16 sps:$4 sm:$0xff]  }
  0x60   :  { %1739 = vmatpush1.bf16.msra.mxu1 %v3114_v43  ;;  %1699 = vmatprep.subr.bf16.mxu0 %v3119_v44  ;;  %v3198_v43 = vld [vmem:[%s4623_s1 + $0x248] ss:$16 sps:$4 sm:$0xff]   ;;  %v3203_v44 = vld [vmem:[%s4623_s1 + $0x2c] ss:$16 sps:$4 sm:$0xff]  }
  0x61   :  { %1740 = vmatprep.subr.bf16.mxu1 %v3122_v45  ;;  %v3206_v45 = vld [vmem:[%s4623_s1 + $0x22c] ss:$16 sps:$4 sm:$0xff]  }
  0x63   :  { %1700 = vmatpush2.bf16.msra.mxu0 %v3117_v46  ;;  %v3201_v46 = vld [vmem:[%s4623_s1 + $0x28] ss:$16 sps:$4 sm:$0xff]  }
  0x64   :  { %1741 = vmatpush2.bf16.msra.mxu1 %v3120_v47  ;;  %1701 = vmatprep.subr.bf16.mxu0 %v3125_v48  ;;  %v3204_v47 = vld [vmem:[%s4623_s1 + $0x228] ss:$16 sps:$4 sm:$0xff]   ;;  %v3209_v48 = vld [vmem:[%s4623_s1 + $0xc] ss:$16 sps:$4 sm:$0xff]  }
  0x65   :  { %1742 = vmatprep.subr.bf16.mxu1 %v3128_v50  ;;  %v3212_v50 = vld [vmem:[%s4623_s1 + $0x20c] ss:$16 sps:$4 sm:$0xff]  }
  0x67   :  { %1702 = vmatpush2.bf16.msra.mxu0 %v3123_v51  ;;  %v3207_v51 = vld [vmem:[%s4623_s1 + $0x8] ss:$16 sps:$4 sm:$0xff]  }
  0x68   :  { %1743 = vmatpush2.bf16.msra.mxu1 %v3126_v53  ;;  %1703 = vmatprep.subr.bf16.mxu0 %v3131_v54  ;;  %v3210_v53 = vld [vmem:[%s4623_s1 + $0x208] ss:$16 sps:$4 sm:$0xff]   ;;  %v3215_v54 = vld [vmem:[%s4623_s1 + $0x1ec] ss:$16 sps:$4 sm:$0xff]  }
  0x69   :  { %1744 = vmatprep.subr.bf16.mxu1 %v3134_v55  ;;  %v3218_v55 = vld [vmem:[%s4623_s1 + $0x3ec] ss:$16 sps:$4 sm:$0xff]  }
  0x6b   :  { %1704 = vmatpush2.bf16.msra.mxu0 %v3129_v56  ;;  %v3213_v56 = vld [vmem:[%s4623_s1 + $0x1e8] ss:$16 sps:$4 sm:$0xff]  }
  0x6c   :  { %1745 = vmatpush2.bf16.msra.mxu1 %v3132_v57  ;;  %1705 = vmatprep.subr.bf16.mxu0 %v3137_v58  ;;  %v3216_v57 = vld [vmem:[%s4623_s1 + $0x3e8] ss:$16 sps:$4 sm:$0xff]   ;;  %v3221_v58 = vld [vmem:[%s4623_s1 + $0x1cc] ss:$16 sps:$4 sm:$0xff]  }
  0x6d   :  { %1746 = vmatprep.subr.bf16.mxu1 %v3140_v59  ;;  %v3224_v59 = vld [vmem:[%s4623_s1 + $0x3cc] ss:$16 sps:$4 sm:$0xff]  }
  0x6f   :  { %1706 = vmatpush2.bf16.msra.mxu0 %v3135_v60  ;;  %v3219_v60 = vld [vmem:[%s4623_s1 + $0x1c8] ss:$16 sps:$4 sm:$0xff]  }
  0x70   :  { %1747 = vmatpush2.bf16.msra.mxu1 %v3138_v61  ;;  %1707 = vmatprep.subr.bf16.mxu0 %v3143_v62  ;;  %v3222_v61 = vld [vmem:[%s4623_s1 + $0x3c8] ss:$16 sps:$4 sm:$0xff]   ;;  %v3227_v62 = vld [vmem:[%s4623_s1 + $0x1ac] ss:$16 sps:$4 sm:$0xff]  }
  0x71   :  { %1748 = vmatprep.subr.bf16.mxu1 %v3146_v63  ;;  %v3230_v63 = vld [vmem:[%s4623_s1 + $0x3ac] ss:$16 sps:$4 sm:$0xff]  }
  0x73   :  { %1708 = vmatpush2.bf16.msra.mxu0 %v3141_v0  ;;  %v3225_v0 = vld [vmem:[%s4623_s1 + $0x1a8] ss:$16 sps:$4 sm:$0xff]  }
  0x74   :  { %1749 = vmatpush2.bf16.msra.mxu1 %v3144_v1  ;;  %1709 = vmatprep.subr.bf16.mxu0 %v3149_v2  ;;  %v3228_v1 = vld [vmem:[%s4623_s1 + $0x3a8] ss:$16 sps:$4 sm:$0xff]   ;;  %v3233_v2 = vld [vmem:[%s4623_s1 + $0x18c] ss:$16 sps:$4 sm:$0xff]  }
  0x75   :  { %1750 = vmatprep.subr.bf16.mxu1 %v3152_v3  ;;  %v3236_v3 = vld [vmem:[%s4623_s1 + $0x38c] ss:$16 sps:$4 sm:$0xff]  }
  0x77   :  { %1710 = vmatpush2.bf16.msra.mxu0 %v3147_v4  ;;  %v3231_v4 = vld [vmem:[%s4623_s1 + $0x188] ss:$16 sps:$4 sm:$0xff]  }
  0x78   :  { %1751 = vmatpush2.bf16.msra.mxu1 %v3150_v5  ;;  %1711 = vmatprep.subr.bf16.mxu0 %v3155_v6  ;;  %v3234_v5 = vld [vmem:[%s4623_s1 + $0x388] ss:$16 sps:$4 sm:$0xff]   ;;  %v3239_v6 = vld [vmem:[%s4623_s1 + $0x16c] ss:$16 sps:$4 sm:$0xff]  }
  0x79   :  { %1752 = vmatprep.subr.bf16.mxu1 %v3158_v7  ;;  %v3242_v7 = vld [vmem:[%s4623_s1 + $0x36c] ss:$16 sps:$4 sm:$0xff]  }
  0x7b   :  { %1712 = vmatpush2.bf16.msra.mxu0 %v3153_v10  ;;  %v3237_v10 = vld [vmem:[%s4623_s1 + $0x168] ss:$16 sps:$4 sm:$0xff]  }
  0x7c   :  { %1753 = vmatpush2.bf16.msra.mxu1 %v3156_v11  ;;  %1713 = vmatprep.subr.bf16.mxu0 %v3161_v12  ;;  %v3240_v11 = vld [vmem:[%s4623_s1 + $0x368] ss:$16 sps:$4 sm:$0xff]   ;;  %v3245_v12 = vld [vmem:[%s4623_s1 + $0x14c] ss:$16 sps:$4 sm:$0xff]  }
  0x7d   :  { %1754 = vmatprep.subr.bf16.mxu1 %v3164_v13  ;;  %v3248_v13 = vld [vmem:[%s4623_s1 + $0x34c] ss:$16 sps:$4 sm:$0xff]  }
  0x7f   :  { %1714 = vmatpush2.bf16.msra.mxu0 %v3159_v14  ;;  %v3243_v14 = vld [vmem:[%s4623_s1 + $0x148] ss:$16 sps:$4 sm:$0xff]  }
  0x80   :  { %1755 = vmatpush2.bf16.msra.mxu1 %v3162_v15  ;;  %1765 = vmatprep.subr.bf16.mxu0 %v3167_v18  ;;  %v3246_v15 = vld [vmem:[%s4623_s1 + $0x348] ss:$16 sps:$4 sm:$0xff]  }
  0x81   :  { %1806 = vmatprep.subr.bf16.mxu1 %v3170_v19  ;;  %v3249_v18 = vld [vmem:[%s4623_s1 + $0x128] ss:$16 sps:$4 sm:$0xff]  }
  0x82   :  { %1716 = vmatmul.mubr.bf16.vlgmr.msra.gmra.mxu0 %v3945_v20  ;;  %v3252_v19 = vld [vmem:[%s4623_s1 + $0x328] ss:$16 sps:$4 sm:$0xff]  }
  0x83   :  { %1757 = vmatmul.mubr.bf16.vlgmr.msra.gmra.mxu1 %v3947_v21  ;;  %1766 = vmatpush1.bf16.msra.mxu0 %v3165_v22  ;;  %v3257_v22 = vld [vmem:[%s4623_s1 + $0x10c] ss:$16 sps:$4 sm:$0xff]  }
  0x84   :  { %1807 = vmatpush1.bf16.msra.mxu1 %v3168_v23  ;;  %1767 = vmatprep.subr.bf16.mxu0 %v3173_v24  ;;  %v3260_v23 = vld [vmem:[%s4623_s1 + $0x30c] ss:$16 sps:$4 sm:$0xff]   ;;  %v3255_v24 = vld [vmem:[%s4623_s1 + $0x108] ss:$16 sps:$4 sm:$0xff]  }
  0x85   :  { %1808 = vmatprep.subr.bf16.mxu1 %v3176_v25  ;;  %1797 = vmatprep.mubr.bf16.mxu0 %v3660_v49  ;;  %v3188_v49 = vld [vmem:[%s4623_s1 + $0x28c] ss:$16 sps:$4 sm:$0xff]   ;;  %v3258_v25 = vld [vmem:[%s4623_s1 + $0x308] ss:$16 sps:$4 sm:$0xff]  }
  0x86   :  { %1838 = vmatprep.mubr.bf16.mxu1 %v3668_v52  ;;  %v3183_v52 = vld [vmem:[%s4623_s1 + $0x88] ss:$16 sps:$4 sm:$0xff]  }
  0x87   :  { %1768 = vmatpush1.bf16.msra.mxu0 %v3171_v26  ;;  %v3263_v26 = vld [vmem:[%s4623_s1 + $0x4ec] ss:$16 sps:$4 sm:$0xff]  }
  0x88   :  { %1809 = vmatpush1.bf16.msra.mxu1 %v3174_v27  ;;  %1769 = vmatprep.subr.bf16.mxu0 %v3179_v28  ;;  %v3266_v27 = vld [vmem:[%s4623_s1 + $0x6ec] ss:$16 sps:$4 sm:$0xff]   ;;  %v3261_v28 = vld [vmem:[%s4623_s1 + $0x4e8] ss:$16 sps:$4 sm:$0xff]  }
  0x89   :  { %1810 = vmatprep.subr.bf16.mxu1 %v3182_v29  ;;  %v3264_v29 = vld [vmem:[%s4623_s1 + $0x6e8] ss:$16 sps:$4 sm:$0xff]  }
  0x8b   :  { %1770 = vmatpush1.bf16.msra.mxu0 %v3177_v30  ;;  %v3269_v30 = vld [vmem:[%s4623_s1 + $0x4cc] ss:$16 sps:$4 sm:$0xff]  }
  0x8c   :  { %1811 = vmatpush1.bf16.msra.mxu1 %v3180_v31  ;;  %1771 = vmatprep.subr.bf16.mxu0 %v3185_v32  ;;  %v3272_v31 = vld [vmem:[%s4623_s1 + $0x6cc] ss:$16 sps:$4 sm:$0xff]   ;;  %v3267_v32 = vld [vmem:[%s4623_s1 + $0x4c8] ss:$16 sps:$4 sm:$0xff]  }
  0x8d   :  { %1812 = vmatprep.subr.bf16.mxu1 %v3188_v49  ;;  %v3270_v49 = vld [vmem:[%s4623_s1 + $0x6c8] ss:$16 sps:$4 sm:$0xff]  }
  0x8f   :  { %1772 = vmatpush1.bf16.msra.mxu0 %v3183_v52  ;;  %v3275_v52 = vld [vmem:[%s4623_s1 + $0x4ac] ss:$16 sps:$4 sm:$0xff]  }
  0x90   :  { %1813 = vmatpush1.bf16.msra.mxu1 %v3186_v33  ;;  %1773 = vmatprep.subr.bf16.mxu0 %v3191_v34  ;;  %v3278_v33 = vld [vmem:[%s4623_s1 + $0x6ac] ss:$16 sps:$4 sm:$0xff]   ;;  %v3273_v34 = vld [vmem:[%s4623_s1 + $0x4a8] ss:$16 sps:$4 sm:$0xff]  }
  0x91   :  { %1814 = vmatprep.subr.bf16.mxu1 %v3194_v35  ;;  %v3284_v35 = vld [vmem:[%s4623_s1 + $0x68c] ss:$16 sps:$4 sm:$0xff]  }
  0x93   :  { %1774 = vmatpush1.bf16.msra.mxu0 %v3189_v36  ;;  %v3279_v36 = vld [vmem:[%s4623_s1 + $0x488] ss:$16 sps:$4 sm:$0xff]  }
  0x94   :  { %1815 = vmatpush1.bf16.msra.mxu1 %v3192_v38  ;;  %1775 = vmatprep.subr.bf16.mxu0 %v3197_v39  ;;  %v3290_v38 = vld [vmem:[%s4623_s1 + $0x66c] ss:$16 sps:$4 sm:$0xff]   ;;  %v3285_v39 = vld [vmem:[%s4623_s1 + $0x468] ss:$16 sps:$4 sm:$0xff]  }
  0x95   :  { %1816 = vmatprep.subr.bf16.mxu1 %v3200_v41  ;;  %v3288_v41 = vld [vmem:[%s4623_s1 + $0x668] ss:$16 sps:$4 sm:$0xff]  }
  0x97   :  { %1776 = vmatpush1.bf16.msra.mxu0 %v3195_v42  ;;  %v3293_v42 = vld [vmem:[%s4623_s1 + $0x44c] ss:$16 sps:$4 sm:$0xff]  }
  0x98   :  { %1817 = vmatpush1.bf16.msra.mxu1 %v3198_v43  ;;  %1777 = vmatprep.subr.bf16.mxu0 %v3203_v44  ;;  %v3296_v43 = vld [vmem:[%s4623_s1 + $0x64c] ss:$16 sps:$4 sm:$0xff]   ;;  %v3291_v44 = vld [vmem:[%s4623_s1 + $0x448] ss:$16 sps:$4 sm:$0xff]  }
  0x99   :  { %1818 = vmatprep.subr.bf16.mxu1 %v3206_v45  ;;  %v3294_v45 = vld [vmem:[%s4623_s1 + $0x648] ss:$16 sps:$4 sm:$0xff]  }
  0x9b   :  { %1778 = vmatpush1.bf16.msra.mxu0 %v3201_v46  ;;  %v3299_v46 = vld [vmem:[%s4623_s1 + $0x42c] ss:$16 sps:$4 sm:$0xff]  }
  0x9c   :  { %1819 = vmatpush1.bf16.msra.mxu1 %v3204_v47  ;;  %1779 = vmatprep.subr.bf16.mxu0 %v3209_v48  ;;  %v3302_v47 = vld [vmem:[%s4623_s1 + $0x62c] ss:$16 sps:$4 sm:$0xff]   ;;  %v3297_v48 = vld [vmem:[%s4623_s1 + $0x428] ss:$16 sps:$4 sm:$0xff]  }
  0x9d   :  { %1820 = vmatprep.subr.bf16.mxu1 %v3212_v50  ;;  %v3300_v50 = vld [vmem:[%s4623_s1 + $0x628] ss:$16 sps:$4 sm:$0xff]  }
  0x9f   :  { %1780 = vmatpush1.bf16.msra.mxu0 %v3207_v51  ;;  %v3305_v51 = vld [vmem:[%s4623_s1 + $0x40c] ss:$16 sps:$4 sm:$0xff]  }
  0xa0   :  { %1821 = vmatpush1.bf16.msra.mxu1 %v3210_v53  ;;  %1781 = vmatprep.subr.bf16.mxu0 %v3215_v54  ;;  %v3308_v53 = vld [vmem:[%s4623_s1 + $0x60c] ss:$16 sps:$4 sm:$0xff]   ;;  %v3303_v54 = vld [vmem:[%s4623_s1 + $0x408] ss:$16 sps:$4 sm:$0xff]  }
  0xa1   :  { %1822 = vmatprep.subr.bf16.mxu1 %v3218_v55  ;;  %v3306_v55 = vld [vmem:[%s4623_s1 + $0x608] ss:$16 sps:$4 sm:$0xff]  }
  0xa3   :  { %1782 = vmatpush2.bf16.msra.mxu0 %v3213_v56  ;;  %v3311_v56 = vld [vmem:[%s4623_s1 + $0x5ec] ss:$16 sps:$4 sm:$0xff]  }
  0xa4   :  { %1823 = vmatpush2.bf16.msra.mxu1 %v3216_v57  ;;  %1783 = vmatprep.subr.bf16.mxu0 %v3221_v58  ;;  %v3314_v57 = vld [vmem:[%s4623_s1 + $0x7ec] ss:$16 sps:$4 sm:$0xff]   ;;  %v3309_v58 = vld [vmem:[%s4623_s1 + $0x5e8] ss:$16 sps:$4 sm:$0xff]  }
  0xa5   :  { %1824 = vmatprep.subr.bf16.mxu1 %v3224_v59  ;;  %v3312_v59 = vld [vmem:[%s4623_s1 + $0x7e8] ss:$16 sps:$4 sm:$0xff]  }
  0xa7   :  { %1784 = vmatpush2.bf16.msra.mxu0 %v3219_v60  ;;  %v3317_v60 = vld [vmem:[%s4623_s1 + $0x5cc] ss:$16 sps:$4 sm:$0xff]  }
  0xa8   :  { %1825 = vmatpush2.bf16.msra.mxu1 %v3222_v61  ;;  %1785 = vmatprep.subr.bf16.mxu0 %v3227_v62  ;;  %v3320_v61 = vld [vmem:[%s4623_s1 + $0x7cc] ss:$16 sps:$4 sm:$0xff]   ;;  %v3315_v62 = vld [vmem:[%s4623_s1 + $0x5c8] ss:$16 sps:$4 sm:$0xff]  }
  0xa9   :  { %1826 = vmatprep.subr.bf16.mxu1 %v3230_v63  ;;  %v3318_v63 = vld [vmem:[%s4623_s1 + $0x7c8] ss:$16 sps:$4 sm:$0xff]  }
  0xab   :  { %1786 = vmatpush2.bf16.msra.mxu0 %v3225_v0  ;;  %v3323_v0 = vld [vmem:[%s4623_s1 + $0x5ac] ss:$16 sps:$4 sm:$0xff]  }
  0xac   :  { %1827 = vmatpush2.bf16.msra.mxu1 %v3228_v1  ;;  %1787 = vmatprep.subr.bf16.mxu0 %v3233_v2  ;;  %v3326_v1 = vld [vmem:[%s4623_s1 + $0x7ac] ss:$16 sps:$4 sm:$0xff]   ;;  %v3321_v2 = vld [vmem:[%s4623_s1 + $0x5a8] ss:$16 sps:$4 sm:$0xff]  }
  0xad   :  { %1828 = vmatprep.subr.bf16.mxu1 %v3236_v3  ;;  %v3324_v3 = vld [vmem:[%s4623_s1 + $0x7a8] ss:$16 sps:$4 sm:$0xff]  }
  0xaf   :  { %1788 = vmatpush2.bf16.msra.mxu0 %v3231_v4  ;;  %v3329_v4 = vld [vmem:[%s4623_s1 + $0x58c] ss:$16 sps:$4 sm:$0xff]  }
  0xb0   :  { %1829 = vmatpush2.bf16.msra.mxu1 %v3234_v5  ;;  %1789 = vmatprep.subr.bf16.mxu0 %v3239_v6  ;;  %v3332_v5 = vld [vmem:[%s4623_s1 + $0x78c] ss:$16 sps:$4 sm:$0xff]   ;;  %v3327_v6 = vld [vmem:[%s4623_s1 + $0x588] ss:$16 sps:$4 sm:$0xff]  }
  0xb1   :  { %1830 = vmatprep.subr.bf16.mxu1 %v3242_v7  ;;  %v3330_v7 = vld [vmem:[%s4623_s1 + $0x788] ss:$16 sps:$4 sm:$0xff]  }
  0xb3   :  { %1790 = vmatpush2.bf16.msra.mxu0 %v3237_v10  ;;  %v3335_v10 = vld [vmem:[%s4623_s1 + $0x56c] ss:$16 sps:$4 sm:$0xff]  }
  0xb4   :  { %1831 = vmatpush2.bf16.msra.mxu1 %v3240_v11  ;;  %1791 = vmatprep.subr.bf16.mxu0 %v3245_v12  ;;  %v3338_v11 = vld [vmem:[%s4623_s1 + $0x76c] ss:$16 sps:$4 sm:$0xff]   ;;  %v3333_v12 = vld [vmem:[%s4623_s1 + $0x568] ss:$16 sps:$4 sm:$0xff]  }
  0xb5   :  { %1832 = vmatprep.subr.bf16.mxu1 %v3248_v13  ;;  %v3336_v13 = vld [vmem:[%s4623_s1 + $0x768] ss:$16 sps:$4 sm:$0xff]  }
  0xb7   :  { %1792 = vmatpush2.bf16.msra.mxu0 %v3243_v14  ;;  %v3341_v14 = vld [vmem:[%s4623_s1 + $0x54c] ss:$16 sps:$4 sm:$0xff]  }
  0xb8   :  { %1833 = vmatpush2.bf16.msra.mxu1 %v3246_v15  ;;  %1793 = vmatprep.subr.bf16.mxu0 %v3251_v16  ;;  %v3344_v15 = vld [vmem:[%s4623_s1 + $0x74c] ss:$16 sps:$4 sm:$0xff]   ;;  %v3339_v16 = vld [vmem:[%s4623_s1 + $0x548] ss:$16 sps:$4 sm:$0xff]  }
  0xb9   :  { %1834 = vmatprep.subr.bf16.mxu1 %v3254_v17  ;;  %v3342_v17 = vld [vmem:[%s4623_s1 + $0x748] ss:$16 sps:$4 sm:$0xff]  }
  0xbb   :  { %1794 = vmatpush2.bf16.msra.mxu0 %v3249_v18  ;;  %v3347_v18 = vld [vmem:[%s4623_s1 + $0x52c] ss:$16 sps:$4 sm:$0xff]  }
  0xbc   :  { %1835 = vmatpush2.bf16.msra.mxu1 %v3252_v19  ;;  %1795 = vmatprep.subr.bf16.mxu0 %v3257_v22  ;;  %v3350_v19 = vld [vmem:[%s4623_s1 + $0x72c] ss:$16 sps:$4 sm:$0xff]   ;;  %v3345_v22 = vld [vmem:[%s4623_s1 + $0x528] ss:$16 sps:$4 sm:$0xff]  }
  0xbd   :  { %1836 = vmatprep.subr.bf16.mxu1 %v3260_v23  ;;  %v3348_v23 = vld [vmem:[%s4623_s1 + $0x728] ss:$16 sps:$4 sm:$0xff]  }
  0xbf   :  { %1796 = vmatpush2.bf16.msra.mxu0 %v3255_v24  ;;  %v3353_v24 = vld [vmem:[%s4623_s1 + $0x50c] ss:$16 sps:$4 sm:$0xff]  }
  0xc0   :  { %1837 = vmatpush2.bf16.msra.mxu1 %v3258_v25  ;;  %1847 = vmatprep.subr.bf16.mxu0 %v3263_v26  ;;  %v3356_v25 = vld [vmem:[%s4623_s1 + $0x70c] ss:$16 sps:$4 sm:$0xff]   ;;  %v3351_v26 = vld [vmem:[%s4623_s1 + $0x508] ss:$16 sps:$4 sm:$0xff]  }
  0xc1   :  { %1888 = vmatprep.subr.bf16.mxu1 %v3266_v27  ;;  %v3354_v27 = vld [vmem:[%s4623_s1 + $0x708] ss:$16 sps:$4 sm:$0xff]  }
  0xc2   :  { %1798 = vmatmul.mubr.bf16.vlgmr.msra.gmra.mxu0 %v3729_v8  ;;  %v3276_v8 = vld [vmem:[%s4623_s1 + $0x6a8] ss:$16 sps:$4 sm:$0xff]  }
  0xc3   :  { %1839 = vmatmul.mubr.bf16.vlgmr.msra.gmra.mxu1 %v3731_v9  ;;  %1848 = vmatpush1.bf16.msra.mxu0 %v3261_v28  ;;  %v3281_v9 = vld [vmem:[%s4623_s1 + $0x48c] ss:$16 sps:$4 sm:$0xff]  }
  0xc4   :  { %1889 = vmatpush1.bf16.msra.mxu1 %v3264_v29  ;;  %1849 = vmatprep.subr.bf16.mxu0 %v3269_v30  ;;  %v3359_v28 = vld [vmem:[%s4625_s3 + $0x74] ss:$8 sps:$4 sm:$0xff]   ;;  %v3357_v29 = vld [vmem:[%s4625_s3 + $0x70] ss:$8 sps:$4 sm:$0xff]   ;;  %v3362_v30 = vld [vmem:[%s4625_s3 + $0x64] ss:$8 sps:$4 sm:$0xff]  }
  0xc5   :  { %1890 = vmatprep.subr.bf16.mxu1 %v3272_v31  ;;  %1879 = vmatprep.mubr.bf16.mxu0 %v3816_v37  ;;  %v3282_v37 = vld [vmem:[%s4623_s1 + $0x688] ss:$16 sps:$4 sm:$0xff]  }
  0xc6   :  { %1920 = vmatprep.mubr.bf16.mxu1 %v3824_v40  ;;  %v3287_v40 = vld [vmem:[%s4623_s1 + $0x46c] ss:$16 sps:$4 sm:$0xff]  }
  0xc7   :  { %1850 = vmatpush1.bf16.msra.mxu0 %v3267_v32 }
  0xc8   :  { %1891 = vmatpush1.bf16.msra.mxu1 %v3270_v49  ;;  %1851 = vmatprep.subr.bf16.mxu0 %v3275_v52  ;;  %v3360_v49 = vld [vmem:[%s4625_s3 + $0x60] ss:$8 sps:$4 sm:$0xff]  }
  0xc9   :  { %1892 = vmatprep.subr.bf16.mxu1 %v3278_v33 }
  0xcb   :  { %1852 = vmatpush1.bf16.msra.mxu0 %v3273_v34  ;;  %v3365_v34 = vld [vmem:[%s4625_s3 + $0x54] ss:$8 sps:$4 sm:$0xff]  }
  0xcc   :  { %1893 = vmatpush1.bf16.msra.mxu1 %v3276_v8  ;;  %1853 = vmatprep.subr.bf16.mxu0 %v3281_v9 }
  0xcd   :  { %1894 = vmatprep.subr.bf16.mxu1 %v3284_v35 }
  0xcf   :  { %1854 = vmatpush1.bf16.msra.mxu0 %v3279_v36  ;;  %v3368_v36 = vld [vmem:[%s4625_s3 + $0x44] ss:$8 sps:$4 sm:$0xff]  }
  0xd0   :  { %1895 = vmatpush1.bf16.msra.mxu1 %v3282_v37  ;;  %1855 = vmatprep.subr.bf16.mxu0 %v3287_v40  ;;  %v3405_v37 = vld [vmem:[%s4625_s3 + $0x170] ss:$8 sps:$4 sm:$0xff]   ;;  %v3407_v40 = vld [vmem:[%s4625_s3 + $0x174] ss:$8 sps:$4 sm:$0xff]  }
  0xd1   :  { %1896 = vmatprep.subr.bf16.mxu1 %v3290_v38  ;;  %v3410_v38 = vld [vmem:[%s4625_s3 + $0x164] ss:$8 sps:$4 sm:$0xff]  }
  0xd3   :  { %1856 = vmatpush1.bf16.msra.mxu0 %v3285_v39  ;;  %v3366_v39 = vld [vmem:[%s4625_s3 + $0x40] ss:$8 sps:$4 sm:$0xff]  }
  0xd4   :  { %1897 = vmatpush1.bf16.msra.mxu1 %v3288_v41  ;;  %1857 = vmatprep.subr.bf16.mxu0 %v3293_v42  ;;  %v3408_v41 = vld [vmem:[%s4625_s3 + $0x160] ss:$8 sps:$4 sm:$0xff]   ;;  %v3371_v42 = vld [vmem:[%s4625_s3 + $0x34] ss:$8 sps:$4 sm:$0xff]  }
  0xd5   :  { %1898 = vmatprep.subr.bf16.mxu1 %v3296_v43  ;;  %v3413_v43 = vld [vmem:[%s4625_s3 + $0x154] ss:$8 sps:$4 sm:$0xff]  }
  0xd7   :  { %1858 = vmatpush1.bf16.msra.mxu0 %v3291_v44  ;;  %v3369_v44 = vld [vmem:[%s4625_s3 + $0x30] ss:$8 sps:$4 sm:$0xff]  }
  0xd8   :  { %1899 = vmatpush1.bf16.msra.mxu1 %v3294_v45  ;;  %1859 = vmatprep.subr.bf16.mxu0 %v3299_v46  ;;  %v3411_v45 = vld [vmem:[%s4625_s3 + $0x150] ss:$8 sps:$4 sm:$0xff]   ;;  %v3374_v46 = vld [vmem:[%s4625_s3 + $0x24] ss:$8 sps:$4 sm:$0xff]  }
  0xd9   :  { %1900 = vmatprep.subr.bf16.mxu1 %v3302_v47  ;;  %v3416_v47 = vld [vmem:[%s4625_s3 + $0x144] ss:$8 sps:$4 sm:$0xff]  }
  0xdb   :  { %1860 = vmatpush1.bf16.msra.mxu0 %v3297_v48  ;;  %v3372_v48 = vld [vmem:[%s4625_s3 + $0x20] ss:$8 sps:$4 sm:$0xff]  }
  0xdc   :  { %1901 = vmatpush1.bf16.msra.mxu1 %v3300_v50  ;;  %1861 = vmatprep.subr.bf16.mxu0 %v3305_v51  ;;  %v3414_v50 = vld [vmem:[%s4625_s3 + $0x140] ss:$8 sps:$4 sm:$0xff]   ;;  %v3377_v51 = vld [vmem:[%s4625_s3 + $0x14] ss:$8 sps:$4 sm:$0xff]  }
  0xdd   :  { %1902 = vmatprep.subr.bf16.mxu1 %v3308_v53  ;;  %v3419_v53 = vld [vmem:[%s4625_s3 + $0x134] ss:$8 sps:$4 sm:$0xff]  }
  0xdf   :  { %1862 = vmatpush1.bf16.msra.mxu0 %v3303_v54  ;;  %v3375_v54 = vld [vmem:[%s4625_s3 + $0x10] ss:$8 sps:$4 sm:$0xff]  }
  0xe0   :  { %1903 = vmatpush1.bf16.msra.mxu1 %v3306_v55  ;;  %1863 = vmatprep.subr.bf16.mxu0 %v3311_v56  ;;  %v3417_v55 = vld [vmem:[%s4625_s3 + $0x130] ss:$8 sps:$4 sm:$0xff]   ;;  %v3380_v56 = vld [vmem:[%s4625_s3 + $0x4] ss:$8 sps:$4 sm:$0xff]  }
  0xe1   :  { %1904 = vmatprep.subr.bf16.mxu1 %v3314_v57  ;;  %v3422_v57 = vld [vmem:[%s4625_s3 + $0x124] ss:$8 sps:$4 sm:$0xff]  }
  0xe3   :  { %1864 = vmatpush2.bf16.msra.mxu0 %v3309_v58  ;;  %v3378_v58 = vld [vmem:[%s4625_s3] ss:$8 sps:$4 sm:$0xff]  }
  0xe4   :  { %1905 = vmatpush2.bf16.msra.mxu1 %v3312_v59  ;;  %1865 = vmatprep.subr.bf16.mxu0 %v3317_v60  ;;  %v3420_v59 = vld [vmem:[%s4625_s3 + $0x120] ss:$8 sps:$4 sm:$0xff]   ;;  %v3383_v60 = vld [vmem:[%s4625_s3 + $0xf4] ss:$8 sps:$4 sm:$0xff]  }
  0xe5   :  { %1906 = vmatprep.subr.bf16.mxu1 %v3320_v61  ;;  %v3425_v61 = vld [vmem:[%s4625_s3 + $0x114] ss:$8 sps:$4 sm:$0xff]  }
  0xe7   :  { %1866 = vmatpush2.bf16.msra.mxu0 %v3315_v62  ;;  %v3381_v62 = vld [vmem:[%s4625_s3 + $0xf0] ss:$8 sps:$4 sm:$0xff]  }
  0xe8   :  { %1907 = vmatpush2.bf16.msra.mxu1 %v3318_v63  ;;  %1867 = vmatprep.subr.bf16.mxu0 %v3323_v0  ;;  %v3423_v63 = vld [vmem:[%s4625_s3 + $0x110] ss:$8 sps:$4 sm:$0xff]   ;;  %v3386_v0 = vld [vmem:[%s4625_s3 + $0xe4] ss:$8 sps:$4 sm:$0xff]  }
  0xe9   :  { %1908 = vmatprep.subr.bf16.mxu1 %v3326_v1  ;;  %v3428_v1 = vld [vmem:[%s4625_s3 + $0x104] ss:$8 sps:$4 sm:$0xff]  }
  0xeb   :  { %1868 = vmatpush2.bf16.msra.mxu0 %v3321_v2  ;;  %v3384_v2 = vld [vmem:[%s4625_s3 + $0xe0] ss:$8 sps:$4 sm:$0xff]  }
  0xec   :  { %1909 = vmatpush2.bf16.msra.mxu1 %v3324_v3  ;;  %1869 = vmatprep.subr.bf16.mxu0 %v3329_v4  ;;  %v3426_v3 = vld [vmem:[%s4625_s3 + $0x100] ss:$8 sps:$4 sm:$0xff]   ;;  %v3389_v4 = vld [vmem:[%s4625_s3 + $0xd4] ss:$8 sps:$4 sm:$0xff]  }
  0xed   :  { %1910 = vmatprep.subr.bf16.mxu1 %v3332_v5  ;;  %v3431_v5 = vld [vmem:[%s4625_s3 + $0x1f4] ss:$8 sps:$4 sm:$0xff]  }
  0xef   :  { %1870 = vmatpush2.bf16.msra.mxu0 %v3327_v6  ;;  %v3387_v6 = vld [vmem:[%s4625_s3 + $0xd0] ss:$8 sps:$4 sm:$0xff]  }
  0xf0   :  { %1911 = vmatpush2.bf16.msra.mxu1 %v3330_v7  ;;  %1871 = vmatprep.subr.bf16.mxu0 %v3335_v10  ;;  %v3429_v7 = vld [vmem:[%s4625_s3 + $0x1f0] ss:$8 sps:$4 sm:$0xff]   ;;  %v3392_v10 = vld [vmem:[%s4625_s3 + $0xc4] ss:$8 sps:$4 sm:$0xff]  }
  0xf1   :  { %1912 = vmatprep.subr.bf16.mxu1 %v3338_v11  ;;  %v3434_v11 = vld [vmem:[%s4625_s3 + $0x1e4] ss:$8 sps:$4 sm:$0xff]  }
  0xf3   :  { %1872 = vmatpush2.bf16.msra.mxu0 %v3333_v12  ;;  %v3390_v12 = vld [vmem:[%s4625_s3 + $0xc0] ss:$8 sps:$4 sm:$0xff]  }
  0xf4   :  { %1913 = vmatpush2.bf16.msra.mxu1 %v3336_v13  ;;  %1873 = vmatprep.subr.bf16.mxu0 %v3341_v14  ;;  %v3432_v13 = vld [vmem:[%s4625_s3 + $0x1e0] ss:$8 sps:$4 sm:$0xff]   ;;  %v3395_v14 = vld [vmem:[%s4625_s3 + $0xb4] ss:$8 sps:$4 sm:$0xff]  }
  0xf5   :  { %1914 = vmatprep.subr.bf16.mxu1 %v3344_v15  ;;  %v3437_v15 = vld [vmem:[%s4625_s3 + $0x1d4] ss:$8 sps:$4 sm:$0xff]  }
  0xf7   :  { %1874 = vmatpush2.bf16.msra.mxu0 %v3339_v16  ;;  %v301_v16 = vlaneseq }
  0xf8   :  { %1915 = vmatpush2.bf16.msra.mxu1 %v3342_v17  ;;  %1875 = vmatprep.subr.bf16.mxu0 %v3347_v18  ;;  %v3393_v17 = vld [vmem:[%s4625_s3 + $0xb0] ss:$8 sps:$4 sm:$0xff]  }
  0xf9   :  { %1916 = vmatprep.subr.bf16.mxu1 %v3350_v19  ;;  %v3435_v18 = vld [vmem:[%s4625_s3 + $0x1d0] ss:$8 sps:$4 sm:$0xff]   ;;  %v3398_v19 = vld [vmem:[%s4625_s3 + $0xa4] ss:$8 sps:$4 sm:$0xff]  }
  0xfb   :  { %1876 = vmatpush2.bf16.msra.mxu0 %v3345_v22  ;;  %v3440_v22 = vld [vmem:[%s4625_s3 + $0x1c4] ss:$8 sps:$4 sm:$0xff]  }
  0xfc   :  { %1917 = vmatpush2.bf16.msra.mxu1 %v3348_v23  ;;  %1877 = vmatprep.subr.bf16.mxu0 %v3353_v24  ;;  %v4496_v23 = vshrl.u32 %v301_v16, 7  ;;  %v3396_v24 = vld [vmem:[%s4625_s3 + $0xa0] ss:$8 sps:$4 sm:$0xff]  }
  0xfd   :  { %1918 = vmatprep.subr.bf16.mxu1 %v3356_v25  ;;  %v3438_v25 = vld [vmem:[%s4625_s3 + $0x1c0] ss:$8 sps:$4 sm:$0xff]  }
  0xff   :  { %1878 = vmatpush2.bf16.msra.mxu0 %v3351_v26  ;;  %v3401_v26 = vld [vmem:[%s4625_s3 + $0x94] ss:$8 sps:$4 sm:$0xff]  }
 0x100   :  { %1919 = vmatpush2.bf16.msra.mxu1 %v3354_v27  ;;  %2333 = vmatprep.subr.bf16.mxu0 %v3359_v28  ;;  %v3443_v27 = vld [vmem:[%s4625_s3 + $0x1b4] ss:$8 sps:$4 sm:$0xff]   ;;  %v303_v28 = vsub.s32 0, %v4496_v23 }
 0x101   :  { %2374 = vmatprep.subr.bf16.mxu1 %v3407_v40 }
 0x102   :  { %v4344_v31 = vpop.f32.mrf.mxu0  ;;  %1880 = vmatmul.mubr.bf16.vlgmr.msra.gmra.mxu0 %v3945_v20  ;;  %v3363_v20 = vld [vmem:[%s4625_s3 + $0x50] ss:$8 sps:$4 sm:$0xff]  }
 0x103   :  { %v4346_v32 = vpop.f32.mrf.mxu1  ;;  %1921 = vmatmul.mubr.bf16.vlgmr.msra.gmra.mxu1 %v3947_v21  ;;  %2334 = vmatpush1.bf16.msra.mxu0 %v3357_v29  ;;  %v4514_v29 = vld [vmem:[%s4626_s2] sm:$0xf] }
 0x104   :  { %v4353_v52 = vpop.f32.mrf.mxu0  ;;  %2335 = vmatprep.subr.bf16.mxu0 %v3362_v30  ;;  %2375 = vmatpush1.bf16.msra.mxu1 %v3405_v37  ;;  %v307_v30 = vsub.s32 1, %v4496_v23  ;;  %v3446_v37 = vld [vmem:[%s4625_s3 + $0x1a4] ss:$8 sps:$4 sm:$0xff]  }
 0x105   :  { %v4355_v33 = vpop.f32.mrf.mxu1  ;;  %2376 = vmatprep.subr.bf16.mxu1 %v3410_v38  ;;  %v3444_v38 = vld [vmem:[%s4625_s3 + $0x1a0] ss:$8 sps:$4 sm:$0xff]  }
 0x106   :  { %v1639_v8 = vpop.f32.mrf.mxu0 }
 0x107   :  { %v1680_v9 = vpop.f32.mrf.mxu1  ;;  %2336 = vmatpush1.bf16.msra.mxu0 %v3360_v49  ;;  %v3399_v49 = vld [vmem:[%s4625_s3 + $0x90] ss:$8 sps:$4 sm:$0xff]   ;;  %v3404_v8 = vld [vmem:[%s4625_s3 + $0x84] ss:$8 sps:$4 sm:$0xff]  }
 0x108   :  { %v1640_v21 = vpop.f32.mrf.mxu0  ;;  %2337 = vmatprep.subr.bf16.mxu0 %v3365_v34  ;;  %2377 = vmatpush1.bf16.msra.mxu1 %v3408_v41  ;;  %v3441_v34 = vld [vmem:[%s4625_s3 + $0x1b0] ss:$8 sps:$4 sm:$0xff]   ;;  %v304_v9 = vrot.slane %v4514_v29, %v303_v28 }
 0x109   :  { %v1681_v35 = vpop.f32.mrf.mxu1  ;;  %2378 = vmatprep.subr.bf16.mxu1 %v3413_v43  ;;  %v3402_v21 = vld [vmem:[%s4625_s3 + $0x80] ss:$8 sps:$4 sm:$0xff]  }
 0x10a   :  { %v1636_v35 = vadd.f32 %v4344_v31, %v304_v9 }
 0x10b   :  { %2338 = vmatpush1.bf16.msra.mxu0 %v3363_v20  ;;  %v308_v20 = vrot.slane %v4514_v29, %v307_v30 }
 0x10c   :  { %2339 = vmatprep.subr.bf16.mxu0 %v3368_v36  ;;  %2379 = vmatpush1.bf16.msra.mxu1 %v3411_v45  ;;  %v1677_v40 = vadd.f32 %v4346_v32, %v1636_v35  ;;  %v3447_v32 = vld [vmem:[%s4625_s3 + $0x190] ss:$8 sps:$4 sm:$0xff]  }
 0x10d   :  { %2380 = vmatprep.subr.bf16.mxu1 %v3416_v47  ;;  %v1638_v36 = vadd.f32 %v4353_v52, %v308_v20 }
 0x10f   :  { %2340 = vmatpush1.bf16.msra.mxu0 %v3366_v39 }
 0x110   :  { %2341 = vmatprep.subr.bf16.mxu0 %v3371_v42  ;;  %2381 = vmatpush1.bf16.msra.mxu1 %v3414_v50  ;;  %v1679_v42 = vadd.f32 %v4355_v33, %v1638_v36 }
 0x111   :  { %2382 = vmatprep.subr.bf16.mxu1 %v3419_v53 }
 0x113   :  { %2342 = vmatpush1.bf16.msra.mxu0 %v3369_v44  ;;  %v3449_v44 = vld [vmem:[%s4625_s3 + $0x194] ss:$8 sps:$4 sm:$0xff]  }
 0x114   :  { %2343 = vmatprep.subr.bf16.mxu0 %v3374_v46  ;;  %2383 = vmatpush1.bf16.msra.mxu1 %v3417_v55 }
 0x115   :  { %2384 = vmatprep.subr.bf16.mxu1 %v3422_v57 }
 0x117   :  { %2344 = vmatpush1.bf16.msra.mxu0 %v3372_v48 }
 0x118   :  { %2345 = vmatprep.subr.bf16.mxu0 %v3377_v51  ;;  %2385 = vmatpush1.bf16.msra.mxu1 %v3420_v59 }
 0x119   :  { %2386 = vmatprep.subr.bf16.mxu1 %v3425_v61 }
 0x11b   :  { %2346 = vmatpush1.bf16.msra.mxu0 %v3375_v54  ;;  %v3452_v54 = vld [vmem:[%s4625_s3 + $0x184] ss:$8 sps:$4 sm:$0xff]  }
 0x11c   :  { %2347 = vmatprep.subr.bf16.mxu0 %v3380_v56  ;;  %2387 = vmatpush1.bf16.msra.mxu1 %v3423_v63  ;;  %v3450_v56 = vld [vmem:[%s4625_s3 + $0x180] ss:$8 sps:$4 sm:$0xff]  }
 0x11d   :  { %2388 = vmatprep.subr.bf16.mxu1 %v3428_v1 }
 0x11f   :  { %2348 = vmatpush1.bf16.msra.mxu0 %v3378_v58 }
 0x120   :  { %2349 = vmatprep.subr.bf16.mxu0 %v3383_v60  ;;  %2389 = vmatpush1.bf16.msra.mxu1 %v3426_v3  ;;  %v3453_v3 = vld [vmem:[%s4627_s5 + $0x78] sm:$0xff]  }
 0x121   :  { %2390 = vmatprep.subr.bf16.mxu1 %v3431_v5  ;;  %v3455_v5 = vld [vmem:[%s4627_s5 + $0x70] sm:$0xff]  }
 0x123   :  { %2350 = vmatpush2.bf16.msra.mxu0 %v3381_v62 }
 0x124   :  { %2351 = vmatprep.subr.bf16.mxu0 %v3386_v0  ;;  %2391 = vmatpush2.bf16.msra.mxu1 %v3429_v7  ;;  %v3457_v7 = vld [vmem:[%s4627_s5 + $0x68] sm:$0xff]  }
 0x125   :  { %2392 = vmatprep.subr.bf16.mxu1 %v3434_v11  ;;  %v3459_v11 = vld [vmem:[%s4627_s5 + $0x60] sm:$0xff]  }
 0x127   :  { %2352 = vmatpush2.bf16.msra.mxu0 %v3384_v2 }
 0x128   :  { %2353 = vmatprep.subr.bf16.mxu0 %v3389_v4  ;;  %2393 = vmatpush2.bf16.msra.mxu1 %v3432_v13  ;;  %v3454_v4 = vld [vmem:[%s4627_s5 + $0x38] sm:$0xff]  }
 0x129   :  { %2394 = vmatprep.subr.bf16.mxu1 %v3437_v15  ;;  %v3461_v13 = vld [vmem:[%s4627_s5 + $0x58] sm:$0xff]   ;;  %v3463_v15 = vld [vmem:[%s4627_s5 + $0x50] sm:$0xff]  }
 0x12b   :  { %2354 = vmatpush2.bf16.msra.mxu0 %v3387_v6  ;;  %v3456_v6 = vld [vmem:[%s4627_s5 + $0x30] sm:$0xff]  }
 0x12c   :  { %2355 = vmatprep.subr.bf16.mxu0 %v3392_v10  ;;  %2395 = vmatpush2.bf16.msra.mxu1 %v3435_v18  ;;  %v3458_v10 = vld [vmem:[%s4627_s5 + $0x28] sm:$0xff]   ;;  %v311_v18 = vsub.s32 2, %v4496_v23 }
 0x12d   :  { %2396 = vmatprep.subr.bf16.mxu1 %v3440_v22 }
 0x12e   :  { %v312_v22 = vrot.slane %v4514_v29, %v311_v18 }
 0x12f   :  { %2356 = vmatpush2.bf16.msra.mxu0 %v3390_v12  ;;  %v3460_v12 = vld [vmem:[%s4627_s5 + $0x20] sm:$0xff]  }
 0x130   :  { %2357 = vmatprep.subr.bf16.mxu0 %v3395_v14  ;;  %2397 = vmatpush2.bf16.msra.mxu1 %v3438_v25  ;;  %v3462_v14 = vld [vmem:[%s4627_s5 + $0x18] sm:$0xff]  }
 0x131   :  { %2398 = vmatprep.subr.bf16.mxu1 %v3443_v27 }
 0x133   :  { %2358 = vmatpush2.bf16.msra.mxu0 %v3393_v17  ;;  %v3464_v17 = vld [vmem:[%s4627_s5 + $0x10] sm:$0xff]  }
 0x134   :  { %2359 = vmatprep.subr.bf16.mxu0 %v3398_v19  ;;  %2399 = vmatpush2.bf16.msra.mxu1 %v3441_v34  ;;  %v315_v19 = vsub.s32 3, %v4496_v23  ;;  %v2934_v23 = vld [vmem:[%s4629_s6] ss:$0 sm:$0xff] }
 0x135   :  { %2400 = vmatprep.subr.bf16.mxu1 %v3446_v37 }
 0x137   :  { %2360 = vmatpush2.bf16.msra.mxu0 %v3396_v24  ;;  %v316_v24 = vrot.slane %v4514_v29, %v315_v19 }
 0x138   :  { %2361 = vmatprep.subr.bf16.mxu0 %v3401_v26  ;;  %2401 = vmatpush2.bf16.msra.mxu1 %v3444_v38 }
 0x139   :  { %2402 = vmatprep.subr.bf16.mxu1 %v3449_v44  ;;  %v3465_v44 = vld [vmem:[%s4627_s5 + $0x48] sm:$0xff]  }
 0x13b   :  { %2362 = vmatpush2.bf16.msra.mxu0 %v3399_v49 }
 0x13c   :  { %2363 = vmatprep.subr.bf16.mxu0 %v3404_v8  ;;  %2403 = vmatpush2.bf16.msra.mxu1 %v3447_v32 }
 0x13d   :  { %2404 = vmatprep.subr.bf16.mxu1 %v3452_v54 }
 0x13f   :  { %2364 = vmatpush2.bf16.msra.mxu0 %v3402_v21 }
 0x140   :  { %2405 = vmatpush2.bf16.msra.mxu1 %v3450_v56  ;;  %2951 = vmatprep.subr.bf16.mxu0 %v3453_v3 }
 0x142   :  { %v1717_v39 = vpop.f32.mrf.mxu0 }
 0x143   :  { %v1758_v41 = vpop.f32.mrf.mxu1  ;;  %v1718_v43 = vadd.f32 %v1717_v39, %v1677_v40 }
 0x144   :  { %v1719_v31 = vpop.f32.mrf.mxu0 }
 0x145   :  { %v1760_v52 = vpop.f32.mrf.mxu1  ;;  %v1759_v45 = vadd.f32 %v1758_v41, %v1718_v43  ;;  %v1720_v46 = vadd.f32 %v1719_v31, %v1679_v42 }
 0x146   :  { %v1721_v47 = vpop.f32.mrf.mxu0 }
 0x147   :  { %v1762_v48 = vpop.f32.mrf.mxu1  ;;  %v1761_v50 = vadd.f32 %v1760_v52, %v1720_v46  ;;  %v1929_v33 = vmax.f32 %v1759_v45, 0.0  ;;  %v3466_v45 = vld [vmem:[%s4627_s5 + $0x8] sm:$0xff]   ;;  %v3467_v47 = vld [vmem:[%s4627_s5 + $0x40] sm:$0xff]  }
 0x148   :  { %v1722_v51 = vpop.f32.mrf.mxu0  ;;  %v3468_v48 = vld [vmem:[%s4627_s5] sm:$0xff]  }
 0x149   :  { %v1763_v53 = vpop.f32.mrf.mxu1  ;;  %v1930_v55 = vmax.f32 %v1761_v50, 0.0  ;;  %v1933_v58 = vpack.c.bf16 %v1929_v33, %v1929_v33  ;;  %v2001_v33 = vld [vmem:[%s4628_s4] sm:$0x3] }
 0x14a   :  { %v2006_v51 = vrot.slane %v2001_v33, %v303_v28  ;;  %v2010_v53 = vrot.slane %v2001_v33, %v307_v30  ;;  %v2596_v30 = vand.u32 127, %v301_v16 }
 0x14b   :  { %v1934_v57 = vpack.c.bf16 %v1930_v55, %v1930_v55 }
 0x14c   :  { %vm2597_vm0 = vcmp.lt.s32.totalorder %v2596_v30, 9 }
 0x14d   :  { %2365 = vmatprep.mubr.bf16.mxu0 %v1934_v57 }
 0x14e   :  { %2366 = vmatmul.mubr.bf16.vlgmr.msra.gmra.mxu0 %v1933_v58 }
 0x14f   :  { %2952 = vmatpush3.bf16.msra.mxu0 %v3454_v4 }
 0x150   :  { %2953 = vmatprep.subr.bf16.mxu0 %v3455_v5 }
 0x153   :  { %2954 = vmatpush3.bf16.msra.mxu0 %v3456_v6 }
 0x154   :  { %2955 = vmatprep.subr.bf16.mxu0 %v3457_v7 }
 0x157   :  { %2956 = vmatpush3.bf16.msra.mxu0 %v3458_v10 }
 0x158   :  { %2957 = vmatprep.subr.bf16.mxu0 %v3459_v11 }
 0x15b   :  { %2958 = vmatpush3.bf16.msra.mxu0 %v3460_v12 }
 0x15c   :  { %2959 = vmatprep.subr.bf16.mxu0 %v3461_v13 }
 0x15f   :  { %2960 = vmatpush3.bf16.msra.mxu0 %v3462_v14 }
 0x160   :  { %2961 = vmatprep.subr.bf16.mxu0 %v3463_v15 }
 0x163   :  { %2962 = vmatpush3.bf16.msra.mxu0 %v3464_v17 }
 0x164   :  { %2963 = vmatprep.subr.bf16.mxu0 %v3465_v44 }
 0x167   :  { %2964 = vmatpush3.bf16.msra.mxu0 %v3466_v45 }
 0x168   :  { %2965 = vmatprep.subr.bf16.mxu0 %v3467_v47 }
 0x16b   :  { %2966 = vmatpush3.bf16.msra.mxu0 %v3468_v48 }
 0x182   :  { %v1799_v59 = vpop.f32.mrf.mxu0 }
 0x183   :  { %v1840_v60 = vpop.f32.mrf.mxu1  ;;  %v1800_v25 = vadd.f32 %v1799_v59, %v312_v22 }
 0x184   :  { %v1801_v61 = vpop.f32.mrf.mxu0 }
 0x185   :  { %v1842_v62 = vpop.f32.mrf.mxu1  ;;  %v1802_v26 = vadd.f32 %v1801_v61, %v316_v24  ;;  %v1841_v27 = vadd.f32 %v1840_v60, %v1800_v25 }
 0x186   :  { %v1803_v63 = vpop.f32.mrf.mxu0 }
 0x187   :  { %v1844_v0 = vpop.f32.mrf.mxu1  ;;  %v1843_v8 = vadd.f32 %v1842_v62, %v1802_v26 }
 0x188   :  { %v1804_v1 = vpop.f32.mrf.mxu0 }
 0x189   :  { %v1845_v2 = vpop.f32.mrf.mxu1 }
 0x1c2   :  { %v1881_v49 = vpop.f32.mrf.mxu0 }
 0x1c3   :  { %v1922_v34 = vpop.f32.mrf.mxu1  ;;  %v1882_v9 = vadd.f32 %v1881_v49, %v1841_v27 }
 0x1c4   :  { %v1883_v20 = vpop.f32.mrf.mxu0 }
 0x1c5   :  { %v1924_v21 = vpop.f32.mrf.mxu1  ;;  %v1923_v35 = vadd.f32 %v1922_v34, %v1882_v9  ;;  %v1884_v36 = vadd.f32 %v1883_v20, %v1843_v8 }
 0x1c6   :  { %v1885_v37 = vpop.f32.mrf.mxu0 }
 0x1c7   :  { %v1926_v40 = vpop.f32.mrf.mxu1  ;;  %v1925_v38 = vadd.f32 %v1924_v21, %v1884_v36  ;;  %v1931_v39 = vmax.f32 %v1923_v35, 0.0 }
 0x1c8   :  { %v1886_v41 = vpop.f32.mrf.mxu0 }
 0x1c9   :  { %v1927_v42 = vpop.f32.mrf.mxu1  ;;  %v1932_v43 = vmax.f32 %v1925_v38, 0.0  ;;  %v1935_v29 = vpack.c.bf16 %v1931_v39, %v1931_v39 }
 0x1cb   :  { %v1936_v31 = vpack.c.bf16 %v1932_v43, %v1932_v43 }
 0x1cd   :  { %2406 = vmatprep.mubr.bf16.mxu1 %v1936_v31 }
 0x1ce   :  { %2407 = vmatmul.mubr.bf16.vlgmr.msra.gmra.mxu1 %v1935_v29 }
 0x20e   :  { %v2367_v52 = vpop.f32.mrf.mxu0 }
 0x20f   :  { %v2368_v54 = vadd.f32 %v2367_v52, %v2006_v51 }
 0x210   :  { %v2369_v46 = vpop.f32.mrf.mxu0 }
 0x211   :  { %v2370_v56 = vadd.f32 %v2369_v46, %v2010_v53 }
 0x212   :  { %v2371_v32 = vpop.f32.mrf.mxu0 }
 0x214   :  { %v2372_v50 = vpop.f32.mrf.mxu0 }
 0x28e   :  { %v2408_v55 = vpop.f32.mrf.mxu1 }
 0x28f   :  { %v2409_v57 = vadd.f32 %v2408_v55, %v2368_v54 }
 0x290   :  { %v2410_v58 = vpop.f32.mrf.mxu1 }
 0x291   :  { %v2411_v59 = vadd.f32 %v2410_v58, %v2370_v56  ;;  %v2415_v60 = vmax.f32 %v2409_v57, 0.0 }
 0x292   :  { %v2412_v61 = vpop.f32.mrf.mxu1 }
 0x293   :  { %v2416_v62 = vmax.f32 %v2411_v59, 0.0  ;;  %v2417_v1 = vpack.c.bf16 %v2415_v60, %v2415_v60 }
 0x294   :  { %v2413_v63 = vpop.f32.mrf.mxu1 }
 0x295   :  { %v2418_v0 = vpack.c.bf16 %v2416_v62, %v2416_v62 }
 0x297   :  { %2586 = vmatprep.mubr.bf16.mxu0 %v2418_v0 }
 0x298   :  { %2587 = vmatmul.mubr.bf16.vlgmr.msra.gmra.mxu0 %v2417_v1 }
 0x358   :  { %v2967_v2 = vpop.f32.mrf.mxu0 }
 0x35a   :  { %v2968_v28 = vpop.f32.mrf.mxu0 }
 0x35b   :  { %v2969_v3 = vadd.f32 %v2968_v28, %v2967_v2 }
 0x35c   :  { %v2970_v4 = vpop.f32.mrf.mxu0 }
 0x35d   :  { %v2589_v5 = vadd.f32 %v2969_v3, %v2934_v23 }
 0x35e   :  { %v2971_v6 = vpop.f32.mrf.mxu0 }
 0x35f   :  { %v2594_v7 = vmax.f32 %v2589_v5, 0.0 }
 0x361   :  { %v2598_v10 = vsel %vm2597_vm0, %v2594_v7, -1e+30 }
 0x362   :  { %2599 = vmax.xlane.f32.xlu0 %v2598_v10 }
 0x3eb   :  { %v2600_v11 = vpop.xlane.xlu0 %2599 }
 0x3ec   :  { %v2601_v12 = vsub.f32 %v2598_v10, %v2600_v11 }
 0x3ee   :  { %v2602_v13 = vmul.f32 1.442695, %v2601_v12 }
 0x3f0   :  { %3469 = vpow2.f32 %v2602_v13 }
 0x3fd   :  { %v3470_v14 = vpop.eup %3469 }
 0x3fe   :  { %2604 = vadd.xlane.f32.xlu0 %v3470_v14 }
 0x487   :  { %v2605_v15 = vpop.xlane.xlu0 %2604 }
 0x488   :  { %3471 = vlog2.f32 %v2605_v15 }
 0x495   :  { %v3472_v17 = vpop.eup %3471 }
 0x496   :  { %v2607_v18 = vmul.f32 0.6931472, %v3472_v17 }
 0x498   :  { %v2608_v19 = vsub.f32 %v2601_v12, %v2607_v18 }
 0x49a   :  { %2609 = vst [vmem:[%s4630_s7] sm:$0xff] %v2608_v19 }

// kernel: forward.2
= control target key start
LH: loop header
LB: loop body
LE: loop exit
PB: predicated region body
PF: predicated region fallthrough
CT: control target
= control target key end

     0   :  { %8 = vsyncpa [#allocation3], 0  ;;  %s20008_s0 = inlined_call_operand.vmem [shape: f32[8,62208], index: 0, kind: input, shape index: {}]   ;;  %s20009_s1 = inlined_call_operand.hbm [shape: bf16[62208,1024], index: 1, kind: input, shape index: {}]   ;;  %s20010_s2 = inlined_call_operand.vmem [shape: f32[1,1024], index: 2, kind: input, shape index: {}]   ;;  %s20011_s3 = inlined_call_operand.vmem [shape: f32[8,1024], index: 3, kind: output, shape index: {}]  }
   0x1   :  { %10 = vsyncpa [#allocation3 + $0x1], 0  ;;  %s17698_s12 = smov 0   ;;  %s17700_s13 = smov 0  }
   0x2   :  { %s17702_s14 = smov 0   ;;  %s17704_s15 = smov 0  }
   0x3   :  { %s17706_s16 = smov 0   ;;  %s17708_s17 = smov 0  }
   0x4   :  { %s17710_s18 = smov 0   ;;  %s17712_s19 = smov 0  }
   0x5 LB: > { %s13163_s20 = sadd.s32 4294967295, %s17671_s19   ;;  %s28_s21 = sadd.s32 1, %s17663_s17  ;;  %s17671_s19 = sphi %s17712_s19, %s16_s19   ;;  %s17667_s18 = sphi %s17710_s18, %s20045_s18   ;;  %s17663_s17 = sphi %s17708_s17, %s20044_s17   ;;  %s17659_s16 = sphi %s17706_s16, %s20043_s16   ;;  %s17655_s15 = sphi %s17704_s15, %s20042_s15   ;;  %s17651_s14 = sphi %s17702_s14, %s20041_s14   ;;  %s17647_s13 = sphi %s17700_s13, %s20040_s13   ;;  %s17643_s12 = sphi %s17698_s12, %s20039_s12  }
   0x6   : > { %p29_p0 = scmp.ge.s32.totalorder %s28_s21, 9  ;;  %s31_s22 = sadd.s32 1, %s17667_s18 }
   0x7   : > { %s72_s23 = sadd.s32 1, %s17651_s14  ;;  %p79_p1 = scmp.ne.s32.totalorder %s17651_s14, %s17647_s13 }
   0x8   : > { %s20047_s21 = smov (%p29_p0, %s28_s21), 0  ;;  %s20049_s22 = smov (!%p29_p0, %s31_s22), %s17667_s18 }
   0x9   : > { %s67_s24 = ssub.s32 %s17663_s17, %s20047_s21  ;;  %p80_p2 = scmp.eq.s32.totalorder %s17671_s19, 0 }
   0xa   : > { %p33_p3 = scmp.ge.s32.totalorder %s20049_s22, 2  ;;  %p85_p4 = scmp.ne.s32.totalorder %s17647_s13, %s17643_s12 }
   0xb   : > { %p17749_p5 = por %p80_p2, %p79_p1  ;;  %p86_p6 = scmp.eq.s32.totalorder %s13163_s20, 0 }
   0xc   : > { %s20051_s22 = smov (%p33_p3, %s20049_s22), 0  ;;  %p14916_p8 = scmp.lt.s32.totalorder %s17671_s19, 18 }
   0xd   : > { %p17755_p7 = por %p86_p6, %p85_p4  ;;  %s68_s27 = ssub.s32 %s17667_s18, %s20051_s22 }
   0xe   : > { %s69_s28 = sor.u32 %s68_s27, %s67_s24  ;;  %s176_s29 = sand.u32 1, %s17651_s14  }
   0xf   : > { %p70_p9 = scmp.eq.s32.totalorder %s69_s28, 0  ;;  %s14908_s30 = smul.u32 13824, %s176_s29 }
  0x10   : > { %s13167_s4 = sshll.u32 %s17667_s18, 2  ;;  %s14907_s6 = smul.u32 6912, %s17663_s17 }
  0x11   : > { %s17765_s5 = scalar_select %p70_p9, %s17651_s14, %s72_s23  }
  0x12   : > { %s180_s7 = scalar_lea.vmem [#allocation2], %s14908_s30  ;;  %p17770_p10 = pnand %p14916_p8, %p17749_p5 }
  0x13   : > { %s190_s8 = sshll.u32 %s180_s7, 4  ;;  %s187_s10 = sadd.s32 %s14907_s6, %s13167_s4  ;;  %s191_s8 = int_to_ptr.vmem [resolvable:$true] %s190_s8 }
  0x14   : > { %s13169_s11 = sshll.u32 %s187_s10, 6  ;;  %s177_s27 = scalar_lea.sflag [#allocation3], %s176_s29 }
  0x15   : > { %s189_s24 = scalar_lea.hbm %s20009_s1, %s13169_s11  ;;  %p17579_p11 = pneg %p17770_p10 }
  0x16   : > { %s17590_s23 = scalar_lea.vmem %s191_s8, 221184  ;;  %s17673_s25 = smov [#allocation2]  }
  0x17   : > { %p17591_p12 = scmp.ne.s32.totalorder %s191_s8, %s17590_s23  ;;  %s17595_s28 = sshll.u32 %s17673_s25, 4  ;;  %s17596_s28 = int_to_ptr.vmem [resolvable:$false] %s17595_s28 }
  0x18   : > { %s17597_s30 = scalar_lea.vmem %s17596_s28, 442368  ;;  %p17598_p1 = scmp.lt.s32.totalorder %s191_s8, %s17596_s28 }
  0x19   : > { %p17593_p13 = pnand %p17591_p12, %p17579_p11  ;;  %p17599_p2 = scmp.lt.s32.totalorder %s17597_s30, %s17590_s23 }
  0x1b   : > { %p17594_p0 = pneg %p17593_p13  ;;  %p17600_p3 = por %p17599_p2, %p17598_p1 }
  0x1d   : > { %p17601_p4 = pnand %p17600_p3, %p17594_p0 }
  0x1f   : > { %17604 = shalt.err (!%p17601_p4)
}
  0x20   : > { %s17674_s4 = smov 512   ;;  %s17675_s29 = smov 256  }
  0x21   : > { %s17676_s6 = smov 16   ;;  %p13170_p5 = scmp.ge.s32.totalorder %s17671_s19, 1 }
  0x22   : > { %14915 = dma.hbm_to_vmem [thread:$0]  (!%p17770_p10), %s189_s24, 221184, %s191_s8, %s177_s27, %s17674_s4, %s17675_s29, %s17676_s6  }
  0x23   : > { %p206_p6 = scmp.lt.s32.totalorder %s17671_s19, 19 }
  0x25   : > { %p207_p8 = pnand %p13170_p5, %p206_p6 }
  0x27   : > { %210 = sbr.rel (%p207_p8) target bundleno = 2005 (0x7d5), region = 32 }
  0x2c   : > { %s212_s7 = sand.u32 1, %s17647_s13  }
  0x2d   : > { %s14909_s10 = smul.u32 13824, %s212_s7  ;;  %s213_s11 = scalar_lea.sflag [#allocation3], %s212_s7 }
  0x2f   : > { %s17784_s12 = scalar_lea.vmem [#allocation2], %s14909_s10 }
  0x30   : > { %17638 = dma.done.wait (%p17755_p7), %s213_s11, 221184  }
  0x31   : > { %17640 = vsyncadd (%p17755_p7), %s213_s11, 4294746112  ;;  %s256_s9 = smul.u32 54, %s17655_s15  ;;  %s13172_s8 = sshll.u32 %s17659_s16, 2 }
  0x32   : > { %p269_p9 = scmp.lt.s32.totalorder %s13172_s8, 7  ;;  %p13175_p7 = scmp.ne.s32.totalorder %s17655_s15, 0 }
  0x33   : > { %p259_p10 = scmp.lt.s32.totalorder %s256_s9, 485 }
  0x34   : > { %s20053_s8 = smov (!%p269_p9, %s13172_s8), 7  ;;  %286 = sbr.rel (%p13175_p7) target bundleno = 60 (0x3c), region = 40 }
  0x35   : > { %s20055_s9 = smov (!%p259_p10, %s256_s9), 485  ;;  %s271_s27 = scalar_lea.vmem %s20010_s2, %s20053_s8 }
  0x36   : > { %s13174_s23 = sshll.u32 %s20053_s8, 3  ;;  %s13171_s25 = sshll.u32 %s20055_s9, 3 }
  0x37   : > { %s17802_s30 = scalar_lea.vmem %s20011_s3, %s13174_s23  ;;  %s17807_s29 = scalar_lea.vmem %s20008_s0, %s13171_s25 }
  0x39   : > { %v17677_v0 = vmov 0.0  }
  0x3a   : > { %287 = vst [vmem:[%s17802_s30] sm:$0xff] %v17677_v0  ;;  %288 = vst [vmem:[%s17802_s30 + $0x8] sm:$0xff] %v17677_v0 }
  0x3b   : > { %289 = vst [vmem:[%s17802_s30 + $0x10] sm:$0xff] %v17677_v0  ;;  %290 = vst [vmem:[%s17802_s30 + $0x18] sm:$0xff] %v17677_v0 }
  0x3c PF: > { %v14985_v1 = vld [vmem:[%s17784_s12 + $0xe4] ss:$16 sps:$4 sm:$0xff]   ;;  %v14989_v3 = vld [vmem:[%s17784_s12 + $0xe0] ss:$16 sps:$4 sm:$0xff]   ;;  %v292_v47 = vld [vmem:[%s17807_s29 + $0x8] sm:$0xff]  ;;  %p14904_p11 = scmp.ne.s32.totalorder %s17655_s15, 8 }
  0x3d   : > { %v14987_v2 = vld [vmem:[%s17784_s12 + $0x2e4] ss:$16 sps:$4 sm:$0xff]   ;;  %10771 = vmatprep.subr.bf16.mxu0 %v14985_v1  ;;  %v14990_v4 = vld [vmem:[%s17784_s12 + $0x2e0] ss:$16 sps:$4 sm:$0xff]   ;;  %v17863_v50 = vpack.c.bf16 %v292_v47, %v292_v47  ;;  %v294_v51 = vld [vmem:[%s17807_s29 + $0x18] sm:$0xff] }
  0x3e   : > { %10812 = vmatprep.subr.bf16.mxu1 %v14987_v2  ;;  %v14991_v5 = vld [vmem:[%s17784_s12 + $0xc4] ss:$16 sps:$4 sm:$0xff]   ;;  %10772 = vmatpush1.bf16.msra.mxu0 %v14989_v3  ;;  %v14995_v7 = vld [vmem:[%s17784_s12 + $0xc0] ss:$16 sps:$4 sm:$0xff]   ;;  %v17867_v53 = vpack.c.bf16 %v294_v51, %v294_v51 }
  0x3f   : > { %10813 = vmatpush1.bf16.msra.mxu1 %v14990_v4  ;;  %v14993_v6 = vld [vmem:[%s17784_s12 + $0x2c4] ss:$16 sps:$4 sm:$0xff]   ;;  %10773 = vmatprep.subr.bf16.mxu0 %v14991_v5  ;;  %v14996_v8 = vld [vmem:[%s17784_s12 + $0x2c0] ss:$16 sps:$4 sm:$0xff]  }
  0x40   : > { %10814 = vmatprep.subr.bf16.mxu1 %v14993_v6  ;;  %v14997_v9 = vld [vmem:[%s17784_s12 + $0xa4] ss:$16 sps:$4 sm:$0xff]   ;;  %v15001_v11 = vld [vmem:[%s17784_s12 + $0xa0] ss:$16 sps:$4 sm:$0xff]   ;;  %10803 = vmatprep.mubr.bf16.mxu0 %v17863_v50 }
  0x41   : > { %v14999_v10 = vld [vmem:[%s17784_s12 + $0x2a4] ss:$16 sps:$4 sm:$0xff]   ;;  %v15002_v12 = vld [vmem:[%s17784_s12 + $0x2a0] ss:$16 sps:$4 sm:$0xff]   ;;  %10844 = vmatprep.mubr.bf16.mxu1 %v17867_v53 }
  0x42   : > { %10774 = vmatpush1.bf16.msra.mxu0 %v14995_v7  ;;  %v15003_v13 = vld [vmem:[%s17784_s12 + $0x84] ss:$16 sps:$4 sm:$0xff]   ;;  %v15007_v15 = vld [vmem:[%s17784_s12 + $0x80] ss:$16 sps:$4 sm:$0xff]  }
  0x43   : > { %10815 = vmatpush1.bf16.msra.mxu1 %v14996_v8  ;;  %10775 = vmatprep.subr.bf16.mxu0 %v14997_v9  ;;  %v15005_v14 = vld [vmem:[%s17784_s12 + $0x284] ss:$16 sps:$4 sm:$0xff]   ;;  %v15008_v16 = vld [vmem:[%s17784_s12 + $0x280] ss:$16 sps:$4 sm:$0xff]  }
  0x44   : > { %10816 = vmatprep.subr.bf16.mxu1 %v14999_v10  ;;  %v15009_v17 = vld [vmem:[%s17784_s12 + $0x64] ss:$16 sps:$4 sm:$0xff]   ;;  %v15013_v19 = vld [vmem:[%s17784_s12 + $0x60] ss:$16 sps:$4 sm:$0xff]  }
  0x45   : > { %v15011_v18 = vld [vmem:[%s17784_s12 + $0x264] ss:$16 sps:$4 sm:$0xff]   ;;  %v15014_v20 = vld [vmem:[%s17784_s12 + $0x260] ss:$16 sps:$4 sm:$0xff]  }
  0x46   : > { %10776 = vmatpush1.bf16.msra.mxu0 %v15001_v11  ;;  %v15015_v21 = vld [vmem:[%s17784_s12 + $0x44] ss:$16 sps:$4 sm:$0xff]   ;;  %v15019_v23 = vld [vmem:[%s17784_s12 + $0x40] ss:$16 sps:$4 sm:$0xff]  }
  0x47   : > { %10817 = vmatpush1.bf16.msra.mxu1 %v15002_v12  ;;  %10777 = vmatprep.subr.bf16.mxu0 %v15003_v13  ;;  %v15017_v22 = vld [vmem:[%s17784_s12 + $0x244] ss:$16 sps:$4 sm:$0xff]   ;;  %v15020_v24 = vld [vmem:[%s17784_s12 + $0x240] ss:$16 sps:$4 sm:$0xff]  }
  0x48   : > { %10818 = vmatprep.subr.bf16.mxu1 %v15005_v14  ;;  %v15021_v25 = vld [vmem:[%s17784_s12 + $0x24] ss:$16 sps:$4 sm:$0xff]   ;;  %v15025_v27 = vld [vmem:[%s17784_s12 + $0x20] ss:$16 sps:$4 sm:$0xff]  }
  0x49   : > { %v15023_v26 = vld [vmem:[%s17784_s12 + $0x224] ss:$16 sps:$4 sm:$0xff]   ;;  %v15026_v28 = vld [vmem:[%s17784_s12 + $0x220] ss:$16 sps:$4 sm:$0xff]  }
  0x4a   : > { %10778 = vmatpush1.bf16.msra.mxu0 %v15007_v15  ;;  %v15027_v29 = vld [vmem:[%s17784_s12 + $0x4] ss:$16 sps:$4 sm:$0xff]   ;;  %v15031_v31 = vld [vmem:[%s17784_s12] ss:$16 sps:$4 sm:$0xff]  }
  0x4b   : > { %10819 = vmatpush1.bf16.msra.mxu1 %v15008_v16  ;;  %10779 = vmatprep.subr.bf16.mxu0 %v15009_v17  ;;  %v15029_v30 = vld [vmem:[%s17784_s12 + $0x204] ss:$16 sps:$4 sm:$0xff]   ;;  %v15032_v32 = vld [vmem:[%s17784_s12 + $0x200] ss:$16 sps:$4 sm:$0xff]  }
  0x4c   : > { %10820 = vmatprep.subr.bf16.mxu1 %v15011_v18  ;;  %v15033_v33 = vld [vmem:[%s17784_s12 + $0x1e4] ss:$16 sps:$4 sm:$0xff]   ;;  %v15037_v35 = vld [vmem:[%s17784_s12 + $0x1e0] ss:$16 sps:$4 sm:$0xff]  }
  0x4d   : > { %v15035_v34 = vld [vmem:[%s17784_s12 + $0x3e4] ss:$16 sps:$4 sm:$0xff]   ;;  %v15038_v36 = vld [vmem:[%s17784_s12 + $0x3e0] ss:$16 sps:$4 sm:$0xff]  }
  0x4e   : > { %10780 = vmatpush1.bf16.msra.mxu0 %v15013_v19  ;;  %v15039_v37 = vld [vmem:[%s17784_s12 + $0x1c4] ss:$16 sps:$4 sm:$0xff]   ;;  %v15043_v39 = vld [vmem:[%s17784_s12 + $0x1c0] ss:$16 sps:$4 sm:$0xff]  }
  0x4f   : > { %10821 = vmatpush1.bf16.msra.mxu1 %v15014_v20  ;;  %10781 = vmatprep.subr.bf16.mxu0 %v15015_v21  ;;  %v15041_v38 = vld [vmem:[%s17784_s12 + $0x3c4] ss:$16 sps:$4 sm:$0xff]   ;;  %v15044_v40 = vld [vmem:[%s17784_s12 + $0x3c0] ss:$16 sps:$4 sm:$0xff]  }
  0x50   : > { %10822 = vmatprep.subr.bf16.mxu1 %v15017_v22  ;;  %v15045_v41 = vld [vmem:[%s17784_s12 + $0x1a4] ss:$16 sps:$4 sm:$0xff]   ;;  %v15049_v43 = vld [vmem:[%s17784_s12 + $0x1a0] ss:$16 sps:$4 sm:$0xff]  }
  0x51   : > { %v15047_v42 = vld [vmem:[%s17784_s12 + $0x3a4] ss:$16 sps:$4 sm:$0xff]   ;;  %v15050_v44 = vld [vmem:[%s17784_s12 + $0x3a0] ss:$16 sps:$4 sm:$0xff]  }
  0x52   : > { %10782 = vmatpush1.bf16.msra.mxu0 %v15019_v23  ;;  %v15051_v45 = vld [vmem:[%s17784_s12 + $0x184] ss:$16 sps:$4 sm:$0xff]   ;;  %v15055_v48 = vld [vmem:[%s17784_s12 + $0x180] ss:$16 sps:$4 sm:$0xff]  }
  0x53   : > { %10823 = vmatpush1.bf16.msra.mxu1 %v15020_v24  ;;  %10783 = vmatprep.subr.bf16.mxu0 %v15021_v25  ;;  %v15053_v46 = vld [vmem:[%s17784_s12 + $0x384] ss:$16 sps:$4 sm:$0xff]   ;;  %v15056_v49 = vld [vmem:[%s17784_s12 + $0x380] ss:$16 sps:$4 sm:$0xff]  }
  0x54   : > { %10824 = vmatprep.subr.bf16.mxu1 %v15023_v26  ;;  %v15057_v52 = vld [vmem:[%s17784_s12 + $0x164] ss:$16 sps:$4 sm:$0xff]   ;;  %v15061_v55 = vld [vmem:[%s17784_s12 + $0x160] ss:$16 sps:$4 sm:$0xff]  }
  0x55   : > { %v15059_v54 = vld [vmem:[%s17784_s12 + $0x364] ss:$16 sps:$4 sm:$0xff]   ;;  %v15062_v56 = vld [vmem:[%s17784_s12 + $0x360] ss:$16 sps:$4 sm:$0xff]  }
  0x56   : > { %10784 = vmatpush1.bf16.msra.mxu0 %v15025_v27  ;;  %v15063_v57 = vld [vmem:[%s17784_s12 + $0x144] ss:$16 sps:$4 sm:$0xff]   ;;  %v15067_v59 = vld [vmem:[%s17784_s12 + $0x140] ss:$16 sps:$4 sm:$0xff]  }
  0x57   : > { %10825 = vmatpush1.bf16.msra.mxu1 %v15026_v28  ;;  %10785 = vmatprep.subr.bf16.mxu0 %v15027_v29  ;;  %v15065_v58 = vld [vmem:[%s17784_s12 + $0x344] ss:$16 sps:$4 sm:$0xff]   ;;  %v15068_v60 = vld [vmem:[%s17784_s12 + $0x340] ss:$16 sps:$4 sm:$0xff]  }
  0x58   : > { %10826 = vmatprep.subr.bf16.mxu1 %v15029_v30  ;;  %v15069_v61 = vld [vmem:[%s17784_s12 + $0x124] ss:$16 sps:$4 sm:$0xff]   ;;  %v15073_v63 = vld [vmem:[%s17784_s12 + $0x120] ss:$16 sps:$4 sm:$0xff]  }
  0x59   : > { %v15071_v62 = vld [vmem:[%s17784_s12 + $0x324] ss:$16 sps:$4 sm:$0xff]   ;;  %v15074_v0 = vld [vmem:[%s17784_s12 + $0x320] ss:$16 sps:$4 sm:$0xff]  }
  0x5a   : > { %10786 = vmatpush1.bf16.msra.mxu0 %v15031_v31  ;;  %v15075_v1 = vld [vmem:[%s17784_s12 + $0x104] ss:$16 sps:$4 sm:$0xff]   ;;  %v15079_v3 = vld [vmem:[%s17784_s12 + $0x100] ss:$16 sps:$4 sm:$0xff]  }
  0x5b   : > { %10827 = vmatpush1.bf16.msra.mxu1 %v15032_v32  ;;  %10787 = vmatprep.subr.bf16.mxu0 %v15033_v33  ;;  %v15077_v2 = vld [vmem:[%s17784_s12 + $0x304] ss:$16 sps:$4 sm:$0xff]   ;;  %v15080_v4 = vld [vmem:[%s17784_s12 + $0x300] ss:$16 sps:$4 sm:$0xff]  }
  0x5c   : > { %10828 = vmatprep.subr.bf16.mxu1 %v15035_v34  ;;  %v291_v5 = vld [vmem:[%s17807_s29] sm:$0xff]  ;;  %v293_v6 = vld [vmem:[%s17807_s29 + $0x10] sm:$0xff] }
  0x5d   : > { %v15083_v7 = vld [vmem:[%s17784_s12 + $0x4e4] ss:$16 sps:$4 sm:$0xff]   ;;  %v17890_v9 = vpack.c.bf16 %v291_v5, %v291_v5  ;;  %v17892_v10 = vpack.c.bf16 %v293_v6, %v293_v6  ;;  %v15081_v11 = vld [vmem:[%s17784_s12 + $0x4e0] ss:$16 sps:$4 sm:$0xff]  }
  0x5e   : > { %10788 = vmatpush2.bf16.msra.mxu0 %v15037_v35  ;;  %v15086_v8 = vld [vmem:[%s17784_s12 + $0x6e4] ss:$16 sps:$4 sm:$0xff]   ;;  %v15084_v12 = vld [vmem:[%s17784_s12 + $0x6e0] ss:$16 sps:$4 sm:$0xff]   ;;  %v296_v35 = vld [vmem:[%s17807_s29 + $0x28] sm:$0xff] }
  0x5f   : > { %10829 = vmatpush2.bf16.msra.mxu1 %v15038_v36  ;;  %10789 = vmatprep.subr.bf16.mxu0 %v15039_v37  ;;  %v15089_v13 = vld [vmem:[%s17784_s12 + $0x4c4] ss:$16 sps:$4 sm:$0xff]   ;;  %v15087_v15 = vld [vmem:[%s17784_s12 + $0x4c0] ss:$16 sps:$4 sm:$0xff]  }
  0x60   : > { %10830 = vmatprep.subr.bf16.mxu1 %v15041_v38  ;;  %v15092_v14 = vld [vmem:[%s17784_s12 + $0x6c4] ss:$16 sps:$4 sm:$0xff]   ;;  %v15090_v16 = vld [vmem:[%s17784_s12 + $0x6c0] ss:$16 sps:$4 sm:$0xff]   ;;  %v17923_v38 = vpack.c.bf16 %v296_v35, %v296_v35 }
  0x61   : > { %v15095_v17 = vld [vmem:[%s17784_s12 + $0x4a4] ss:$16 sps:$4 sm:$0xff]   ;;  %v15093_v19 = vld [vmem:[%s17784_s12 + $0x4a0] ss:$16 sps:$4 sm:$0xff]  }
  0x62   : > { %10790 = vmatpush2.bf16.msra.mxu0 %v15043_v39  ;;  %v15098_v18 = vld [vmem:[%s17784_s12 + $0x6a4] ss:$16 sps:$4 sm:$0xff]   ;;  %v15096_v20 = vld [vmem:[%s17784_s12 + $0x6a0] ss:$16 sps:$4 sm:$0xff]   ;;  %v298_v39 = vld [vmem:[%s17807_s29 + $0x38] sm:$0xff] }
  0x63   : > { %10831 = vmatpush2.bf16.msra.mxu1 %v15044_v40  ;;  %10791 = vmatprep.subr.bf16.mxu0 %v15045_v41  ;;  %v15101_v21 = vld [vmem:[%s17784_s12 + $0x484] ss:$16 sps:$4 sm:$0xff]   ;;  %v15099_v23 = vld [vmem:[%s17784_s12 + $0x480] ss:$16 sps:$4 sm:$0xff]   ;;  %v17927_v41 = vpack.c.bf16 %v298_v39, %v298_v39 }
  0x64   : > { %10832 = vmatprep.subr.bf16.mxu1 %v15047_v42  ;;  %v15104_v22 = vld [vmem:[%s17784_s12 + $0x684] ss:$16 sps:$4 sm:$0xff]   ;;  %v15102_v24 = vld [vmem:[%s17784_s12 + $0x680] ss:$16 sps:$4 sm:$0xff]  }
  0x65   : > { %v15107_v25 = vld [vmem:[%s17784_s12 + $0x464] ss:$16 sps:$4 sm:$0xff]   ;;  %v15105_v27 = vld [vmem:[%s17784_s12 + $0x460] ss:$16 sps:$4 sm:$0xff]  }
  0x66   : > { %10792 = vmatpush2.bf16.msra.mxu0 %v15049_v43  ;;  %v15110_v26 = vld [vmem:[%s17784_s12 + $0x664] ss:$16 sps:$4 sm:$0xff]   ;;  %v15108_v28 = vld [vmem:[%s17784_s12 + $0x660] ss:$16 sps:$4 sm:$0xff]  }
  0x67   : > { %10833 = vmatpush2.bf16.msra.mxu1 %v15050_v44  ;;  %10793 = vmatprep.subr.bf16.mxu0 %v15051_v45  ;;  %v15113_v29 = vld [vmem:[%s17784_s12 + $0x444] ss:$16 sps:$4 sm:$0xff]   ;;  %v15111_v31 = vld [vmem:[%s17784_s12 + $0x440] ss:$16 sps:$4 sm:$0xff]  }
  0x68   : > { %10834 = vmatprep.subr.bf16.mxu1 %v15053_v46  ;;  %v15116_v30 = vld [vmem:[%s17784_s12 + $0x644] ss:$16 sps:$4 sm:$0xff]   ;;  %v15114_v32 = vld [vmem:[%s17784_s12 + $0x640] ss:$16 sps:$4 sm:$0xff]  }
  0x69   : > { %v15119_v33 = vld [vmem:[%s17784_s12 + $0x424] ss:$16 sps:$4 sm:$0xff]   ;;  %v15117_v36 = vld [vmem:[%s17784_s12 + $0x420] ss:$16 sps:$4 sm:$0xff]  }
  0x6a   : > { %10794 = vmatpush2.bf16.msra.mxu0 %v15055_v48  ;;  %v15122_v34 = vld [vmem:[%s17784_s12 + $0x624] ss:$16 sps:$4 sm:$0xff]   ;;  %v15120_v37 = vld [vmem:[%s17784_s12 + $0x620] ss:$16 sps:$4 sm:$0xff]  }
  0x6b   : > { %10835 = vmatpush2.bf16.msra.mxu1 %v15056_v49  ;;  %10795 = vmatprep.subr.bf16.mxu0 %v15057_v52  ;;  %v15125_v40 = vld [vmem:[%s17784_s12 + $0x404] ss:$16 sps:$4 sm:$0xff]   ;;  %v15123_v43 = vld [vmem:[%s17784_s12 + $0x400] ss:$16 sps:$4 sm:$0xff]  }
  0x6c   : > { %10836 = vmatprep.subr.bf16.mxu1 %v15059_v54  ;;  %v15128_v42 = vld [vmem:[%s17784_s12 + $0x604] ss:$16 sps:$4 sm:$0xff]   ;;  %v15126_v44 = vld [vmem:[%s17784_s12 + $0x600] ss:$16 sps:$4 sm:$0xff]  }
  0x6d   : > { %v15131_v45 = vld [vmem:[%s17784_s12 + $0x5e4] ss:$16 sps:$4 sm:$0xff]   ;;  %v15129_v47 = vld [vmem:[%s17784_s12 + $0x5e0] ss:$16 sps:$4 sm:$0xff]  }
  0x6e   : > { %10796 = vmatpush2.bf16.msra.mxu0 %v15061_v55  ;;  %v15134_v46 = vld [vmem:[%s17784_s12 + $0x7e4] ss:$16 sps:$4 sm:$0xff]   ;;  %v15132_v48 = vld [vmem:[%s17784_s12 + $0x7e0] ss:$16 sps:$4 sm:$0xff]  }
  0x6f   : > { %10837 = vmatpush2.bf16.msra.mxu1 %v15062_v56  ;;  %10797 = vmatprep.subr.bf16.mxu0 %v15063_v57  ;;  %v15137_v49 = vld [vmem:[%s17784_s12 + $0x5c4] ss:$16 sps:$4 sm:$0xff]   ;;  %v15135_v52 = vld [vmem:[%s17784_s12 + $0x5c0] ss:$16 sps:$4 sm:$0xff]  }
  0x70   : > { %10838 = vmatprep.subr.bf16.mxu1 %v15065_v58  ;;  %v15140_v51 = vld [vmem:[%s17784_s12 + $0x7c4] ss:$16 sps:$4 sm:$0xff]   ;;  %v15138_v54 = vld [vmem:[%s17784_s12 + $0x7c0] ss:$16 sps:$4 sm:$0xff]  }
  0x71   : > { %v15143_v55 = vld [vmem:[%s17784_s12 + $0x5a4] ss:$16 sps:$4 sm:$0xff]   ;;  %v15141_v57 = vld [vmem:[%s17784_s12 + $0x5a0] ss:$16 sps:$4 sm:$0xff]  }
  0x72   : > { %10798 = vmatpush2.bf16.msra.mxu0 %v15067_v59  ;;  %v15146_v56 = vld [vmem:[%s17784_s12 + $0x7a4] ss:$16 sps:$4 sm:$0xff]   ;;  %v15144_v58 = vld [vmem:[%s17784_s12 + $0x7a0] ss:$16 sps:$4 sm:$0xff]  }
  0x73   : > { %10839 = vmatpush2.bf16.msra.mxu1 %v15068_v60  ;;  %10799 = vmatprep.subr.bf16.mxu0 %v15069_v61  ;;  %v15149_v59 = vld [vmem:[%s17784_s12 + $0x584] ss:$16 sps:$4 sm:$0xff]   ;;  %v15147_v61 = vld [vmem:[%s17784_s12 + $0x580] ss:$16 sps:$4 sm:$0xff]  }
  0x74   : > { %10840 = vmatprep.subr.bf16.mxu1 %v15071_v62  ;;  %v15152_v60 = vld [vmem:[%s17784_s12 + $0x784] ss:$16 sps:$4 sm:$0xff]   ;;  %v15150_v62 = vld [vmem:[%s17784_s12 + $0x780] ss:$16 sps:$4 sm:$0xff]  }
  0x75   : > { %v15159_v5 = vld [vmem:[%s17784_s12 + $0x540] ss:$16 sps:$4 sm:$0xff]   ;;  %v15200_v39 = vld [vmem:[%s17784_s12 + $0xa84] ss:$16 sps:$4 sm:$0xff]  }
  0x76   : > { %10800 = vmatpush2.bf16.msra.mxu0 %v15073_v63  ;;  %v15155_v63 = vld [vmem:[%s17784_s12 + $0x564] ss:$16 sps:$4 sm:$0xff]   ;;  %v15162_v6 = vld [vmem:[%s17784_s12 + $0x740] ss:$16 sps:$4 sm:$0xff]  }
  0x77   : > { %10841 = vmatpush2.bf16.msra.mxu1 %v15074_v0  ;;  %10801 = vmatprep.subr.bf16.mxu0 %v15075_v1  ;;  %v15158_v0 = vld [vmem:[%s17784_s12 + $0x764] ss:$16 sps:$4 sm:$0xff]   ;;  %v15153_v1 = vld [vmem:[%s17784_s12 + $0x560] ss:$16 sps:$4 sm:$0xff]  }
  0x78   : > { %10842 = vmatprep.subr.bf16.mxu1 %v15077_v2  ;;  %v15156_v2 = vld [vmem:[%s17784_s12 + $0x760] ss:$16 sps:$4 sm:$0xff]  }
  0x79   : > { %v15189_v35 = vld [vmem:[%s17784_s12 + $0x8a0] ss:$16 sps:$4 sm:$0xff]  }
  0x7a   : > { %10802 = vmatpush2.bf16.msra.mxu0 %v15079_v3  ;;  %v15161_v3 = vld [vmem:[%s17784_s12 + $0x544] ss:$16 sps:$4 sm:$0xff]  }
  0x7b   : > { %10843 = vmatpush2.bf16.msra.mxu1 %v15080_v4  ;;  %10853 = vmatprep.subr.bf16.mxu0 %v15083_v7  ;;  %v15164_v4 = vld [vmem:[%s17784_s12 + $0x744] ss:$16 sps:$4 sm:$0xff]  }
  0x7c   : > { %10894 = vmatprep.subr.bf16.mxu1 %v15086_v8  ;;  %v15167_v7 = vld [vmem:[%s17784_s12 + $0x524] ss:$16 sps:$4 sm:$0xff]  }
  0x7d   : > { %10804 = vmatmul.mubr.bf16.vlgmr.msra.gmra.mxu0 %v17890_v9  ;;  %v15170_v8 = vld [vmem:[%s17784_s12 + $0x724] ss:$16 sps:$4 sm:$0xff]  }
  0x7e   : > { %10845 = vmatmul.mubr.bf16.vlgmr.msra.gmra.mxu1 %v17892_v10  ;;  %10854 = vmatpush1.bf16.msra.mxu0 %v15081_v11  ;;  %v15165_v11 = vld [vmem:[%s17784_s12 + $0x520] ss:$16 sps:$4 sm:$0xff]  }
  0x7f   : > { %10895 = vmatpush1.bf16.msra.mxu1 %v15084_v12  ;;  %10855 = vmatprep.subr.bf16.mxu0 %v15089_v13  ;;  %v15168_v12 = vld [vmem:[%s17784_s12 + $0x720] ss:$16 sps:$4 sm:$0xff]   ;;  %v15173_v13 = vld [vmem:[%s17784_s12 + $0x504] ss:$16 sps:$4 sm:$0xff]  }
  0x80   : > { %10896 = vmatprep.subr.bf16.mxu1 %v15092_v14  ;;  %10885 = vmatprep.mubr.bf16.mxu0 %v17923_v38  ;;  %v15176_v14 = vld [vmem:[%s17784_s12 + $0x704] ss:$16 sps:$4 sm:$0xff]  }
  0x81   : > { %10926 = vmatprep.mubr.bf16.mxu1 %v17927_v41 }
  0x82   : > { %10856 = vmatpush1.bf16.msra.mxu0 %v15087_v15  ;;  %v15171_v15 = vld [vmem:[%s17784_s12 + $0x500] ss:$16 sps:$4 sm:$0xff]  }
  0x83   : > { %10897 = vmatpush1.bf16.msra.mxu1 %v15090_v16  ;;  %10857 = vmatprep.subr.bf16.mxu0 %v15095_v17  ;;  %v15174_v16 = vld [vmem:[%s17784_s12 + $0x700] ss:$16 sps:$4 sm:$0xff]  }
  0x84   : > { %10898 = vmatprep.subr.bf16.mxu1 %v15098_v18  ;;  %v295_v17 = vld [vmem:[%s17807_s29 + $0x20] sm:$0xff]  ;;  %v297_v18 = vld [vmem:[%s17807_s29 + $0x30] sm:$0xff] }
  0x86   : > { %10858 = vmatpush1.bf16.msra.mxu0 %v15093_v19  ;;  %v15179_v19 = vld [vmem:[%s17784_s12 + $0x8e4] ss:$16 sps:$4 sm:$0xff]  }
  0x87   : > { %10899 = vmatpush1.bf16.msra.mxu1 %v15096_v20  ;;  %10859 = vmatprep.subr.bf16.mxu0 %v15101_v21  ;;  %v15182_v20 = vld [vmem:[%s17784_s12 + $0xae4] ss:$16 sps:$4 sm:$0xff]   ;;  %v17970_v21 = vpack.c.bf16 %v295_v17, %v295_v17  ;;  %v15249_v17 = vld [vmem:[%s17784_s12 + $0x960] ss:$16 sps:$4 sm:$0xff]  }
  0x88   : > { %10900 = vmatprep.subr.bf16.mxu1 %v15104_v22  ;;  %v17972_v22 = vpack.c.bf16 %v297_v18, %v297_v18  ;;  %v15252_v18 = vld [vmem:[%s17784_s12 + $0xb60] ss:$16 sps:$4 sm:$0xff]  }
  0x8a   : > { %10860 = vmatpush1.bf16.msra.mxu0 %v15099_v23  ;;  %v15177_v23 = vld [vmem:[%s17784_s12 + $0x8e0] ss:$16 sps:$4 sm:$0xff]  }
  0x8b   : > { %10901 = vmatpush1.bf16.msra.mxu1 %v15102_v24  ;;  %10861 = vmatprep.subr.bf16.mxu0 %v15107_v25  ;;  %v15180_v24 = vld [vmem:[%s17784_s12 + $0xae0] ss:$16 sps:$4 sm:$0xff]   ;;  %v15185_v25 = vld [vmem:[%s17784_s12 + $0x8c4] ss:$16 sps:$4 sm:$0xff]  }
  0x8c   : > { %10902 = vmatprep.subr.bf16.mxu1 %v15110_v26  ;;  %v15188_v26 = vld [vmem:[%s17784_s12 + $0xac4] ss:$16 sps:$4 sm:$0xff]  }
  0x8e   : > { %10862 = vmatpush1.bf16.msra.mxu0 %v15105_v27  ;;  %v300_v27 = vld [vmem:[%s17807_s29 + $0x48] sm:$0xff] }
  0x8f   : > { %10903 = vmatpush1.bf16.msra.mxu1 %v15108_v28  ;;  %10863 = vmatprep.subr.bf16.mxu0 %v15113_v29  ;;  %v15183_v28 = vld [vmem:[%s17784_s12 + $0x8c0] ss:$16 sps:$4 sm:$0xff]  }
  0x90   : > { %10904 = vmatprep.subr.bf16.mxu1 %v15116_v30  ;;  %v15186_v29 = vld [vmem:[%s17784_s12 + $0xac0] ss:$16 sps:$4 sm:$0xff]   ;;  %v17983_v30 = vpack.c.bf16 %v300_v27, %v300_v27 }
  0x91   : > { %v15261_v27 = vld [vmem:[%s17784_s12 + $0x920] ss:$16 sps:$4 sm:$0xff]  }
  0x92   : > { %10864 = vmatpush1.bf16.msra.mxu0 %v15111_v31  ;;  %v302_v31 = vld [vmem:[%s17807_s29 + $0x58] sm:$0xff] }
  0x93   : > { %10905 = vmatpush1.bf16.msra.mxu1 %v15114_v32  ;;  %10865 = vmatprep.subr.bf16.mxu0 %v15119_v33  ;;  %v15191_v32 = vld [vmem:[%s17784_s12 + $0x8a4] ss:$16 sps:$4 sm:$0xff]   ;;  %v17987_v33 = vpack.c.bf16 %v302_v31, %v302_v31 }
  0x94   : > { %10906 = vmatprep.subr.bf16.mxu1 %v15122_v34  ;;  %v15194_v34 = vld [vmem:[%s17784_s12 + $0xaa4] ss:$16 sps:$4 sm:$0xff]  }
  0x95   : > { %v15272_v31 = vld [vmem:[%s17784_s12 + $0xb04] ss:$16 sps:$4 sm:$0xff]  }
  0x96   : > { %10866 = vmatpush1.bf16.msra.mxu0 %v15117_v36  ;;  %v15192_v36 = vld [vmem:[%s17784_s12 + $0xaa0] ss:$16 sps:$4 sm:$0xff]  }
  0x97   : > { %10907 = vmatpush1.bf16.msra.mxu1 %v15120_v37  ;;  %10867 = vmatprep.subr.bf16.mxu0 %v15125_v40  ;;  %v15197_v37 = vld [vmem:[%s17784_s12 + $0x884] ss:$16 sps:$4 sm:$0xff]   ;;  %v15195_v40 = vld [vmem:[%s17784_s12 + $0x880] ss:$16 sps:$4 sm:$0xff]  }
  0x98   : > { %10908 = vmatprep.subr.bf16.mxu1 %v15128_v42  ;;  %v15198_v42 = vld [vmem:[%s17784_s12 + $0xa80] ss:$16 sps:$4 sm:$0xff]  }
  0x9a   : > { %10868 = vmatpush1.bf16.msra.mxu0 %v15123_v43  ;;  %v15203_v43 = vld [vmem:[%s17784_s12 + $0x864] ss:$16 sps:$4 sm:$0xff]  }
  0x9b   : > { %10909 = vmatpush1.bf16.msra.mxu1 %v15126_v44  ;;  %10869 = vmatprep.subr.bf16.mxu0 %v15131_v45  ;;  %v15206_v44 = vld [vmem:[%s17784_s12 + $0xa64] ss:$16 sps:$4 sm:$0xff]   ;;  %v15201_v45 = vld [vmem:[%s17784_s12 + $0x860] ss:$16 sps:$4 sm:$0xff]  }
  0x9c   : > { %10910 = vmatprep.subr.bf16.mxu1 %v15134_v46  ;;  %v15204_v46 = vld [vmem:[%s17784_s12 + $0xa60] ss:$16 sps:$4 sm:$0xff]  }
  0x9e   : > { %10870 = vmatpush2.bf16.msra.mxu0 %v15129_v47  ;;  %v15209_v47 = vld [vmem:[%s17784_s12 + $0x844] ss:$16 sps:$4 sm:$0xff]  }
  0x9f   : > { %10911 = vmatpush2.bf16.msra.mxu1 %v15132_v48  ;;  %10871 = vmatprep.subr.bf16.mxu0 %v15137_v49  ;;  %v15212_v48 = vld [vmem:[%s17784_s12 + $0xa44] ss:$16 sps:$4 sm:$0xff]   ;;  %v15207_v49 = vld [vmem:[%s17784_s12 + $0x840] ss:$16 sps:$4 sm:$0xff]  }
  0xa0   : > { %10912 = vmatprep.subr.bf16.mxu1 %v15140_v51  ;;  %v15210_v51 = vld [vmem:[%s17784_s12 + $0xa40] ss:$16 sps:$4 sm:$0xff]  }
  0xa2   : > { %10872 = vmatpush2.bf16.msra.mxu0 %v15135_v52  ;;  %v15215_v52 = vld [vmem:[%s17784_s12 + $0x824] ss:$16 sps:$4 sm:$0xff]  }
  0xa3   : > { %10913 = vmatpush2.bf16.msra.mxu1 %v15138_v54  ;;  %10873 = vmatprep.subr.bf16.mxu0 %v15143_v55  ;;  %v15218_v54 = vld [vmem:[%s17784_s12 + $0xa24] ss:$16 sps:$4 sm:$0xff]   ;;  %v15213_v55 = vld [vmem:[%s17784_s12 + $0x820] ss:$16 sps:$4 sm:$0xff]  }
  0xa4   : > { %10914 = vmatprep.subr.bf16.mxu1 %v15146_v56  ;;  %v15216_v56 = vld [vmem:[%s17784_s12 + $0xa20] ss:$16 sps:$4 sm:$0xff]  }
  0xa6   : > { %10874 = vmatpush2.bf16.msra.mxu0 %v15141_v57  ;;  %v15221_v57 = vld [vmem:[%s17784_s12 + $0x804] ss:$16 sps:$4 sm:$0xff]  }
  0xa7   : > { %10915 = vmatpush2.bf16.msra.mxu1 %v15144_v58  ;;  %10875 = vmatprep.subr.bf16.mxu0 %v15149_v59  ;;  %v15224_v58 = vld [vmem:[%s17784_s12 + $0xa04] ss:$16 sps:$4 sm:$0xff]   ;;  %v15219_v59 = vld [vmem:[%s17784_s12 + $0x800] ss:$16 sps:$4 sm:$0xff]  }
  0xa8   : > { %10916 = vmatprep.subr.bf16.mxu1 %v15152_v60  ;;  %v15222_v60 = vld [vmem:[%s17784_s12 + $0xa00] ss:$16 sps:$4 sm:$0xff]  }
  0xaa   : > { %10876 = vmatpush2.bf16.msra.mxu0 %v15147_v61  ;;  %v15227_v61 = vld [vmem:[%s17784_s12 + $0x9e4] ss:$16 sps:$4 sm:$0xff]  }
  0xab   : > { %10917 = vmatpush2.bf16.msra.mxu1 %v15150_v62  ;;  %10877 = vmatprep.subr.bf16.mxu0 %v15155_v63  ;;  %v15230_v62 = vld [vmem:[%s17784_s12 + $0xbe4] ss:$16 sps:$4 sm:$0xff]   ;;  %v15225_v63 = vld [vmem:[%s17784_s12 + $0x9e0] ss:$16 sps:$4 sm:$0xff]  }
  0xac   : > { %10918 = vmatprep.subr.bf16.mxu1 %v15158_v0  ;;  %v15228_v0 = vld [vmem:[%s17784_s12 + $0xbe0] ss:$16 sps:$4 sm:$0xff]  }
  0xae   : > { %10878 = vmatpush2.bf16.msra.mxu0 %v15153_v1  ;;  %v15233_v1 = vld [vmem:[%s17784_s12 + $0x9c4] ss:$16 sps:$4 sm:$0xff]  }
  0xaf   : > { %10919 = vmatpush2.bf16.msra.mxu1 %v15156_v2  ;;  %10879 = vmatprep.subr.bf16.mxu0 %v15161_v3  ;;  %v15236_v2 = vld [vmem:[%s17784_s12 + $0xbc4] ss:$16 sps:$4 sm:$0xff]   ;;  %v15231_v3 = vld [vmem:[%s17784_s12 + $0x9c0] ss:$16 sps:$4 sm:$0xff]  }
  0xb0   : > { %10920 = vmatprep.subr.bf16.mxu1 %v15164_v4  ;;  %v15234_v4 = vld [vmem:[%s17784_s12 + $0xbc0] ss:$16 sps:$4 sm:$0xff]  }
  0xb2   : > { %10880 = vmatpush2.bf16.msra.mxu0 %v15159_v5  ;;  %v15239_v5 = vld [vmem:[%s17784_s12 + $0x9a4] ss:$16 sps:$4 sm:$0xff]  }
  0xb3   : > { %10921 = vmatpush2.bf16.msra.mxu1 %v15162_v6  ;;  %10881 = vmatprep.subr.bf16.mxu0 %v15167_v7  ;;  %v15242_v6 = vld [vmem:[%s17784_s12 + $0xba4] ss:$16 sps:$4 sm:$0xff]   ;;  %v15237_v7 = vld [vmem:[%s17784_s12 + $0x9a0] ss:$16 sps:$4 sm:$0xff]  }
  0xb4   : > { %10922 = vmatprep.subr.bf16.mxu1 %v15170_v8  ;;  %v15240_v8 = vld [vmem:[%s17784_s12 + $0xba0] ss:$16 sps:$4 sm:$0xff]  }
  0xb6   : > { %10882 = vmatpush2.bf16.msra.mxu0 %v15165_v11  ;;  %v15245_v11 = vld [vmem:[%s17784_s12 + $0x984] ss:$16 sps:$4 sm:$0xff]  }
  0xb7   : > { %10923 = vmatpush2.bf16.msra.mxu1 %v15168_v12  ;;  %10883 = vmatprep.subr.bf16.mxu0 %v15173_v13  ;;  %v15248_v12 = vld [vmem:[%s17784_s12 + $0xb84] ss:$16 sps:$4 sm:$0xff]   ;;  %v15243_v13 = vld [vmem:[%s17784_s12 + $0x980] ss:$16 sps:$4 sm:$0xff]  }
  0xb8   : > { %10924 = vmatprep.subr.bf16.mxu1 %v15176_v14  ;;  %v15246_v14 = vld [vmem:[%s17784_s12 + $0xb80] ss:$16 sps:$4 sm:$0xff]  }
  0xba   : > { %10884 = vmatpush2.bf16.msra.mxu0 %v15171_v15  ;;  %v15251_v15 = vld [vmem:[%s17784_s12 + $0x964] ss:$16 sps:$4 sm:$0xff]  }
  0xbb   : > { %10925 = vmatpush2.bf16.msra.mxu1 %v15174_v16  ;;  %10935 = vmatprep.subr.bf16.mxu0 %v15179_v19  ;;  %v15254_v16 = vld [vmem:[%s17784_s12 + $0xb64] ss:$16 sps:$4 sm:$0xff]  }
  0xbc   : > { %10976 = vmatprep.subr.bf16.mxu1 %v15182_v20  ;;  %v15257_v19 = vld [vmem:[%s17784_s12 + $0x944] ss:$16 sps:$4 sm:$0xff]  }
  0xbd   : > { %10886 = vmatmul.mubr.bf16.vlgmr.msra.gmra.mxu0 %v17970_v21  ;;  %v15260_v20 = vld [vmem:[%s17784_s12 + $0xb44] ss:$16 sps:$4 sm:$0xff]  }
  0xbe   : > { %10927 = vmatmul.mubr.bf16.vlgmr.msra.gmra.mxu1 %v17972_v22  ;;  %10936 = vmatpush1.bf16.msra.mxu0 %v15177_v23  ;;  %v15255_v23 = vld [vmem:[%s17784_s12 + $0x940] ss:$16 sps:$4 sm:$0xff]  }
  0xbf   : > { %10977 = vmatpush1.bf16.msra.mxu1 %v15180_v24  ;;  %10937 = vmatprep.subr.bf16.mxu0 %v15185_v25  ;;  %v15258_v24 = vld [vmem:[%s17784_s12 + $0xb40] ss:$16 sps:$4 sm:$0xff]   ;;  %v15263_v25 = vld [vmem:[%s17784_s12 + $0x924] ss:$16 sps:$4 sm:$0xff]  }
  0xc0   : > { %10978 = vmatprep.subr.bf16.mxu1 %v15188_v26  ;;  %10967 = vmatprep.mubr.bf16.mxu0 %v17983_v30  ;;  %v15266_v26 = vld [vmem:[%s17784_s12 + $0xb24] ss:$16 sps:$4 sm:$0xff]  }
  0xc1   : > { %11008 = vmatprep.mubr.bf16.mxu1 %v17987_v33 }
  0xc2   : > { %10938 = vmatpush1.bf16.msra.mxu0 %v15183_v28  ;;  %v15264_v28 = vld [vmem:[%s17784_s12 + $0xb20] ss:$16 sps:$4 sm:$0xff]  }
  0xc3   : > { %10979 = vmatpush1.bf16.msra.mxu1 %v15186_v29  ;;  %10939 = vmatprep.subr.bf16.mxu0 %v15191_v32  ;;  %v15269_v29 = vld [vmem:[%s17784_s12 + $0x904] ss:$16 sps:$4 sm:$0xff]   ;;  %v15267_v32 = vld [vmem:[%s17784_s12 + $0x900] ss:$16 sps:$4 sm:$0xff]  }
  0xc4   : > { %10980 = vmatprep.subr.bf16.mxu1 %v15194_v34  ;;  %v15270_v34 = vld [vmem:[%s17784_s12 + $0xb00] ss:$16 sps:$4 sm:$0xff]  }
  0xc6   : > { %10940 = vmatpush1.bf16.msra.mxu0 %v15189_v35  ;;  %v299_v35 = vld [vmem:[%s17807_s29 + $0x40] sm:$0xff] }
  0xc7   : > { %10981 = vmatpush1.bf16.msra.mxu1 %v15192_v36  ;;  %10941 = vmatprep.subr.bf16.mxu0 %v15197_v37  ;;  %v301_v36 = vld [vmem:[%s17807_s29 + $0x50] sm:$0xff] }
  0xc8   : > { %10982 = vmatprep.subr.bf16.mxu1 %v15200_v39  ;;  %v15275_v37 = vld [vmem:[%s17784_s12 + $0xce4] ss:$16 sps:$4 sm:$0xff]  }
  0xc9   : > { %v15278_v39 = vld [vmem:[%s17784_s12 + $0xee4] ss:$16 sps:$4 sm:$0xff]  }
  0xca   : > { %10942 = vmatpush1.bf16.msra.mxu0 %v15195_v40  ;;  %v15273_v40 = vld [vmem:[%s17784_s12 + $0xce0] ss:$16 sps:$4 sm:$0xff]  }
  0xcb   : > { %10983 = vmatpush1.bf16.msra.mxu1 %v15198_v42  ;;  %10943 = vmatprep.subr.bf16.mxu0 %v15203_v43  ;;  %v15276_v42 = vld [vmem:[%s17784_s12 + $0xee0] ss:$16 sps:$4 sm:$0xff]   ;;  %v18052_v43 = vpack.c.bf16 %v299_v35, %v299_v35 }
  0xcc   : > { %10984 = vmatprep.subr.bf16.mxu1 %v15206_v44  ;;  %v18054_v44 = vpack.c.bf16 %v301_v36, %v301_v36  ;;  %v15339_v35 = vld [vmem:[%s17784_s12 + $0xd80] ss:$16 sps:$4 sm:$0xff]  }
  0xcd   : > { %v15342_v36 = vld [vmem:[%s17784_s12 + $0xf80] ss:$16 sps:$4 sm:$0xff]  }
  0xce   : > { %10944 = vmatpush1.bf16.msra.mxu0 %v15201_v45  ;;  %v304_v45 = vld [vmem:[%s17807_s29 + $0x68] sm:$0xff] }
  0xcf   : > { %10985 = vmatpush1.bf16.msra.mxu1 %v15204_v46  ;;  %10945 = vmatprep.subr.bf16.mxu0 %v15209_v47  ;;  %v306_v46 = vld [vmem:[%s17807_s29 + $0x78] sm:$0xff]  ;;  %v15281_v47 = vld [vmem:[%s17784_s12 + $0xcc4] ss:$16 sps:$4 sm:$0xff]  }
  0xd0   : > { %10986 = vmatprep.subr.bf16.mxu1 %v15212_v48  ;;  %v15284_v48 = vld [vmem:[%s17784_s12 + $0xec4] ss:$16 sps:$4 sm:$0xff]  }
  0xd2   : > { %10946 = vmatpush1.bf16.msra.mxu0 %v15207_v49  ;;  %v18060_v49 = vpack.c.bf16 %v304_v45, %v304_v45  ;;  %v15353_v45 = vld [vmem:[%s17784_s12 + $0xd44] ss:$16 sps:$4 sm:$0xff]  }
  0xd3   : > { %10987 = vmatpush1.bf16.msra.mxu1 %v15210_v51  ;;  %10947 = vmatprep.subr.bf16.mxu0 %v15215_v52  ;;  %v18062_v51 = vpack.c.bf16 %v306_v46, %v306_v46  ;;  %v15279_v52 = vld [vmem:[%s17784_s12 + $0xcc0] ss:$16 sps:$4 sm:$0xff]   ;;  %v15356_v46 = vld [vmem:[%s17784_s12 + $0xf44] ss:$16 sps:$4 sm:$0xff]  }
  0xd4   : > { %10988 = vmatprep.subr.bf16.mxu1 %v15218_v54  ;;  %v15282_v54 = vld [vmem:[%s17784_s12 + $0xec0] ss:$16 sps:$4 sm:$0xff]  }
  0xd6   : > { %10948 = vmatpush1.bf16.msra.mxu0 %v15213_v55  ;;  %v15287_v55 = vld [vmem:[%s17784_s12 + $0xca4] ss:$16 sps:$4 sm:$0xff]  }
  0xd7   : > { %10989 = vmatpush1.bf16.msra.mxu1 %v15216_v56  ;;  %10949 = vmatprep.subr.bf16.mxu0 %v15221_v57  ;;  %v15290_v56 = vld [vmem:[%s17784_s12 + $0xea4] ss:$16 sps:$4 sm:$0xff]   ;;  %v15285_v57 = vld [vmem:[%s17784_s12 + $0xca0] ss:$16 sps:$4 sm:$0xff]  }
  0xd8   : > { %10990 = vmatprep.subr.bf16.mxu1 %v15224_v58  ;;  %v15288_v58 = vld [vmem:[%s17784_s12 + $0xea0] ss:$16 sps:$4 sm:$0xff]  }
  0xda   : > { %10950 = vmatpush1.bf16.msra.mxu0 %v15219_v59  ;;  %v15293_v59 = vld [vmem:[%s17784_s12 + $0xc84] ss:$16 sps:$4 sm:$0xff]  }
  0xdb   : > { %10991 = vmatpush1.bf16.msra.mxu1 %v15222_v60  ;;  %10951 = vmatprep.subr.bf16.mxu0 %v15227_v61  ;;  %v15296_v60 = vld [vmem:[%s17784_s12 + $0xe84] ss:$16 sps:$4 sm:$0xff]   ;;  %v15291_v61 = vld [vmem:[%s17784_s12 + $0xc80] ss:$16 sps:$4 sm:$0xff]  }
  0xdc   : > { %10992 = vmatprep.subr.bf16.mxu1 %v15230_v62  ;;  %v15294_v62 = vld [vmem:[%s17784_s12 + $0xe80] ss:$16 sps:$4 sm:$0xff]  }
  0xde   : > { %10952 = vmatpush2.bf16.msra.mxu0 %v15225_v63  ;;  %v15299_v63 = vld [vmem:[%s17784_s12 + $0xc64] ss:$16 sps:$4 sm:$0xff]  }
  0xdf   : > { %10993 = vmatpush2.bf16.msra.mxu1 %v15228_v0  ;;  %10953 = vmatprep.subr.bf16.mxu0 %v15233_v1  ;;  %v15302_v0 = vld [vmem:[%s17784_s12 + $0xe64] ss:$16 sps:$4 sm:$0xff]   ;;  %v15297_v1 = vld [vmem:[%s17784_s12 + $0xc60] ss:$16 sps:$4 sm:$0xff]  }
  0xe0   : > { %10994 = vmatprep.subr.bf16.mxu1 %v15236_v2  ;;  %v15300_v2 = vld [vmem:[%s17784_s12 + $0xe60] ss:$16 sps:$4 sm:$0xff]  }
  0xe2   : > { %10954 = vmatpush2.bf16.msra.mxu0 %v15231_v3  ;;  %v15305_v3 = vld [vmem:[%s17784_s12 + $0xc44] ss:$16 sps:$4 sm:$0xff]  }
  0xe3   : > { %10995 = vmatpush2.bf16.msra.mxu1 %v15234_v4  ;;  %10955 = vmatprep.subr.bf16.mxu0 %v15239_v5  ;;  %v15308_v4 = vld [vmem:[%s17784_s12 + $0xe44] ss:$16 sps:$4 sm:$0xff]   ;;  %v15303_v5 = vld [vmem:[%s17784_s12 + $0xc40] ss:$16 sps:$4 sm:$0xff]  }
  0xe4   : > { %10996 = vmatprep.subr.bf16.mxu1 %v15242_v6  ;;  %v15306_v6 = vld [vmem:[%s17784_s12 + $0xe40] ss:$16 sps:$4 sm:$0xff]  }
  0xe6   : > { %10956 = vmatpush2.bf16.msra.mxu0 %v15237_v7  ;;  %v15311_v7 = vld [vmem:[%s17784_s12 + $0xc24] ss:$16 sps:$4 sm:$0xff]  }
  0xe7   : > { %10997 = vmatpush2.bf16.msra.mxu1 %v15240_v8  ;;  %10957 = vmatprep.subr.bf16.mxu0 %v15245_v11  ;;  %v15314_v8 = vld [vmem:[%s17784_s12 + $0xe24] ss:$16 sps:$4 sm:$0xff]   ;;  %v15309_v11 = vld [vmem:[%s17784_s12 + $0xc20] ss:$16 sps:$4 sm:$0xff]  }
  0xe8   : > { %10998 = vmatprep.subr.bf16.mxu1 %v15248_v12  ;;  %v15312_v12 = vld [vmem:[%s17784_s12 + $0xe20] ss:$16 sps:$4 sm:$0xff]  }
  0xea   : > { %10958 = vmatpush2.bf16.msra.mxu0 %v15243_v13  ;;  %v15317_v13 = vld [vmem:[%s17784_s12 + $0xc04] ss:$16 sps:$4 sm:$0xff]  }
  0xeb   : > { %10999 = vmatpush2.bf16.msra.mxu1 %v15246_v14  ;;  %10959 = vmatprep.subr.bf16.mxu0 %v15251_v15  ;;  %v15320_v14 = vld [vmem:[%s17784_s12 + $0xe04] ss:$16 sps:$4 sm:$0xff]   ;;  %v15315_v15 = vld [vmem:[%s17784_s12 + $0xc00] ss:$16 sps:$4 sm:$0xff]  }
  0xec   : > { %11000 = vmatprep.subr.bf16.mxu1 %v15254_v16  ;;  %v15318_v16 = vld [vmem:[%s17784_s12 + $0xe00] ss:$16 sps:$4 sm:$0xff]  }
  0xee   : > { %10960 = vmatpush2.bf16.msra.mxu0 %v15249_v17  ;;  %v15323_v17 = vld [vmem:[%s17784_s12 + $0xde4] ss:$16 sps:$4 sm:$0xff]  }
  0xef   : > { %11001 = vmatpush2.bf16.msra.mxu1 %v15252_v18  ;;  %10961 = vmatprep.subr.bf16.mxu0 %v15257_v19  ;;  %v15326_v18 = vld [vmem:[%s17784_s12 + $0xfe4] ss:$16 sps:$4 sm:$0xff]   ;;  %v15321_v19 = vld [vmem:[%s17784_s12 + $0xde0] ss:$16 sps:$4 sm:$0xff]  }
  0xf0   : > { %11002 = vmatprep.subr.bf16.mxu1 %v15260_v20  ;;  %v15324_v20 = vld [vmem:[%s17784_s12 + $0xfe0] ss:$16 sps:$4 sm:$0xff]  }
  0xf2   : > { %10962 = vmatpush2.bf16.msra.mxu0 %v15255_v23  ;;  %v15329_v23 = vld [vmem:[%s17784_s12 + $0xdc4] ss:$16 sps:$4 sm:$0xff]  }
  0xf3   : > { %11003 = vmatpush2.bf16.msra.mxu1 %v15258_v24  ;;  %10963 = vmatprep.subr.bf16.mxu0 %v15263_v25  ;;  %v15332_v24 = vld [vmem:[%s17784_s12 + $0xfc4] ss:$16 sps:$4 sm:$0xff]   ;;  %v15327_v25 = vld [vmem:[%s17784_s12 + $0xdc0] ss:$16 sps:$4 sm:$0xff]  }
  0xf4   : > { %11004 = vmatprep.subr.bf16.mxu1 %v15266_v26  ;;  %v15330_v26 = vld [vmem:[%s17784_s12 + $0xfc0] ss:$16 sps:$4 sm:$0xff]  }
  0xf6   : > { %10964 = vmatpush2.bf16.msra.mxu0 %v15261_v27  ;;  %v15335_v27 = vld [vmem:[%s17784_s12 + $0xda4] ss:$16 sps:$4 sm:$0xff]  }
  0xf7   : > { %11005 = vmatpush2.bf16.msra.mxu1 %v15264_v28  ;;  %10965 = vmatprep.subr.bf16.mxu0 %v15269_v29  ;;  %v15338_v28 = vld [vmem:[%s17784_s12 + $0xfa4] ss:$16 sps:$4 sm:$0xff]   ;;  %v15333_v29 = vld [vmem:[%s17784_s12 + $0xda0] ss:$16 sps:$4 sm:$0xff]  }
  0xf8   : > { %11006 = vmatprep.subr.bf16.mxu1 %v15272_v31  ;;  %v15336_v31 = vld [vmem:[%s17784_s12 + $0xfa0] ss:$16 sps:$4 sm:$0xff]  }
  0xfa   : > { %10966 = vmatpush2.bf16.msra.mxu0 %v15267_v32  ;;  %v15341_v32 = vld [vmem:[%s17784_s12 + $0xd84] ss:$16 sps:$4 sm:$0xff]  }
  0xfb   : > { %11007 = vmatpush2.bf16.msra.mxu1 %v15270_v34  ;;  %11017 = vmatprep.subr.bf16.mxu0 %v15275_v37  ;;  %v15344_v34 = vld [vmem:[%s17784_s12 + $0xf84] ss:$16 sps:$4 sm:$0xff]  }
  0xfc   : > { %11058 = vmatprep.subr.bf16.mxu1 %v15278_v39  ;;  %v15347_v37 = vld [vmem:[%s17784_s12 + $0xd64] ss:$16 sps:$4 sm:$0xff]  }
  0xfd   : > { %10968 = vmatmul.mubr.bf16.vlgmr.msra.gmra.mxu0 %v18052_v43  ;;  %v15350_v39 = vld [vmem:[%s17784_s12 + $0xf64] ss:$16 sps:$4 sm:$0xff]  }
  0xfe   : > { %11009 = vmatmul.mubr.bf16.vlgmr.msra.gmra.mxu1 %v18054_v44  ;;  %11018 = vmatpush1.bf16.msra.mxu0 %v15273_v40  ;;  %v15345_v40 = vld [vmem:[%s17784_s12 + $0xd60] ss:$16 sps:$4 sm:$0xff]  }
  0xff   : > { %11059 = vmatpush1.bf16.msra.mxu1 %v15276_v42  ;;  %11019 = vmatprep.subr.bf16.mxu0 %v15281_v47  ;;  %v15348_v42 = vld [vmem:[%s17784_s12 + $0xf60] ss:$16 sps:$4 sm:$0xff]  }
 0x100   : > { %11060 = vmatprep.subr.bf16.mxu1 %v15284_v48  ;;  %11049 = vmatprep.mubr.bf16.mxu0 %v18060_v49  ;;  %v15351_v47 = vld [vmem:[%s17784_s12 + $0xd40] ss:$16 sps:$4 sm:$0xff]  }
 0x101   : > { %11090 = vmatprep.mubr.bf16.mxu1 %v18062_v51  ;;  %v15354_v48 = vld [vmem:[%s17784_s12 + $0xf40] ss:$16 sps:$4 sm:$0xff]  }
 0x102   : > { %11020 = vmatpush1.bf16.msra.mxu0 %v15279_v52  ;;  %v15359_v52 = vld [vmem:[%s17784_s12 + $0xd24] ss:$16 sps:$4 sm:$0xff]  }
 0x103   : > { %11061 = vmatpush1.bf16.msra.mxu1 %v15282_v54  ;;  %11021 = vmatprep.subr.bf16.mxu0 %v15287_v55  ;;  %v15362_v54 = vld [vmem:[%s17784_s12 + $0xf24] ss:$16 sps:$4 sm:$0xff]   ;;  %v15357_v55 = vld [vmem:[%s17784_s12 + $0xd20] ss:$16 sps:$4 sm:$0xff]  }
 0x104   : > { %11062 = vmatprep.subr.bf16.mxu1 %v15290_v56  ;;  %v15360_v56 = vld [vmem:[%s17784_s12 + $0xf20] ss:$16 sps:$4 sm:$0xff]  }
 0x106   : > { %11022 = vmatpush1.bf16.msra.mxu0 %v15285_v57  ;;  %v15365_v57 = vld [vmem:[%s17784_s12 + $0xd04] ss:$16 sps:$4 sm:$0xff]  }
 0x107   : > { %11063 = vmatpush1.bf16.msra.mxu1 %v15288_v58  ;;  %11023 = vmatprep.subr.bf16.mxu0 %v15293_v59  ;;  %v15368_v58 = vld [vmem:[%s17784_s12 + $0xf04] ss:$16 sps:$4 sm:$0xff]   ;;  %v15363_v59 = vld [vmem:[%s17784_s12 + $0xd00] ss:$16 sps:$4 sm:$0xff]  }
 0x108   : > { %11064 = vmatprep.subr.bf16.mxu1 %v15296_v60  ;;  %v15366_v60 = vld [vmem:[%s17784_s12 + $0xf00] ss:$16 sps:$4 sm:$0xff]  }
 0x10a   : > { %11024 = vmatpush1.bf16.msra.mxu0 %v15291_v61  ;;  %v303_v61 = vld [vmem:[%s17807_s29 + $0x60] sm:$0xff] }
 0x10b   : > { %11065 = vmatpush1.bf16.msra.mxu1 %v15294_v62  ;;  %11025 = vmatprep.subr.bf16.mxu0 %v15299_v63  ;;  %v305_v62 = vld [vmem:[%s17807_s29 + $0x70] sm:$0xff] }
 0x10c   : > { %11066 = vmatprep.subr.bf16.mxu1 %v15302_v0  ;;  %v15371_v63 = vld [vmem:[%s17784_s12 + $0x10e4] ss:$16 sps:$4 sm:$0xff]  }
 0x10d   : > { %v15374_v0 = vld [vmem:[%s17784_s12 + $0x12e4] ss:$16 sps:$4 sm:$0xff]  }
 0x10e   : > { %11026 = vmatpush1.bf16.msra.mxu0 %v15297_v1  ;;  %v15369_v1 = vld [vmem:[%s17784_s12 + $0x10e0] ss:$16 sps:$4 sm:$0xff]  }
 0x10f   : > { %11067 = vmatpush1.bf16.msra.mxu1 %v15300_v2  ;;  %11027 = vmatprep.subr.bf16.mxu0 %v15305_v3  ;;  %v15372_v2 = vld [vmem:[%s17784_s12 + $0x12e0] ss:$16 sps:$4 sm:$0xff]   ;;  %v18132_v3 = vpack.c.bf16 %v303_v61, %v303_v61  ;;  %v15419_v61 = vld [vmem:[%s17784_s12 + $0x11e4] ss:$16 sps:$4 sm:$0xff]  }
 0x110   : > { %11068 = vmatprep.subr.bf16.mxu1 %v15308_v4  ;;  %v18134_v4 = vpack.c.bf16 %v305_v62, %v305_v62  ;;  %v15422_v62 = vld [vmem:[%s17784_s12 + $0x13e4] ss:$16 sps:$4 sm:$0xff]  }
 0x112   : > { %11028 = vmatpush1.bf16.msra.mxu0 %v15303_v5  ;;  %v308_v5 = vld [vmem:[%s17807_s29 + $0x88] sm:$0xff] }
 0x113   : > { %11069 = vmatpush1.bf16.msra.mxu1 %v15306_v6  ;;  %11029 = vmatprep.subr.bf16.mxu0 %v15311_v7  ;;  %v310_v6 = vld [vmem:[%s17807_s29 + $0x98] sm:$0xff]  ;;  %v15377_v7 = vld [vmem:[%s17784_s12 + $0x10c4] ss:$16 sps:$4 sm:$0xff]  }
 0x114   : > { %11070 = vmatprep.subr.bf16.mxu1 %v15314_v8  ;;  %v15380_v8 = vld [vmem:[%s17784_s12 + $0x12c4] ss:$16 sps:$4 sm:$0xff]  }
 0x116   : > { %11030 = vmatpush1.bf16.msra.mxu0 %v15309_v11  ;;  %v18140_v11 = vpack.c.bf16 %v308_v5, %v308_v5  ;;  %v15423_v5 = vld [vmem:[%s17784_s12 + $0x11c0] ss:$16 sps:$4 sm:$0xff]  }
 0x117   : > { %11071 = vmatpush1.bf16.msra.mxu1 %v15312_v12  ;;  %11031 = vmatprep.subr.bf16.mxu0 %v15317_v13  ;;  %v18142_v12 = vpack.c.bf16 %v310_v6, %v310_v6  ;;  %v15426_v6 = vld [vmem:[%s17784_s12 + $0x13c0] ss:$16 sps:$4 sm:$0xff]  }
 0x118   : > { %11072 = vmatprep.subr.bf16.mxu1 %v15320_v14 }
 0x11a   : > { %11032 = vmatpush1.bf16.msra.mxu0 %v15315_v15  ;;  %v15375_v15 = vld [vmem:[%s17784_s12 + $0x10c0] ss:$16 sps:$4 sm:$0xff]  }
 0x11b   : > { %11073 = vmatpush1.bf16.msra.mxu1 %v15318_v16  ;;  %11033 = vmatprep.subr.bf16.mxu0 %v15323_v17  ;;  %v15378_v16 = vld [vmem:[%s17784_s12 + $0x12c0] ss:$16 sps:$4 sm:$0xff]  }
 0x11c   : > { %11074 = vmatprep.subr.bf16.mxu1 %v15326_v18  ;;  %v15383_v18 = vld [vmem:[%s17784_s12 + $0x10a4] ss:$16 sps:$4 sm:$0xff]  }
 0x11e   : > { %11034 = vmatpush2.bf16.msra.mxu0 %v15321_v19 }
 0x11f   : > { %11075 = vmatpush2.bf16.msra.mxu1 %v15324_v20  ;;  %11035 = vmatprep.subr.bf16.mxu0 %v15329_v23  ;;  %v15386_v23 = vld [vmem:[%s17784_s12 + $0x12a4] ss:$16 sps:$4 sm:$0xff]  }
 0x120   : > { %11076 = vmatprep.subr.bf16.mxu1 %v15332_v24 }
 0x122   : > { %11036 = vmatpush2.bf16.msra.mxu0 %v15327_v25 }
 0x123   : > { %11077 = vmatpush2.bf16.msra.mxu1 %v15330_v26  ;;  %11037 = vmatprep.subr.bf16.mxu0 %v15335_v27  ;;  %v15381_v27 = vld [vmem:[%s17784_s12 + $0x10a0] ss:$16 sps:$4 sm:$0xff]  }
 0x124   : > { %11078 = vmatprep.subr.bf16.mxu1 %v15338_v28  ;;  %v15384_v28 = vld [vmem:[%s17784_s12 + $0x12a0] ss:$16 sps:$4 sm:$0xff]  }
 0x126   : > { %11038 = vmatpush2.bf16.msra.mxu0 %v15333_v29  ;;  %v15389_v29 = vld [vmem:[%s17784_s12 + $0x1084] ss:$16 sps:$4 sm:$0xff]  }
 0x127   : > { %11079 = vmatpush2.bf16.msra.mxu1 %v15336_v31  ;;  %11039 = vmatprep.subr.bf16.mxu0 %v15341_v32 }
 0x128   : > { %11080 = vmatprep.subr.bf16.mxu1 %v15344_v34  ;;  %v15392_v34 = vld [vmem:[%s17784_s12 + $0x1284] ss:$16 sps:$4 sm:$0xff]  }
 0x12a   : > { %11040 = vmatpush2.bf16.msra.mxu0 %v15339_v35  ;;  %v15387_v35 = vld [vmem:[%s17784_s12 + $0x1080] ss:$16 sps:$4 sm:$0xff]  }
 0x12b   : > { %11081 = vmatpush2.bf16.msra.mxu1 %v15342_v36  ;;  %11041 = vmatprep.subr.bf16.mxu0 %v15347_v37  ;;  %v15390_v36 = vld [vmem:[%s17784_s12 + $0x1280] ss:$16 sps:$4 sm:$0xff]   ;;  %v15395_v37 = vld [vmem:[%s17784_s12 + $0x1064] ss:$16 sps:$4 sm:$0xff]  }
 0x12c   : > { %11082 = vmatprep.subr.bf16.mxu1 %v15350_v39  ;;  %v15398_v39 = vld [vmem:[%s17784_s12 + $0x1264] ss:$16 sps:$4 sm:$0xff]  }
 0x12e   : > { %11042 = vmatpush2.bf16.msra.mxu0 %v15345_v40  ;;  %v15393_v40 = vld [vmem:[%s17784_s12 + $0x1060] ss:$16 sps:$4 sm:$0xff]  }
 0x12f   : > { %11083 = vmatpush2.bf16.msra.mxu1 %v15348_v42  ;;  %11043 = vmatprep.subr.bf16.mxu0 %v15353_v45  ;;  %v15396_v42 = vld [vmem:[%s17784_s12 + $0x1260] ss:$16 sps:$4 sm:$0xff]   ;;  %v15401_v45 = vld [vmem:[%s17784_s12 + $0x1044] ss:$16 sps:$4 sm:$0xff]  }
 0x130   : > { %11084 = vmatprep.subr.bf16.mxu1 %v15356_v46  ;;  %v15404_v46 = vld [vmem:[%s17784_s12 + $0x1244] ss:$16 sps:$4 sm:$0xff]  }
 0x132   : > { %11044 = vmatpush2.bf16.msra.mxu0 %v15351_v47  ;;  %v15399_v47 = vld [vmem:[%s17784_s12 + $0x1040] ss:$16 sps:$4 sm:$0xff]  }
 0x133   : > { %11085 = vmatpush2.bf16.msra.mxu1 %v15354_v48  ;;  %11045 = vmatprep.subr.bf16.mxu0 %v15359_v52  ;;  %v15402_v48 = vld [vmem:[%s17784_s12 + $0x1240] ss:$16 sps:$4 sm:$0xff]   ;;  %v15407_v52 = vld [vmem:[%s17784_s12 + $0x1024] ss:$16 sps:$4 sm:$0xff]  }
 0x134   : > { %11086 = vmatprep.subr.bf16.mxu1 %v15362_v54  ;;  %v15410_v54 = vld [vmem:[%s17784_s12 + $0x1224] ss:$16 sps:$4 sm:$0xff]  }
 0x136   : > { %11046 = vmatpush2.bf16.msra.mxu0 %v15357_v55  ;;  %v15405_v55 = vld [vmem:[%s17784_s12 + $0x1020] ss:$16 sps:$4 sm:$0xff]  }
 0x137   : > { %11087 = vmatpush2.bf16.msra.mxu1 %v15360_v56  ;;  %11047 = vmatprep.subr.bf16.mxu0 %v15365_v57  ;;  %v15408_v56 = vld [vmem:[%s17784_s12 + $0x1220] ss:$16 sps:$4 sm:$0xff]   ;;  %v15413_v57 = vld [vmem:[%s17784_s12 + $0x1004] ss:$16 sps:$4 sm:$0xff]  }
 0x138   : > { %11088 = vmatprep.subr.bf16.mxu1 %v15368_v58  ;;  %v15416_v58 = vld [vmem:[%s17784_s12 + $0x1204] ss:$16 sps:$4 sm:$0xff]  }
 0x13a   : > { %11048 = vmatpush2.bf16.msra.mxu0 %v15363_v59  ;;  %v15411_v59 = vld [vmem:[%s17784_s12 + $0x1000] ss:$16 sps:$4 sm:$0xff]  }
 0x13b   : > { %11089 = vmatpush2.bf16.msra.mxu1 %v15366_v60  ;;  %11099 = vmatprep.subr.bf16.mxu0 %v15371_v63  ;;  %v15414_v60 = vld [vmem:[%s17784_s12 + $0x1200] ss:$16 sps:$4 sm:$0xff]  }
 0x13c   : > { %11140 = vmatprep.subr.bf16.mxu1 %v15374_v0  ;;  %v15417_v63 = vld [vmem:[%s17784_s12 + $0x11e0] ss:$16 sps:$4 sm:$0xff]  }
 0x13d   : > { %v10805_v13 = vpop.f32.mrf.mxu0  ;;  %11050 = vmatmul.mubr.bf16.vlgmr.msra.gmra.mxu0 %v18132_v3  ;;  %v15420_v0 = vld [vmem:[%s17784_s12 + $0x13e0] ss:$16 sps:$4 sm:$0xff]  }
 0x13e   : > { %v10846_v14 = vpop.f32.mrf.mxu1  ;;  %11091 = vmatmul.mubr.bf16.vlgmr.msra.gmra.mxu1 %v18134_v4  ;;  %11100 = vmatpush1.bf16.msra.mxu0 %v15369_v1  ;;  %v15425_v1 = vld [vmem:[%s17784_s12 + $0x11c4] ss:$16 sps:$4 sm:$0xff]  }
 0x13f   : > { %v18148_v17 = vadd.f32 %v10846_v14, %v10805_v13  ;;  %11141 = vmatpush1.bf16.msra.mxu1 %v15372_v2  ;;  %v10807_v19 = vpop.f32.mrf.mxu0  ;;  %11101 = vmatprep.subr.bf16.mxu0 %v15377_v7  ;;  %v15428_v2 = vld [vmem:[%s17784_s12 + $0x13c4] ss:$16 sps:$4 sm:$0xff]   ;;  %v15429_v13 = vld [vmem:[%s17784_s12 + $0x11a0] ss:$16 sps:$4 sm:$0xff]  }
 0x140   : > { %v10848_v20 = vpop.f32.mrf.mxu1  ;;  %11142 = vmatprep.subr.bf16.mxu1 %v15380_v8  ;;  %11131 = vmatprep.mubr.bf16.mxu0 %v18140_v11  ;;  %v15431_v7 = vld [vmem:[%s17784_s12 + $0x11a4] ss:$16 sps:$4 sm:$0xff]   ;;  %v15432_v14 = vld [vmem:[%s17784_s12 + $0x13a0] ss:$16 sps:$4 sm:$0xff]  }
 0x141   : > { %v18152_v24 = vadd.f32 %v10848_v20, %v10807_v19  ;;  %11172 = vmatprep.mubr.bf16.mxu1 %v18142_v12  ;;  %v10809_v25 = vpop.f32.mrf.mxu0  ;;  %v15434_v8 = vld [vmem:[%s17784_s12 + $0x13a4] ss:$16 sps:$4 sm:$0xff]   ;;  %v15438_v19 = vld [vmem:[%s17784_s12 + $0x1380] ss:$16 sps:$4 sm:$0xff]  }
 0x142   : > { %v10850_v26 = vpop.f32.mrf.mxu1  ;;  %11102 = vmatpush1.bf16.msra.mxu0 %v15375_v15  ;;  %v15437_v15 = vld [vmem:[%s17784_s12 + $0x1184] ss:$16 sps:$4 sm:$0xff]   ;;  %v15441_v25 = vld [vmem:[%s17784_s12 + $0x1160] ss:$16 sps:$4 sm:$0xff]  }
 0x143   : > { %11143 = vmatpush1.bf16.msra.mxu1 %v15378_v16  ;;  %v10810_v31 = vpop.f32.mrf.mxu0  ;;  %11103 = vmatprep.subr.bf16.mxu0 %v15383_v18  ;;  %v15440_v16 = vld [vmem:[%s17784_s12 + $0x1384] ss:$16 sps:$4 sm:$0xff]   ;;  %v15435_v18 = vld [vmem:[%s17784_s12 + $0x1180] ss:$16 sps:$4 sm:$0xff]  }
 0x144   : > { %v10851_v32 = vpop.f32.mrf.mxu1  ;;  %11144 = vmatprep.subr.bf16.mxu1 %v15386_v23  ;;  %v15443_v20 = vld [vmem:[%s17784_s12 + $0x1164] ss:$16 sps:$4 sm:$0xff]   ;;  %v15444_v26 = vld [vmem:[%s17784_s12 + $0x1360] ss:$16 sps:$4 sm:$0xff]  }
 0x145   : > { %v15446_v23 = vld [vmem:[%s17784_s12 + $0x1364] ss:$16 sps:$4 sm:$0xff]   ;;  %v15450_v31 = vld [vmem:[%s17784_s12 + $0x1340] ss:$16 sps:$4 sm:$0xff]  }
 0x146   : > { %11104 = vmatpush1.bf16.msra.mxu0 %v15381_v27  ;;  %v15449_v27 = vld [vmem:[%s17784_s12 + $0x1144] ss:$16 sps:$4 sm:$0xff]  }
 0x147   : > { %11145 = vmatpush1.bf16.msra.mxu1 %v15384_v28  ;;  %11105 = vmatprep.subr.bf16.mxu0 %v15389_v29  ;;  %v15452_v28 = vld [vmem:[%s17784_s12 + $0x1344] ss:$16 sps:$4 sm:$0xff]   ;;  %v15447_v29 = vld [vmem:[%s17784_s12 + $0x1140] ss:$16 sps:$4 sm:$0xff]  }
 0x148   : > { %11146 = vmatprep.subr.bf16.mxu1 %v15392_v34  ;;  %v15455_v32 = vld [vmem:[%s17784_s12 + $0x1124] ss:$16 sps:$4 sm:$0xff]  }
 0x149   : > { %v15458_v34 = vld [vmem:[%s17784_s12 + $0x1324] ss:$16 sps:$4 sm:$0xff]  }
 0x14a   : > { %11106 = vmatpush1.bf16.msra.mxu0 %v15387_v35  ;;  %v15453_v35 = vld [vmem:[%s17784_s12 + $0x1120] ss:$16 sps:$4 sm:$0xff]  }
 0x14b   : > { %11147 = vmatpush1.bf16.msra.mxu1 %v15390_v36  ;;  %11107 = vmatprep.subr.bf16.mxu0 %v15395_v37  ;;  %v15456_v36 = vld [vmem:[%s17784_s12 + $0x1320] ss:$16 sps:$4 sm:$0xff]   ;;  %v15461_v37 = vld [vmem:[%s17784_s12 + $0x1104] ss:$16 sps:$4 sm:$0xff]  }
 0x14c   : > { %11148 = vmatprep.subr.bf16.mxu1 %v15398_v39  ;;  %v15464_v39 = vld [vmem:[%s17784_s12 + $0x1304] ss:$16 sps:$4 sm:$0xff]  }
 0x14e   : > { %11108 = vmatpush1.bf16.msra.mxu0 %v15393_v40  ;;  %v15459_v40 = vld [vmem:[%s17784_s12 + $0x1100] ss:$16 sps:$4 sm:$0xff]  }
 0x14f   : > { %11149 = vmatpush1.bf16.msra.mxu1 %v15396_v42  ;;  %11109 = vmatprep.subr.bf16.mxu0 %v15401_v45  ;;  %v15462_v42 = vld [vmem:[%s17784_s12 + $0x1300] ss:$16 sps:$4 sm:$0xff]  }
 0x150   : > { %11150 = vmatprep.subr.bf16.mxu1 %v15404_v46  ;;  %v307_v45 = vld [vmem:[%s17807_s29 + $0x80] sm:$0xff]  ;;  %v309_v46 = vld [vmem:[%s17807_s29 + $0x90] sm:$0xff] }
 0x152   : > { %11110 = vmatpush1.bf16.msra.mxu0 %v15399_v47  ;;  %v15467_v47 = vld [vmem:[%s17784_s12 + $0x14e4] ss:$16 sps:$4 sm:$0xff]  }
 0x153   : > { %11151 = vmatpush1.bf16.msra.mxu1 %v15402_v48  ;;  %11111 = vmatprep.subr.bf16.mxu0 %v15407_v52  ;;  %v15470_v48 = vld [vmem:[%s17784_s12 + $0x16e4] ss:$16 sps:$4 sm:$0xff]   ;;  %v18214_v52 = vpack.c.bf16 %v307_v45, %v307_v45  ;;  %v15501_v45 = vld [vmem:[%s17784_s12 + $0x1420] ss:$16 sps:$4 sm:$0xff]  }
 0x154   : > { %11152 = vmatprep.subr.bf16.mxu1 %v15410_v54  ;;  %v18216_v54 = vpack.c.bf16 %v309_v46, %v309_v46  ;;  %v15504_v46 = vld [vmem:[%s17784_s12 + $0x1620] ss:$16 sps:$4 sm:$0xff]  }
 0x156   : > { %11112 = vmatpush1.bf16.msra.mxu0 %v15405_v55  ;;  %v312_v55 = vld [vmem:[%s17807_s29 + $0xa8] sm:$0xff] }
 0x157   : > { %11153 = vmatpush1.bf16.msra.mxu1 %v15408_v56  ;;  %11113 = vmatprep.subr.bf16.mxu0 %v15413_v57  ;;  %v314_v56 = vld [vmem:[%s17807_s29 + $0xb8] sm:$0xff]  ;;  %v15465_v57 = vld [vmem:[%s17784_s12 + $0x14e0] ss:$16 sps:$4 sm:$0xff]  }
 0x158   : > { %11154 = vmatprep.subr.bf16.mxu1 %v15416_v58  ;;  %v15468_v58 = vld [vmem:[%s17784_s12 + $0x16e0] ss:$16 sps:$4 sm:$0xff]  }
 0x15a   : > { %11114 = vmatpush1.bf16.msra.mxu0 %v15411_v59  ;;  %v15473_v59 = vld [vmem:[%s17784_s12 + $0x14c4] ss:$16 sps:$4 sm:$0xff]  }
 0x15b   : > { %11155 = vmatpush1.bf16.msra.mxu1 %v15414_v60  ;;  %11115 = vmatprep.subr.bf16.mxu0 %v15419_v61  ;;  %v15476_v60 = vld [vmem:[%s17784_s12 + $0x16c4] ss:$16 sps:$4 sm:$0xff]   ;;  %v15471_v61 = vld [vmem:[%s17784_s12 + $0x14c0] ss:$16 sps:$4 sm:$0xff]  }
 0x15c   : > { %11156 = vmatprep.subr.bf16.mxu1 %v15422_v62  ;;  %v15474_v62 = vld [vmem:[%s17784_s12 + $0x16c0] ss:$16 sps:$4 sm:$0xff]  }
 0x15e   : > { %11116 = vmatpush2.bf16.msra.mxu0 %v15417_v63  ;;  %v18226_v63 = vpack.c.bf16 %v312_v55, %v312_v55  ;;  %v15507_v55 = vld [vmem:[%s17784_s12 + $0x1400] ss:$16 sps:$4 sm:$0xff]  }
 0x15f   : > { %11157 = vmatpush2.bf16.msra.mxu1 %v15420_v0  ;;  %11117 = vmatprep.subr.bf16.mxu0 %v15425_v1  ;;  %v18228_v0 = vpack.c.bf16 %v314_v56, %v314_v56  ;;  %v15510_v56 = vld [vmem:[%s17784_s12 + $0x1600] ss:$16 sps:$4 sm:$0xff]  }
 0x160   : > { %11158 = vmatprep.subr.bf16.mxu1 %v15428_v2 }
 0x162   : > { %11118 = vmatpush2.bf16.msra.mxu0 %v15423_v5 }
 0x163   : > { %11159 = vmatpush2.bf16.msra.mxu1 %v15426_v6  ;;  %11119 = vmatprep.subr.bf16.mxu0 %v15431_v7 }
 0x164   : > { %11160 = vmatprep.subr.bf16.mxu1 %v15434_v8  ;;  %v15479_v8 = vld [vmem:[%s17784_s12 + $0x14a4] ss:$16 sps:$4 sm:$0xff]  }
 0x166   : > { %11120 = vmatpush2.bf16.msra.mxu0 %v15429_v13  ;;  %v15482_v13 = vld [vmem:[%s17784_s12 + $0x16a4] ss:$16 sps:$4 sm:$0xff]  }
 0x167   : > { %11161 = vmatpush2.bf16.msra.mxu1 %v15432_v14  ;;  %11121 = vmatprep.subr.bf16.mxu0 %v15437_v15 }
 0x168   : > { %11162 = vmatprep.subr.bf16.mxu1 %v15440_v16  ;;  %v15477_v16 = vld [vmem:[%s17784_s12 + $0x14a0] ss:$16 sps:$4 sm:$0xff]  }
 0x16a   : > { %11122 = vmatpush2.bf16.msra.mxu0 %v15435_v18  ;;  %v15480_v18 = vld [vmem:[%s17784_s12 + $0x16a0] ss:$16 sps:$4 sm:$0xff]  }
 0x16b   : > { %11163 = vmatpush2.bf16.msra.mxu1 %v15438_v19  ;;  %11123 = vmatprep.subr.bf16.mxu0 %v15443_v20 }
 0x16c   : > { %11164 = vmatprep.subr.bf16.mxu1 %v15446_v23 }
 0x16e   : > { %11124 = vmatpush2.bf16.msra.mxu0 %v15441_v25 }
 0x16f   : > { %11165 = vmatpush2.bf16.msra.mxu1 %v15444_v26  ;;  %11125 = vmatprep.subr.bf16.mxu0 %v15449_v27  ;;  %v15488_v26 = vld [vmem:[%s17784_s12 + $0x1684] ss:$16 sps:$4 sm:$0xff]   ;;  %v15483_v27 = vld [vmem:[%s17784_s12 + $0x1480] ss:$16 sps:$4 sm:$0xff]  }
 0x170   : > { %11166 = vmatprep.subr.bf16.mxu1 %v15452_v28  ;;  %v15486_v28 = vld [vmem:[%s17784_s12 + $0x1680] ss:$16 sps:$4 sm:$0xff]  }
 0x172   : > { %11126 = vmatpush2.bf16.msra.mxu0 %v15447_v29  ;;  %v15491_v29 = vld [vmem:[%s17784_s12 + $0x1464] ss:$16 sps:$4 sm:$0xff]  }
 0x173   : > { %11167 = vmatpush2.bf16.msra.mxu1 %v15450_v31  ;;  %11127 = vmatprep.subr.bf16.mxu0 %v15455_v32  ;;  %v15494_v31 = vld [vmem:[%s17784_s12 + $0x1664] ss:$16 sps:$4 sm:$0xff]   ;;  %v15489_v32 = vld [vmem:[%s17784_s12 + $0x1460] ss:$16 sps:$4 sm:$0xff]  }
 0x174   : > { %11168 = vmatprep.subr.bf16.mxu1 %v15458_v34  ;;  %v15492_v34 = vld [vmem:[%s17784_s12 + $0x1660] ss:$16 sps:$4 sm:$0xff]  }
 0x176   : > { %11128 = vmatpush2.bf16.msra.mxu0 %v15453_v35  ;;  %v15497_v35 = vld [vmem:[%s17784_s12 + $0x1444] ss:$16 sps:$4 sm:$0xff]  }
 0x177   : > { %11169 = vmatpush2.bf16.msra.mxu1 %v15456_v36  ;;  %11129 = vmatprep.subr.bf16.mxu0 %v15461_v37  ;;  %v15500_v36 = vld [vmem:[%s17784_s12 + $0x1644] ss:$16 sps:$4 sm:$0xff]   ;;  %v15495_v37 = vld [vmem:[%s17784_s12 + $0x1440] ss:$16 sps:$4 sm:$0xff]  }
 0x178   : > { %11170 = vmatprep.subr.bf16.mxu1 %v15464_v39  ;;  %v15498_v39 = vld [vmem:[%s17784_s12 + $0x1640] ss:$16 sps:$4 sm:$0xff]  }
 0x17a   : > { %11130 = vmatpush2.bf16.msra.mxu0 %v15459_v40  ;;  %v15503_v40 = vld [vmem:[%s17784_s12 + $0x1424] ss:$16 sps:$4 sm:$0xff]  }
 0x17b   : > { %11171 = vmatpush2.bf16.msra.mxu1 %v15462_v42  ;;  %11181 = vmatprep.subr.bf16.mxu0 %v15467_v47  ;;  %v15506_v42 = vld [vmem:[%s17784_s12 + $0x1624] ss:$16 sps:$4 sm:$0xff]  }
 0x17c   : > { %11222 = vmatprep.subr.bf16.mxu1 %v15470_v48  ;;  %v15509_v47 = vld [vmem:[%s17784_s12 + $0x1404] ss:$16 sps:$4 sm:$0xff]  }
 0x17d   : > { %v10887_v1 = vpop.f32.mrf.mxu0  ;;  %11132 = vmatmul.mubr.bf16.vlgmr.msra.gmra.mxu0 %v18214_v52  ;;  %v15512_v48 = vld [vmem:[%s17784_s12 + $0x1604] ss:$16 sps:$4 sm:$0xff]  }
 0x17e   : > { %v10928_v2 = vpop.f32.mrf.mxu1  ;;  %11173 = vmatmul.mubr.bf16.vlgmr.msra.gmra.mxu1 %v18216_v54  ;;  %v10888_v5 = vadd.f32 %v10887_v1, %v18148_v17  ;;  %11182 = vmatpush1.bf16.msra.mxu0 %v15465_v57  ;;  %v15515_v57 = vld [vmem:[%s17784_s12 + $0x15e4] ss:$16 sps:$4 sm:$0xff]   ;;  %v15519_v1 = vld [vmem:[%s17784_s12 + $0x15c0] ss:$16 sps:$4 sm:$0xff]  }
 0x17f   : > { %11223 = vmatpush1.bf16.msra.mxu1 %v15468_v58  ;;  %v10889_v6 = vpop.f32.mrf.mxu0  ;;  %11183 = vmatprep.subr.bf16.mxu0 %v15473_v59  ;;  %v15518_v58 = vld [vmem:[%s17784_s12 + $0x17e4] ss:$16 sps:$4 sm:$0xff]   ;;  %v15513_v59 = vld [vmem:[%s17784_s12 + $0x15e0] ss:$16 sps:$4 sm:$0xff]  }
 0x180   : > { %v10930_v7 = vpop.f32.mrf.mxu1  ;;  %11224 = vmatprep.subr.bf16.mxu1 %v15476_v60  ;;  %v18235_v14 = vadd.f32 %v10928_v2, %v10888_v5  ;;  %v10890_v15 = vadd.f32 %v10889_v6, %v18152_v24  ;;  %11213 = vmatprep.mubr.bf16.mxu0 %v18226_v63  ;;  %v15485_v24 = vld [vmem:[%s17784_s12 + $0x1484] ss:$16 sps:$4 sm:$0xff]   ;;  %v15516_v60 = vld [vmem:[%s17784_s12 + $0x17e0] ss:$16 sps:$4 sm:$0xff]  }
 0x181   : > { %11254 = vmatprep.mubr.bf16.mxu1 %v18228_v0  ;;  %v10891_v17 = vpop.f32.mrf.mxu0  ;;  %v15522_v2 = vld [vmem:[%s17784_s12 + $0x17c0] ss:$16 sps:$4 sm:$0xff]   ;;  %v15527_v5 = vld [vmem:[%s17784_s12 + $0x15a4] ss:$16 sps:$4 sm:$0xff]  }
 0x182   : > { %v10932_v19 = vpop.f32.mrf.mxu1  ;;  %v18242_v20 = vadd.f32 %v10930_v7, %v10890_v15  ;;  %11184 = vmatpush1.bf16.msra.mxu0 %v15471_v61  ;;  %v15521_v61 = vld [vmem:[%s17784_s12 + $0x15c4] ss:$16 sps:$4 sm:$0xff]   ;;  %v15525_v7 = vld [vmem:[%s17784_s12 + $0x15a0] ss:$16 sps:$4 sm:$0xff]  }
 0x183   : > { %11225 = vmatpush1.bf16.msra.mxu1 %v15474_v62  ;;  %v10892_v23 = vpop.f32.mrf.mxu0  ;;  %11185 = vmatprep.subr.bf16.mxu0 %v15479_v8  ;;  %v15524_v62 = vld [vmem:[%s17784_s12 + $0x17c4] ss:$16 sps:$4 sm:$0xff]   ;;  %v15528_v8 = vld [vmem:[%s17784_s12 + $0x17a0] ss:$16 sps:$4 sm:$0xff]  }
 0x184   : > { %v10933_v25 = vpop.f32.mrf.mxu1  ;;  %11226 = vmatprep.subr.bf16.mxu1 %v15482_v13  ;;  %v15530_v6 = vld [vmem:[%s17784_s12 + $0x17a4] ss:$16 sps:$4 sm:$0xff]   ;;  %v15537_v23 = vld [vmem:[%s17784_s12 + $0x1560] ss:$16 sps:$4 sm:$0xff]  }
 0x185   : > { %v15533_v13 = vld [vmem:[%s17784_s12 + $0x1584] ss:$16 sps:$4 sm:$0xff]   ;;  %v15540_v25 = vld [vmem:[%s17784_s12 + $0x1760] ss:$16 sps:$4 sm:$0xff]  }
 0x186   : > { %11186 = vmatpush1.bf16.msra.mxu0 %v15477_v16  ;;  %v15536_v15 = vld [vmem:[%s17784_s12 + $0x1784] ss:$16 sps:$4 sm:$0xff]   ;;  %v15531_v16 = vld [vmem:[%s17784_s12 + $0x1580] ss:$16 sps:$4 sm:$0xff]  }
 0x187   : > { %11227 = vmatpush1.bf16.msra.mxu1 %v15480_v18  ;;  %11187 = vmatprep.subr.bf16.mxu0 %v15485_v24  ;;  %v15534_v18 = vld [vmem:[%s17784_s12 + $0x1780] ss:$16 sps:$4 sm:$0xff]   ;;  %v15539_v17 = vld [vmem:[%s17784_s12 + $0x1564] ss:$16 sps:$4 sm:$0xff]  }
 0x188   : > { %11228 = vmatprep.subr.bf16.mxu1 %v15488_v26  ;;  %v15542_v19 = vld [vmem:[%s17784_s12 + $0x1764] ss:$16 sps:$4 sm:$0xff]  }
 0x189   : > { %v15545_v24 = vld [vmem:[%s17784_s12 + $0x1544] ss:$16 sps:$4 sm:$0xff]  }
 0x18a   : > { %11188 = vmatpush1.bf16.msra.mxu0 %v15483_v27  ;;  %v15548_v26 = vld [vmem:[%s17784_s12 + $0x1744] ss:$16 sps:$4 sm:$0xff]   ;;  %v15543_v27 = vld [vmem:[%s17784_s12 + $0x1540] ss:$16 sps:$4 sm:$0xff]  }
 0x18b   : > { %11229 = vmatpush1.bf16.msra.mxu1 %v15486_v28  ;;  %11189 = vmatprep.subr.bf16.mxu0 %v15491_v29  ;;  %v15546_v28 = vld [vmem:[%s17784_s12 + $0x1740] ss:$16 sps:$4 sm:$0xff]   ;;  %v15551_v29 = vld [vmem:[%s17784_s12 + $0x1524] ss:$16 sps:$4 sm:$0xff]  }
 0x18c   : > { %11230 = vmatprep.subr.bf16.mxu1 %v15494_v31  ;;  %v15554_v31 = vld [vmem:[%s17784_s12 + $0x1724] ss:$16 sps:$4 sm:$0xff]  }
 0x18e   : > { %11190 = vmatpush1.bf16.msra.mxu0 %v15489_v32  ;;  %v15549_v32 = vld [vmem:[%s17784_s12 + $0x1520] ss:$16 sps:$4 sm:$0xff]  }
 0x18f   : > { %11231 = vmatpush1.bf16.msra.mxu1 %v15492_v34  ;;  %11191 = vmatprep.subr.bf16.mxu0 %v15497_v35  ;;  %v15552_v34 = vld [vmem:[%s17784_s12 + $0x1720] ss:$16 sps:$4 sm:$0xff]   ;;  %v15557_v35 = vld [vmem:[%s17784_s12 + $0x1504] ss:$16 sps:$4 sm:$0xff]  }
 0x190   : > { %11232 = vmatprep.subr.bf16.mxu1 %v15500_v36  ;;  %v15560_v36 = vld [vmem:[%s17784_s12 + $0x1704] ss:$16 sps:$4 sm:$0xff]  }
 0x192   : > { %11192 = vmatpush1.bf16.msra.mxu0 %v15495_v37  ;;  %v15555_v37 = vld [vmem:[%s17784_s12 + $0x1500] ss:$16 sps:$4 sm:$0xff]  }
 0x193   : > { %11233 = vmatpush1.bf16.msra.mxu1 %v15498_v39  ;;  %11193 = vmatprep.subr.bf16.mxu0 %v15503_v40  ;;  %v15558_v39 = vld [vmem:[%s17784_s12 + $0x1700] ss:$16 sps:$4 sm:$0xff]  }
 0x194   : > { %11234 = vmatprep.subr.bf16.mxu1 %v15506_v42  ;;  %v311_v40 = vld [vmem:[%s17807_s29 + $0xa0] sm:$0xff]  ;;  %v313_v42 = vld [vmem:[%s17807_s29 + $0xb0] sm:$0xff] }
 0x196   : > { %11194 = vmatpush1.bf16.msra.mxu0 %v15501_v45  ;;  %v15563_v45 = vld [vmem:[%s17784_s12 + $0x18e4] ss:$16 sps:$4 sm:$0xff]  }
 0x197   : > { %11235 = vmatpush1.bf16.msra.mxu1 %v15504_v46  ;;  %11195 = vmatprep.subr.bf16.mxu0 %v15509_v47  ;;  %v15566_v46 = vld [vmem:[%s17784_s12 + $0x1ae4] ss:$16 sps:$4 sm:$0xff]   ;;  %v18300_v47 = vpack.c.bf16 %v311_v40, %v311_v40  ;;  %v15591_v40 = vld [vmem:[%s17784_s12 + $0x1840] ss:$16 sps:$4 sm:$0xff]  }
 0x198   : > { %11236 = vmatprep.subr.bf16.mxu1 %v15512_v48  ;;  %v18302_v48 = vpack.c.bf16 %v313_v42, %v313_v42  ;;  %v15594_v42 = vld [vmem:[%s17784_s12 + $0x1a40] ss:$16 sps:$4 sm:$0xff]  }
 0x19a   : > { %11196 = vmatpush1.bf16.msra.mxu0 %v15507_v55  ;;  %v316_v55 = vld [vmem:[%s17807_s29 + $0xc8] sm:$0xff] }
 0x19b   : > { %11237 = vmatpush1.bf16.msra.mxu1 %v15510_v56  ;;  %11197 = vmatprep.subr.bf16.mxu0 %v15515_v57  ;;  %v318_v56 = vld [vmem:[%s17807_s29 + $0xd8] sm:$0xff]  ;;  %v15561_v57 = vld [vmem:[%s17784_s12 + $0x18e0] ss:$16 sps:$4 sm:$0xff]  }
 0x19c   : > { %11238 = vmatprep.subr.bf16.mxu1 %v15518_v58  ;;  %v15564_v58 = vld [vmem:[%s17784_s12 + $0x1ae0] ss:$16 sps:$4 sm:$0xff]  }
 0x19e   : > { %11198 = vmatpush2.bf16.msra.mxu0 %v15513_v59  ;;  %v15569_v59 = vld [vmem:[%s17784_s12 + $0x18c4] ss:$16 sps:$4 sm:$0xff]  }
 0x19f   : > { %11239 = vmatpush2.bf16.msra.mxu1 %v15516_v60  ;;  %11199 = vmatprep.subr.bf16.mxu0 %v15521_v61  ;;  %v15572_v60 = vld [vmem:[%s17784_s12 + $0x1ac4] ss:$16 sps:$4 sm:$0xff]   ;;  %v15567_v61 = vld [vmem:[%s17784_s12 + $0x18c0] ss:$16 sps:$4 sm:$0xff]  }
 0x1a0   : > { %11240 = vmatprep.subr.bf16.mxu1 %v15524_v62  ;;  %v15570_v62 = vld [vmem:[%s17784_s12 + $0x1ac0] ss:$16 sps:$4 sm:$0xff]  }
 0x1a2   : > { %11200 = vmatpush2.bf16.msra.mxu0 %v15519_v1  ;;  %v18312_v1 = vpack.c.bf16 %v316_v55, %v316_v55  ;;  %v15597_v55 = vld [vmem:[%s17784_s12 + $0x1820] ss:$16 sps:$4 sm:$0xff]  }
 0x1a3   : > { %11241 = vmatpush2.bf16.msra.mxu1 %v15522_v2  ;;  %11201 = vmatprep.subr.bf16.mxu0 %v15527_v5  ;;  %v18314_v2 = vpack.c.bf16 %v318_v56, %v318_v56  ;;  %v15600_v56 = vld [vmem:[%s17784_s12 + $0x1a20] ss:$16 sps:$4 sm:$0xff]  }
 0x1a4   : > { %11242 = vmatprep.subr.bf16.mxu1 %v15530_v6 }
 0x1a6   : > { %11202 = vmatpush2.bf16.msra.mxu0 %v15525_v7 }
 0x1a7   : > { %11243 = vmatpush2.bf16.msra.mxu1 %v15528_v8  ;;  %11203 = vmatprep.subr.bf16.mxu0 %v15533_v13 }
 0x1a8   : > { %11244 = vmatprep.subr.bf16.mxu1 %v15536_v15  ;;  %v15575_v15 = vld [vmem:[%s17784_s12 + $0x18a4] ss:$16 sps:$4 sm:$0xff]  }
 0x1aa   : > { %11204 = vmatpush2.bf16.msra.mxu0 %v15531_v16  ;;  %v15578_v16 = vld [vmem:[%s17784_s12 + $0x1aa4] ss:$16 sps:$4 sm:$0xff]  }
 0x1ab   : > { %11245 = vmatpush2.bf16.msra.mxu1 %v15534_v18  ;;  %11205 = vmatprep.subr.bf16.mxu0 %v15539_v17 }
 0x1ac   : > { %11246 = vmatprep.subr.bf16.mxu1 %v15542_v19  ;;  %v15573_v19 = vld [vmem:[%s17784_s12 + $0x18a0] ss:$16 sps:$4 sm:$0xff]  }
 0x1ae   : > { %11206 = vmatpush2.bf16.msra.mxu0 %v15537_v23  ;;  %v15576_v23 = vld [vmem:[%s17784_s12 + $0x1aa0] ss:$16 sps:$4 sm:$0xff]  }
 0x1af   : > { %11247 = vmatpush2.bf16.msra.mxu1 %v15540_v25  ;;  %11207 = vmatprep.subr.bf16.mxu0 %v15545_v24 }
 0x1b0   : > { %11248 = vmatprep.subr.bf16.mxu1 %v15548_v26 }
 0x1b2   : > { %11208 = vmatpush2.bf16.msra.mxu0 %v15543_v27 }
 0x1b3   : > { %11249 = vmatpush2.bf16.msra.mxu1 %v15546_v28  ;;  %11209 = vmatprep.subr.bf16.mxu0 %v15551_v29  ;;  %v15584_v28 = vld [vmem:[%s17784_s12 + $0x1a84] ss:$16 sps:$4 sm:$0xff]   ;;  %v15579_v29 = vld [vmem:[%s17784_s12 + $0x1880] ss:$16 sps:$4 sm:$0xff]  }
 0x1b4   : > { %11250 = vmatprep.subr.bf16.mxu1 %v15554_v31  ;;  %v15582_v31 = vld [vmem:[%s17784_s12 + $0x1a80] ss:$16 sps:$4 sm:$0xff]  }
 0x1b6   : > { %11210 = vmatpush2.bf16.msra.mxu0 %v15549_v32  ;;  %v15587_v32 = vld [vmem:[%s17784_s12 + $0x1864] ss:$16 sps:$4 sm:$0xff]  }
 0x1b7   : > { %11251 = vmatpush2.bf16.msra.mxu1 %v15552_v34  ;;  %11211 = vmatprep.subr.bf16.mxu0 %v15557_v35  ;;  %v15590_v34 = vld [vmem:[%s17784_s12 + $0x1a64] ss:$16 sps:$4 sm:$0xff]   ;;  %v15585_v35 = vld [vmem:[%s17784_s12 + $0x1860] ss:$16 sps:$4 sm:$0xff]  }
 0x1b8   : > { %11252 = vmatprep.subr.bf16.mxu1 %v15560_v36  ;;  %v15588_v36 = vld [vmem:[%s17784_s12 + $0x1a60] ss:$16 sps:$4 sm:$0xff]  }
 0x1ba   : > { %11212 = vmatpush2.bf16.msra.mxu0 %v15555_v37  ;;  %v15593_v37 = vld [vmem:[%s17784_s12 + $0x1844] ss:$16 sps:$4 sm:$0xff]  }
 0x1bb   : > { %11253 = vmatpush2.bf16.msra.mxu1 %v15558_v39  ;;  %11263 = vmatprep.subr.bf16.mxu0 %v15563_v45  ;;  %v15596_v39 = vld [vmem:[%s17784_s12 + $0x1a44] ss:$16 sps:$4 sm:$0xff]  }
 0x1bc   : > { %11304 = vmatprep.subr.bf16.mxu1 %v15566_v46  ;;  %v15599_v45 = vld [vmem:[%s17784_s12 + $0x1824] ss:$16 sps:$4 sm:$0xff]  }
 0x1bd   : > { %v10969_v5 = vpop.f32.mrf.mxu0  ;;  %11214 = vmatmul.mubr.bf16.vlgmr.msra.gmra.mxu0 %v18300_v47  ;;  %v15602_v46 = vld [vmem:[%s17784_s12 + $0x1a24] ss:$16 sps:$4 sm:$0xff]  }
 0x1be   : > { %v11010_v6 = vpop.f32.mrf.mxu1  ;;  %11255 = vmatmul.mubr.bf16.vlgmr.msra.gmra.mxu1 %v18302_v48  ;;  %v10970_v7 = vadd.f32 %v10969_v5, %v18235_v14  ;;  %11264 = vmatpush1.bf16.msra.mxu0 %v15561_v57  ;;  %v15605_v57 = vld [vmem:[%s17784_s12 + $0x1804] ss:$16 sps:$4 sm:$0xff]   ;;  %v15609_v5 = vld [vmem:[%s17784_s12 + $0x19e0] ss:$16 sps:$4 sm:$0xff]  }
 0x1bf   : > { %11305 = vmatpush1.bf16.msra.mxu1 %v15564_v58  ;;  %v10971_v8 = vpop.f32.mrf.mxu0  ;;  %11265 = vmatprep.subr.bf16.mxu0 %v15569_v59  ;;  %v15608_v58 = vld [vmem:[%s17784_s12 + $0x1a04] ss:$16 sps:$4 sm:$0xff]   ;;  %v15603_v59 = vld [vmem:[%s17784_s12 + $0x1800] ss:$16 sps:$4 sm:$0xff]  }
 0x1c0   : > { %v11012_v13 = vpop.f32.mrf.mxu1  ;;  %11306 = vmatprep.subr.bf16.mxu1 %v15572_v60  ;;  %v18321_v18 = vadd.f32 %v11010_v6, %v10970_v7  ;;  %v10972_v17 = vadd.f32 %v10971_v8, %v18242_v20  ;;  %11295 = vmatprep.mubr.bf16.mxu0 %v18312_v1  ;;  %v15581_v20 = vld [vmem:[%s17784_s12 + $0x1884] ss:$16 sps:$4 sm:$0xff]   ;;  %v15606_v60 = vld [vmem:[%s17784_s12 + $0x1a00] ss:$16 sps:$4 sm:$0xff]  }
 0x1c1   : > { %11336 = vmatprep.mubr.bf16.mxu1 %v18314_v2  ;;  %v10973_v14 = vpop.f32.mrf.mxu0  ;;  %v15612_v6 = vld [vmem:[%s17784_s12 + $0x1be0] ss:$16 sps:$4 sm:$0xff]   ;;  %v15617_v7 = vld [vmem:[%s17784_s12 + $0x19c4] ss:$16 sps:$4 sm:$0xff]  }
 0x1c2   : > { %v11014_v25 = vpop.f32.mrf.mxu1  ;;  %v18328_v24 = vadd.f32 %v11012_v13, %v10972_v17  ;;  %11266 = vmatpush1.bf16.msra.mxu0 %v15567_v61  ;;  %v15611_v61 = vld [vmem:[%s17784_s12 + $0x19e4] ss:$16 sps:$4 sm:$0xff]   ;;  %v15615_v13 = vld [vmem:[%s17784_s12 + $0x19c0] ss:$16 sps:$4 sm:$0xff]  }
 0x1c3   : > { %11307 = vmatpush1.bf16.msra.mxu1 %v15570_v62  ;;  %v10974_v26 = vpop.f32.mrf.mxu0  ;;  %11267 = vmatprep.subr.bf16.mxu0 %v15575_v15  ;;  %v15614_v62 = vld [vmem:[%s17784_s12 + $0x1be4] ss:$16 sps:$4 sm:$0xff]   ;;  %v15618_v15 = vld [vmem:[%s17784_s12 + $0x1bc0] ss:$16 sps:$4 sm:$0xff]  }
 0x1c4   : > { %v11015_v27 = vpop.f32.mrf.mxu1  ;;  %11308 = vmatprep.subr.bf16.mxu1 %v15578_v16  ;;  %v15620_v8 = vld [vmem:[%s17784_s12 + $0x1bc4] ss:$16 sps:$4 sm:$0xff]   ;;  %v15627_v26 = vld [vmem:[%s17784_s12 + $0x1980] ss:$16 sps:$4 sm:$0xff]  }
 0x1c5   : > { %v15623_v16 = vld [vmem:[%s17784_s12 + $0x19a4] ss:$16 sps:$4 sm:$0xff]   ;;  %v15630_v27 = vld [vmem:[%s17784_s12 + $0x1b80] ss:$16 sps:$4 sm:$0xff]  }
 0x1c6   : > { %11268 = vmatpush1.bf16.msra.mxu0 %v15573_v19  ;;  %v15626_v17 = vld [vmem:[%s17784_s12 + $0x1ba4] ss:$16 sps:$4 sm:$0xff]   ;;  %v15621_v19 = vld [vmem:[%s17784_s12 + $0x19a0] ss:$16 sps:$4 sm:$0xff]  }
 0x1c7   : > { %11309 = vmatpush1.bf16.msra.mxu1 %v15576_v23  ;;  %11269 = vmatprep.subr.bf16.mxu0 %v15581_v20  ;;  %v15624_v23 = vld [vmem:[%s17784_s12 + $0x1ba0] ss:$16 sps:$4 sm:$0xff]   ;;  %v15629_v14 = vld [vmem:[%s17784_s12 + $0x1984] ss:$16 sps:$4 sm:$0xff]  }
 0x1c8   : > { %11310 = vmatprep.subr.bf16.mxu1 %v15584_v28  ;;  %v15632_v25 = vld [vmem:[%s17784_s12 + $0x1b84] ss:$16 sps:$4 sm:$0xff]  }
 0x1c9   : > { %v15635_v20 = vld [vmem:[%s17784_s12 + $0x1964] ss:$16 sps:$4 sm:$0xff]  }
 0x1ca   : > { %11270 = vmatpush1.bf16.msra.mxu0 %v15579_v29  ;;  %v15638_v28 = vld [vmem:[%s17784_s12 + $0x1b64] ss:$16 sps:$4 sm:$0xff]   ;;  %v15633_v29 = vld [vmem:[%s17784_s12 + $0x1960] ss:$16 sps:$4 sm:$0xff]  }
 0x1cb   : > { %11311 = vmatpush1.bf16.msra.mxu1 %v15582_v31  ;;  %11271 = vmatprep.subr.bf16.mxu0 %v15587_v32  ;;  %v15636_v31 = vld [vmem:[%s17784_s12 + $0x1b60] ss:$16 sps:$4 sm:$0xff]   ;;  %v15641_v32 = vld [vmem:[%s17784_s12 + $0x1944] ss:$16 sps:$4 sm:$0xff]  }
 0x1cc   : > { %11312 = vmatprep.subr.bf16.mxu1 %v15590_v34  ;;  %v15644_v34 = vld [vmem:[%s17784_s12 + $0x1b44] ss:$16 sps:$4 sm:$0xff]  }
 0x1ce   : > { %11272 = vmatpush1.bf16.msra.mxu0 %v15585_v35  ;;  %v15639_v35 = vld [vmem:[%s17784_s12 + $0x1940] ss:$16 sps:$4 sm:$0xff]  }
 0x1cf   : > { %11313 = vmatpush1.bf16.msra.mxu1 %v15588_v36  ;;  %11273 = vmatprep.subr.bf16.mxu0 %v15593_v37  ;;  %v15642_v36 = vld [vmem:[%s17784_s12 + $0x1b40] ss:$16 sps:$4 sm:$0xff]   ;;  %v15647_v37 = vld [vmem:[%s17784_s12 + $0x1924] ss:$16 sps:$4 sm:$0xff]  }
 0x1d0   : > { %11314 = vmatprep.subr.bf16.mxu1 %v15596_v39  ;;  %v15650_v39 = vld [vmem:[%s17784_s12 + $0x1b24] ss:$16 sps:$4 sm:$0xff]  }
 0x1d2   : > { %11274 = vmatpush1.bf16.msra.mxu0 %v15591_v40  ;;  %v15645_v40 = vld [vmem:[%s17784_s12 + $0x1920] ss:$16 sps:$4 sm:$0xff]  }
 0x1d3   : > { %11315 = vmatpush1.bf16.msra.mxu1 %v15594_v42  ;;  %11275 = vmatprep.subr.bf16.mxu0 %v15599_v45  ;;  %v15648_v42 = vld [vmem:[%s17784_s12 + $0x1b20] ss:$16 sps:$4 sm:$0xff]   ;;  %v15653_v45 = vld [vmem:[%s17784_s12 + $0x1904] ss:$16 sps:$4 sm:$0xff]  }
 0x1d4   : > { %11316 = vmatprep.subr.bf16.mxu1 %v15602_v46  ;;  %v15656_v46 = vld [vmem:[%s17784_s12 + $0x1b04] ss:$16 sps:$4 sm:$0xff]  }
 0x1d6   : > { %11276 = vmatpush1.bf16.msra.mxu0 %v15597_v55  ;;  %v15651_v55 = vld [vmem:[%s17784_s12 + $0x1900] ss:$16 sps:$4 sm:$0xff]  }
 0x1d7   : > { %11317 = vmatpush1.bf16.msra.mxu1 %v15600_v56  ;;  %11277 = vmatprep.subr.bf16.mxu0 %v15605_v57  ;;  %v15654_v56 = vld [vmem:[%s17784_s12 + $0x1b00] ss:$16 sps:$4 sm:$0xff]  }
 0x1d8   : > { %11318 = vmatprep.subr.bf16.mxu1 %v15608_v58  ;;  %v315_v57 = vld [vmem:[%s17807_s29 + $0xc0] sm:$0xff]  ;;  %v317_v58 = vld [vmem:[%s17807_s29 + $0xd0] sm:$0xff] }
 0x1da   : > { %11278 = vmatpush1.bf16.msra.mxu0 %v15603_v59  ;;  %v15659_v59 = vld [vmem:[%s17784_s12 + $0x1ce4] ss:$16 sps:$4 sm:$0xff]  }
 0x1db   : > { %11319 = vmatpush1.bf16.msra.mxu1 %v15606_v60  ;;  %11279 = vmatprep.subr.bf16.mxu0 %v15611_v61  ;;  %v15662_v60 = vld [vmem:[%s17784_s12 + $0x1ee4] ss:$16 sps:$4 sm:$0xff]   ;;  %v18386_v61 = vpack.c.bf16 %v315_v57, %v315_v57  ;;  %v15681_v57 = vld [vmem:[%s17784_s12 + $0x1c60] ss:$16 sps:$4 sm:$0xff]  }
 0x1dc   : > { %11320 = vmatprep.subr.bf16.mxu1 %v15614_v62  ;;  %v18388_v62 = vpack.c.bf16 %v317_v58, %v317_v58  ;;  %v15684_v58 = vld [vmem:[%s17784_s12 + $0x1e60] ss:$16 sps:$4 sm:$0xff]  }
 0x1de   : > { %11280 = vmatpush2.bf16.msra.mxu0 %v15609_v5  ;;  %v320_v5 = vld [vmem:[%s17807_s29 + $0xe8] sm:$0xff] }
 0x1df   : > { %11321 = vmatpush2.bf16.msra.mxu1 %v15612_v6  ;;  %11281 = vmatprep.subr.bf16.mxu0 %v15617_v7  ;;  %v322_v6 = vld [vmem:[%s17807_s29 + $0xf8] sm:$0xff]  ;;  %v15657_v7 = vld [vmem:[%s17784_s12 + $0x1ce0] ss:$16 sps:$4 sm:$0xff]  }
 0x1e0   : > { %11322 = vmatprep.subr.bf16.mxu1 %v15620_v8  ;;  %v15660_v8 = vld [vmem:[%s17784_s12 + $0x1ee0] ss:$16 sps:$4 sm:$0xff]  }
 0x1e2   : > { %11282 = vmatpush2.bf16.msra.mxu0 %v15615_v13  ;;  %v15665_v13 = vld [vmem:[%s17784_s12 + $0x1cc4] ss:$16 sps:$4 sm:$0xff]  }
 0x1e3   : > { %11323 = vmatpush2.bf16.msra.mxu1 %v15618_v15  ;;  %11283 = vmatprep.subr.bf16.mxu0 %v15623_v16  ;;  %v15668_v15 = vld [vmem:[%s17784_s12 + $0x1ec4] ss:$16 sps:$4 sm:$0xff]   ;;  %v15663_v16 = vld [vmem:[%s17784_s12 + $0x1cc0] ss:$16 sps:$4 sm:$0xff]  }
 0x1e4   : > { %11324 = vmatprep.subr.bf16.mxu1 %v15626_v17  ;;  %v15666_v17 = vld [vmem:[%s17784_s12 + $0x1ec0] ss:$16 sps:$4 sm:$0xff]  }
 0x1e6   : > { %11284 = vmatpush2.bf16.msra.mxu0 %v15621_v19  ;;  %v18398_v19 = vpack.c.bf16 %v320_v5, %v320_v5  ;;  %v15687_v5 = vld [vmem:[%s17784_s12 + $0x1c40] ss:$16 sps:$4 sm:$0xff]  }
 0x1e7   : > { %11325 = vmatpush2.bf16.msra.mxu1 %v15624_v23  ;;  %11285 = vmatprep.subr.bf16.mxu0 %v15629_v14  ;;  %v18400_v23 = vpack.c.bf16 %v322_v6, %v322_v6  ;;  %v15690_v6 = vld [vmem:[%s17784_s12 + $0x1e40] ss:$16 sps:$4 sm:$0xff]  }
 0x1e8   : > { %11326 = vmatprep.subr.bf16.mxu1 %v15632_v25 }
 0x1ea   : > { %11286 = vmatpush2.bf16.msra.mxu0 %v15627_v26 }
 0x1eb   : > { %11327 = vmatpush2.bf16.msra.mxu1 %v15630_v27  ;;  %11287 = vmatprep.subr.bf16.mxu0 %v15635_v20 }
 0x1ec   : > { %11328 = vmatprep.subr.bf16.mxu1 %v15638_v28  ;;  %v15671_v28 = vld [vmem:[%s17784_s12 + $0x1ca4] ss:$16 sps:$4 sm:$0xff]  }
 0x1ee   : > { %11288 = vmatpush2.bf16.msra.mxu0 %v15633_v29  ;;  %v15674_v29 = vld [vmem:[%s17784_s12 + $0x1ea4] ss:$16 sps:$4 sm:$0xff]  }
 0x1ef   : > { %11329 = vmatpush2.bf16.msra.mxu1 %v15636_v31  ;;  %11289 = vmatprep.subr.bf16.mxu0 %v15641_v32 }
 0x1f0   : > { %11330 = vmatprep.subr.bf16.mxu1 %v15644_v34  ;;  %v15669_v34 = vld [vmem:[%s17784_s12 + $0x1ca0] ss:$16 sps:$4 sm:$0xff]  }
 0x1f2   : > { %11290 = vmatpush2.bf16.msra.mxu0 %v15639_v35  ;;  %v15672_v35 = vld [vmem:[%s17784_s12 + $0x1ea0] ss:$16 sps:$4 sm:$0xff]  }
 0x1f3   : > { %11331 = vmatpush2.bf16.msra.mxu1 %v15642_v36  ;;  %11291 = vmatprep.subr.bf16.mxu0 %v15647_v37 }
 0x1f4   : > { %11332 = vmatprep.subr.bf16.mxu1 %v15650_v39 }
 0x1f6   : > { %11292 = vmatpush2.bf16.msra.mxu0 %v15645_v40 }
 0x1f7   : > { %11333 = vmatpush2.bf16.msra.mxu1 %v15648_v42  ;;  %11293 = vmatprep.subr.bf16.mxu0 %v15653_v45  ;;  %v15680_v42 = vld [vmem:[%s17784_s12 + $0x1e84] ss:$16 sps:$4 sm:$0xff]   ;;  %v15675_v45 = vld [vmem:[%s17784_s12 + $0x1c80] ss:$16 sps:$4 sm:$0xff]  }
 0x1f8   : > { %11334 = vmatprep.subr.bf16.mxu1 %v15656_v46  ;;  %v15678_v46 = vld [vmem:[%s17784_s12 + $0x1e80] ss:$16 sps:$4 sm:$0xff]  }
 0x1fa   : > { %11294 = vmatpush2.bf16.msra.mxu0 %v15651_v55  ;;  %v15683_v55 = vld [vmem:[%s17784_s12 + $0x1c64] ss:$16 sps:$4 sm:$0xff]  }
 0x1fb   : > { %11335 = vmatpush2.bf16.msra.mxu1 %v15654_v56  ;;  %11345 = vmatprep.subr.bf16.mxu0 %v15659_v59  ;;  %v15686_v56 = vld [vmem:[%s17784_s12 + $0x1e64] ss:$16 sps:$4 sm:$0xff]  }
 0x1fc   : > { %11386 = vmatprep.subr.bf16.mxu1 %v15662_v60  ;;  %v15689_v59 = vld [vmem:[%s17784_s12 + $0x1c44] ss:$16 sps:$4 sm:$0xff]  }
 0x1fd   : > { %v11051_v14 = vpop.f32.mrf.mxu0  ;;  %11296 = vmatmul.mubr.bf16.vlgmr.msra.gmra.mxu0 %v18386_v61  ;;  %v15692_v60 = vld [vmem:[%s17784_s12 + $0x1e44] ss:$16 sps:$4 sm:$0xff]  }
 0x1fe   : > { %v11092_v25 = vpop.f32.mrf.mxu1  ;;  %11337 = vmatmul.mubr.bf16.vlgmr.msra.gmra.mxu1 %v18388_v62  ;;  %v11052_v26 = vadd.f32 %v11051_v14, %v18321_v18  ;;  %11346 = vmatpush1.bf16.msra.mxu0 %v15657_v7  ;;  %v15695_v7 = vld [vmem:[%s17784_s12 + $0x1c24] ss:$16 sps:$4 sm:$0xff]   ;;  %v15699_v14 = vld [vmem:[%s17784_s12 + $0x1c00] ss:$16 sps:$4 sm:$0xff]  }
 0x1ff   : > { %11387 = vmatpush1.bf16.msra.mxu1 %v15660_v8  ;;  %v11053_v27 = vpop.f32.mrf.mxu0  ;;  %11347 = vmatprep.subr.bf16.mxu0 %v15665_v13  ;;  %v15698_v8 = vld [vmem:[%s17784_s12 + $0x1e24] ss:$16 sps:$4 sm:$0xff]   ;;  %v15693_v13 = vld [vmem:[%s17784_s12 + $0x1c20] ss:$16 sps:$4 sm:$0xff]  }
 0x200   : > { %v11094_v20 = vpop.f32.mrf.mxu1  ;;  %11388 = vmatprep.subr.bf16.mxu1 %v15668_v15  ;;  %v18407_v31 = vadd.f32 %v11092_v25, %v11052_v26  ;;  %v11054_v32 = vadd.f32 %v11053_v27, %v18328_v24  ;;  %11377 = vmatprep.mubr.bf16.mxu0 %v18398_v19  ;;  %v15677_v24 = vld [vmem:[%s17784_s12 + $0x1c84] ss:$16 sps:$4 sm:$0xff]   ;;  %v15696_v15 = vld [vmem:[%s17784_s12 + $0x1e20] ss:$16 sps:$4 sm:$0xff]  }
 0x201   : > { %11418 = vmatprep.mubr.bf16.mxu1 %v18400_v23  ;;  %v11055_v18 = vpop.f32.mrf.mxu0  ;;  %v15702_v25 = vld [vmem:[%s17784_s12 + $0x1e00] ss:$16 sps:$4 sm:$0xff]   ;;  %v15707_v26 = vld [vmem:[%s17784_s12 + $0x1de4] ss:$16 sps:$4 sm:$0xff]  }
 0x202   : > { %v11096_v36 = vpop.f32.mrf.mxu1  ;;  %v18414_v37 = vadd.f32 %v11094_v20, %v11054_v32  ;;  %11348 = vmatpush1.bf16.msra.mxu0 %v15663_v16  ;;  %v15701_v16 = vld [vmem:[%s17784_s12 + $0x1c04] ss:$16 sps:$4 sm:$0xff]   ;;  %v15705_v20 = vld [vmem:[%s17784_s12 + $0x1de0] ss:$16 sps:$4 sm:$0xff]  }
 0x203   : > { %11389 = vmatpush1.bf16.msra.mxu1 %v15666_v17  ;;  %v11056_v39 = vpop.f32.mrf.mxu0  ;;  %11349 = vmatprep.subr.bf16.mxu0 %v15671_v28  ;;  %v15704_v17 = vld [vmem:[%s17784_s12 + $0x1e04] ss:$16 sps:$4 sm:$0xff]   ;;  %v15708_v28 = vld [vmem:[%s17784_s12 + $0x1fe0] ss:$16 sps:$4 sm:$0xff]  }
 0x204   : > { %v11097_v40 = vpop.f32.mrf.mxu1  ;;  %11390 = vmatprep.subr.bf16.mxu1 %v15674_v29  ;;  %v15710_v27 = vld [vmem:[%s17784_s12 + $0x1fe4] ss:$16 sps:$4 sm:$0xff]   ;;  %v15717_v39 = vld [vmem:[%s17784_s12 + $0x1da0] ss:$16 sps:$4 sm:$0xff]  }
 0x205   : > { %v15713_v29 = vld [vmem:[%s17784_s12 + $0x1dc4] ss:$16 sps:$4 sm:$0xff]   ;;  %v15720_v40 = vld [vmem:[%s17784_s12 + $0x1fa0] ss:$16 sps:$4 sm:$0xff]  }
 0x206   : > { %11350 = vmatpush1.bf16.msra.mxu0 %v15669_v34  ;;  %v15716_v32 = vld [vmem:[%s17784_s12 + $0x1fc4] ss:$16 sps:$4 sm:$0xff]   ;;  %v15711_v34 = vld [vmem:[%s17784_s12 + $0x1dc0] ss:$16 sps:$4 sm:$0xff]  }
 0x207   : > { %11391 = vmatpush1.bf16.msra.mxu1 %v15672_v35  ;;  %11351 = vmatprep.subr.bf16.mxu0 %v15677_v24  ;;  %v15714_v35 = vld [vmem:[%s17784_s12 + $0x1fc0] ss:$16 sps:$4 sm:$0xff]   ;;  %v15719_v18 = vld [vmem:[%s17784_s12 + $0x1da4] ss:$16 sps:$4 sm:$0xff]  }
 0x208   : > { %11392 = vmatprep.subr.bf16.mxu1 %v15680_v42  ;;  %v15722_v36 = vld [vmem:[%s17784_s12 + $0x1fa4] ss:$16 sps:$4 sm:$0xff]  }
 0x209   : > { %v15725_v24 = vld [vmem:[%s17784_s12 + $0x1d84] ss:$16 sps:$4 sm:$0xff]  }
 0x20a   : > { %11352 = vmatpush1.bf16.msra.mxu0 %v15675_v45  ;;  %v15728_v42 = vld [vmem:[%s17784_s12 + $0x1f84] ss:$16 sps:$4 sm:$0xff]   ;;  %v15723_v45 = vld [vmem:[%s17784_s12 + $0x1d80] ss:$16 sps:$4 sm:$0xff]  }
 0x20b   : > { %11393 = vmatpush1.bf16.msra.mxu1 %v15678_v46  ;;  %11353 = vmatprep.subr.bf16.mxu0 %v15683_v55  ;;  %v15726_v46 = vld [vmem:[%s17784_s12 + $0x1f80] ss:$16 sps:$4 sm:$0xff]   ;;  %v15731_v55 = vld [vmem:[%s17784_s12 + $0x1d64] ss:$16 sps:$4 sm:$0xff]  }
 0x20c   : > { %11394 = vmatprep.subr.bf16.mxu1 %v15686_v56  ;;  %v15734_v56 = vld [vmem:[%s17784_s12 + $0x1f64] ss:$16 sps:$4 sm:$0xff]  }
 0x20e   : > { %11354 = vmatpush1.bf16.msra.mxu0 %v15681_v57  ;;  %v15729_v57 = vld [vmem:[%s17784_s12 + $0x1d60] ss:$16 sps:$4 sm:$0xff]  }
 0x20f   : > { %11395 = vmatpush1.bf16.msra.mxu1 %v15684_v58  ;;  %11355 = vmatprep.subr.bf16.mxu0 %v15689_v59  ;;  %v15732_v58 = vld [vmem:[%s17784_s12 + $0x1f60] ss:$16 sps:$4 sm:$0xff]   ;;  %v15737_v59 = vld [vmem:[%s17784_s12 + $0x1d44] ss:$16 sps:$4 sm:$0xff]  }
 0x210   : > { %11396 = vmatprep.subr.bf16.mxu1 %v15692_v60  ;;  %v15740_v60 = vld [vmem:[%s17784_s12 + $0x1f44] ss:$16 sps:$4 sm:$0xff]  }
 0x212   : > { %11356 = vmatpush1.bf16.msra.mxu0 %v15687_v5  ;;  %v15735_v5 = vld [vmem:[%s17784_s12 + $0x1d40] ss:$16 sps:$4 sm:$0xff]  }
 0x213   : > { %11397 = vmatpush1.bf16.msra.mxu1 %v15690_v6  ;;  %11357 = vmatprep.subr.bf16.mxu0 %v15695_v7  ;;  %v15738_v6 = vld [vmem:[%s17784_s12 + $0x1f40] ss:$16 sps:$4 sm:$0xff]   ;;  %v15743_v7 = vld [vmem:[%s17784_s12 + $0x1d24] ss:$16 sps:$4 sm:$0xff]  }
 0x214   : > { %11398 = vmatprep.subr.bf16.mxu1 %v15698_v8  ;;  %v15746_v8 = vld [vmem:[%s17784_s12 + $0x1f24] ss:$16 sps:$4 sm:$0xff]  }
 0x216   : > { %11358 = vmatpush1.bf16.msra.mxu0 %v15693_v13  ;;  %v15741_v13 = vld [vmem:[%s17784_s12 + $0x1d20] ss:$16 sps:$4 sm:$0xff]  }
 0x217   : > { %11399 = vmatpush1.bf16.msra.mxu1 %v15696_v15  ;;  %11359 = vmatprep.subr.bf16.mxu0 %v15701_v16  ;;  %v15744_v15 = vld [vmem:[%s17784_s12 + $0x1f20] ss:$16 sps:$4 sm:$0xff]   ;;  %v15749_v16 = vld [vmem:[%s17784_s12 + $0x1d04] ss:$16 sps:$4 sm:$0xff]  }
 0x218   : > { %11400 = vmatprep.subr.bf16.mxu1 %v15704_v17  ;;  %v15752_v17 = vld [vmem:[%s17784_s12 + $0x1f04] ss:$16 sps:$4 sm:$0xff]  }
 0x21a   : > { %11360 = vmatpush1.bf16.msra.mxu0 %v15699_v14  ;;  %v15747_v14 = vld [vmem:[%s17784_s12 + $0x1d00] ss:$16 sps:$4 sm:$0xff]  }
 0x21b   : > { %11401 = vmatpush1.bf16.msra.mxu1 %v15702_v25  ;;  %11361 = vmatprep.subr.bf16.mxu0 %v15707_v26  ;;  %v15750_v25 = vld [vmem:[%s17784_s12 + $0x1f00] ss:$16 sps:$4 sm:$0xff]  }
 0x21c   : > { %11402 = vmatprep.subr.bf16.mxu1 %v15710_v27  ;;  %v319_v26 = vld [vmem:[%s17807_s29 + $0xe0] sm:$0xff]  ;;  %v321_v27 = vld [vmem:[%s17807_s29 + $0xf0] sm:$0xff] }
 0x21e   : > { %11362 = vmatpush2.bf16.msra.mxu0 %v15705_v20  ;;  %v15755_v20 = vld [vmem:[%s17784_s12 + $0x20e4] ss:$16 sps:$4 sm:$0xff]  }
 0x21f   : > { %11403 = vmatpush2.bf16.msra.mxu1 %v15708_v28  ;;  %11363 = vmatprep.subr.bf16.mxu0 %v15713_v29  ;;  %v15758_v28 = vld [vmem:[%s17784_s12 + $0x22e4] ss:$16 sps:$4 sm:$0xff]   ;;  %v18472_v29 = vpack.c.bf16 %v319_v26, %v319_v26  ;;  %v15771_v26 = vld [vmem:[%s17784_s12 + $0x2080] ss:$16 sps:$4 sm:$0xff]  }
 0x220   : > { %11404 = vmatprep.subr.bf16.mxu1 %v15716_v32  ;;  %v18474_v32 = vpack.c.bf16 %v321_v27, %v321_v27  ;;  %v15774_v27 = vld [vmem:[%s17784_s12 + $0x2280] ss:$16 sps:$4 sm:$0xff]  }
 0x222   : > { %11364 = vmatpush2.bf16.msra.mxu0 %v15711_v34  ;;  %v324_v34 = vld [vmem:[%s17807_s29 + $0x108] sm:$0xff] }
 0x223   : > { %11405 = vmatpush2.bf16.msra.mxu1 %v15714_v35  ;;  %11365 = vmatprep.subr.bf16.mxu0 %v15719_v18  ;;  %v326_v35 = vld [vmem:[%s17807_s29 + $0x118] sm:$0xff]  ;;  %v15753_v18 = vld [vmem:[%s17784_s12 + $0x20e0] ss:$16 sps:$4 sm:$0xff]  }
 0x224   : > { %11406 = vmatprep.subr.bf16.mxu1 %v15722_v36  ;;  %v15756_v36 = vld [vmem:[%s17784_s12 + $0x22e0] ss:$16 sps:$4 sm:$0xff]  }
 0x226   : > { %11366 = vmatpush2.bf16.msra.mxu0 %v15717_v39  ;;  %v15761_v39 = vld [vmem:[%s17784_s12 + $0x20c4] ss:$16 sps:$4 sm:$0xff]  }
 0x227   : > { %11407 = vmatpush2.bf16.msra.mxu1 %v15720_v40  ;;  %11367 = vmatprep.subr.bf16.mxu0 %v15725_v24  ;;  %v15764_v40 = vld [vmem:[%s17784_s12 + $0x22c4] ss:$16 sps:$4 sm:$0xff]   ;;  %v15759_v24 = vld [vmem:[%s17784_s12 + $0x20c0] ss:$16 sps:$4 sm:$0xff]  }
 0x228   : > { %11408 = vmatprep.subr.bf16.mxu1 %v15728_v42  ;;  %v15762_v42 = vld [vmem:[%s17784_s12 + $0x22c0] ss:$16 sps:$4 sm:$0xff]  }
 0x22a   : > { %11368 = vmatpush2.bf16.msra.mxu0 %v15723_v45  ;;  %v18484_v45 = vpack.c.bf16 %v324_v34, %v324_v34  ;;  %v15777_v34 = vld [vmem:[%s17784_s12 + $0x2060] ss:$16 sps:$4 sm:$0xff]  }
 0x22b   : > { %11409 = vmatpush2.bf16.msra.mxu1 %v15726_v46  ;;  %11369 = vmatprep.subr.bf16.mxu0 %v15731_v55  ;;  %v18486_v46 = vpack.c.bf16 %v326_v35, %v326_v35  ;;  %v15780_v35 = vld [vmem:[%s17784_s12 + $0x2260] ss:$16 sps:$4 sm:$0xff]  }
 0x22c   : > { %11410 = vmatprep.subr.bf16.mxu1 %v15734_v56 }
 0x22e   : > { %11370 = vmatpush2.bf16.msra.mxu0 %v15729_v57 }
 0x22f   : > { %11411 = vmatpush2.bf16.msra.mxu1 %v15732_v58  ;;  %11371 = vmatprep.subr.bf16.mxu0 %v15737_v59 }
 0x230   : > { %11412 = vmatprep.subr.bf16.mxu1 %v15740_v60  ;;  %v15767_v60 = vld [vmem:[%s17784_s12 + $0x20a4] ss:$16 sps:$4 sm:$0xff]  }
 0x232   : > { %11372 = vmatpush2.bf16.msra.mxu0 %v15735_v5  ;;  %v15770_v5 = vld [vmem:[%s17784_s12 + $0x22a4] ss:$16 sps:$4 sm:$0xff]  }
 0x233   : > { %11413 = vmatpush2.bf16.msra.mxu1 %v15738_v6  ;;  %11373 = vmatprep.subr.bf16.mxu0 %v15743_v7 }
 0x234   : > { %11414 = vmatprep.subr.bf16.mxu1 %v15746_v8  ;;  %v15765_v8 = vld [vmem:[%s17784_s12 + $0x20a0] ss:$16 sps:$4 sm:$0xff]  }
 0x236   : > { %11374 = vmatpush2.bf16.msra.mxu0 %v15741_v13  ;;  %v15768_v13 = vld [vmem:[%s17784_s12 + $0x22a0] ss:$16 sps:$4 sm:$0xff]  }
 0x237   : > { %11415 = vmatpush2.bf16.msra.mxu1 %v15744_v15  ;;  %11375 = vmatprep.subr.bf16.mxu0 %v15749_v16 }
 0x238   : > { %11416 = vmatprep.subr.bf16.mxu1 %v15752_v17 }
 0x23a   : > { %11376 = vmatpush2.bf16.msra.mxu0 %v15747_v14 }
 0x23b   : > { %11417 = vmatpush2.bf16.msra.mxu1 %v15750_v25  ;;  %11427 = vmatprep.subr.bf16.mxu0 %v15755_v20  ;;  %v15776_v25 = vld [vmem:[%s17784_s12 + $0x2284] ss:$16 sps:$4 sm:$0xff]  }
 0x23c   : > { %11468 = vmatprep.subr.bf16.mxu1 %v15758_v28  ;;  %v15779_v20 = vld [vmem:[%s17784_s12 + $0x2064] ss:$16 sps:$4 sm:$0xff]  }
 0x23d   : > { %v11133_v55 = vpop.f32.mrf.mxu0  ;;  %11378 = vmatmul.mubr.bf16.vlgmr.msra.gmra.mxu0 %v18472_v29  ;;  %v15782_v28 = vld [vmem:[%s17784_s12 + $0x2264] ss:$16 sps:$4 sm:$0xff]  }
 0x23e   : > { %v11174_v56 = vpop.f32.mrf.mxu1  ;;  %11419 = vmatmul.mubr.bf16.vlgmr.msra.gmra.mxu1 %v18474_v32  ;;  %v11134_v57 = vadd.f32 %v11133_v55, %v18407_v31  ;;  %11428 = vmatpush1.bf16.msra.mxu0 %v15753_v18  ;;  %v15785_v18 = vld [vmem:[%s17784_s12 + $0x2044] ss:$16 sps:$4 sm:$0xff]   ;;  %v15789_v55 = vld [vmem:[%s17784_s12 + $0x2020] ss:$16 sps:$4 sm:$0xff]  }
 0x23f   : > { %11469 = vmatpush1.bf16.msra.mxu1 %v15756_v36  ;;  %v11135_v58 = vpop.f32.mrf.mxu0  ;;  %11429 = vmatprep.subr.bf16.mxu0 %v15761_v39  ;;  %v15788_v36 = vld [vmem:[%s17784_s12 + $0x2244] ss:$16 sps:$4 sm:$0xff]   ;;  %v15783_v39 = vld [vmem:[%s17784_s12 + $0x2040] ss:$16 sps:$4 sm:$0xff]  }
 0x240   : > { %v11176_v59 = vpop.f32.mrf.mxu1  ;;  %11470 = vmatprep.subr.bf16.mxu1 %v15764_v40  ;;  %v18493_v6 = vadd.f32 %v11174_v56, %v11134_v57  ;;  %v11136_v7 = vadd.f32 %v11135_v58, %v18414_v37  ;;  %11459 = vmatprep.mubr.bf16.mxu0 %v18484_v45  ;;  %v15773_v37 = vld [vmem:[%s17784_s12 + $0x2084] ss:$16 sps:$4 sm:$0xff]   ;;  %v15786_v40 = vld [vmem:[%s17784_s12 + $0x2240] ss:$16 sps:$4 sm:$0xff]  }
 0x241   : > { %11500 = vmatprep.mubr.bf16.mxu1 %v18486_v46  ;;  %v11137_v31 = vpop.f32.mrf.mxu0  ;;  %v15792_v56 = vld [vmem:[%s17784_s12 + $0x2220] ss:$16 sps:$4 sm:$0xff]   ;;  %v15797_v57 = vld [vmem:[%s17784_s12 + $0x2004] ss:$16 sps:$4 sm:$0xff]  }
 0x242   : > { %v11178_v15 = vpop.f32.mrf.mxu1  ;;  %v18500_v16 = vadd.f32 %v11176_v59, %v11136_v7  ;;  %11430 = vmatpush1.bf16.msra.mxu0 %v15759_v24  ;;  %v15791_v24 = vld [vmem:[%s17784_s12 + $0x2024] ss:$16 sps:$4 sm:$0xff]   ;;  %v15795_v59 = vld [vmem:[%s17784_s12 + $0x2000] ss:$16 sps:$4 sm:$0xff]  }
 0x243   : > { %11471 = vmatpush1.bf16.msra.mxu1 %v15762_v42  ;;  %v11138_v17 = vpop.f32.mrf.mxu0  ;;  %11431 = vmatprep.subr.bf16.mxu0 %v15767_v60  ;;  %v15794_v42 = vld [vmem:[%s17784_s12 + $0x2224] ss:$16 sps:$4 sm:$0xff]   ;;  %v15798_v60 = vld [vmem:[%s17784_s12 + $0x2200] ss:$16 sps:$4 sm:$0xff]  }
 0x244   : > { %v11179_v14 = vpop.f32.mrf.mxu1  ;;  %11472 = vmatprep.subr.bf16.mxu1 %v15770_v5  ;;  %v15800_v58 = vld [vmem:[%s17784_s12 + $0x2204] ss:$16 sps:$4 sm:$0xff]   ;;  %v15807_v17 = vld [vmem:[%s17784_s12 + $0x21c0] ss:$16 sps:$4 sm:$0xff]  }
 0x245   : > { %v15803_v5 = vld [vmem:[%s17784_s12 + $0x21e4] ss:$16 sps:$4 sm:$0xff]   ;;  %v15810_v14 = vld [vmem:[%s17784_s12 + $0x23c0] ss:$16 sps:$4 sm:$0xff]  }
 0x246   : > { %11432 = vmatpush1.bf16.msra.mxu0 %v15765_v8  ;;  %v15806_v7 = vld [vmem:[%s17784_s12 + $0x23e4] ss:$16 sps:$4 sm:$0xff]   ;;  %v15801_v8 = vld [vmem:[%s17784_s12 + $0x21e0] ss:$16 sps:$4 sm:$0xff]  }
 0x247   : > { %11473 = vmatpush1.bf16.msra.mxu1 %v15768_v13  ;;  %11433 = vmatprep.subr.bf16.mxu0 %v15773_v37  ;;  %v15804_v13 = vld [vmem:[%s17784_s12 + $0x23e0] ss:$16 sps:$4 sm:$0xff]   ;;  %v15809_v31 = vld [vmem:[%s17784_s12 + $0x21c4] ss:$16 sps:$4 sm:$0xff]  }
 0x248   : > { %11474 = vmatprep.subr.bf16.mxu1 %v15776_v25  ;;  %v15812_v15 = vld [vmem:[%s17784_s12 + $0x23c4] ss:$16 sps:$4 sm:$0xff]  }
 0x249   : > { %v15815_v37 = vld [vmem:[%s17784_s12 + $0x21a4] ss:$16 sps:$4 sm:$0xff]  }
 0x24a   : > { %11434 = vmatpush1.bf16.msra.mxu0 %v15771_v26  ;;  %v15818_v25 = vld [vmem:[%s17784_s12 + $0x23a4] ss:$16 sps:$4 sm:$0xff]   ;;  %v15813_v26 = vld [vmem:[%s17784_s12 + $0x21a0] ss:$16 sps:$4 sm:$0xff]  }
 0x24b   : > { %11475 = vmatpush1.bf16.msra.mxu1 %v15774_v27  ;;  %11435 = vmatprep.subr.bf16.mxu0 %v15779_v20  ;;  %v15816_v27 = vld [vmem:[%s17784_s12 + $0x23a0] ss:$16 sps:$4 sm:$0xff]   ;;  %v15821_v20 = vld [vmem:[%s17784_s12 + $0x2184] ss:$16 sps:$4 sm:$0xff]  }
 0x24c   : > { %11476 = vmatprep.subr.bf16.mxu1 %v15782_v28  ;;  %v15824_v28 = vld [vmem:[%s17784_s12 + $0x2384] ss:$16 sps:$4 sm:$0xff]  }
 0x24e   : > { %11436 = vmatpush1.bf16.msra.mxu0 %v15777_v34  ;;  %v15819_v34 = vld [vmem:[%s17784_s12 + $0x2180] ss:$16 sps:$4 sm:$0xff]  }
 0x24f   : > { %11477 = vmatpush1.bf16.msra.mxu1 %v15780_v35  ;;  %11437 = vmatprep.subr.bf16.mxu0 %v15785_v18  ;;  %v15822_v35 = vld [vmem:[%s17784_s12 + $0x2380] ss:$16 sps:$4 sm:$0xff]   ;;  %v15827_v18 = vld [vmem:[%s17784_s12 + $0x2164] ss:$16 sps:$4 sm:$0xff]  }
 0x250   : > { %11478 = vmatprep.subr.bf16.mxu1 %v15788_v36  ;;  %v15830_v36 = vld [vmem:[%s17784_s12 + $0x2364] ss:$16 sps:$4 sm:$0xff]  }
 0x252   : > { %11438 = vmatpush1.bf16.msra.mxu0 %v15783_v39  ;;  %v15825_v39 = vld [vmem:[%s17784_s12 + $0x2160] ss:$16 sps:$4 sm:$0xff]  }
 0x253   : > { %11479 = vmatpush1.bf16.msra.mxu1 %v15786_v40  ;;  %11439 = vmatprep.subr.bf16.mxu0 %v15791_v24  ;;  %v15828_v40 = vld [vmem:[%s17784_s12 + $0x2360] ss:$16 sps:$4 sm:$0xff]   ;;  %v15833_v24 = vld [vmem:[%s17784_s12 + $0x2144] ss:$16 sps:$4 sm:$0xff]  }
 0x254   : > { %11480 = vmatprep.subr.bf16.mxu1 %v15794_v42  ;;  %v15836_v42 = vld [vmem:[%s17784_s12 + $0x2344] ss:$16 sps:$4 sm:$0xff]  }
 0x256   : > { %11440 = vmatpush1.bf16.msra.mxu0 %v15789_v55  ;;  %v15831_v55 = vld [vmem:[%s17784_s12 + $0x2140] ss:$16 sps:$4 sm:$0xff]  }
 0x257   : > { %11481 = vmatpush1.bf16.msra.mxu1 %v15792_v56  ;;  %11441 = vmatprep.subr.bf16.mxu0 %v15797_v57  ;;  %v15834_v56 = vld [vmem:[%s17784_s12 + $0x2340] ss:$16 sps:$4 sm:$0xff]   ;;  %v15839_v57 = vld [vmem:[%s17784_s12 + $0x2124] ss:$16 sps:$4 sm:$0xff]  }
 0x258   : > { %11482 = vmatprep.subr.bf16.mxu1 %v15800_v58  ;;  %v15842_v58 = vld [vmem:[%s17784_s12 + $0x2324] ss:$16 sps:$4 sm:$0xff]  }
 0x25a   : > { %11442 = vmatpush1.bf16.msra.mxu0 %v15795_v59  ;;  %v15837_v59 = vld [vmem:[%s17784_s12 + $0x2120] ss:$16 sps:$4 sm:$0xff]  }
 0x25b   : > { %11483 = vmatpush1.bf16.msra.mxu1 %v15798_v60  ;;  %11443 = vmatprep.subr.bf16.mxu0 %v15803_v5  ;;  %v15840_v60 = vld [vmem:[%s17784_s12 + $0x2320] ss:$16 sps:$4 sm:$0xff]   ;;  %v15845_v5 = vld [vmem:[%s17784_s12 + $0x2104] ss:$16 sps:$4 sm:$0xff]  }
 0x25c   : > { %11484 = vmatprep.subr.bf16.mxu1 %v15806_v7  ;;  %v15848_v7 = vld [vmem:[%s17784_s12 + $0x2304] ss:$16 sps:$4 sm:$0xff]  }
 0x25e   : > { %11444 = vmatpush2.bf16.msra.mxu0 %v15801_v8  ;;  %v15843_v8 = vld [vmem:[%s17784_s12 + $0x2100] ss:$16 sps:$4 sm:$0xff]  }
 0x25f   : > { %11485 = vmatpush2.bf16.msra.mxu1 %v15804_v13  ;;  %11445 = vmatprep.subr.bf16.mxu0 %v15809_v31  ;;  %v15846_v13 = vld [vmem:[%s17784_s12 + $0x2300] ss:$16 sps:$4 sm:$0xff]  }
 0x260   : > { %11486 = vmatprep.subr.bf16.mxu1 %v15812_v15  ;;  %v323_v31 = vld [vmem:[%s17807_s29 + $0x100] sm:$0xff]  ;;  %v325_v15 = vld [vmem:[%s17807_s29 + $0x110] sm:$0xff] }
 0x262   : > { %11446 = vmatpush2.bf16.msra.mxu0 %v15807_v17  ;;  %v15851_v17 = vld [vmem:[%s17784_s12 + $0x24e4] ss:$16 sps:$4 sm:$0xff]  }
 0x263   : > { %11487 = vmatpush2.bf16.msra.mxu1 %v15810_v14  ;;  %11447 = vmatprep.subr.bf16.mxu0 %v15815_v37  ;;  %v15854_v14 = vld [vmem:[%s17784_s12 + $0x26e4] ss:$16 sps:$4 sm:$0xff]   ;;  %v18558_v37 = vpack.c.bf16 %v323_v31, %v323_v31 }
 0x264   : > { %11488 = vmatprep.subr.bf16.mxu1 %v15818_v25  ;;  %v18560_v25 = vpack.c.bf16 %v325_v15, %v325_v15 }
 0x266   : > { %11448 = vmatpush2.bf16.msra.mxu0 %v15813_v26  ;;  %v328_v26 = vld [vmem:[%s17807_s29 + $0x128] sm:$0xff] }
 0x267   : > { %11489 = vmatpush2.bf16.msra.mxu1 %v15816_v27  ;;  %11449 = vmatprep.subr.bf16.mxu0 %v15821_v20  ;;  %v330_v27 = vld [vmem:[%s17807_s29 + $0x138] sm:$0xff]  ;;  %v15849_v20 = vld [vmem:[%s17784_s12 + $0x24e0] ss:$16 sps:$4 sm:$0xff]  }
 0x268   : > { %11490 = vmatprep.subr.bf16.mxu1 %v15824_v28  ;;  %v15852_v28 = vld [vmem:[%s17784_s12 + $0x26e0] ss:$16 sps:$4 sm:$0xff]  }
 0x26a   : > { %11450 = vmatpush2.bf16.msra.mxu0 %v15819_v34  ;;  %v15857_v34 = vld [vmem:[%s17784_s12 + $0x24c4] ss:$16 sps:$4 sm:$0xff]  }
 0x26b   : > { %11491 = vmatpush2.bf16.msra.mxu1 %v15822_v35  ;;  %11451 = vmatprep.subr.bf16.mxu0 %v15827_v18  ;;  %v15860_v35 = vld [vmem:[%s17784_s12 + $0x26c4] ss:$16 sps:$4 sm:$0xff]   ;;  %v15855_v18 = vld [vmem:[%s17784_s12 + $0x24c0] ss:$16 sps:$4 sm:$0xff]  }
 0x26c   : > { %11492 = vmatprep.subr.bf16.mxu1 %v15830_v36  ;;  %v15858_v36 = vld [vmem:[%s17784_s12 + $0x26c0] ss:$16 sps:$4 sm:$0xff]  }
 0x26e   : > { %11452 = vmatpush2.bf16.msra.mxu0 %v15825_v39  ;;  %v18570_v39 = vpack.c.bf16 %v328_v26, %v328_v26  ;;  %v15867_v26 = vld [vmem:[%s17784_s12 + $0x2480] ss:$16 sps:$4 sm:$0xff]  }
 0x26f   : > { %11493 = vmatpush2.bf16.msra.mxu1 %v15828_v40  ;;  %11453 = vmatprep.subr.bf16.mxu0 %v15833_v24  ;;  %v18572_v40 = vpack.c.bf16 %v330_v27, %v330_v27  ;;  %v15870_v27 = vld [vmem:[%s17784_s12 + $0x2680] ss:$16 sps:$4 sm:$0xff]  }
 0x270   : > { %11494 = vmatprep.subr.bf16.mxu1 %v15836_v42 }
 0x272   : > { %11454 = vmatpush2.bf16.msra.mxu0 %v15831_v55 }
 0x273   : > { %11495 = vmatpush2.bf16.msra.mxu1 %v15834_v56  ;;  %11455 = vmatprep.subr.bf16.mxu0 %v15839_v57 }
 0x274   : > { %11496 = vmatprep.subr.bf16.mxu1 %v15842_v58  ;;  %v15863_v58 = vld [vmem:[%s17784_s12 + $0x24a4] ss:$16 sps:$4 sm:$0xff]  }
 0x276   : > { %11456 = vmatpush2.bf16.msra.mxu0 %v15837_v59  ;;  %v15866_v59 = vld [vmem:[%s17784_s12 + $0x26a4] ss:$16 sps:$4 sm:$0xff]  }
 0x277   : > { %11497 = vmatpush2.bf16.msra.mxu1 %v15840_v60  ;;  %11457 = vmatprep.subr.bf16.mxu0 %v15845_v5 }
 0x278   : > { %11498 = vmatprep.subr.bf16.mxu1 %v15848_v7  ;;  %v15861_v7 = vld [vmem:[%s17784_s12 + $0x24a0] ss:$16 sps:$4 sm:$0xff]  }
 0x27a   : > { %11458 = vmatpush2.bf16.msra.mxu0 %v15843_v8  ;;  %v15864_v8 = vld [vmem:[%s17784_s12 + $0x26a0] ss:$16 sps:$4 sm:$0xff]  }
 0x27b   : > { %11499 = vmatpush2.bf16.msra.mxu1 %v15846_v13  ;;  %11509 = vmatprep.subr.bf16.mxu0 %v15851_v17 }
 0x27c   : > { %11550 = vmatprep.subr.bf16.mxu1 %v15854_v14  ;;  %v15872_v14 = vld [vmem:[%s17784_s12 + $0x2684] ss:$16 sps:$4 sm:$0xff]  }
 0x27d   : > { %v11215_v24 = vpop.f32.mrf.mxu0  ;;  %11460 = vmatmul.mubr.bf16.vlgmr.msra.gmra.mxu0 %v18558_v37 }
 0x27e   : > { %v11256_v42 = vpop.f32.mrf.mxu1  ;;  %11501 = vmatmul.mubr.bf16.vlgmr.msra.gmra.mxu1 %v18560_v25  ;;  %v11216_v55 = vadd.f32 %v11215_v24, %v18493_v6  ;;  %11510 = vmatpush1.bf16.msra.mxu0 %v15849_v20  ;;  %v15875_v20 = vld [vmem:[%s17784_s12 + $0x2464] ss:$16 sps:$4 sm:$0xff]   ;;  %v15879_v24 = vld [vmem:[%s17784_s12 + $0x2440] ss:$16 sps:$4 sm:$0xff]  }
 0x27f   : > { %11551 = vmatpush1.bf16.msra.mxu1 %v15852_v28  ;;  %v11217_v56 = vpop.f32.mrf.mxu0  ;;  %11511 = vmatprep.subr.bf16.mxu0 %v15857_v34  ;;  %v15878_v28 = vld [vmem:[%s17784_s12 + $0x2664] ss:$16 sps:$4 sm:$0xff]   ;;  %v15873_v34 = vld [vmem:[%s17784_s12 + $0x2460] ss:$16 sps:$4 sm:$0xff]  }
 0x280   : > { %v11258_v57 = vpop.f32.mrf.mxu1  ;;  %11552 = vmatprep.subr.bf16.mxu1 %v15860_v35  ;;  %v18579_v60 = vadd.f32 %v11256_v42, %v11216_v55  ;;  %v11218_v5 = vadd.f32 %v11217_v56, %v18500_v16  ;;  %11541 = vmatprep.mubr.bf16.mxu0 %v18570_v39  ;;  %v15869_v16 = vld [vmem:[%s17784_s12 + $0x2484] ss:$16 sps:$4 sm:$0xff]   ;;  %v15876_v35 = vld [vmem:[%s17784_s12 + $0x2660] ss:$16 sps:$4 sm:$0xff]  }
 0x281   : > { %11582 = vmatprep.mubr.bf16.mxu1 %v18572_v40  ;;  %v11219_v6 = vpop.f32.mrf.mxu0  ;;  %v15882_v42 = vld [vmem:[%s17784_s12 + $0x2640] ss:$16 sps:$4 sm:$0xff]   ;;  %v15887_v55 = vld [vmem:[%s17784_s12 + $0x2424] ss:$16 sps:$4 sm:$0xff]  }
 0x282   : > { %v11260_v13 = vpop.f32.mrf.mxu1  ;;  %v18586_v31 = vadd.f32 %v11258_v57, %v11218_v5  ;;  %11512 = vmatpush1.bf16.msra.mxu0 %v15855_v18  ;;  %v15881_v18 = vld [vmem:[%s17784_s12 + $0x2444] ss:$16 sps:$4 sm:$0xff]   ;;  %v15885_v57 = vld [vmem:[%s17784_s12 + $0x2420] ss:$16 sps:$4 sm:$0xff]  }
 0x283   : > { %11553 = vmatpush1.bf16.msra.mxu1 %v15858_v36  ;;  %v11220_v15 = vpop.f32.mrf.mxu0  ;;  %11513 = vmatprep.subr.bf16.mxu0 %v15863_v58  ;;  %v15884_v36 = vld [vmem:[%s17784_s12 + $0x2644] ss:$16 sps:$4 sm:$0xff]   ;;  %v15888_v58 = vld [vmem:[%s17784_s12 + $0x2620] ss:$16 sps:$4 sm:$0xff]  }
 0x284   : > { %v11261_v17 = vpop.f32.mrf.mxu1  ;;  %11554 = vmatprep.subr.bf16.mxu1 %v15866_v59  ;;  %v15890_v56 = vld [vmem:[%s17784_s12 + $0x2624] ss:$16 sps:$4 sm:$0xff]   ;;  %v15897_v15 = vld [vmem:[%s17784_s12 + $0x25e0] ss:$16 sps:$4 sm:$0xff]  }
 0x285   : > { %v15893_v59 = vld [vmem:[%s17784_s12 + $0x2404] ss:$16 sps:$4 sm:$0xff]   ;;  %v15900_v17 = vld [vmem:[%s17784_s12 + $0x27e0] ss:$16 sps:$4 sm:$0xff]  }
 0x286   : > { %11514 = vmatpush1.bf16.msra.mxu0 %v15861_v7  ;;  %v15896_v5 = vld [vmem:[%s17784_s12 + $0x2604] ss:$16 sps:$4 sm:$0xff]   ;;  %v15891_v7 = vld [vmem:[%s17784_s12 + $0x2400] ss:$16 sps:$4 sm:$0xff]  }
 0x287   : > { %11555 = vmatpush1.bf16.msra.mxu1 %v15864_v8  ;;  %11515 = vmatprep.subr.bf16.mxu0 %v15869_v16  ;;  %v15894_v8 = vld [vmem:[%s17784_s12 + $0x2600] ss:$16 sps:$4 sm:$0xff]   ;;  %v15899_v6 = vld [vmem:[%s17784_s12 + $0x25e4] ss:$16 sps:$4 sm:$0xff]  }
 0x288   : > { %11556 = vmatprep.subr.bf16.mxu1 %v15872_v14  ;;  %v15902_v13 = vld [vmem:[%s17784_s12 + $0x27e4] ss:$16 sps:$4 sm:$0xff]  }
 0x289   : > { %v15905_v16 = vld [vmem:[%s17784_s12 + $0x25c4] ss:$16 sps:$4 sm:$0xff]  }
 0x28a   : > { %11516 = vmatpush1.bf16.msra.mxu0 %v15867_v26  ;;  %v15908_v14 = vld [vmem:[%s17784_s12 + $0x27c4] ss:$16 sps:$4 sm:$0xff]   ;;  %v15903_v26 = vld [vmem:[%s17784_s12 + $0x25c0] ss:$16 sps:$4 sm:$0xff]  }
 0x28b   : > { %11557 = vmatpush1.bf16.msra.mxu1 %v15870_v27  ;;  %11517 = vmatprep.subr.bf16.mxu0 %v15875_v20  ;;  %v15906_v27 = vld [vmem:[%s17784_s12 + $0x27c0] ss:$16 sps:$4 sm:$0xff]   ;;  %v15911_v20 = vld [vmem:[%s17784_s12 + $0x25a4] ss:$16 sps:$4 sm:$0xff]  }
 0x28c   : > { %11558 = vmatprep.subr.bf16.mxu1 %v15878_v28  ;;  %v15914_v28 = vld [vmem:[%s17784_s12 + $0x27a4] ss:$16 sps:$4 sm:$0xff]  }
 0x28e   : > { %11518 = vmatpush1.bf16.msra.mxu0 %v15873_v34  ;;  %v15909_v34 = vld [vmem:[%s17784_s12 + $0x25a0] ss:$16 sps:$4 sm:$0xff]  }
 0x28f   : > { %11559 = vmatpush1.bf16.msra.mxu1 %v15876_v35  ;;  %11519 = vmatprep.subr.bf16.mxu0 %v15881_v18  ;;  %v15912_v35 = vld [vmem:[%s17784_s12 + $0x27a0] ss:$16 sps:$4 sm:$0xff]   ;;  %v15917_v18 = vld [vmem:[%s17784_s12 + $0x2584] ss:$16 sps:$4 sm:$0xff]  }
 0x290   : > { %11560 = vmatprep.subr.bf16.mxu1 %v15884_v36  ;;  %v15920_v36 = vld [vmem:[%s17784_s12 + $0x2784] ss:$16 sps:$4 sm:$0xff]  }
 0x292   : > { %11520 = vmatpush1.bf16.msra.mxu0 %v15879_v24  ;;  %v15915_v24 = vld [vmem:[%s17784_s12 + $0x2580] ss:$16 sps:$4 sm:$0xff]  }
 0x293   : > { %11561 = vmatpush1.bf16.msra.mxu1 %v15882_v42  ;;  %11521 = vmatprep.subr.bf16.mxu0 %v15887_v55  ;;  %v15918_v42 = vld [vmem:[%s17784_s12 + $0x2780] ss:$16 sps:$4 sm:$0xff]   ;;  %v15923_v55 = vld [vmem:[%s17784_s12 + $0x2564] ss:$16 sps:$4 sm:$0xff]  }
 0x294   : > { %11562 = vmatprep.subr.bf16.mxu1 %v15890_v56  ;;  %v15926_v56 = vld [vmem:[%s17784_s12 + $0x2764] ss:$16 sps:$4 sm:$0xff]  }
 0x296   : > { %11522 = vmatpush1.bf16.msra.mxu0 %v15885_v57  ;;  %v15921_v57 = vld [vmem:[%s17784_s12 + $0x2560] ss:$16 sps:$4 sm:$0xff]  }
 0x297   : > { %11563 = vmatpush1.bf16.msra.mxu1 %v15888_v58  ;;  %11523 = vmatprep.subr.bf16.mxu0 %v15893_v59  ;;  %v15924_v58 = vld [vmem:[%s17784_s12 + $0x2760] ss:$16 sps:$4 sm:$0xff]   ;;  %v15929_v59 = vld [vmem:[%s17784_s12 + $0x2544] ss:$16 sps:$4 sm:$0xff]  }
 0x298   : > { %11564 = vmatprep.subr.bf16.mxu1 %v15896_v5  ;;  %v15932_v5 = vld [vmem:[%s17784_s12 + $0x2744] ss:$16 sps:$4 sm:$0xff]  }
 0x29a   : > { %11524 = vmatpush1.bf16.msra.mxu0 %v15891_v7  ;;  %v15927_v7 = vld [vmem:[%s17784_s12 + $0x2540] ss:$16 sps:$4 sm:$0xff]  }
 0x29b   : > { %11565 = vmatpush1.bf16.msra.mxu1 %v15894_v8  ;;  %11525 = vmatprep.subr.bf16.mxu0 %v15899_v6  ;;  %v15930_v8 = vld [vmem:[%s17784_s12 + $0x2740] ss:$16 sps:$4 sm:$0xff]   ;;  %v15935_v6 = vld [vmem:[%s17784_s12 + $0x2524] ss:$16 sps:$4 sm:$0xff]  }
 0x29c   : > { %11566 = vmatprep.subr.bf16.mxu1 %v15902_v13  ;;  %v15938_v13 = vld [vmem:[%s17784_s12 + $0x2724] ss:$16 sps:$4 sm:$0xff]  }
 0x29e   : > { %11526 = vmatpush2.bf16.msra.mxu0 %v15897_v15  ;;  %v15933_v15 = vld [vmem:[%s17784_s12 + $0x2520] ss:$16 sps:$4 sm:$0xff]  }
 0x29f   : > { %11567 = vmatpush2.bf16.msra.mxu1 %v15900_v17  ;;  %11527 = vmatprep.subr.bf16.mxu0 %v15905_v16  ;;  %v15936_v17 = vld [vmem:[%s17784_s12 + $0x2720] ss:$16 sps:$4 sm:$0xff]   ;;  %v15941_v16 = vld [vmem:[%s17784_s12 + $0x2504] ss:$16 sps:$4 sm:$0xff]  }
 0x2a0   : > { %11568 = vmatprep.subr.bf16.mxu1 %v15908_v14  ;;  %v15944_v14 = vld [vmem:[%s17784_s12 + $0x2704] ss:$16 sps:$4 sm:$0xff]  }
 0x2a2   : > { %11528 = vmatpush2.bf16.msra.mxu0 %v15903_v26  ;;  %v15939_v26 = vld [vmem:[%s17784_s12 + $0x2500] ss:$16 sps:$4 sm:$0xff]  }
 0x2a3   : > { %11569 = vmatpush2.bf16.msra.mxu1 %v15906_v27  ;;  %11529 = vmatprep.subr.bf16.mxu0 %v15911_v20  ;;  %v15942_v27 = vld [vmem:[%s17784_s12 + $0x2700] ss:$16 sps:$4 sm:$0xff]  }
 0x2a4   : > { %11570 = vmatprep.subr.bf16.mxu1 %v15914_v28  ;;  %v327_v20 = vld [vmem:[%s17807_s29 + $0x120] sm:$0xff]  ;;  %v329_v28 = vld [vmem:[%s17807_s29 + $0x130] sm:$0xff] }
 0x2a6   : > { %11530 = vmatpush2.bf16.msra.mxu0 %v15909_v34  ;;  %v15947_v34 = vld [vmem:[%s17784_s12 + $0x28e4] ss:$16 sps:$4 sm:$0xff]  }
 0x2a7   : > { %11571 = vmatpush2.bf16.msra.mxu1 %v15912_v35  ;;  %11531 = vmatprep.subr.bf16.mxu0 %v15917_v18  ;;  %v15950_v35 = vld [vmem:[%s17784_s12 + $0x2ae4] ss:$16 sps:$4 sm:$0xff]   ;;  %v18644_v18 = vpack.c.bf16 %v327_v20, %v327_v20 }
 0x2a8   : > { %11572 = vmatprep.subr.bf16.mxu1 %v15920_v36  ;;  %v18646_v36 = vpack.c.bf16 %v329_v28, %v329_v28  ;;  %v15957_v28 = vld [vmem:[%s17784_s12 + $0x28a0] ss:$16 sps:$4 sm:$0xff]  }
 0x2aa   : > { %11532 = vmatpush2.bf16.msra.mxu0 %v15915_v24  ;;  %v332_v24 = vld [vmem:[%s17807_s29 + $0x148] sm:$0xff] }
 0x2ab   : > { %11573 = vmatpush2.bf16.msra.mxu1 %v15918_v42  ;;  %11533 = vmatprep.subr.bf16.mxu0 %v15923_v55  ;;  %v334_v42 = vld [vmem:[%s17807_s29 + $0x158] sm:$0xff]  ;;  %v15945_v55 = vld [vmem:[%s17784_s12 + $0x28e0] ss:$16 sps:$4 sm:$0xff]  }
 0x2ac   : > { %11574 = vmatprep.subr.bf16.mxu1 %v15926_v56  ;;  %v15948_v56 = vld [vmem:[%s17784_s12 + $0x2ae0] ss:$16 sps:$4 sm:$0xff]  }
 0x2ae   : > { %11534 = vmatpush2.bf16.msra.mxu0 %v15921_v57  ;;  %v15953_v57 = vld [vmem:[%s17784_s12 + $0x28c4] ss:$16 sps:$4 sm:$0xff]  }
 0x2af   : > { %11575 = vmatpush2.bf16.msra.mxu1 %v15924_v58  ;;  %11535 = vmatprep.subr.bf16.mxu0 %v15929_v59  ;;  %v15956_v58 = vld [vmem:[%s17784_s12 + $0x2ac4] ss:$16 sps:$4 sm:$0xff]   ;;  %v15951_v59 = vld [vmem:[%s17784_s12 + $0x28c0] ss:$16 sps:$4 sm:$0xff]  }
 0x2b0   : > { %11576 = vmatprep.subr.bf16.mxu1 %v15932_v5  ;;  %v15954_v5 = vld [vmem:[%s17784_s12 + $0x2ac0] ss:$16 sps:$4 sm:$0xff]  }
 0x2b2   : > { %11536 = vmatpush2.bf16.msra.mxu0 %v15927_v7  ;;  %v18656_v7 = vpack.c.bf16 %v332_v24, %v332_v24 }
 0x2b3   : > { %11577 = vmatpush2.bf16.msra.mxu1 %v15930_v8  ;;  %11537 = vmatprep.subr.bf16.mxu0 %v15935_v6  ;;  %v18658_v8 = vpack.c.bf16 %v334_v42, %v334_v42 }
 0x2b4   : > { %11578 = vmatprep.subr.bf16.mxu1 %v15938_v13 }
 0x2b5   : > { %20023 = vst [vmem:[#allocation5_spill] sm:$0xff] %v18658_v8 }
 0x2b6   : > { %11538 = vmatpush2.bf16.msra.mxu0 %v15933_v15 }
 0x2b7   : > { %11579 = vmatpush2.bf16.msra.mxu1 %v15936_v17  ;;  %11539 = vmatprep.subr.bf16.mxu0 %v15941_v16 }
 0x2b8   : > { %11580 = vmatprep.subr.bf16.mxu1 %v15944_v14  ;;  %v15959_v14 = vld [vmem:[%s17784_s12 + $0x28a4] ss:$16 sps:$4 sm:$0xff]  }
 0x2ba   : > { %11540 = vmatpush2.bf16.msra.mxu0 %v15939_v26  ;;  %v15962_v26 = vld [vmem:[%s17784_s12 + $0x2aa4] ss:$16 sps:$4 sm:$0xff]  }
 0x2bb   : > { %11581 = vmatpush2.bf16.msra.mxu1 %v15942_v27  ;;  %11591 = vmatprep.subr.bf16.mxu0 %v15947_v34  ;;  %v15960_v34 = vld [vmem:[%s17784_s12 + $0x2aa0] ss:$16 sps:$4 sm:$0xff]  }
 0x2bc   : > { %11632 = vmatprep.subr.bf16.mxu1 %v15950_v35 }
 0x2bd   : > { %v11297_v6 = vpop.f32.mrf.mxu0  ;;  %11542 = vmatmul.mubr.bf16.vlgmr.msra.gmra.mxu0 %v18644_v18 }
 0x2be   : > { %v11338_v13 = vpop.f32.mrf.mxu1  ;;  %11583 = vmatmul.mubr.bf16.vlgmr.msra.gmra.mxu1 %v18646_v36  ;;  %v11298_v15 = vadd.f32 %v11297_v6, %v18579_v60  ;;  %11592 = vmatpush1.bf16.msra.mxu0 %v15945_v55  ;;  %v15969_v6 = vld [vmem:[%s17784_s12 + $0x2860] ss:$16 sps:$4 sm:$0xff]  }
 0x2bf   : > { %11633 = vmatpush1.bf16.msra.mxu1 %v15948_v56  ;;  %v11299_v17 = vpop.f32.mrf.mxu0  ;;  %11593 = vmatprep.subr.bf16.mxu0 %v15953_v57  ;;  %v15968_v56 = vld [vmem:[%s17784_s12 + $0x2a84] ss:$16 sps:$4 sm:$0xff]   ;;  %v15963_v57 = vld [vmem:[%s17784_s12 + $0x2880] ss:$16 sps:$4 sm:$0xff]  }
 0x2c0   : > { %v11340_v16 = vpop.f32.mrf.mxu1  ;;  %11634 = vmatprep.subr.bf16.mxu1 %v15956_v58  ;;  %v18665_v27 = vadd.f32 %v11338_v13, %v11298_v15  ;;  %v11300_v20 = vadd.f32 %v11299_v17, %v18586_v31  ;;  %11623 = vmatprep.mubr.bf16.mxu0 %v18656_v7  ;;  %v15965_v31 = vld [vmem:[%s17784_s12 + $0x2884] ss:$16 sps:$4 sm:$0xff]   ;;  %v15966_v58 = vld [vmem:[%s17784_s12 + $0x2a80] ss:$16 sps:$4 sm:$0xff]  }
 0x2c1   : > { %11664 = vmatprep.mubr.bf16.mxu1 %v18658_v8  ;;  %v11301_v60 = vpop.f32.mrf.mxu0  ;;  %v15972_v13 = vld [vmem:[%s17784_s12 + $0x2a60] ss:$16 sps:$4 sm:$0xff]   ;;  %v15977_v15 = vld [vmem:[%s17784_s12 + $0x2844] ss:$16 sps:$4 sm:$0xff]  }
 0x2c2   : > { %v11342_v35 = vpop.f32.mrf.mxu1  ;;  %v18672_v24 = vadd.f32 %v11340_v16, %v11300_v20  ;;  %11594 = vmatpush1.bf16.msra.mxu0 %v15951_v59  ;;  %v15971_v59 = vld [vmem:[%s17784_s12 + $0x2864] ss:$16 sps:$4 sm:$0xff]   ;;  %v15975_v16 = vld [vmem:[%s17784_s12 + $0x2840] ss:$16 sps:$4 sm:$0xff]  }
 0x2c3   : > { %11635 = vmatpush1.bf16.msra.mxu1 %v15954_v5  ;;  %v11302_v42 = vpop.f32.mrf.mxu0  ;;  %11595 = vmatprep.subr.bf16.mxu0 %v15959_v14  ;;  %v15974_v5 = vld [vmem:[%s17784_s12 + $0x2a64] ss:$16 sps:$4 sm:$0xff]   ;;  %v15978_v14 = vld [vmem:[%s17784_s12 + $0x2a40] ss:$16 sps:$4 sm:$0xff]  }
 0x2c4   : > { %v11343_v55 = vpop.f32.mrf.mxu1  ;;  %11636 = vmatprep.subr.bf16.mxu1 %v15962_v26  ;;  %v15980_v17 = vld [vmem:[%s17784_s12 + $0x2a44] ss:$16 sps:$4 sm:$0xff]   ;;  %v15987_v42 = vld [vmem:[%s17784_s12 + $0x2800] ss:$16 sps:$4 sm:$0xff]  }
 0x2c5   : > { %v15983_v26 = vld [vmem:[%s17784_s12 + $0x2824] ss:$16 sps:$4 sm:$0xff]   ;;  %v15990_v55 = vld [vmem:[%s17784_s12 + $0x2a00] ss:$16 sps:$4 sm:$0xff]  }
 0x2c6   : > { %11596 = vmatpush1.bf16.msra.mxu0 %v15957_v28  ;;  %v15986_v20 = vld [vmem:[%s17784_s12 + $0x2a24] ss:$16 sps:$4 sm:$0xff]   ;;  %v15981_v28 = vld [vmem:[%s17784_s12 + $0x2820] ss:$16 sps:$4 sm:$0xff]  }
 0x2c7   : > { %11637 = vmatpush1.bf16.msra.mxu1 %v15960_v34  ;;  %11597 = vmatprep.subr.bf16.mxu0 %v15965_v31  ;;  %v15984_v34 = vld [vmem:[%s17784_s12 + $0x2a20] ss:$16 sps:$4 sm:$0xff]   ;;  %v15989_v60 = vld [vmem:[%s17784_s12 + $0x2804] ss:$16 sps:$4 sm:$0xff]  }
 0x2c8   : > { %11638 = vmatprep.subr.bf16.mxu1 %v15968_v56  ;;  %v15992_v35 = vld [vmem:[%s17784_s12 + $0x2a04] ss:$16 sps:$4 sm:$0xff]   ;;  %v16056_v8 = vld [vmem:[%s17784_s12 + $0x2ea0] ss:$16 sps:$4 sm:$0xff]  }
 0x2c9   : > { %v15995_v31 = vld [vmem:[%s17784_s12 + $0x29e4] ss:$16 sps:$4 sm:$0xff]  }
 0x2ca   : > { %11598 = vmatpush1.bf16.msra.mxu0 %v15963_v57  ;;  %v15998_v56 = vld [vmem:[%s17784_s12 + $0x2be4] ss:$16 sps:$4 sm:$0xff]   ;;  %v15993_v57 = vld [vmem:[%s17784_s12 + $0x29e0] ss:$16 sps:$4 sm:$0xff]  }
 0x2cb   : > { %11639 = vmatpush1.bf16.msra.mxu1 %v15966_v58  ;;  %11599 = vmatprep.subr.bf16.mxu0 %v15971_v59  ;;  %v15996_v58 = vld [vmem:[%s17784_s12 + $0x2be0] ss:$16 sps:$4 sm:$0xff]   ;;  %v16001_v59 = vld [vmem:[%s17784_s12 + $0x29c4] ss:$16 sps:$4 sm:$0xff]  }
 0x2cc   : > { %11640 = vmatprep.subr.bf16.mxu1 %v15974_v5  ;;  %v16004_v5 = vld [vmem:[%s17784_s12 + $0x2bc4] ss:$16 sps:$4 sm:$0xff]  }
 0x2ce   : > { %11600 = vmatpush1.bf16.msra.mxu0 %v15969_v6  ;;  %v15999_v6 = vld [vmem:[%s17784_s12 + $0x29c0] ss:$16 sps:$4 sm:$0xff]  }
 0x2cf   : > { %11641 = vmatpush1.bf16.msra.mxu1 %v15972_v13  ;;  %11601 = vmatprep.subr.bf16.mxu0 %v15977_v15  ;;  %v16002_v13 = vld [vmem:[%s17784_s12 + $0x2bc0] ss:$16 sps:$4 sm:$0xff]   ;;  %v16007_v15 = vld [vmem:[%s17784_s12 + $0x29a4] ss:$16 sps:$4 sm:$0xff]  }
 0x2d0   : > { %11642 = vmatprep.subr.bf16.mxu1 %v15980_v17  ;;  %v16010_v17 = vld [vmem:[%s17784_s12 + $0x2ba4] ss:$16 sps:$4 sm:$0xff]  }
 0x2d2   : > { %11602 = vmatpush1.bf16.msra.mxu0 %v15975_v16  ;;  %v16005_v16 = vld [vmem:[%s17784_s12 + $0x29a0] ss:$16 sps:$4 sm:$0xff]  }
 0x2d3   : > { %11643 = vmatpush1.bf16.msra.mxu1 %v15978_v14  ;;  %11603 = vmatprep.subr.bf16.mxu0 %v15983_v26  ;;  %v16008_v14 = vld [vmem:[%s17784_s12 + $0x2ba0] ss:$16 sps:$4 sm:$0xff]   ;;  %v16013_v26 = vld [vmem:[%s17784_s12 + $0x2984] ss:$16 sps:$4 sm:$0xff]  }
 0x2d4   : > { %11644 = vmatprep.subr.bf16.mxu1 %v15986_v20  ;;  %v16016_v20 = vld [vmem:[%s17784_s12 + $0x2b84] ss:$16 sps:$4 sm:$0xff]  }
 0x2d6   : > { %11604 = vmatpush1.bf16.msra.mxu0 %v15981_v28  ;;  %v16011_v28 = vld [vmem:[%s17784_s12 + $0x2980] ss:$16 sps:$4 sm:$0xff]  }
 0x2d7   : > { %11645 = vmatpush1.bf16.msra.mxu1 %v15984_v34  ;;  %11605 = vmatprep.subr.bf16.mxu0 %v15989_v60  ;;  %v16014_v34 = vld [vmem:[%s17784_s12 + $0x2b80] ss:$16 sps:$4 sm:$0xff]   ;;  %v16019_v60 = vld [vmem:[%s17784_s12 + $0x2964] ss:$16 sps:$4 sm:$0xff]  }
 0x2d8   : > { %11646 = vmatprep.subr.bf16.mxu1 %v15992_v35  ;;  %v16022_v35 = vld [vmem:[%s17784_s12 + $0x2b64] ss:$16 sps:$4 sm:$0xff]  }
 0x2da   : > { %11606 = vmatpush1.bf16.msra.mxu0 %v15987_v42  ;;  %v16017_v42 = vld [vmem:[%s17784_s12 + $0x2960] ss:$16 sps:$4 sm:$0xff]  }
 0x2db   : > { %11647 = vmatpush1.bf16.msra.mxu1 %v15990_v55  ;;  %11607 = vmatprep.subr.bf16.mxu0 %v15995_v31  ;;  %v16020_v55 = vld [vmem:[%s17784_s12 + $0x2b60] ss:$16 sps:$4 sm:$0xff]   ;;  %v16025_v31 = vld [vmem:[%s17784_s12 + $0x2944] ss:$16 sps:$4 sm:$0xff]  }
 0x2dc   : > { %11648 = vmatprep.subr.bf16.mxu1 %v15998_v56  ;;  %v16028_v56 = vld [vmem:[%s17784_s12 + $0x2b44] ss:$16 sps:$4 sm:$0xff]  }
 0x2de   : > { %11608 = vmatpush2.bf16.msra.mxu0 %v15993_v57  ;;  %v16023_v57 = vld [vmem:[%s17784_s12 + $0x2940] ss:$16 sps:$4 sm:$0xff]  }
 0x2df   : > { %11649 = vmatpush2.bf16.msra.mxu1 %v15996_v58  ;;  %11609 = vmatprep.subr.bf16.mxu0 %v16001_v59  ;;  %v16026_v58 = vld [vmem:[%s17784_s12 + $0x2b40] ss:$16 sps:$4 sm:$0xff]   ;;  %v16031_v59 = vld [vmem:[%s17784_s12 + $0x2924] ss:$16 sps:$4 sm:$0xff]  }
 0x2e0   : > { %11650 = vmatprep.subr.bf16.mxu1 %v16004_v5  ;;  %v16034_v5 = vld [vmem:[%s17784_s12 + $0x2b24] ss:$16 sps:$4 sm:$0xff]  }
 0x2e2   : > { %11610 = vmatpush2.bf16.msra.mxu0 %v15999_v6  ;;  %v16029_v6 = vld [vmem:[%s17784_s12 + $0x2920] ss:$16 sps:$4 sm:$0xff]  }
 0x2e3   : > { %11651 = vmatpush2.bf16.msra.mxu1 %v16002_v13  ;;  %11611 = vmatprep.subr.bf16.mxu0 %v16007_v15  ;;  %v16032_v13 = vld [vmem:[%s17784_s12 + $0x2b20] ss:$16 sps:$4 sm:$0xff]   ;;  %v16037_v15 = vld [vmem:[%s17784_s12 + $0x2904] ss:$16 sps:$4 sm:$0xff]  }
 0x2e4   : > { %11652 = vmatprep.subr.bf16.mxu1 %v16010_v17  ;;  %v16040_v17 = vld [vmem:[%s17784_s12 + $0x2b04] ss:$16 sps:$4 sm:$0xff]  }
 0x2e6   : > { %11612 = vmatpush2.bf16.msra.mxu0 %v16005_v16  ;;  %v16035_v16 = vld [vmem:[%s17784_s12 + $0x2900] ss:$16 sps:$4 sm:$0xff]  }
 0x2e7   : > { %11653 = vmatpush2.bf16.msra.mxu1 %v16008_v14  ;;  %11613 = vmatprep.subr.bf16.mxu0 %v16013_v26  ;;  %v16038_v14 = vld [vmem:[%s17784_s12 + $0x2b00] ss:$16 sps:$4 sm:$0xff]  }
 0x2e8   : > { %11654 = vmatprep.subr.bf16.mxu1 %v16016_v20  ;;  %v331_v26 = vld [vmem:[%s17807_s29 + $0x140] sm:$0xff]  ;;  %v333_v20 = vld [vmem:[%s17807_s29 + $0x150] sm:$0xff] }
 0x2ea   : > { %11614 = vmatpush2.bf16.msra.mxu0 %v16011_v28  ;;  %v16043_v28 = vld [vmem:[%s17784_s12 + $0x2ce4] ss:$16 sps:$4 sm:$0xff]  }
 0x2eb   : > { %11655 = vmatpush2.bf16.msra.mxu1 %v16014_v34  ;;  %11615 = vmatprep.subr.bf16.mxu0 %v16019_v60  ;;  %v16046_v34 = vld [vmem:[%s17784_s12 + $0x2ee4] ss:$16 sps:$4 sm:$0xff]   ;;  %v18730_v60 = vpack.c.bf16 %v331_v26, %v331_v26 }
 0x2ec   : > { %11656 = vmatprep.subr.bf16.mxu1 %v16022_v35  ;;  %v18732_v35 = vpack.c.bf16 %v333_v20, %v333_v20  ;;  %v16055_v20 = vld [vmem:[%s17784_s12 + $0x2ca4] ss:$16 sps:$4 sm:$0xff]  }
 0x2ee   : > { %11616 = vmatpush2.bf16.msra.mxu0 %v16017_v42  ;;  %20024 = vst [vmem:[#allocation6_spill] sm:$0xff] %v18732_v35  ;;  %v336_v42 = vld [vmem:[%s17807_s29 + $0x168] sm:$0xff] }
 0x2ef   : > { %11657 = vmatpush2.bf16.msra.mxu1 %v16020_v55  ;;  %11617 = vmatprep.subr.bf16.mxu0 %v16025_v31  ;;  %v338_v55 = vld [vmem:[%s17807_s29 + $0x178] sm:$0xff]  ;;  %v16041_v31 = vld [vmem:[%s17784_s12 + $0x2ce0] ss:$16 sps:$4 sm:$0xff]  }
 0x2f0   : > { %11658 = vmatprep.subr.bf16.mxu1 %v16028_v56  ;;  %v16044_v56 = vld [vmem:[%s17784_s12 + $0x2ee0] ss:$16 sps:$4 sm:$0xff]  }
 0x2f2   : > { %11618 = vmatpush2.bf16.msra.mxu0 %v16023_v57  ;;  %v16049_v57 = vld [vmem:[%s17784_s12 + $0x2cc4] ss:$16 sps:$4 sm:$0xff]  }
 0x2f3   : > { %11659 = vmatpush2.bf16.msra.mxu1 %v16026_v58  ;;  %11619 = vmatprep.subr.bf16.mxu0 %v16031_v59  ;;  %v16052_v58 = vld [vmem:[%s17784_s12 + $0x2ec4] ss:$16 sps:$4 sm:$0xff]   ;;  %v16047_v59 = vld [vmem:[%s17784_s12 + $0x2cc0] ss:$16 sps:$4 sm:$0xff]  }
 0x2f4   : > { %11660 = vmatprep.subr.bf16.mxu1 %v16034_v5  ;;  %v16050_v5 = vld [vmem:[%s17784_s12 + $0x2ec0] ss:$16 sps:$4 sm:$0xff]  }
 0x2f6   : > { %11620 = vmatpush2.bf16.msra.mxu0 %v16029_v6  ;;  %v18742_v6 = vpack.c.bf16 %v336_v42, %v336_v42 }
 0x2f7   : > { %11661 = vmatpush2.bf16.msra.mxu1 %v16032_v13  ;;  %11621 = vmatprep.subr.bf16.mxu0 %v16037_v15  ;;  %v18744_v13 = vpack.c.bf16 %v338_v55, %v338_v55  ;;  %v16053_v55 = vld [vmem:[%s17784_s12 + $0x2ca0] ss:$16 sps:$4 sm:$0xff]  }
 0x2f8   : > { %11662 = vmatprep.subr.bf16.mxu1 %v16040_v17  ;;  %20025 = vst [vmem:[#allocation7_spill] sm:$0xff] %v18742_v6 }
 0x2f9   : > { %20026 = vst [vmem:[#allocation8_spill] sm:$0xff] %v18744_v13 }
 0x2fa   : > { %11622 = vmatpush2.bf16.msra.mxu0 %v16035_v16 }
 0x2fb   : > { %11663 = vmatpush2.bf16.msra.mxu1 %v16038_v14  ;;  %11673 = vmatprep.subr.bf16.mxu0 %v16043_v28  ;;  %v16058_v28 = vld [vmem:[%s17784_s12 + $0x2ea4] ss:$16 sps:$4 sm:$0xff]  }
 0x2fc   : > { %11714 = vmatprep.subr.bf16.mxu1 %v16046_v34 }
 0x2fd   : > { %v11379_v15 = vpop.f32.mrf.mxu0  ;;  %11624 = vmatmul.mubr.bf16.vlgmr.msra.gmra.mxu0 %v18730_v60 }
 0x2fe   : > { %v11420_v17 = vpop.f32.mrf.mxu1  ;;  %11665 = vmatmul.mubr.bf16.vlgmr.msra.gmra.mxu1 %v18732_v35  ;;  %v11380_v16 = vadd.f32 %v11379_v15, %v18665_v27  ;;  %11674 = vmatpush1.bf16.msra.mxu0 %v16041_v31  ;;  %v16064_v15 = vld [vmem:[%s17784_s12 + $0x2e84] ss:$16 sps:$4 sm:$0xff]  }
 0x2ff   : > { %11715 = vmatpush1.bf16.msra.mxu1 %v16044_v56  ;;  %v11381_v14 = vpop.f32.mrf.mxu0  ;;  %11675 = vmatprep.subr.bf16.mxu0 %v16049_v57 }
 0x300   : > { %v11422_v26 = vpop.f32.mrf.mxu1  ;;  %11716 = vmatprep.subr.bf16.mxu1 %v16052_v58  ;;  %v18751_v34 = vadd.f32 %v11420_v17, %v11380_v16  ;;  %v11382_v42 = vadd.f32 %v11381_v14, %v18672_v24  ;;  %11705 = vmatprep.mubr.bf16.mxu0 %v18742_v6  ;;  %v16061_v24 = vld [vmem:[%s17784_s12 + $0x2c84] ss:$16 sps:$4 sm:$0xff]   ;;  %v16059_v17 = vld [vmem:[%s17784_s12 + $0x2c80] ss:$16 sps:$4 sm:$0xff]  }
 0x301   : > { %11746 = vmatprep.mubr.bf16.mxu1 %v18744_v13  ;;  %v11383_v27 = vpop.f32.mrf.mxu0  ;;  %v16062_v16 = vld [vmem:[%s17784_s12 + $0x2e80] ss:$16 sps:$4 sm:$0xff]  }
 0x302   : > { %v11424_v31 = vpop.f32.mrf.mxu1  ;;  %v18758_v56 = vadd.f32 %v11422_v26, %v11382_v42  ;;  %11676 = vmatpush1.bf16.msra.mxu0 %v16047_v59  ;;  %v16067_v59 = vld [vmem:[%s17784_s12 + $0x2c64] ss:$16 sps:$4 sm:$0xff]   ;;  %v16065_v14 = vld [vmem:[%s17784_s12 + $0x2c60] ss:$16 sps:$4 sm:$0xff]  }
 0x303   : > { %11717 = vmatpush1.bf16.msra.mxu1 %v16050_v5  ;;  %v11384_v57 = vpop.f32.mrf.mxu0  ;;  %11677 = vmatprep.subr.bf16.mxu0 %v16055_v20  ;;  %v16070_v5 = vld [vmem:[%s17784_s12 + $0x2e64] ss:$16 sps:$4 sm:$0xff]   ;;  %v16068_v26 = vld [vmem:[%s17784_s12 + $0x2e60] ss:$16 sps:$4 sm:$0xff]  }
 0x304   : > { %v11425_v58 = vpop.f32.mrf.mxu1  ;;  %11718 = vmatprep.subr.bf16.mxu1 %v16058_v28  ;;  %v16073_v20 = vld [vmem:[%s17784_s12 + $0x2c44] ss:$16 sps:$4 sm:$0xff]   ;;  %v16071_v28 = vld [vmem:[%s17784_s12 + $0x2c40] ss:$16 sps:$4 sm:$0xff]  }
 0x305   : > { %v16074_v42 = vld [vmem:[%s17784_s12 + $0x2e40] ss:$16 sps:$4 sm:$0xff]   ;;  %v16082_v27 = vld [vmem:[%s17784_s12 + $0x2e24] ss:$16 sps:$4 sm:$0xff]  }
 0x306   : > { %11678 = vmatpush1.bf16.msra.mxu0 %v16053_v55  ;;  %v16079_v55 = vld [vmem:[%s17784_s12 + $0x2c24] ss:$16 sps:$4 sm:$0xff]   ;;  %v16077_v31 = vld [vmem:[%s17784_s12 + $0x2c20] ss:$16 sps:$4 sm:$0xff]  }
 0x307   : > { %11719 = vmatpush1.bf16.msra.mxu1 %v16056_v8  ;;  %11679 = vmatprep.subr.bf16.mxu0 %v16061_v24  ;;  %v16076_v8 = vld [vmem:[%s17784_s12 + $0x2e44] ss:$16 sps:$4 sm:$0xff]   ;;  %v16080_v57 = vld [vmem:[%s17784_s12 + $0x2e20] ss:$16 sps:$4 sm:$0xff]  }
 0x308   : > { %11720 = vmatprep.subr.bf16.mxu1 %v16064_v15  ;;  %v16085_v58 = vld [vmem:[%s17784_s12 + $0x2c04] ss:$16 sps:$4 sm:$0xff]   ;;  %v16083_v15 = vld [vmem:[%s17784_s12 + $0x2c00] ss:$16 sps:$4 sm:$0xff]  }
 0x309   : > { %v16088_v24 = vld [vmem:[%s17784_s12 + $0x2e04] ss:$16 sps:$4 sm:$0xff]   ;;  %v16149_v6 = vld [vmem:[%s17784_s12 + $0x30a0] ss:$16 sps:$4 sm:$0xff]  }
 0x30a   : > { %11680 = vmatpush1.bf16.msra.mxu0 %v16059_v17  ;;  %v16086_v17 = vld [vmem:[%s17784_s12 + $0x2e00] ss:$16 sps:$4 sm:$0xff]  }
 0x30b   : > { %11721 = vmatpush1.bf16.msra.mxu1 %v16062_v16  ;;  %11681 = vmatprep.subr.bf16.mxu0 %v16067_v59  ;;  %v16091_v16 = vld [vmem:[%s17784_s12 + $0x2de4] ss:$16 sps:$4 sm:$0xff]  }
 0x30c   : > { %11722 = vmatprep.subr.bf16.mxu1 %v16070_v5  ;;  %v16094_v59 = vld [vmem:[%s17784_s12 + $0x2fe4] ss:$16 sps:$4 sm:$0xff]   ;;  %v16089_v5 = vld [vmem:[%s17784_s12 + $0x2de0] ss:$16 sps:$4 sm:$0xff]  }
 0x30e   : > { %11682 = vmatpush1.bf16.msra.mxu0 %v16065_v14  ;;  %v16092_v14 = vld [vmem:[%s17784_s12 + $0x2fe0] ss:$16 sps:$4 sm:$0xff]  }
 0x30f   : > { %11723 = vmatpush1.bf16.msra.mxu1 %v16068_v26  ;;  %11683 = vmatprep.subr.bf16.mxu0 %v16073_v20  ;;  %v16097_v26 = vld [vmem:[%s17784_s12 + $0x2dc4] ss:$16 sps:$4 sm:$0xff]  }
 0x310   : > { %11724 = vmatprep.subr.bf16.mxu1 %v16076_v8  ;;  %v16100_v20 = vld [vmem:[%s17784_s12 + $0x2fc4] ss:$16 sps:$4 sm:$0xff]   ;;  %v16095_v8 = vld [vmem:[%s17784_s12 + $0x2dc0] ss:$16 sps:$4 sm:$0xff]  }
 0x312   : > { %11684 = vmatpush1.bf16.msra.mxu0 %v16071_v28  ;;  %v16098_v28 = vld [vmem:[%s17784_s12 + $0x2fc0] ss:$16 sps:$4 sm:$0xff]  }
 0x313   : > { %11725 = vmatpush1.bf16.msra.mxu1 %v16074_v42  ;;  %11685 = vmatprep.subr.bf16.mxu0 %v16079_v55  ;;  %v16103_v42 = vld [vmem:[%s17784_s12 + $0x2da4] ss:$16 sps:$4 sm:$0xff]  }
 0x314   : > { %11726 = vmatprep.subr.bf16.mxu1 %v16082_v27  ;;  %v16106_v55 = vld [vmem:[%s17784_s12 + $0x2fa4] ss:$16 sps:$4 sm:$0xff]   ;;  %v16101_v27 = vld [vmem:[%s17784_s12 + $0x2da0] ss:$16 sps:$4 sm:$0xff]  }
 0x316   : > { %11686 = vmatpush1.bf16.msra.mxu0 %v16077_v31  ;;  %v16104_v31 = vld [vmem:[%s17784_s12 + $0x2fa0] ss:$16 sps:$4 sm:$0xff]  }
 0x317   : > { %11727 = vmatpush1.bf16.msra.mxu1 %v16080_v57  ;;  %11687 = vmatprep.subr.bf16.mxu0 %v16085_v58  ;;  %v16109_v57 = vld [vmem:[%s17784_s12 + $0x2d84] ss:$16 sps:$4 sm:$0xff]  }
 0x318   : > { %11728 = vmatprep.subr.bf16.mxu1 %v16088_v24  ;;  %v16112_v58 = vld [vmem:[%s17784_s12 + $0x2f84] ss:$16 sps:$4 sm:$0xff]   ;;  %v16107_v24 = vld [vmem:[%s17784_s12 + $0x2d80] ss:$16 sps:$4 sm:$0xff]  }
 0x31a   : > { %11688 = vmatpush1.bf16.msra.mxu0 %v16083_v15  ;;  %v16110_v15 = vld [vmem:[%s17784_s12 + $0x2f80] ss:$16 sps:$4 sm:$0xff]  }
 0x31b   : > { %11729 = vmatpush1.bf16.msra.mxu1 %v16086_v17  ;;  %11689 = vmatprep.subr.bf16.mxu0 %v16091_v16  ;;  %v16115_v17 = vld [vmem:[%s17784_s12 + $0x2d64] ss:$16 sps:$4 sm:$0xff]  }
 0x31c   : > { %11730 = vmatprep.subr.bf16.mxu1 %v16094_v59  ;;  %v16118_v16 = vld [vmem:[%s17784_s12 + $0x2f64] ss:$16 sps:$4 sm:$0xff]   ;;  %v16113_v59 = vld [vmem:[%s17784_s12 + $0x2d60] ss:$16 sps:$4 sm:$0xff]  }
 0x31e   : > { %11690 = vmatpush2.bf16.msra.mxu0 %v16089_v5  ;;  %v16116_v5 = vld [vmem:[%s17784_s12 + $0x2f60] ss:$16 sps:$4 sm:$0xff]  }
 0x31f   : > { %11731 = vmatpush2.bf16.msra.mxu1 %v16092_v14  ;;  %11691 = vmatprep.subr.bf16.mxu0 %v16097_v26  ;;  %v16121_v14 = vld [vmem:[%s17784_s12 + $0x2d44] ss:$16 sps:$4 sm:$0xff]  }
 0x320   : > { %11732 = vmatprep.subr.bf16.mxu1 %v16100_v20  ;;  %v16124_v26 = vld [vmem:[%s17784_s12 + $0x2f44] ss:$16 sps:$4 sm:$0xff]   ;;  %v16119_v20 = vld [vmem:[%s17784_s12 + $0x2d40] ss:$16 sps:$4 sm:$0xff]  }
 0x322   : > { %11692 = vmatpush2.bf16.msra.mxu0 %v16095_v8  ;;  %v16122_v8 = vld [vmem:[%s17784_s12 + $0x2f40] ss:$16 sps:$4 sm:$0xff]  }
 0x323   : > { %11733 = vmatpush2.bf16.msra.mxu1 %v16098_v28  ;;  %11693 = vmatprep.subr.bf16.mxu0 %v16103_v42  ;;  %v16127_v28 = vld [vmem:[%s17784_s12 + $0x2d24] ss:$16 sps:$4 sm:$0xff]  }
 0x324   : > { %11734 = vmatprep.subr.bf16.mxu1 %v16106_v55  ;;  %v16130_v42 = vld [vmem:[%s17784_s12 + $0x2f24] ss:$16 sps:$4 sm:$0xff]   ;;  %v16125_v55 = vld [vmem:[%s17784_s12 + $0x2d20] ss:$16 sps:$4 sm:$0xff]  }
 0x326   : > { %11694 = vmatpush2.bf16.msra.mxu0 %v16101_v27  ;;  %v16128_v27 = vld [vmem:[%s17784_s12 + $0x2f20] ss:$16 sps:$4 sm:$0xff]  }
 0x327   : > { %11735 = vmatpush2.bf16.msra.mxu1 %v16104_v31  ;;  %11695 = vmatprep.subr.bf16.mxu0 %v16109_v57  ;;  %v16133_v31 = vld [vmem:[%s17784_s12 + $0x2d04] ss:$16 sps:$4 sm:$0xff]  }
 0x328   : > { %11736 = vmatprep.subr.bf16.mxu1 %v16112_v58  ;;  %v16136_v57 = vld [vmem:[%s17784_s12 + $0x2f04] ss:$16 sps:$4 sm:$0xff]   ;;  %v16131_v58 = vld [vmem:[%s17784_s12 + $0x2d00] ss:$16 sps:$4 sm:$0xff]  }
 0x32a   : > { %11696 = vmatpush2.bf16.msra.mxu0 %v16107_v24  ;;  %v16134_v24 = vld [vmem:[%s17784_s12 + $0x2f00] ss:$16 sps:$4 sm:$0xff]  }
 0x32b   : > { %11737 = vmatpush2.bf16.msra.mxu1 %v16110_v15  ;;  %11697 = vmatprep.subr.bf16.mxu0 %v16115_v17  ;;  %v335_v15 = vld [vmem:[%s17807_s29 + $0x160] sm:$0xff]  ;;  %v337_v17 = vld [vmem:[%s17807_s29 + $0x170] sm:$0xff] }
 0x32c   : > { %11738 = vmatprep.subr.bf16.mxu1 %v16118_v16  ;;  %v16139_v16 = vld [vmem:[%s17784_s12 + $0x30e4] ss:$16 sps:$4 sm:$0xff]  }
 0x32e   : > { %11698 = vmatpush2.bf16.msra.mxu0 %v16113_v59  ;;  %v16142_v59 = vld [vmem:[%s17784_s12 + $0x32e4] ss:$16 sps:$4 sm:$0xff]  }
 0x32f   : > { %11739 = vmatpush2.bf16.msra.mxu1 %v16116_v5  ;;  %11699 = vmatprep.subr.bf16.mxu0 %v16121_v14  ;;  %v340_v5 = vld [vmem:[%s17807_s29 + $0x188] sm:$0xff]  ;;  %v16137_v14 = vld [vmem:[%s17784_s12 + $0x30e0] ss:$16 sps:$4 sm:$0xff]  }
 0x330   : > { %11740 = vmatprep.subr.bf16.mxu1 %v16124_v26  ;;  %v18818_v26 = vpack.c.bf16 %v335_v15, %v335_v15 }
 0x332   : > { %11700 = vmatpush2.bf16.msra.mxu0 %v16119_v20  ;;  %20027 = vst [vmem:[#allocation9_spill] sm:$0xff] %v18818_v26  ;;  %v18820_v20 = vpack.c.bf16 %v337_v17, %v337_v17 }
 0x333   : > { %11741 = vmatpush2.bf16.msra.mxu1 %v16122_v8  ;;  %11701 = vmatprep.subr.bf16.mxu0 %v16127_v28  ;;  %v342_v8 = vld [vmem:[%s17807_s29 + $0x198] sm:$0xff]  ;;  %v16140_v28 = vld [vmem:[%s17784_s12 + $0x32e0] ss:$16 sps:$4 sm:$0xff]  }
 0x334   : > { %11742 = vmatprep.subr.bf16.mxu1 %v16130_v42  ;;  %20028 = vst [vmem:[#allocation10_spill] sm:$0xff] %v18820_v20  ;;  %v16145_v42 = vld [vmem:[%s17784_s12 + $0x30c4] ss:$16 sps:$4 sm:$0xff]   ;;  %v18830_v13 = vpack.c.bf16 %v342_v8, %v342_v8 }
 0x336   : > { %11702 = vmatpush2.bf16.msra.mxu0 %v16125_v55  ;;  %v16148_v55 = vld [vmem:[%s17784_s12 + $0x32c4] ss:$16 sps:$4 sm:$0xff]   ;;  %20029 = vst [vmem:[#allocation11_spill] sm:$0xff] %v18830_v13 }
 0x337   : > { %11743 = vmatpush2.bf16.msra.mxu1 %v16128_v27  ;;  %11703 = vmatprep.subr.bf16.mxu0 %v16133_v31  ;;  %v16143_v27 = vld [vmem:[%s17784_s12 + $0x30c0] ss:$16 sps:$4 sm:$0xff]  }
 0x338   : > { %11744 = vmatprep.subr.bf16.mxu1 %v16136_v57  ;;  %v16146_v31 = vld [vmem:[%s17784_s12 + $0x32c0] ss:$16 sps:$4 sm:$0xff]   ;;  %v18828_v57 = vpack.c.bf16 %v340_v5, %v340_v5  ;;  %v16154_v5 = vld [vmem:[%s17784_s12 + $0x32a4] ss:$16 sps:$4 sm:$0xff]  }
 0x33a   : > { %11704 = vmatpush2.bf16.msra.mxu0 %v16131_v58 }
 0x33b   : > { %11745 = vmatpush2.bf16.msra.mxu1 %v16134_v24  ;;  %11755 = vmatprep.subr.bf16.mxu0 %v16139_v16 }
 0x33c   : > { %11796 = vmatprep.subr.bf16.mxu1 %v16142_v59  ;;  %v16151_v59 = vld [vmem:[%s17784_s12 + $0x30a4] ss:$16 sps:$4 sm:$0xff]  }
 0x33d   : > { %v11461_v15 = vpop.f32.mrf.mxu0  ;;  %11706 = vmatmul.mubr.bf16.vlgmr.msra.gmra.mxu0 %v18818_v26  ;;  %v16152_v26 = vld [vmem:[%s17784_s12 + $0x32a0] ss:$16 sps:$4 sm:$0xff]  }
 0x33e   : > { %v11502_v17 = vpop.f32.mrf.mxu1  ;;  %11747 = vmatmul.mubr.bf16.vlgmr.msra.gmra.mxu1 %v18820_v20  ;;  %v11462_v58 = vadd.f32 %v11461_v15, %v18751_v34  ;;  %11756 = vmatpush1.bf16.msra.mxu0 %v16137_v14  ;;  %v16160_v15 = vld [vmem:[%s17784_s12 + $0x3284] ss:$16 sps:$4 sm:$0xff]   ;;  %v16245_v20 = vld [vmem:[%s17784_s12 + $0x34a0] ss:$16 sps:$4 sm:$0xff]  }
 0x33f   : > { %11797 = vmatpush1.bf16.msra.mxu1 %v16140_v28  ;;  %v11463_v24 = vpop.f32.mrf.mxu0  ;;  %11757 = vmatprep.subr.bf16.mxu0 %v16145_v42 }
 0x340   : > { %v11504_v16 = vpop.f32.mrf.mxu1  ;;  %11798 = vmatprep.subr.bf16.mxu1 %v16148_v55  ;;  %v18837_v8 = vadd.f32 %v11502_v17, %v11462_v58  ;;  %v11464_v35 = vadd.f32 %v11463_v24, %v18758_v56  ;;  %11787 = vmatprep.mubr.bf16.mxu0 %v18828_v57  ;;  %v16157_v56 = vld [vmem:[%s17784_s12 + $0x3084] ss:$16 sps:$4 sm:$0xff]   ;;  %v16155_v17 = vld [vmem:[%s17784_s12 + $0x3080] ss:$16 sps:$4 sm:$0xff]  }
 0x341   : > { %11828 = vmatprep.mubr.bf16.mxu1 %v18830_v13  ;;  %v11465_v34 = vpop.f32.mrf.mxu0  ;;  %v16158_v58 = vld [vmem:[%s17784_s12 + $0x3280] ss:$16 sps:$4 sm:$0xff]  }
 0x342   : > { %v11506_v14 = vpop.f32.mrf.mxu1  ;;  %v18844_v28 = vadd.f32 %v11504_v16, %v11464_v35  ;;  %11758 = vmatpush1.bf16.msra.mxu0 %v16143_v27  ;;  %v16163_v35 = vld [vmem:[%s17784_s12 + $0x3064] ss:$16 sps:$4 sm:$0xff]   ;;  %v16164_v24 = vld [vmem:[%s17784_s12 + $0x3260] ss:$16 sps:$4 sm:$0xff]  }
 0x343   : > { %11799 = vmatpush1.bf16.msra.mxu1 %v16146_v31  ;;  %v11466_v42 = vpop.f32.mrf.mxu0  ;;  %11759 = vmatprep.subr.bf16.mxu0 %v16151_v59  ;;  %v16166_v27 = vld [vmem:[%s17784_s12 + $0x3264] ss:$16 sps:$4 sm:$0xff]   ;;  %v16161_v31 = vld [vmem:[%s17784_s12 + $0x3060] ss:$16 sps:$4 sm:$0xff]  }
 0x344   : > { %v11507_v55 = vpop.f32.mrf.mxu1  ;;  %11800 = vmatprep.subr.bf16.mxu1 %v16154_v5  ;;  %v16167_v16 = vld [vmem:[%s17784_s12 + $0x3040] ss:$16 sps:$4 sm:$0xff]   ;;  %v16175_v5 = vld [vmem:[%s17784_s12 + $0x3024] ss:$16 sps:$4 sm:$0xff]  }
 0x345   : > { %v16170_v59 = vld [vmem:[%s17784_s12 + $0x3240] ss:$16 sps:$4 sm:$0xff]   ;;  %v16178_v34 = vld [vmem:[%s17784_s12 + $0x3224] ss:$16 sps:$4 sm:$0xff]  }
 0x346   : > { %11760 = vmatpush1.bf16.msra.mxu0 %v16149_v6  ;;  %v16169_v6 = vld [vmem:[%s17784_s12 + $0x3044] ss:$16 sps:$4 sm:$0xff]   ;;  %v16173_v14 = vld [vmem:[%s17784_s12 + $0x3020] ss:$16 sps:$4 sm:$0xff]  }
 0x347   : > { %11801 = vmatpush1.bf16.msra.mxu1 %v16152_v26  ;;  %11761 = vmatprep.subr.bf16.mxu0 %v16157_v56  ;;  %v16172_v26 = vld [vmem:[%s17784_s12 + $0x3244] ss:$16 sps:$4 sm:$0xff]   ;;  %v16176_v42 = vld [vmem:[%s17784_s12 + $0x3220] ss:$16 sps:$4 sm:$0xff]  }
 0x348   : > { %11802 = vmatprep.subr.bf16.mxu1 %v16160_v15  ;;  %v16181_v55 = vld [vmem:[%s17784_s12 + $0x3004] ss:$16 sps:$4 sm:$0xff]   ;;  %v16179_v15 = vld [vmem:[%s17784_s12 + $0x3000] ss:$16 sps:$4 sm:$0xff]  }
 0x349   : > { %v16184_v56 = vld [vmem:[%s17784_s12 + $0x3204] ss:$16 sps:$4 sm:$0xff]  }
 0x34a   : > { %11762 = vmatpush1.bf16.msra.mxu0 %v16155_v17  ;;  %v16182_v17 = vld [vmem:[%s17784_s12 + $0x3200] ss:$16 sps:$4 sm:$0xff]  }
 0x34b   : > { %11803 = vmatpush1.bf16.msra.mxu1 %v16158_v58  ;;  %11763 = vmatprep.subr.bf16.mxu0 %v16163_v35  ;;  %v16187_v58 = vld [vmem:[%s17784_s12 + $0x31e4] ss:$16 sps:$4 sm:$0xff]  }
 0x34c   : > { %11804 = vmatprep.subr.bf16.mxu1 %v16166_v27  ;;  %v16190_v35 = vld [vmem:[%s17784_s12 + $0x33e4] ss:$16 sps:$4 sm:$0xff]   ;;  %v16185_v27 = vld [vmem:[%s17784_s12 + $0x31e0] ss:$16 sps:$4 sm:$0xff]  }
 0x34e   : > { %11764 = vmatpush1.bf16.msra.mxu0 %v16161_v31  ;;  %v16188_v31 = vld [vmem:[%s17784_s12 + $0x33e0] ss:$16 sps:$4 sm:$0xff]  }
 0x34f   : > { %11805 = vmatpush1.bf16.msra.mxu1 %v16164_v24  ;;  %11765 = vmatprep.subr.bf16.mxu0 %v16169_v6  ;;  %v16193_v24 = vld [vmem:[%s17784_s12 + $0x31c4] ss:$16 sps:$4 sm:$0xff]  }
 0x350   : > { %11806 = vmatprep.subr.bf16.mxu1 %v16172_v26  ;;  %v16196_v6 = vld [vmem:[%s17784_s12 + $0x33c4] ss:$16 sps:$4 sm:$0xff]   ;;  %v16191_v26 = vld [vmem:[%s17784_s12 + $0x31c0] ss:$16 sps:$4 sm:$0xff]  }
 0x352   : > { %11766 = vmatpush1.bf16.msra.mxu0 %v16167_v16  ;;  %v16194_v16 = vld [vmem:[%s17784_s12 + $0x33c0] ss:$16 sps:$4 sm:$0xff]  }
 0x353   : > { %11807 = vmatpush1.bf16.msra.mxu1 %v16170_v59  ;;  %11767 = vmatprep.subr.bf16.mxu0 %v16175_v5  ;;  %v16199_v59 = vld [vmem:[%s17784_s12 + $0x31a4] ss:$16 sps:$4 sm:$0xff]  }
 0x354   : > { %11808 = vmatprep.subr.bf16.mxu1 %v16178_v34  ;;  %v16202_v5 = vld [vmem:[%s17784_s12 + $0x33a4] ss:$16 sps:$4 sm:$0xff]   ;;  %v16197_v34 = vld [vmem:[%s17784_s12 + $0x31a0] ss:$16 sps:$4 sm:$0xff]  }
 0x356   : > { %11768 = vmatpush1.bf16.msra.mxu0 %v16173_v14  ;;  %v16200_v14 = vld [vmem:[%s17784_s12 + $0x33a0] ss:$16 sps:$4 sm:$0xff]  }
 0x357   : > { %11809 = vmatpush1.bf16.msra.mxu1 %v16176_v42  ;;  %11769 = vmatprep.subr.bf16.mxu0 %v16181_v55  ;;  %v16205_v42 = vld [vmem:[%s17784_s12 + $0x3184] ss:$16 sps:$4 sm:$0xff]  }
 0x358   : > { %11810 = vmatprep.subr.bf16.mxu1 %v16184_v56  ;;  %v16208_v55 = vld [vmem:[%s17784_s12 + $0x3384] ss:$16 sps:$4 sm:$0xff]   ;;  %v16203_v56 = vld [vmem:[%s17784_s12 + $0x3180] ss:$16 sps:$4 sm:$0xff]  }
 0x35a   : > { %11770 = vmatpush1.bf16.msra.mxu0 %v16179_v15  ;;  %v16206_v15 = vld [vmem:[%s17784_s12 + $0x3380] ss:$16 sps:$4 sm:$0xff]  }
 0x35b   : > { %11811 = vmatpush1.bf16.msra.mxu1 %v16182_v17  ;;  %11771 = vmatprep.subr.bf16.mxu0 %v16187_v58  ;;  %v16211_v17 = vld [vmem:[%s17784_s12 + $0x3164] ss:$16 sps:$4 sm:$0xff]  }
 0x35c   : > { %11812 = vmatprep.subr.bf16.mxu1 %v16190_v35  ;;  %v16214_v58 = vld [vmem:[%s17784_s12 + $0x3364] ss:$16 sps:$4 sm:$0xff]   ;;  %v16209_v35 = vld [vmem:[%s17784_s12 + $0x3160] ss:$16 sps:$4 sm:$0xff]  }
 0x35e   : > { %11772 = vmatpush2.bf16.msra.mxu0 %v16185_v27  ;;  %v16212_v27 = vld [vmem:[%s17784_s12 + $0x3360] ss:$16 sps:$4 sm:$0xff]  }
 0x35f   : > { %11813 = vmatpush2.bf16.msra.mxu1 %v16188_v31  ;;  %11773 = vmatprep.subr.bf16.mxu0 %v16193_v24  ;;  %v16217_v31 = vld [vmem:[%s17784_s12 + $0x3144] ss:$16 sps:$4 sm:$0xff]  }
 0x360   : > { %11814 = vmatprep.subr.bf16.mxu1 %v16196_v6  ;;  %v16220_v24 = vld [vmem:[%s17784_s12 + $0x3344] ss:$16 sps:$4 sm:$0xff]   ;;  %v16215_v6 = vld [vmem:[%s17784_s12 + $0x3140] ss:$16 sps:$4 sm:$0xff]  }
 0x362   : > { %11774 = vmatpush2.bf16.msra.mxu0 %v16191_v26  ;;  %v16218_v26 = vld [vmem:[%s17784_s12 + $0x3340] ss:$16 sps:$4 sm:$0xff]  }
 0x363   : > { %11815 = vmatpush2.bf16.msra.mxu1 %v16194_v16  ;;  %11775 = vmatprep.subr.bf16.mxu0 %v16199_v59  ;;  %v16223_v16 = vld [vmem:[%s17784_s12 + $0x3124] ss:$16 sps:$4 sm:$0xff]  }
 0x364   : > { %11816 = vmatprep.subr.bf16.mxu1 %v16202_v5  ;;  %v16226_v59 = vld [vmem:[%s17784_s12 + $0x3324] ss:$16 sps:$4 sm:$0xff]   ;;  %v16221_v5 = vld [vmem:[%s17784_s12 + $0x3120] ss:$16 sps:$4 sm:$0xff]  }
 0x366   : > { %11776 = vmatpush2.bf16.msra.mxu0 %v16197_v34  ;;  %v16224_v34 = vld [vmem:[%s17784_s12 + $0x3320] ss:$16 sps:$4 sm:$0xff]  }
 0x367   : > { %11817 = vmatpush2.bf16.msra.mxu1 %v16200_v14  ;;  %11777 = vmatprep.subr.bf16.mxu0 %v16205_v42  ;;  %v16229_v14 = vld [vmem:[%s17784_s12 + $0x3104] ss:$16 sps:$4 sm:$0xff]  }
 0x368   : > { %11818 = vmatprep.subr.bf16.mxu1 %v16208_v55  ;;  %v16232_v42 = vld [vmem:[%s17784_s12 + $0x3304] ss:$16 sps:$4 sm:$0xff]   ;;  %v16227_v55 = vld [vmem:[%s17784_s12 + $0x3100] ss:$16 sps:$4 sm:$0xff]  }
 0x36a   : > { %11778 = vmatpush2.bf16.msra.mxu0 %v16203_v56  ;;  %v16230_v56 = vld [vmem:[%s17784_s12 + $0x3300] ss:$16 sps:$4 sm:$0xff]  }
 0x36b   : > { %11819 = vmatpush2.bf16.msra.mxu1 %v16206_v15  ;;  %11779 = vmatprep.subr.bf16.mxu0 %v16211_v17  ;;  %v339_v15 = vld [vmem:[%s17807_s29 + $0x180] sm:$0xff]  ;;  %v341_v17 = vld [vmem:[%s17807_s29 + $0x190] sm:$0xff] }
 0x36c   : > { %11820 = vmatprep.subr.bf16.mxu1 %v16214_v58  ;;  %v16235_v58 = vld [vmem:[%s17784_s12 + $0x34e4] ss:$16 sps:$4 sm:$0xff]  }
 0x36e   : > { %11780 = vmatpush2.bf16.msra.mxu0 %v16209_v35  ;;  %v16238_v35 = vld [vmem:[%s17784_s12 + $0xec] ss:$16 sps:$4 sm:$0xff]  }
 0x36f   : > { %11821 = vmatpush2.bf16.msra.mxu1 %v16212_v27  ;;  %11781 = vmatprep.subr.bf16.mxu0 %v16217_v31  ;;  %v344_v27 = vld [vmem:[%s17807_s29 + $0x1a8] sm:$0xff]  ;;  %v16233_v31 = vld [vmem:[%s17784_s12 + $0x34e0] ss:$16 sps:$4 sm:$0xff]  }
 0x370   : > { %11822 = vmatprep.subr.bf16.mxu1 %v16220_v24  ;;  %v16236_v24 = vld [vmem:[%s17784_s12 + $0xe8] ss:$16 sps:$4 sm:$0xff]  }
 0x372   : > { %11782 = vmatpush2.bf16.msra.mxu0 %v16215_v6  ;;  %v18905_v6 = vpack.c.bf16 %v339_v15, %v339_v15 }
 0x373   : > { %11823 = vmatpush2.bf16.msra.mxu1 %v16218_v26  ;;  %11783 = vmatprep.subr.bf16.mxu0 %v16223_v16  ;;  %v18907_v26 = vpack.c.bf16 %v341_v17, %v341_v17  ;;  %v16241_v16 = vld [vmem:[%s17784_s12 + $0x34c4] ss:$16 sps:$4 sm:$0xff]  }
 0x374   : > { %11824 = vmatprep.subr.bf16.mxu1 %v16226_v59  ;;  %20030 = vst [vmem:[#allocation12_spill] sm:$0xff] %v18905_v6  ;;  %v16244_v59 = vld [vmem:[%s17784_s12 + $0xcc] ss:$16 sps:$4 sm:$0xff]   ;;  %v16247_v17 = vld [vmem:[%s17784_s12 + $0x34a4] ss:$16 sps:$4 sm:$0xff]  }
 0x376   : > { %11784 = vmatpush2.bf16.msra.mxu0 %v16221_v5  ;;  %v16239_v5 = vld [vmem:[%s17784_s12 + $0x34c0] ss:$16 sps:$4 sm:$0xff]  }
 0x377   : > { %11825 = vmatpush2.bf16.msra.mxu1 %v16224_v34  ;;  %11785 = vmatprep.subr.bf16.mxu0 %v16229_v14  ;;  %v16242_v34 = vld [vmem:[%s17784_s12 + $0xc8] ss:$16 sps:$4 sm:$0xff]   ;;  %v18913_v14 = vpack.c.bf16 %v344_v27, %v344_v27 }
 0x378   : > { %11826 = vmatprep.subr.bf16.mxu1 %v16232_v42 }
 0x37a   : > { %11786 = vmatpush2.bf16.msra.mxu0 %v16227_v55 }
 0x37b   : > { %11827 = vmatpush2.bf16.msra.mxu1 %v16230_v56  ;;  %11837 = vmatprep.subr.bf16.mxu0 %v16235_v58  ;;  %v16250_v58 = vld [vmem:[%s17784_s12 + $0xac] ss:$16 sps:$4 sm:$0xff]  }
 0x37c   : > { %11878 = vmatprep.subr.bf16.mxu1 %v16238_v35 }
 0x37d   : > { %v11543_v42 = vpop.f32.mrf.mxu0  ;;  %11788 = vmatmul.mubr.bf16.vlgmr.msra.gmra.mxu0 %v18905_v6  ;;  %v16248_v6 = vld [vmem:[%s17784_s12 + $0xa8] ss:$16 sps:$4 sm:$0xff]  }
 0x37e   : > { %v11584_v13 = vpop.f32.mrf.mxu1  ;;  %11829 = vmatmul.mubr.bf16.vlgmr.msra.gmra.mxu1 %v18907_v26  ;;  %v11544_v55 = vadd.f32 %v11543_v42, %v18837_v8  ;;  %11838 = vmatpush1.bf16.msra.mxu0 %v16233_v31  ;;  %v16254_v42 = vld [vmem:[%s17784_s12 + $0x88] ss:$16 sps:$4 sm:$0xff]  }
 0x37f   : > { %11879 = vmatpush1.bf16.msra.mxu1 %v16236_v24  ;;  %v11545_v56 = vpop.f32.mrf.mxu0  ;;  %11839 = vmatprep.subr.bf16.mxu0 %v16241_v16 }
 0x380   : > { %v11586_v15 = vpop.f32.mrf.mxu1  ;;  %11880 = vmatprep.subr.bf16.mxu1 %v16244_v59  ;;  %v18920_v35 = vadd.f32 %v11584_v13, %v11544_v55  ;;  %v11546_v27 = vadd.f32 %v11545_v56, %v18844_v28  ;;  %11869 = vmatprep.mubr.bf16.mxu0 %v18913_v14  ;;  %v16253_v28 = vld [vmem:[%s17784_s12 + $0x3484] ss:$16 sps:$4 sm:$0xff]   ;;  %v16256_v59 = vld [vmem:[%s17784_s12 + $0x8c] ss:$16 sps:$4 sm:$0xff]   ;;  %v16257_v55 = vld [vmem:[%s17784_s12 + $0x3460] ss:$16 sps:$4 sm:$0xff]  }
 0x381   : > { %11910 = vmatprep.mubr.bf16.mxu1 %v17863_v50  ;;  %v11547_v8 = vpop.f32.mrf.mxu0  ;;  %v16251_v50 = vld [vmem:[%s17784_s12 + $0x3480] ss:$16 sps:$4 sm:$0xff]   ;;  %v16260_v56 = vld [vmem:[%s17784_s12 + $0x68] ss:$16 sps:$4 sm:$0xff]  }
 0x382   : > { %v11588_v31 = vpop.f32.mrf.mxu1  ;;  %v18927_v24 = vadd.f32 %v11586_v15, %v11546_v27  ;;  %11840 = vmatpush1.bf16.msra.mxu0 %v16239_v5  ;;  %v16259_v5 = vld [vmem:[%s17784_s12 + $0x3464] ss:$16 sps:$4 sm:$0xff]   ;;  %v16263_v15 = vld [vmem:[%s17784_s12 + $0x3440] ss:$16 sps:$4 sm:$0xff]   ;;  %v16274_v27 = vld [vmem:[%s17784_s12 + $0x2c] ss:$16 sps:$4 sm:$0xff]  }
 0x383   : > { %11881 = vmatpush1.bf16.msra.mxu1 %v16242_v34  ;;  %v11548_v13 = vpop.f32.mrf.mxu0  ;;  %11841 = vmatprep.subr.bf16.mxu0 %v16247_v17  ;;  %v16262_v34 = vld [vmem:[%s17784_s12 + $0x6c] ss:$16 sps:$4 sm:$0xff]   ;;  %v16266_v17 = vld [vmem:[%s17784_s12 + $0x48] ss:$16 sps:$4 sm:$0xff]   ;;  %v16269_v8 = vld [vmem:[%s17784_s12 + $0x3420] ss:$16 sps:$4 sm:$0xff]  }
 0x384   : > { %v11589_v16 = vpop.f32.mrf.mxu1  ;;  %11882 = vmatprep.subr.bf16.mxu1 %v16250_v58  ;;  %v16271_v58 = vld [vmem:[%s17784_s12 + $0x3424] ss:$16 sps:$4 sm:$0xff]   ;;  %v16272_v31 = vld [vmem:[%s17784_s12 + $0x28] ss:$16 sps:$4 sm:$0xff]  }
 0x385   : > { %v16277_v13 = vld [vmem:[%s17784_s12 + $0x3404] ss:$16 sps:$4 sm:$0xff]   ;;  %v16280_v16 = vld [vmem:[%s17784_s12 + $0xc] ss:$16 sps:$4 sm:$0xff]  }
 0x386   : > { %11842 = vmatpush1.bf16.msra.mxu0 %v16245_v20  ;;  %v16265_v20 = vld [vmem:[%s17784_s12 + $0x3444] ss:$16 sps:$4 sm:$0xff]  }
 0x387   : > { %11883 = vmatpush1.bf16.msra.mxu1 %v16248_v6  ;;  %11843 = vmatprep.subr.bf16.mxu0 %v16253_v28  ;;  %v16268_v6 = vld [vmem:[%s17784_s12 + $0x4c] ss:$16 sps:$4 sm:$0xff]   ;;  %v16275_v28 = vld [vmem:[%s17784_s12 + $0x3400] ss:$16 sps:$4 sm:$0xff]  }
 0x388   : > { %11884 = vmatprep.subr.bf16.mxu1 %v16256_v59  ;;  %v16278_v59 = vld [vmem:[%s17784_s12 + $0x8] ss:$16 sps:$4 sm:$0xff]  }
 0x38a   : > { %11844 = vmatpush1.bf16.msra.mxu0 %v16251_v50  ;;  %v16283_v50 = vld [vmem:[%s17784_s12 + $0x35e4] ss:$16 sps:$4 sm:$0xff]  }
 0x38b   : > { %11885 = vmatpush1.bf16.msra.mxu1 %v16254_v42  ;;  %11845 = vmatprep.subr.bf16.mxu0 %v16259_v5  ;;  %v16286_v42 = vld [vmem:[%s17784_s12 + $0x1ec] ss:$16 sps:$4 sm:$0xff]   ;;  %v16281_v5 = vld [vmem:[%s17784_s12 + $0x35e0] ss:$16 sps:$4 sm:$0xff]  }
 0x38c   : > { %11886 = vmatprep.subr.bf16.mxu1 %v16262_v34  ;;  %v16284_v34 = vld [vmem:[%s17784_s12 + $0x1e8] ss:$16 sps:$4 sm:$0xff]  }
 0x38e   : > { %11846 = vmatpush1.bf16.msra.mxu0 %v16257_v55  ;;  %v16289_v55 = vld [vmem:[%s17784_s12 + $0x35c4] ss:$16 sps:$4 sm:$0xff]  }
 0x38f   : > { %11887 = vmatpush1.bf16.msra.mxu1 %v16260_v56  ;;  %11847 = vmatprep.subr.bf16.mxu0 %v16265_v20  ;;  %v16292_v56 = vld [vmem:[%s17784_s12 + $0x1cc] ss:$16 sps:$4 sm:$0xff]   ;;  %v16287_v20 = vld [vmem:[%s17784_s12 + $0x35c0] ss:$16 sps:$4 sm:$0xff]  }
 0x390   : > { %11888 = vmatprep.subr.bf16.mxu1 %v16268_v6  ;;  %v16290_v6 = vld [vmem:[%s17784_s12 + $0x1c8] ss:$16 sps:$4 sm:$0xff]  }
 0x392   : > { %11848 = vmatpush1.bf16.msra.mxu0 %v16263_v15  ;;  %v16295_v15 = vld [vmem:[%s17784_s12 + $0x35a4] ss:$16 sps:$4 sm:$0xff]  }
 0x393   : > { %11889 = vmatpush1.bf16.msra.mxu1 %v16266_v17  ;;  %11849 = vmatprep.subr.bf16.mxu0 %v16271_v58  ;;  %v16298_v17 = vld [vmem:[%s17784_s12 + $0x1ac] ss:$16 sps:$4 sm:$0xff]   ;;  %v16293_v58 = vld [vmem:[%s17784_s12 + $0x35a0] ss:$16 sps:$4 sm:$0xff]  }
 0x394   : > { %11890 = vmatprep.subr.bf16.mxu1 %v16274_v27  ;;  %v16296_v27 = vld [vmem:[%s17784_s12 + $0x1a8] ss:$16 sps:$4 sm:$0xff]  }
 0x396   : > { %11850 = vmatpush1.bf16.msra.mxu0 %v16269_v8  ;;  %v16301_v8 = vld [vmem:[%s17784_s12 + $0x3584] ss:$16 sps:$4 sm:$0xff]  }
 0x397   : > { %11891 = vmatpush1.bf16.msra.mxu1 %v16272_v31  ;;  %11851 = vmatprep.subr.bf16.mxu0 %v16277_v13  ;;  %v16304_v31 = vld [vmem:[%s17784_s12 + $0x18c] ss:$16 sps:$4 sm:$0xff]   ;;  %v16299_v13 = vld [vmem:[%s17784_s12 + $0x3580] ss:$16 sps:$4 sm:$0xff]  }
 0x398   : > { %11892 = vmatprep.subr.bf16.mxu1 %v16280_v16  ;;  %v16302_v16 = vld [vmem:[%s17784_s12 + $0x188] ss:$16 sps:$4 sm:$0xff]  }
 0x39a   : > { %11852 = vmatpush1.bf16.msra.mxu0 %v16275_v28  ;;  %v16307_v28 = vld [vmem:[%s17784_s12 + $0x3564] ss:$16 sps:$4 sm:$0xff]  }
 0x39b   : > { %11893 = vmatpush1.bf16.msra.mxu1 %v16278_v59  ;;  %11853 = vmatprep.subr.bf16.mxu0 %v16283_v50  ;;  %v16310_v59 = vld [vmem:[%s17784_s12 + $0x16c] ss:$16 sps:$4 sm:$0xff]   ;;  %v16305_v50 = vld [vmem:[%s17784_s12 + $0x3560] ss:$16 sps:$4 sm:$0xff]  }
 0x39c   : > { %11894 = vmatprep.subr.bf16.mxu1 %v16286_v42  ;;  %v16308_v42 = vld [vmem:[%s17784_s12 + $0x168] ss:$16 sps:$4 sm:$0xff]  }
 0x39e   : > { %11854 = vmatpush2.bf16.msra.mxu0 %v16281_v5  ;;  %v16313_v5 = vld [vmem:[%s17784_s12 + $0x3544] ss:$16 sps:$4 sm:$0xff]  }
 0x39f   : > { %11895 = vmatpush2.bf16.msra.mxu1 %v16284_v34  ;;  %11855 = vmatprep.subr.bf16.mxu0 %v16289_v55  ;;  %v16316_v34 = vld [vmem:[%s17784_s12 + $0x14c] ss:$16 sps:$4 sm:$0xff]   ;;  %v16311_v55 = vld [vmem:[%s17784_s12 + $0x3540] ss:$16 sps:$4 sm:$0xff]  }
 0x3a0   : > { %11896 = vmatprep.subr.bf16.mxu1 %v16292_v56  ;;  %v16314_v56 = vld [vmem:[%s17784_s12 + $0x148] ss:$16 sps:$4 sm:$0xff]  }
 0x3a2   : > { %11856 = vmatpush2.bf16.msra.mxu0 %v16287_v20  ;;  %v16319_v20 = vld [vmem:[%s17784_s12 + $0x3524] ss:$16 sps:$4 sm:$0xff]  }
 0x3a3   : > { %11897 = vmatpush2.bf16.msra.mxu1 %v16290_v6  ;;  %11857 = vmatprep.subr.bf16.mxu0 %v16295_v15  ;;  %v16322_v6 = vld [vmem:[%s17784_s12 + $0x12c] ss:$16 sps:$4 sm:$0xff]   ;;  %v16317_v15 = vld [vmem:[%s17784_s12 + $0x3520] ss:$16 sps:$4 sm:$0xff]  }
 0x3a4   : > { %11898 = vmatprep.subr.bf16.mxu1 %v16298_v17  ;;  %v16320_v17 = vld [vmem:[%s17784_s12 + $0x128] ss:$16 sps:$4 sm:$0xff]  }
 0x3a6   : > { %11858 = vmatpush2.bf16.msra.mxu0 %v16293_v58  ;;  %v16325_v58 = vld [vmem:[%s17784_s12 + $0x3504] ss:$16 sps:$4 sm:$0xff]  }
 0x3a7   : > { %11899 = vmatpush2.bf16.msra.mxu1 %v16296_v27  ;;  %11859 = vmatprep.subr.bf16.mxu0 %v16301_v8  ;;  %v16328_v27 = vld [vmem:[%s17784_s12 + $0x10c] ss:$16 sps:$4 sm:$0xff]   ;;  %v16323_v8 = vld [vmem:[%s17784_s12 + $0x3500] ss:$16 sps:$4 sm:$0xff]  }
 0x3a8   : > { %11900 = vmatprep.subr.bf16.mxu1 %v16304_v31  ;;  %v16326_v31 = vld [vmem:[%s17784_s12 + $0x108] ss:$16 sps:$4 sm:$0xff]  }
 0x3aa   : > { %11860 = vmatpush2.bf16.msra.mxu0 %v16299_v13  ;;  %v343_v13 = vld [vmem:[%s17807_s29 + $0x1a0] sm:$0xff] }
 0x3ab   : > { %11901 = vmatpush2.bf16.msra.mxu1 %v16302_v16  ;;  %11861 = vmatprep.subr.bf16.mxu0 %v16307_v28  ;;  %v16331_v16 = vld [vmem:[%s17784_s12 + $0x2ec] ss:$16 sps:$4 sm:$0xff]  }
 0x3ac   : > { %11902 = vmatprep.subr.bf16.mxu1 %v16310_v59  ;;  %v16334_v28 = vld [vmem:[%s17784_s12 + $0x4ec] ss:$16 sps:$4 sm:$0xff]   ;;  %v16329_v59 = vld [vmem:[%s17784_s12 + $0x2e8] ss:$16 sps:$4 sm:$0xff]  }
 0x3ae   : > { %11862 = vmatpush2.bf16.msra.mxu0 %v16305_v50  ;;  %v16332_v50 = vld [vmem:[%s17784_s12 + $0x4e8] ss:$16 sps:$4 sm:$0xff]  }
 0x3af   : > { %11903 = vmatpush2.bf16.msra.mxu1 %v16308_v42  ;;  %11863 = vmatprep.subr.bf16.mxu0 %v16313_v5  ;;  %v18986_v42 = vpack.c.bf16 %v343_v13, %v343_v13  ;;  %v16337_v5 = vld [vmem:[%s17784_s12 + $0x2cc] ss:$16 sps:$4 sm:$0xff]  }
 0x3b0   : > { %11904 = vmatprep.subr.bf16.mxu1 %v16316_v34  ;;  %v16340_v34 = vld [vmem:[%s17784_s12 + $0x4cc] ss:$16 sps:$4 sm:$0xff]  }
 0x3b2   : > { %11864 = vmatpush2.bf16.msra.mxu0 %v16311_v55  ;;  %v16335_v55 = vld [vmem:[%s17784_s12 + $0x2c8] ss:$16 sps:$4 sm:$0xff]  }
 0x3b3   : > { %11905 = vmatpush2.bf16.msra.mxu1 %v16314_v56  ;;  %11865 = vmatprep.subr.bf16.mxu0 %v16319_v20  ;;  %v16338_v56 = vld [vmem:[%s17784_s12 + $0x4c8] ss:$16 sps:$4 sm:$0xff]  }
 0x3b4   : > { %11906 = vmatprep.subr.bf16.mxu1 %v16322_v6 }
 0x3b6   : > { %11866 = vmatpush2.bf16.msra.mxu0 %v16317_v15 }
 0x3b7   : > { %11907 = vmatpush2.bf16.msra.mxu1 %v16320_v17  ;;  %11867 = vmatprep.subr.bf16.mxu0 %v16325_v58 }
 0x3b8   : > { %11908 = vmatprep.subr.bf16.mxu1 %v16328_v27  ;;  %v16343_v27 = vld [vmem:[%s17784_s12 + $0x2ac] ss:$16 sps:$4 sm:$0xff]  }
 0x3ba   : > { %11868 = vmatpush2.bf16.msra.mxu0 %v16323_v8  ;;  %v16346_v8 = vld [vmem:[%s17784_s12 + $0x4ac] ss:$16 sps:$4 sm:$0xff]  }
 0x3bb   : > { %11909 = vmatpush2.bf16.msra.mxu1 %v16326_v31  ;;  %11919 = vmatprep.subr.bf16.mxu0 %v16331_v16  ;;  %v16341_v16 = vld [vmem:[%s17784_s12 + $0x2a8] ss:$16 sps:$4 sm:$0xff]  }
 0x3bc   : > { %11960 = vmatprep.subr.bf16.mxu1 %v16334_v28  ;;  %v16344_v28 = vld [vmem:[%s17784_s12 + $0x4a8] ss:$16 sps:$4 sm:$0xff]  }
 0x3bd   : > { %v11625_v20 = vpop.f32.mrf.mxu0  ;;  %11870 = vmatmul.mubr.bf16.vlgmr.msra.gmra.mxu0 %v18986_v42 }
 0x3be   : > { %v11666_v6 = vpop.f32.mrf.mxu1  ;;  %11911 = vmatmul.mubr.bf16.vlgmr.msra.gmra.mxu1 %v17890_v9  ;;  %v11626_v15 = vadd.f32 %v11625_v20, %v18920_v35  ;;  %11920 = vmatpush1.bf16.msra.mxu0 %v16329_v59  ;;  %v16353_v20 = vld [vmem:[%s17784_s12 + $0x268] ss:$16 sps:$4 sm:$0xff]  }
 0x3bf   : > { %11961 = vmatpush1.bf16.msra.mxu1 %v16332_v50  ;;  %v11627_v17 = vpop.f32.mrf.mxu0  ;;  %11921 = vmatprep.subr.bf16.mxu0 %v16337_v5 }
 0x3c0   : > { %v11668_v58 = vpop.f32.mrf.mxu1  ;;  %11962 = vmatprep.subr.bf16.mxu1 %v16340_v34  ;;  %v18997_v31 = vadd.f32 %v11666_v6, %v11626_v15  ;;  %v11628_v13 = vadd.f32 %v11627_v17, %v18927_v24  ;;  %11951 = vmatprep.mubr.bf16.mxu0 %v17867_v53  ;;  %v16349_v24 = vld [vmem:[%s17784_s12 + $0x28c] ss:$16 sps:$4 sm:$0xff]   ;;  %v16350_v34 = vld [vmem:[%s17784_s12 + $0x488] ss:$16 sps:$4 sm:$0xff]  }
 0x3c1   : > { %11992 = vmatprep.mubr.bf16.mxu1 %v17923_v38  ;;  %v11629_v9 = vpop.f32.mrf.mxu0  ;;  %v16352_v53 = vld [vmem:[%s17784_s12 + $0x48c] ss:$16 sps:$4 sm:$0xff]   ;;  %v16347_v38 = vld [vmem:[%s17784_s12 + $0x288] ss:$16 sps:$4 sm:$0xff]  }
 0x3c2   : > { %v11670_v35 = vpop.f32.mrf.mxu1  ;;  %v19004_v59 = vadd.f32 %v11668_v58, %v11628_v13  ;;  %11922 = vmatpush1.bf16.msra.mxu0 %v16335_v55  ;;  %v16355_v55 = vld [vmem:[%s17784_s12 + $0x26c] ss:$16 sps:$4 sm:$0xff]   ;;  %v16356_v6 = vld [vmem:[%s17784_s12 + $0x468] ss:$16 sps:$4 sm:$0xff]  }
 0x3c3   : > { %11963 = vmatpush1.bf16.msra.mxu1 %v16338_v56  ;;  %v11630_v50 = vpop.f32.mrf.mxu0  ;;  %11923 = vmatprep.subr.bf16.mxu0 %v16343_v27  ;;  %v16358_v56 = vld [vmem:[%s17784_s12 + $0x46c] ss:$16 sps:$4 sm:$0xff]   ;;  %v16359_v58 = vld [vmem:[%s17784_s12 + $0x248] ss:$16 sps:$4 sm:$0xff]  }
 0x3c4   : > { %v11671_v5 = vpop.f32.mrf.mxu1  ;;  %11964 = vmatprep.subr.bf16.mxu1 %v16346_v8  ;;  %v16361_v15 = vld [vmem:[%s17784_s12 + $0x24c] ss:$16 sps:$4 sm:$0xff]   ;;  %v16362_v27 = vld [vmem:[%s17784_s12 + $0x448] ss:$16 sps:$4 sm:$0xff]  }
 0x3c5   : > { %v16364_v17 = vld [vmem:[%s17784_s12 + $0x44c] ss:$16 sps:$4 sm:$0xff]   ;;  %v16371_v50 = vld [vmem:[%s17784_s12 + $0x208] ss:$16 sps:$4 sm:$0xff]  }
 0x3c6   : > { %11924 = vmatpush1.bf16.msra.mxu0 %v16341_v16  ;;  %v16367_v8 = vld [vmem:[%s17784_s12 + $0x22c] ss:$16 sps:$4 sm:$0xff]   ;;  %v16365_v16 = vld [vmem:[%s17784_s12 + $0x228] ss:$16 sps:$4 sm:$0xff]  }
 0x3c7   : > { %11965 = vmatpush1.bf16.msra.mxu1 %v16344_v28  ;;  %11925 = vmatprep.subr.bf16.mxu0 %v16349_v24  ;;  %v16370_v13 = vld [vmem:[%s17784_s12 + $0x42c] ss:$16 sps:$4 sm:$0xff]   ;;  %v16368_v28 = vld [vmem:[%s17784_s12 + $0x428] ss:$16 sps:$4 sm:$0xff]  }
 0x3c8   : > { %11966 = vmatprep.subr.bf16.mxu1 %v16352_v53  ;;  %v16373_v9 = vld [vmem:[%s17784_s12 + $0x20c] ss:$16 sps:$4 sm:$0xff]   ;;  %v16374_v5 = vld [vmem:[%s17784_s12 + $0x408] ss:$16 sps:$4 sm:$0xff]  }
 0x3c9   : > { %v16376_v35 = vld [vmem:[%s17784_s12 + $0x40c] ss:$16 sps:$4 sm:$0xff]  }
 0x3ca   : > { %11926 = vmatpush1.bf16.msra.mxu0 %v16347_v38  ;;  %v16379_v24 = vld [vmem:[%s17784_s12 + $0x3ec] ss:$16 sps:$4 sm:$0xff]   ;;  %v16377_v38 = vld [vmem:[%s17784_s12 + $0x3e8] ss:$16 sps:$4 sm:$0xff]  }
 0x3cb   : > { %11967 = vmatpush1.bf16.msra.mxu1 %v16350_v34  ;;  %11927 = vmatprep.subr.bf16.mxu0 %v16355_v55  ;;  %v16382_v53 = vld [vmem:[%s17784_s12 + $0x5ec] ss:$16 sps:$4 sm:$0xff]   ;;  %v16380_v34 = vld [vmem:[%s17784_s12 + $0x5e8] ss:$16 sps:$4 sm:$0xff]  }
 0x3cc   : > { %11968 = vmatprep.subr.bf16.mxu1 %v16358_v56  ;;  %v16385_v55 = vld [vmem:[%s17784_s12 + $0x3cc] ss:$16 sps:$4 sm:$0xff]  }
 0x3cd   : > { %v16388_v56 = vld [vmem:[%s17784_s12 + $0x5cc] ss:$16 sps:$4 sm:$0xff]  }
 0x3ce   : > { %11928 = vmatpush1.bf16.msra.mxu0 %v16353_v20  ;;  %v16383_v20 = vld [vmem:[%s17784_s12 + $0x3c8] ss:$16 sps:$4 sm:$0xff]  }
 0x3cf   : > { %11969 = vmatpush1.bf16.msra.mxu1 %v16356_v6  ;;  %11929 = vmatprep.subr.bf16.mxu0 %v16361_v15  ;;  %v16386_v6 = vld [vmem:[%s17784_s12 + $0x5c8] ss:$16 sps:$4 sm:$0xff]   ;;  %v16391_v15 = vld [vmem:[%s17784_s12 + $0x3ac] ss:$16 sps:$4 sm:$0xff]  }
 0x3d0   : > { %11970 = vmatprep.subr.bf16.mxu1 %v16364_v17  ;;  %v16394_v17 = vld [vmem:[%s17784_s12 + $0x5ac] ss:$16 sps:$4 sm:$0xff]  }
 0x3d2   : > { %11930 = vmatpush1.bf16.msra.mxu0 %v16359_v58  ;;  %v16389_v58 = vld [vmem:[%s17784_s12 + $0x3a8] ss:$16 sps:$4 sm:$0xff]  }
 0x3d3   : > { %11971 = vmatpush1.bf16.msra.mxu1 %v16362_v27  ;;  %11931 = vmatprep.subr.bf16.mxu0 %v16367_v8  ;;  %v16392_v27 = vld [vmem:[%s17784_s12 + $0x5a8] ss:$16 sps:$4 sm:$0xff]   ;;  %v16397_v8 = vld [vmem:[%s17784_s12 + $0x38c] ss:$16 sps:$4 sm:$0xff]  }
 0x3d4   : > { %11972 = vmatprep.subr.bf16.mxu1 %v16370_v13  ;;  %v16400_v13 = vld [vmem:[%s17784_s12 + $0x58c] ss:$16 sps:$4 sm:$0xff]  }
 0x3d6   : > { %11932 = vmatpush1.bf16.msra.mxu0 %v16365_v16  ;;  %v16395_v16 = vld [vmem:[%s17784_s12 + $0x388] ss:$16 sps:$4 sm:$0xff]  }
 0x3d7   : > { %11973 = vmatpush1.bf16.msra.mxu1 %v16368_v28  ;;  %11933 = vmatprep.subr.bf16.mxu0 %v16373_v9  ;;  %v16398_v28 = vld [vmem:[%s17784_s12 + $0x588] ss:$16 sps:$4 sm:$0xff]   ;;  %v16403_v9 = vld [vmem:[%s17784_s12 + $0x36c] ss:$16 sps:$4 sm:$0xff]  }
 0x3d8   : > { %11974 = vmatprep.subr.bf16.mxu1 %v16376_v35  ;;  %v16406_v35 = vld [vmem:[%s17784_s12 + $0x56c] ss:$16 sps:$4 sm:$0xff]  }
 0x3da   : > { %11934 = vmatpush1.bf16.msra.mxu0 %v16371_v50  ;;  %v16401_v50 = vld [vmem:[%s17784_s12 + $0x368] ss:$16 sps:$4 sm:$0xff]  }
 0x3db   : > { %11975 = vmatpush1.bf16.msra.mxu1 %v16374_v5  ;;  %11935 = vmatprep.subr.bf16.mxu0 %v16379_v24  ;;  %v16404_v5 = vld [vmem:[%s17784_s12 + $0x568] ss:$16 sps:$4 sm:$0xff]   ;;  %v16409_v24 = vld [vmem:[%s17784_s12 + $0x34c] ss:$16 sps:$4 sm:$0xff]  }
 0x3dc   : > { %11976 = vmatprep.subr.bf16.mxu1 %v16382_v53  ;;  %v16412_v53 = vld [vmem:[%s17784_s12 + $0x54c] ss:$16 sps:$4 sm:$0xff]  }
 0x3de   : > { %11936 = vmatpush2.bf16.msra.mxu0 %v16377_v38  ;;  %v16407_v38 = vld [vmem:[%s17784_s12 + $0x348] ss:$16 sps:$4 sm:$0xff]  }
 0x3df   : > { %11977 = vmatpush2.bf16.msra.mxu1 %v16380_v34  ;;  %11937 = vmatprep.subr.bf16.mxu0 %v16385_v55  ;;  %v16410_v34 = vld [vmem:[%s17784_s12 + $0x548] ss:$16 sps:$4 sm:$0xff]   ;;  %v16415_v55 = vld [vmem:[%s17784_s12 + $0x32c] ss:$16 sps:$4 sm:$0xff]  }
 0x3e0   : > { %11978 = vmatprep.subr.bf16.mxu1 %v16388_v56  ;;  %v16418_v56 = vld [vmem:[%s17784_s12 + $0x52c] ss:$16 sps:$4 sm:$0xff]  }
 0x3e2   : > { %11938 = vmatpush2.bf16.msra.mxu0 %v16383_v20  ;;  %v16413_v20 = vld [vmem:[%s17784_s12 + $0x328] ss:$16 sps:$4 sm:$0xff]  }
 0x3e3   : > { %11979 = vmatpush2.bf16.msra.mxu1 %v16386_v6  ;;  %11939 = vmatprep.subr.bf16.mxu0 %v16391_v15  ;;  %v16416_v6 = vld [vmem:[%s17784_s12 + $0x528] ss:$16 sps:$4 sm:$0xff]   ;;  %v16421_v15 = vld [vmem:[%s17784_s12 + $0x30c] ss:$16 sps:$4 sm:$0xff]  }
 0x3e4   : > { %11980 = vmatprep.subr.bf16.mxu1 %v16394_v17  ;;  %v16424_v17 = vld [vmem:[%s17784_s12 + $0x50c] ss:$16 sps:$4 sm:$0xff]  }
 0x3e6   : > { %11940 = vmatpush2.bf16.msra.mxu0 %v16389_v58  ;;  %v16419_v58 = vld [vmem:[%s17784_s12 + $0x308] ss:$16 sps:$4 sm:$0xff]  }
 0x3e7   : > { %11981 = vmatpush2.bf16.msra.mxu1 %v16392_v27  ;;  %11941 = vmatprep.subr.bf16.mxu0 %v16397_v8  ;;  %v16422_v27 = vld [vmem:[%s17784_s12 + $0x508] ss:$16 sps:$4 sm:$0xff]   ;;  %v16427_v8 = vld [vmem:[%s17784_s12 + $0x6ec] ss:$16 sps:$4 sm:$0xff]  }
 0x3e8   : > { %11982 = vmatprep.subr.bf16.mxu1 %v16400_v13  ;;  %v16430_v13 = vld [vmem:[%s17784_s12 + $0x8ec] ss:$16 sps:$4 sm:$0xff]  }
 0x3ea   : > { %11942 = vmatpush2.bf16.msra.mxu0 %v16395_v16  ;;  %v16425_v16 = vld [vmem:[%s17784_s12 + $0x6e8] ss:$16 sps:$4 sm:$0xff]  }
 0x3eb   : > { %11983 = vmatpush2.bf16.msra.mxu1 %v16398_v28  ;;  %11943 = vmatprep.subr.bf16.mxu0 %v16403_v9  ;;  %v16428_v28 = vld [vmem:[%s17784_s12 + $0x8e8] ss:$16 sps:$4 sm:$0xff]   ;;  %v16433_v9 = vld [vmem:[%s17784_s12 + $0x6cc] ss:$16 sps:$4 sm:$0xff]  }
 0x3ec   : > { %11984 = vmatprep.subr.bf16.mxu1 %v16406_v35  ;;  %v16436_v35 = vld [vmem:[%s17784_s12 + $0x8cc] ss:$16 sps:$4 sm:$0xff]  }
 0x3ee   : > { %11944 = vmatpush2.bf16.msra.mxu0 %v16401_v50 }
 0x3ef   : > { %11985 = vmatpush2.bf16.msra.mxu1 %v16404_v5  ;;  %11945 = vmatprep.subr.bf16.mxu0 %v16409_v24 }
 0x3f0   : > { %11986 = vmatprep.subr.bf16.mxu1 %v16412_v53  ;;  %v16431_v53 = vld [vmem:[%s17784_s12 + $0x6c8] ss:$16 sps:$4 sm:$0xff]  }
 0x3f2   : > { %11946 = vmatpush2.bf16.msra.mxu0 %v16407_v38  ;;  %v16434_v38 = vld [vmem:[%s17784_s12 + $0x8c8] ss:$16 sps:$4 sm:$0xff]  }
 0x3f3   : > { %11987 = vmatpush2.bf16.msra.mxu1 %v16410_v34  ;;  %11947 = vmatprep.subr.bf16.mxu0 %v16415_v55 }
 0x3f4   : > { %11988 = vmatprep.subr.bf16.mxu1 %v16418_v56  ;;  %v16439_v56 = vld [vmem:[%s17784_s12 + $0x6ac] ss:$16 sps:$4 sm:$0xff]  }
 0x3f6   : > { %11948 = vmatpush2.bf16.msra.mxu0 %v16413_v20  ;;  %v16442_v20 = vld [vmem:[%s17784_s12 + $0x8ac] ss:$16 sps:$4 sm:$0xff]  }
 0x3f7   : > { %11989 = vmatpush2.bf16.msra.mxu1 %v16416_v6  ;;  %11949 = vmatprep.subr.bf16.mxu0 %v16421_v15 }
 0x3f8   : > { %11990 = vmatprep.subr.bf16.mxu1 %v16424_v17  ;;  %v16437_v17 = vld [vmem:[%s17784_s12 + $0x6a8] ss:$16 sps:$4 sm:$0xff]  }
 0x3fa   : > { %11950 = vmatpush2.bf16.msra.mxu0 %v16419_v58  ;;  %v16440_v58 = vld [vmem:[%s17784_s12 + $0x8a8] ss:$16 sps:$4 sm:$0xff]  }
 0x3fb   : > { %11991 = vmatpush2.bf16.msra.mxu1 %v16422_v27  ;;  %12001 = vmatprep.subr.bf16.mxu0 %v16427_v8 }
 0x3fc   : > { %12042 = vmatprep.subr.bf16.mxu1 %v16430_v13  ;;  %v16446_v13 = vld [vmem:[%s17784_s12 + $0x888] ss:$16 sps:$4 sm:$0xff]  }
 0x3fd   : > { %v11707_v50 = vpop.f32.mrf.mxu0  ;;  %11952 = vmatmul.mubr.bf16.vlgmr.msra.gmra.mxu0 %v17892_v10 }
 0x3fe   : > { %v11748_v5 = vpop.f32.mrf.mxu1  ;;  %11993 = vmatmul.mubr.bf16.vlgmr.msra.gmra.mxu1 %v17970_v21  ;;  %v11708_v24 = vadd.f32 %v11707_v50, %v18997_v31  ;;  %12002 = vmatpush1.bf16.msra.mxu0 %v16425_v16  ;;  %v16451_v16 = vld [vmem:[%s17784_s12 + $0x66c] ss:$16 sps:$4 sm:$0xff]  }
 0x3ff   : > { %12043 = vmatpush1.bf16.msra.mxu1 %v16428_v28  ;;  %v11709_v34 = vpop.f32.mrf.mxu0  ;;  %12003 = vmatprep.subr.bf16.mxu0 %v16433_v9  ;;  %v16454_v28 = vld [vmem:[%s17784_s12 + $0x86c] ss:$16 sps:$4 sm:$0xff]   ;;  %v16449_v9 = vld [vmem:[%s17784_s12 + $0x668] ss:$16 sps:$4 sm:$0xff]  }
 0x400   : > { %v11750_v55 = vpop.f32.mrf.mxu1  ;;  %12044 = vmatprep.subr.bf16.mxu1 %v16436_v35  ;;  %v19071_v6 = vadd.f32 %v11748_v5, %v11708_v24  ;;  %v11710_v10 = vadd.f32 %v11709_v34, %v19004_v59  ;;  %12033 = vmatprep.mubr.bf16.mxu0 %v17927_v41  ;;  %v16445_v41 = vld [vmem:[%s17784_s12 + $0x68c] ss:$16 sps:$4 sm:$0xff]   ;;  %v16443_v59 = vld [vmem:[%s17784_s12 + $0x688] ss:$16 sps:$4 sm:$0xff]  }
 0x401   : > { %12074 = vmatprep.mubr.bf16.mxu1 %v17983_v30  ;;  %v11711_v21 = vpop.f32.mrf.mxu0  ;;  %v16448_v30 = vld [vmem:[%s17784_s12 + $0x88c] ss:$16 sps:$4 sm:$0xff]   ;;  %v16452_v35 = vld [vmem:[%s17784_s12 + $0x868] ss:$16 sps:$4 sm:$0xff]  }
 0x402   : > { %v11752_v31 = vpop.f32.mrf.mxu1  ;;  %v19076_v15 = vadd.f32 %v11750_v55, %v11710_v10  ;;  %12004 = vmatpush1.bf16.msra.mxu0 %v16431_v53  ;;  %v16457_v50 = vld [vmem:[%s17784_s12 + $0x64c] ss:$16 sps:$4 sm:$0xff]   ;;  %v16455_v24 = vld [vmem:[%s17784_s12 + $0x648] ss:$16 sps:$4 sm:$0xff]  }
 0x403   : > { %12045 = vmatpush1.bf16.msra.mxu1 %v16434_v38  ;;  %v11712_v27 = vpop.f32.mrf.mxu0  ;;  %12005 = vmatprep.subr.bf16.mxu0 %v16439_v56  ;;  %v16460_v5 = vld [vmem:[%s17784_s12 + $0x84c] ss:$16 sps:$4 sm:$0xff]   ;;  %v16458_v53 = vld [vmem:[%s17784_s12 + $0x848] ss:$16 sps:$4 sm:$0xff]  }
 0x404   : > { %v11753_v8 = vpop.f32.mrf.mxu1  ;;  %12046 = vmatprep.subr.bf16.mxu1 %v16442_v20  ;;  %v16463_v38 = vld [vmem:[%s17784_s12 + $0x62c] ss:$16 sps:$4 sm:$0xff]   ;;  %v16461_v55 = vld [vmem:[%s17784_s12 + $0x628] ss:$16 sps:$4 sm:$0xff]  }
 0x405   : > { %v16466_v34 = vld [vmem:[%s17784_s12 + $0x82c] ss:$16 sps:$4 sm:$0xff]   ;;  %v16464_v56 = vld [vmem:[%s17784_s12 + $0x828] ss:$16 sps:$4 sm:$0xff]  }
 0x406   : > { %12006 = vmatpush1.bf16.msra.mxu0 %v16437_v17  ;;  %v16469_v20 = vld [vmem:[%s17784_s12 + $0x60c] ss:$16 sps:$4 sm:$0xff]   ;;  %v16467_v21 = vld [vmem:[%s17784_s12 + $0x608] ss:$16 sps:$4 sm:$0xff]  }
 0x407   : > { %12047 = vmatpush1.bf16.msra.mxu1 %v16440_v58  ;;  %12007 = vmatprep.subr.bf16.mxu0 %v16445_v41  ;;  %v16472_v10 = vld [vmem:[%s17784_s12 + $0x80c] ss:$16 sps:$4 sm:$0xff]   ;;  %v16470_v31 = vld [vmem:[%s17784_s12 + $0x808] ss:$16 sps:$4 sm:$0xff]  }
 0x408   : > { %12048 = vmatprep.subr.bf16.mxu1 %v16448_v30  ;;  %v16475_v17 = vld [vmem:[%s17784_s12 + $0x7ec] ss:$16 sps:$4 sm:$0xff]   ;;  %v16473_v27 = vld [vmem:[%s17784_s12 + $0x7e8] ss:$16 sps:$4 sm:$0xff]  }
 0x409   : > { %v16478_v58 = vld [vmem:[%s17784_s12 + $0x9ec] ss:$16 sps:$4 sm:$0xff]   ;;  %v16476_v8 = vld [vmem:[%s17784_s12 + $0x9e8] ss:$16 sps:$4 sm:$0xff]  }
 0x40a   : > { %12008 = vmatpush1.bf16.msra.mxu0 %v16443_v59  ;;  %v16481_v41 = vld [vmem:[%s17784_s12 + $0x7cc] ss:$16 sps:$4 sm:$0xff]   ;;  %v16479_v59 = vld [vmem:[%s17784_s12 + $0x7c8] ss:$16 sps:$4 sm:$0xff]  }
 0x40b   : > { %12049 = vmatpush1.bf16.msra.mxu1 %v16446_v13  ;;  %12009 = vmatprep.subr.bf16.mxu0 %v16451_v16  ;;  %v16484_v30 = vld [vmem:[%s17784_s12 + $0x9cc] ss:$16 sps:$4 sm:$0xff]   ;;  %v16482_v13 = vld [vmem:[%s17784_s12 + $0x9c8] ss:$16 sps:$4 sm:$0xff]  }
 0x40c   : > { %12050 = vmatprep.subr.bf16.mxu1 %v16454_v28  ;;  %v16487_v16 = vld [vmem:[%s17784_s12 + $0x7ac] ss:$16 sps:$4 sm:$0xff]  }
 0x40d   : > { %v16490_v28 = vld [vmem:[%s17784_s12 + $0x9ac] ss:$16 sps:$4 sm:$0xff]  }
 0x40e   : > { %12010 = vmatpush1.bf16.msra.mxu0 %v16449_v9  ;;  %v16485_v9 = vld [vmem:[%s17784_s12 + $0x7a8] ss:$16 sps:$4 sm:$0xff]  }
 0x40f   : > { %12051 = vmatpush1.bf16.msra.mxu1 %v16452_v35  ;;  %12011 = vmatprep.subr.bf16.mxu0 %v16457_v50  ;;  %v16488_v35 = vld [vmem:[%s17784_s12 + $0x9a8] ss:$16 sps:$4 sm:$0xff]   ;;  %v16493_v50 = vld [vmem:[%s17784_s12 + $0x78c] ss:$16 sps:$4 sm:$0xff]  }
 0x410   : > { %12052 = vmatprep.subr.bf16.mxu1 %v16460_v5  ;;  %v16496_v5 = vld [vmem:[%s17784_s12 + $0x98c] ss:$16 sps:$4 sm:$0xff]  }
 0x412   : > { %12012 = vmatpush1.bf16.msra.mxu0 %v16455_v24  ;;  %v16491_v24 = vld [vmem:[%s17784_s12 + $0x788] ss:$16 sps:$4 sm:$0xff]  }
 0x413   : > { %12053 = vmatpush1.bf16.msra.mxu1 %v16458_v53  ;;  %12013 = vmatprep.subr.bf16.mxu0 %v16463_v38  ;;  %v16494_v53 = vld [vmem:[%s17784_s12 + $0x988] ss:$16 sps:$4 sm:$0xff]   ;;  %v16499_v38 = vld [vmem:[%s17784_s12 + $0x76c] ss:$16 sps:$4 sm:$0xff]  }
 0x414   : > { %12054 = vmatprep.subr.bf16.mxu1 %v16466_v34  ;;  %v16502_v34 = vld [vmem:[%s17784_s12 + $0x96c] ss:$16 sps:$4 sm:$0xff]  }
 0x416   : > { %12014 = vmatpush1.bf16.msra.mxu0 %v16461_v55  ;;  %v16497_v55 = vld [vmem:[%s17784_s12 + $0x768] ss:$16 sps:$4 sm:$0xff]  }
 0x417   : > { %12055 = vmatpush1.bf16.msra.mxu1 %v16464_v56  ;;  %12015 = vmatprep.subr.bf16.mxu0 %v16469_v20  ;;  %v16500_v56 = vld [vmem:[%s17784_s12 + $0x968] ss:$16 sps:$4 sm:$0xff]   ;;  %v16505_v20 = vld [vmem:[%s17784_s12 + $0x74c] ss:$16 sps:$4 sm:$0xff]  }
 0x418   : > { %12056 = vmatprep.subr.bf16.mxu1 %v16472_v10  ;;  %v16508_v10 = vld [vmem:[%s17784_s12 + $0x94c] ss:$16 sps:$4 sm:$0xff]  }
 0x41a   : > { %12016 = vmatpush1.bf16.msra.mxu0 %v16467_v21  ;;  %v16503_v21 = vld [vmem:[%s17784_s12 + $0x748] ss:$16 sps:$4 sm:$0xff]  }
 0x41b   : > { %12057 = vmatpush1.bf16.msra.mxu1 %v16470_v31  ;;  %12017 = vmatprep.subr.bf16.mxu0 %v16475_v17  ;;  %v16506_v31 = vld [vmem:[%s17784_s12 + $0x948] ss:$16 sps:$4 sm:$0xff]   ;;  %v16511_v17 = vld [vmem:[%s17784_s12 + $0x72c] ss:$16 sps:$4 sm:$0xff]  }
 0x41c   : > { %12058 = vmatprep.subr.bf16.mxu1 %v16478_v58  ;;  %v16514_v58 = vld [vmem:[%s17784_s12 + $0x92c] ss:$16 sps:$4 sm:$0xff]  }
 0x41e   : > { %12018 = vmatpush2.bf16.msra.mxu0 %v16473_v27  ;;  %v16509_v27 = vld [vmem:[%s17784_s12 + $0x728] ss:$16 sps:$4 sm:$0xff]  }
 0x41f   : > { %12059 = vmatpush2.bf16.msra.mxu1 %v16476_v8  ;;  %12019 = vmatprep.subr.bf16.mxu0 %v16481_v41  ;;  %v16512_v8 = vld [vmem:[%s17784_s12 + $0x928] ss:$16 sps:$4 sm:$0xff]   ;;  %v16517_v41 = vld [vmem:[%s17784_s12 + $0x70c] ss:$16 sps:$4 sm:$0xff]  }
 0x420   : > { %12060 = vmatprep.subr.bf16.mxu1 %v16484_v30  ;;  %v16520_v30 = vld [vmem:[%s17784_s12 + $0x90c] ss:$16 sps:$4 sm:$0xff]  }
 0x422   : > { %12020 = vmatpush2.bf16.msra.mxu0 %v16479_v59  ;;  %v16515_v59 = vld [vmem:[%s17784_s12 + $0x708] ss:$16 sps:$4 sm:$0xff]  }
 0x423   : > { %12061 = vmatpush2.bf16.msra.mxu1 %v16482_v13  ;;  %12021 = vmatprep.subr.bf16.mxu0 %v16487_v16  ;;  %v16518_v13 = vld [vmem:[%s17784_s12 + $0x908] ss:$16 sps:$4 sm:$0xff]   ;;  %v16523_v16 = vld [vmem:[%s17784_s12 + $0xaec] ss:$16 sps:$4 sm:$0xff]  }
 0x424   : > { %12062 = vmatprep.subr.bf16.mxu1 %v16490_v28  ;;  %v16526_v28 = vld [vmem:[%s17784_s12 + $0xcec] ss:$16 sps:$4 sm:$0xff]  }
 0x426   : > { %12022 = vmatpush2.bf16.msra.mxu0 %v16485_v9  ;;  %v16521_v9 = vld [vmem:[%s17784_s12 + $0xae8] ss:$16 sps:$4 sm:$0xff]  }
 0x427   : > { %12063 = vmatpush2.bf16.msra.mxu1 %v16488_v35  ;;  %12023 = vmatprep.subr.bf16.mxu0 %v16493_v50  ;;  %v16524_v35 = vld [vmem:[%s17784_s12 + $0xce8] ss:$16 sps:$4 sm:$0xff]   ;;  %v16529_v50 = vld [vmem:[%s17784_s12 + $0xacc] ss:$16 sps:$4 sm:$0xff]  }
 0x428   : > { %12064 = vmatprep.subr.bf16.mxu1 %v16496_v5  ;;  %v16532_v5 = vld [vmem:[%s17784_s12 + $0xccc] ss:$16 sps:$4 sm:$0xff]  }
 0x42a   : > { %12024 = vmatpush2.bf16.msra.mxu0 %v16491_v24 }
 0x42b   : > { %12065 = vmatpush2.bf16.msra.mxu1 %v16494_v53  ;;  %12025 = vmatprep.subr.bf16.mxu0 %v16499_v38  ;;  %v16527_v38 = vld [vmem:[%s17784_s12 + $0xac8] ss:$16 sps:$4 sm:$0xff]  }
 0x42c   : > { %12066 = vmatprep.subr.bf16.mxu1 %v16502_v34  ;;  %v16530_v34 = vld [vmem:[%s17784_s12 + $0xcc8] ss:$16 sps:$4 sm:$0xff]  }
 0x42e   : > { %12026 = vmatpush2.bf16.msra.mxu0 %v16497_v55 }
 0x42f   : > { %12067 = vmatpush2.bf16.msra.mxu1 %v16500_v56  ;;  %12027 = vmatprep.subr.bf16.mxu0 %v16505_v20  ;;  %v16535_v20 = vld [vmem:[%s17784_s12 + $0xaac] ss:$16 sps:$4 sm:$0xff]  }
 0x430   : > { %12068 = vmatprep.subr.bf16.mxu1 %v16508_v10  ;;  %v16538_v10 = vld [vmem:[%s17784_s12 + $0xcac] ss:$16 sps:$4 sm:$0xff]  }
 0x432   : > { %12028 = vmatpush2.bf16.msra.mxu0 %v16503_v21  ;;  %v16533_v21 = vld [vmem:[%s17784_s12 + $0xaa8] ss:$16 sps:$4 sm:$0xff]  }
 0x433   : > { %12069 = vmatpush2.bf16.msra.mxu1 %v16506_v31  ;;  %12029 = vmatprep.subr.bf16.mxu0 %v16511_v17  ;;  %v16536_v31 = vld [vmem:[%s17784_s12 + $0xca8] ss:$16 sps:$4 sm:$0xff]  }
 0x434   : > { %12070 = vmatprep.subr.bf16.mxu1 %v16514_v58 }
 0x436   : > { %12030 = vmatpush2.bf16.msra.mxu0 %v16509_v27  ;;  %v16541_v27 = vld [vmem:[%s17784_s12 + $0xa8c] ss:$16 sps:$4 sm:$0xff]  }
 0x437   : > { %12071 = vmatpush2.bf16.msra.mxu1 %v16512_v8  ;;  %12031 = vmatprep.subr.bf16.mxu0 %v16517_v41  ;;  %v16542_v8 = vld [vmem:[%s17784_s12 + $0xc88] ss:$16 sps:$4 sm:$0xff]   ;;  %v16547_v41 = vld [vmem:[%s17784_s12 + $0xa6c] ss:$16 sps:$4 sm:$0xff]  }
 0x438   : > { %12072 = vmatprep.subr.bf16.mxu1 %v16520_v30  ;;  %v16550_v30 = vld [vmem:[%s17784_s12 + $0xc6c] ss:$16 sps:$4 sm:$0xff]  }
 0x43a   : > { %12032 = vmatpush2.bf16.msra.mxu0 %v16515_v59  ;;  %v16545_v59 = vld [vmem:[%s17784_s12 + $0xa68] ss:$16 sps:$4 sm:$0xff]  }
 0x43b   : > { %12073 = vmatpush2.bf16.msra.mxu1 %v16518_v13  ;;  %12083 = vmatprep.subr.bf16.mxu0 %v16523_v16  ;;  %v16548_v13 = vld [vmem:[%s17784_s12 + $0xc68] ss:$16 sps:$4 sm:$0xff]   ;;  %v16553_v16 = vld [vmem:[%s17784_s12 + $0xa4c] ss:$16 sps:$4 sm:$0xff]  }
 0x43c   : > { %12124 = vmatprep.subr.bf16.mxu1 %v16526_v28  ;;  %v16556_v28 = vld [vmem:[%s17784_s12 + $0xc4c] ss:$16 sps:$4 sm:$0xff]  }
 0x43d   : > { %v19138_v24 = vpop.f32.mrf.mxu0  ;;  %12034 = vmatmul.mubr.bf16.vlgmr.msra.gmra.mxu0 %v17972_v22 }
 0x43e   : > { %v19140_v53 = vpop.f32.mrf.mxu1  ;;  %12075 = vmatmul.mubr.bf16.vlgmr.msra.gmra.mxu1 %v18052_v43  ;;  %12084 = vmatpush1.bf16.msra.mxu0 %v16521_v9  ;;  %v16551_v9 = vld [vmem:[%s17784_s12 + $0xa48] ss:$16 sps:$4 sm:$0xff]  }
 0x43f   : > { %12125 = vmatpush1.bf16.msra.mxu1 %v16524_v35  ;;  %v19146_v55 = vpop.f32.mrf.mxu0  ;;  %12085 = vmatprep.subr.bf16.mxu0 %v16529_v50  ;;  %v16554_v35 = vld [vmem:[%s17784_s12 + $0xc48] ss:$16 sps:$4 sm:$0xff]   ;;  %v16559_v50 = vld [vmem:[%s17784_s12 + $0xa2c] ss:$16 sps:$4 sm:$0xff]  }
 0x440   : > { %v19148_v56 = vpop.f32.mrf.mxu1  ;;  %12126 = vmatprep.subr.bf16.mxu1 %v16532_v5  ;;  %12115 = vmatprep.mubr.bf16.mxu0 %v17987_v33  ;;  %v16544_v33 = vld [vmem:[%s17784_s12 + $0xc8c] ss:$16 sps:$4 sm:$0xff]  }
 0x441   : > { %12156 = vmatprep.mubr.bf16.mxu1 %v18060_v49  ;;  %v11793_v22 = vpop.f32.mrf.mxu0  ;;  %v16539_v49 = vld [vmem:[%s17784_s12 + $0xa88] ss:$16 sps:$4 sm:$0xff]   ;;  %v16562_v5 = vld [vmem:[%s17784_s12 + $0xc2c] ss:$16 sps:$4 sm:$0xff]  }
 0x442   : > { %v11834_v43 = vpop.f32.mrf.mxu1  ;;  %12086 = vmatpush1.bf16.msra.mxu0 %v16527_v38  ;;  %v16557_v38 = vld [vmem:[%s17784_s12 + $0xa28] ss:$16 sps:$4 sm:$0xff]  }
 0x443   : > { %12127 = vmatpush1.bf16.msra.mxu1 %v16530_v34  ;;  %v11794_v17 = vpop.f32.mrf.mxu0  ;;  %12087 = vmatprep.subr.bf16.mxu0 %v16535_v20  ;;  %v16560_v34 = vld [vmem:[%s17784_s12 + $0xc28] ss:$16 sps:$4 sm:$0xff]   ;;  %v16565_v20 = vld [vmem:[%s17784_s12 + $0xa0c] ss:$16 sps:$4 sm:$0xff]  }
 0x444   : > { %v11835_v58 = vpop.f32.mrf.mxu1  ;;  %12128 = vmatprep.subr.bf16.mxu1 %v16538_v10  ;;  %v16568_v10 = vld [vmem:[%s17784_s12 + $0xc0c] ss:$16 sps:$4 sm:$0xff]   ;;  %v16563_v22 = vld [vmem:[%s17784_s12 + $0xa08] ss:$16 sps:$4 sm:$0xff]  }
 0x445   : > { %v16566_v43 = vld [vmem:[%s17784_s12 + $0xc08] ss:$16 sps:$4 sm:$0xff]  }
 0x446   : > { %12088 = vmatpush1.bf16.msra.mxu0 %v16533_v21  ;;  %v16571_v21 = vld [vmem:[%s17784_s12 + $0xbec] ss:$16 sps:$4 sm:$0xff]   ;;  %v16569_v17 = vld [vmem:[%s17784_s12 + $0xbe8] ss:$16 sps:$4 sm:$0xff]  }
 0x447   : > { %12129 = vmatpush1.bf16.msra.mxu1 %v16536_v31  ;;  %12089 = vmatprep.subr.bf16.mxu0 %v16541_v27  ;;  %v16574_v31 = vld [vmem:[%s17784_s12 + $0xdec] ss:$16 sps:$4 sm:$0xff]   ;;  %v16572_v58 = vld [vmem:[%s17784_s12 + $0xde8] ss:$16 sps:$4 sm:$0xff]  }
 0x448   : > { %12130 = vmatprep.subr.bf16.mxu1 %v16544_v33  ;;  %v16577_v27 = vld [vmem:[%s17784_s12 + $0xbcc] ss:$16 sps:$4 sm:$0xff]  }
 0x449   : > { %v16580_v33 = vld [vmem:[%s17784_s12 + $0xdcc] ss:$16 sps:$4 sm:$0xff]  }
 0x44a   : > { %12090 = vmatpush1.bf16.msra.mxu0 %v16539_v49  ;;  %v16575_v49 = vld [vmem:[%s17784_s12 + $0xbc8] ss:$16 sps:$4 sm:$0xff]  }
 0x44b   : > { %12131 = vmatpush1.bf16.msra.mxu1 %v16542_v8  ;;  %12091 = vmatprep.subr.bf16.mxu0 %v16547_v41  ;;  %v16578_v8 = vld [vmem:[%s17784_s12 + $0xdc8] ss:$16 sps:$4 sm:$0xff]   ;;  %v16583_v41 = vld [vmem:[%s17784_s12 + $0xbac] ss:$16 sps:$4 sm:$0xff]  }
 0x44c   : > { %12132 = vmatprep.subr.bf16.mxu1 %v16550_v30  ;;  %v16586_v30 = vld [vmem:[%s17784_s12 + $0xdac] ss:$16 sps:$4 sm:$0xff]  }
 0x44e   : > { %12092 = vmatpush1.bf16.msra.mxu0 %v16545_v59  ;;  %v16581_v59 = vld [vmem:[%s17784_s12 + $0xba8] ss:$16 sps:$4 sm:$0xff]  }
 0x44f   : > { %12133 = vmatpush1.bf16.msra.mxu1 %v16548_v13  ;;  %12093 = vmatprep.subr.bf16.mxu0 %v16553_v16  ;;  %v16584_v13 = vld [vmem:[%s17784_s12 + $0xda8] ss:$16 sps:$4 sm:$0xff]   ;;  %v16589_v16 = vld [vmem:[%s17784_s12 + $0xb8c] ss:$16 sps:$4 sm:$0xff]  }
 0x450   : > { %12134 = vmatprep.subr.bf16.mxu1 %v16556_v28  ;;  %v16592_v28 = vld [vmem:[%s17784_s12 + $0xd8c] ss:$16 sps:$4 sm:$0xff]  }
 0x452   : > { %12094 = vmatpush1.bf16.msra.mxu0 %v16551_v9  ;;  %v16587_v9 = vld [vmem:[%s17784_s12 + $0xb88] ss:$16 sps:$4 sm:$0xff]  }
 0x453   : > { %12135 = vmatpush1.bf16.msra.mxu1 %v16554_v35  ;;  %12095 = vmatprep.subr.bf16.mxu0 %v16559_v50  ;;  %v16590_v35 = vld [vmem:[%s17784_s12 + $0xd88] ss:$16 sps:$4 sm:$0xff]   ;;  %v16595_v50 = vld [vmem:[%s17784_s12 + $0xb6c] ss:$16 sps:$4 sm:$0xff]  }
 0x454   : > { %12136 = vmatprep.subr.bf16.mxu1 %v16562_v5  ;;  %v16598_v5 = vld [vmem:[%s17784_s12 + $0xd6c] ss:$16 sps:$4 sm:$0xff]  }
 0x456   : > { %12096 = vmatpush1.bf16.msra.mxu0 %v16557_v38  ;;  %v16593_v38 = vld [vmem:[%s17784_s12 + $0xb68] ss:$16 sps:$4 sm:$0xff]  }
 0x457   : > { %12137 = vmatpush1.bf16.msra.mxu1 %v16560_v34  ;;  %12097 = vmatprep.subr.bf16.mxu0 %v16565_v20  ;;  %v16596_v34 = vld [vmem:[%s17784_s12 + $0xd68] ss:$16 sps:$4 sm:$0xff]   ;;  %v16601_v20 = vld [vmem:[%s17784_s12 + $0xb4c] ss:$16 sps:$4 sm:$0xff]  }
 0x458   : > { %12138 = vmatprep.subr.bf16.mxu1 %v16568_v10  ;;  %v16604_v10 = vld [vmem:[%s17784_s12 + $0xd4c] ss:$16 sps:$4 sm:$0xff]  }
 0x45a   : > { %12098 = vmatpush1.bf16.msra.mxu0 %v16563_v22  ;;  %v16599_v22 = vld [vmem:[%s17784_s12 + $0xb48] ss:$16 sps:$4 sm:$0xff]  }
 0x45b   : > { %12139 = vmatpush1.bf16.msra.mxu1 %v16566_v43  ;;  %12099 = vmatprep.subr.bf16.mxu0 %v16571_v21  ;;  %v16602_v43 = vld [vmem:[%s17784_s12 + $0xd48] ss:$16 sps:$4 sm:$0xff]   ;;  %v16607_v21 = vld [vmem:[%s17784_s12 + $0xb2c] ss:$16 sps:$4 sm:$0xff]  }
 0x45c   : > { %12140 = vmatprep.subr.bf16.mxu1 %v16574_v31  ;;  %v16610_v31 = vld [vmem:[%s17784_s12 + $0xd2c] ss:$16 sps:$4 sm:$0xff]  }
 0x45e   : > { %12100 = vmatpush2.bf16.msra.mxu0 %v16569_v17  ;;  %v16605_v17 = vld [vmem:[%s17784_s12 + $0xb28] ss:$16 sps:$4 sm:$0xff]  }
 0x45f   : > { %12141 = vmatpush2.bf16.msra.mxu1 %v16572_v58  ;;  %12101 = vmatprep.subr.bf16.mxu0 %v16577_v27  ;;  %v16608_v58 = vld [vmem:[%s17784_s12 + $0xd28] ss:$16 sps:$4 sm:$0xff]   ;;  %v16613_v27 = vld [vmem:[%s17784_s12 + $0xb0c] ss:$16 sps:$4 sm:$0xff]  }
 0x460   : > { %12142 = vmatprep.subr.bf16.mxu1 %v16580_v33  ;;  %v16616_v33 = vld [vmem:[%s17784_s12 + $0xd0c] ss:$16 sps:$4 sm:$0xff]  }
 0x462   : > { %12102 = vmatpush2.bf16.msra.mxu0 %v16575_v49  ;;  %v16611_v49 = vld [vmem:[%s17784_s12 + $0xb08] ss:$16 sps:$4 sm:$0xff]  }
 0x463   : > { %12143 = vmatpush2.bf16.msra.mxu1 %v16578_v8  ;;  %12103 = vmatprep.subr.bf16.mxu0 %v16583_v41  ;;  %v16614_v8 = vld [vmem:[%s17784_s12 + $0xd08] ss:$16 sps:$4 sm:$0xff]   ;;  %v16619_v41 = vld [vmem:[%s17784_s12 + $0xeec] ss:$16 sps:$4 sm:$0xff]  }
 0x464   : > { %12144 = vmatprep.subr.bf16.mxu1 %v16586_v30  ;;  %v16622_v30 = vld [vmem:[%s17784_s12 + $0x10ec] ss:$16 sps:$4 sm:$0xff]  }
 0x466   : > { %12104 = vmatpush2.bf16.msra.mxu0 %v16581_v59  ;;  %v11790_v59 = vadd.f32 %v19138_v24, %v19071_v6 }
 0x467   : > { %12145 = vmatpush2.bf16.msra.mxu1 %v16584_v13  ;;  %12105 = vmatprep.subr.bf16.mxu0 %v16589_v16  ;;  %v11792_v13 = vadd.f32 %v19146_v55, %v19076_v15  ;;  %v16617_v16 = vld [vmem:[%s17784_s12 + $0xee8] ss:$16 sps:$4 sm:$0xff]  }
 0x468   : > { %12146 = vmatprep.subr.bf16.mxu1 %v16592_v28  ;;  %v16620_v28 = vld [vmem:[%s17784_s12 + $0x10e8] ss:$16 sps:$4 sm:$0xff]  }
 0x469   : > { %v400_v15 = vld [vmem:[%s17802_s30 + $0x8] sm:$0xff]  ;;  %v11833_v24 = vadd.f32 %v19148_v56, %v11792_v13 }
 0x46a   : > { %12106 = vmatpush2.bf16.msra.mxu0 %v16587_v9  ;;  %v16625_v9 = vld [vmem:[%s17784_s12 + $0xecc] ss:$16 sps:$4 sm:$0xff]  }
 0x46b   : > { %12147 = vmatpush2.bf16.msra.mxu1 %v16590_v35  ;;  %12107 = vmatprep.subr.bf16.mxu0 %v16595_v50  ;;  %v16628_v35 = vld [vmem:[%s17784_s12 + $0x10cc] ss:$16 sps:$4 sm:$0xff]   ;;  %v11831_v50 = vadd.f32 %v19140_v53, %v11790_v59  ;;  %v19229_v53 = vld [vmem:[%s17802_s30 + $0x10] sm:$0xff] }
 0x46c   : > { %12148 = vmatprep.subr.bf16.mxu1 %v16598_v5  ;;  %v399_v5 = vld [vmem:[%s17802_s30] sm:$0xff]  ;;  %v16643_v59 = vld [vmem:[%s17784_s12 + $0xe6c] ss:$16 sps:$4 sm:$0xff]  }
 0x46d   : > { %v16646_v13 = vld [vmem:[%s17784_s12 + $0x106c] ss:$16 sps:$4 sm:$0xff]  }
 0x46e   : > { %12108 = vmatpush2.bf16.msra.mxu0 %v16593_v38 }
 0x46f   : > { %12149 = vmatpush2.bf16.msra.mxu1 %v16596_v34  ;;  %12109 = vmatprep.subr.bf16.mxu0 %v16601_v20  ;;  %v16623_v34 = vld [vmem:[%s17784_s12 + $0xec8] ss:$16 sps:$4 sm:$0xff]  }
 0x470   : > { %12150 = vmatprep.subr.bf16.mxu1 %v16604_v10  ;;  %v16626_v20 = vld [vmem:[%s17784_s12 + $0x10c8] ss:$16 sps:$4 sm:$0xff]  }
 0x472   : > { %12110 = vmatpush2.bf16.msra.mxu0 %v16599_v22 }
 0x473   : > { %12151 = vmatpush2.bf16.msra.mxu1 %v16602_v43  ;;  %12111 = vmatprep.subr.bf16.mxu0 %v16607_v21  ;;  %v19236_v43 = vld [vmem:[%s17802_s30 + $0x18] sm:$0xff] }
 0x474   : > { %12152 = vmatprep.subr.bf16.mxu1 %v16610_v31 }
 0x476   : > { %12112 = vmatpush2.bf16.msra.mxu0 %v16605_v17 }
 0x477   : > { %12153 = vmatpush2.bf16.msra.mxu1 %v16608_v58  ;;  %12113 = vmatprep.subr.bf16.mxu0 %v16613_v27  ;;  %v16629_v27 = vld [vmem:[%s17784_s12 + $0xea8] ss:$16 sps:$4 sm:$0xff]  }
 0x478   : > { %12154 = vmatprep.subr.bf16.mxu1 %v16616_v33  ;;  %v16632_v33 = vld [vmem:[%s17784_s12 + $0x10a8] ss:$16 sps:$4 sm:$0xff]  }
 0x47a   : > { %12114 = vmatpush2.bf16.msra.mxu0 %v16611_v49 }
 0x47b   : > { %12155 = vmatpush2.bf16.msra.mxu1 %v16614_v8  ;;  %12165 = vmatprep.subr.bf16.mxu0 %v16619_v41  ;;  %v16635_v41 = vld [vmem:[%s17784_s12 + $0xe88] ss:$16 sps:$4 sm:$0xff]  }
 0x47c   : > { %12206 = vmatprep.subr.bf16.mxu1 %v16622_v30  ;;  %v16638_v30 = vld [vmem:[%s17784_s12 + $0x1088] ss:$16 sps:$4 sm:$0xff]  }
 0x47d   : > { %v11871_v38 = vpop.f32.mrf.mxu0  ;;  %12116 = vmatmul.mubr.bf16.vlgmr.msra.gmra.mxu0 %v18054_v44  ;;  %v16631_v44 = vld [vmem:[%s17784_s12 + $0xeac] ss:$16 sps:$4 sm:$0xff]  }
 0x47e   : > { %v19220_v6 = vpop.f32.mrf.mxu1  ;;  %12157 = vmatmul.mubr.bf16.vlgmr.msra.gmra.mxu1 %v18132_v3  ;;  %v11872_v55 = vadd.f32 %v11871_v38, %v11831_v50  ;;  %12166 = vmatpush1.bf16.msra.mxu0 %v16617_v16  ;;  %v16634_v3 = vld [vmem:[%s17784_s12 + $0x10ac] ss:$16 sps:$4 sm:$0xff]   ;;  %v16641_v16 = vld [vmem:[%s17784_s12 + $0xe68] ss:$16 sps:$4 sm:$0xff]  }
 0x47f   : > { %12207 = vmatpush1.bf16.msra.mxu1 %v16620_v28  ;;  %v11873_v10 = vpop.f32.mrf.mxu0  ;;  %12167 = vmatprep.subr.bf16.mxu0 %v16625_v9  ;;  %v16644_v28 = vld [vmem:[%s17784_s12 + $0x1068] ss:$16 sps:$4 sm:$0xff]   ;;  %v16649_v9 = vld [vmem:[%s17784_s12 + $0xe4c] ss:$16 sps:$4 sm:$0xff]  }
 0x480   : > { %v19231_v22 = vpop.f32.mrf.mxu1  ;;  %12208 = vmatprep.subr.bf16.mxu1 %v16628_v35  ;;  %v12985_v56 = vadd.f32 %v11872_v55, %v399_v5  ;;  %v11874_v21 = vadd.f32 %v11873_v10, %v11833_v24  ;;  %12197 = vmatprep.mubr.bf16.mxu0 %v18062_v51  ;;  %v16637_v51 = vld [vmem:[%s17784_s12 + $0xe8c] ss:$16 sps:$4 sm:$0xff]   ;;  %v16647_v50 = vld [vmem:[%s17784_s12 + $0xe48] ss:$16 sps:$4 sm:$0xff]  }
 0x481   : > { %12238 = vmatprep.mubr.bf16.mxu1 %v18140_v11  ;;  %v11875_v31 = vpop.f32.mrf.mxu0  ;;  %v16640_v11 = vld [vmem:[%s17784_s12 + $0x108c] ss:$16 sps:$4 sm:$0xff]   ;;  %v16650_v5 = vld [vmem:[%s17784_s12 + $0x1048] ss:$16 sps:$4 sm:$0xff]  }
 0x482   : > { %v11916_v17 = vpop.f32.mrf.mxu1  ;;  %v12986_v58 = vadd.f32 %v11874_v21, %v400_v15  ;;  %12168 = vmatpush1.bf16.msra.mxu0 %v16623_v34  ;;  %12989 = vst [vmem:[%s17802_s30] sm:$0xff] %v12985_v56  ;;  %v16652_v35 = vld [vmem:[%s17784_s12 + $0x104c] ss:$16 sps:$4 sm:$0xff]   ;;  %v16653_v24 = vld [vmem:[%s17784_s12 + $0xe28] ss:$16 sps:$4 sm:$0xff]  }
 0x483   : > { %12209 = vmatpush1.bf16.msra.mxu1 %v16626_v20  ;;  %v11876_v49 = vpop.f32.mrf.mxu0  ;;  %12169 = vmatprep.subr.bf16.mxu0 %v16631_v44  ;;  %v16655_v38 = vld [vmem:[%s17784_s12 + $0xe2c] ss:$16 sps:$4 sm:$0xff]   ;;  %v16656_v55 = vld [vmem:[%s17784_s12 + $0x1028] ss:$16 sps:$4 sm:$0xff]  }
 0x484   : > { %v11917_v8 = vpop.f32.mrf.mxu1  ;;  %12210 = vmatprep.subr.bf16.mxu1 %v16634_v3  ;;  %12990 = vst [vmem:[%s17802_s30 + $0x8] sm:$0xff] %v12986_v58  ;;  %v16658_v15 = vld [vmem:[%s17784_s12 + $0x102c] ss:$16 sps:$4 sm:$0xff]   ;;  %v16659_v10 = vld [vmem:[%s17784_s12 + $0xe08] ss:$16 sps:$4 sm:$0xff]  }
 0x485   : > { %v16661_v34 = vld [vmem:[%s17784_s12 + $0xe0c] ss:$16 sps:$4 sm:$0xff]   ;;  %v16662_v44 = vld [vmem:[%s17784_s12 + $0x1008] ss:$16 sps:$4 sm:$0xff]  }
 0x486   : > { %12170 = vmatpush1.bf16.msra.mxu0 %v16629_v27  ;;  %v16664_v20 = vld [vmem:[%s17784_s12 + $0x100c] ss:$16 sps:$4 sm:$0xff]   ;;  %v16665_v21 = vld [vmem:[%s17784_s12 + $0xfe8] ss:$16 sps:$4 sm:$0xff]  }
 0x487   : > { %12211 = vmatpush1.bf16.msra.mxu1 %v16632_v33  ;;  %12171 = vmatprep.subr.bf16.mxu0 %v16637_v51  ;;  %v16667_v3 = vld [vmem:[%s17784_s12 + $0xfec] ss:$16 sps:$4 sm:$0xff]   ;;  %v16668_v31 = vld [vmem:[%s17784_s12 + $0x11e8] ss:$16 sps:$4 sm:$0xff]  }
 0x488   : > { %12212 = vmatprep.subr.bf16.mxu1 %v16640_v11  ;;  %v16670_v56 = vld [vmem:[%s17784_s12 + $0x11ec] ss:$16 sps:$4 sm:$0xff]   ;;  %v16671_v27 = vld [vmem:[%s17784_s12 + $0xfc8] ss:$16 sps:$4 sm:$0xff]  }
 0x489   : > { %v16673_v17 = vld [vmem:[%s17784_s12 + $0xfcc] ss:$16 sps:$4 sm:$0xff]   ;;  %v16674_v33 = vld [vmem:[%s17784_s12 + $0x11c8] ss:$16 sps:$4 sm:$0xff]  }
 0x48a   : > { %12172 = vmatpush1.bf16.msra.mxu0 %v16635_v41  ;;  %v16676_v58 = vld [vmem:[%s17784_s12 + $0x11cc] ss:$16 sps:$4 sm:$0xff]   ;;  %v16677_v51 = vld [vmem:[%s17784_s12 + $0xfa8] ss:$16 sps:$4 sm:$0xff]  }
 0x48b   : > { %12213 = vmatpush1.bf16.msra.mxu1 %v16638_v30  ;;  %12173 = vmatprep.subr.bf16.mxu0 %v16643_v59  ;;  %v16679_v49 = vld [vmem:[%s17784_s12 + $0xfac] ss:$16 sps:$4 sm:$0xff]   ;;  %v16680_v11 = vld [vmem:[%s17784_s12 + $0x11a8] ss:$16 sps:$4 sm:$0xff]  }
 0x48c   : > { %12214 = vmatprep.subr.bf16.mxu1 %v16646_v13  ;;  %v16682_v8 = vld [vmem:[%s17784_s12 + $0x11ac] ss:$16 sps:$4 sm:$0xff]   ;;  %v16683_v59 = vld [vmem:[%s17784_s12 + $0xf88] ss:$16 sps:$4 sm:$0xff]  }
 0x48d   : > { %v16685_v41 = vld [vmem:[%s17784_s12 + $0xf8c] ss:$16 sps:$4 sm:$0xff]   ;;  %v16686_v13 = vld [vmem:[%s17784_s12 + $0x1188] ss:$16 sps:$4 sm:$0xff]  }
 0x48e   : > { %12174 = vmatpush1.bf16.msra.mxu0 %v16641_v16  ;;  %v16688_v30 = vld [vmem:[%s17784_s12 + $0x118c] ss:$16 sps:$4 sm:$0xff]  }
 0x48f   : > { %12215 = vmatpush1.bf16.msra.mxu1 %v16644_v28  ;;  %12175 = vmatprep.subr.bf16.mxu0 %v16649_v9  ;;  %v16691_v16 = vld [vmem:[%s17784_s12 + $0xf6c] ss:$16 sps:$4 sm:$0xff]   ;;  %v16689_v9 = vld [vmem:[%s17784_s12 + $0xf68] ss:$16 sps:$4 sm:$0xff]  }
 0x490   : > { %12216 = vmatprep.subr.bf16.mxu1 %v16652_v35  ;;  %v16694_v28 = vld [vmem:[%s17784_s12 + $0x116c] ss:$16 sps:$4 sm:$0xff]   ;;  %v16692_v35 = vld [vmem:[%s17784_s12 + $0x1168] ss:$16 sps:$4 sm:$0xff]  }
 0x492   : > { %12176 = vmatpush1.bf16.msra.mxu0 %v16647_v50  ;;  %v16697_v50 = vld [vmem:[%s17784_s12 + $0xf4c] ss:$16 sps:$4 sm:$0xff]  }
 0x493   : > { %12217 = vmatpush1.bf16.msra.mxu1 %v16650_v5  ;;  %12177 = vmatprep.subr.bf16.mxu0 %v16655_v38  ;;  %v16700_v5 = vld [vmem:[%s17784_s12 + $0x114c] ss:$16 sps:$4 sm:$0xff]   ;;  %v16695_v38 = vld [vmem:[%s17784_s12 + $0xf48] ss:$16 sps:$4 sm:$0xff]  }
 0x494   : > { %12218 = vmatprep.subr.bf16.mxu1 %v16658_v15  ;;  %v16698_v15 = vld [vmem:[%s17784_s12 + $0x1148] ss:$16 sps:$4 sm:$0xff]  }
 0x496   : > { %12178 = vmatpush1.bf16.msra.mxu0 %v16653_v24  ;;  %v16703_v24 = vld [vmem:[%s17784_s12 + $0xf2c] ss:$16 sps:$4 sm:$0xff]  }
 0x497   : > { %12219 = vmatpush1.bf16.msra.mxu1 %v16656_v55  ;;  %12179 = vmatprep.subr.bf16.mxu0 %v16661_v34  ;;  %v16706_v55 = vld [vmem:[%s17784_s12 + $0x112c] ss:$16 sps:$4 sm:$0xff]   ;;  %v16701_v34 = vld [vmem:[%s17784_s12 + $0xf28] ss:$16 sps:$4 sm:$0xff]  }
 0x498   : > { %12220 = vmatprep.subr.bf16.mxu1 %v16664_v20  ;;  %v16704_v20 = vld [vmem:[%s17784_s12 + $0x1128] ss:$16 sps:$4 sm:$0xff]  }
 0x49a   : > { %12180 = vmatpush1.bf16.msra.mxu0 %v16659_v10  ;;  %v16709_v10 = vld [vmem:[%s17784_s12 + $0xf0c] ss:$16 sps:$4 sm:$0xff]  }
 0x49b   : > { %12221 = vmatpush1.bf16.msra.mxu1 %v16662_v44  ;;  %12181 = vmatprep.subr.bf16.mxu0 %v16667_v3  ;;  %v16712_v44 = vld [vmem:[%s17784_s12 + $0x110c] ss:$16 sps:$4 sm:$0xff]   ;;  %v16707_v3 = vld [vmem:[%s17784_s12 + $0xf08] ss:$16 sps:$4 sm:$0xff]  }
 0x49c   : > { %12222 = vmatprep.subr.bf16.mxu1 %v16670_v56  ;;  %v16710_v56 = vld [vmem:[%s17784_s12 + $0x1108] ss:$16 sps:$4 sm:$0xff]  }
 0x49e   : > { %12182 = vmatpush2.bf16.msra.mxu0 %v16665_v21  ;;  %v16715_v21 = vld [vmem:[%s17784_s12 + $0x12ec] ss:$16 sps:$4 sm:$0xff]  }
 0x49f   : > { %12223 = vmatpush2.bf16.msra.mxu1 %v16668_v31  ;;  %12183 = vmatprep.subr.bf16.mxu0 %v16673_v17  ;;  %v16718_v31 = vld [vmem:[%s17784_s12 + $0x14ec] ss:$16 sps:$4 sm:$0xff]   ;;  %v16713_v17 = vld [vmem:[%s17784_s12 + $0x12e8] ss:$16 sps:$4 sm:$0xff]  }
 0x4a0   : > { %12224 = vmatprep.subr.bf16.mxu1 %v16676_v58  ;;  %v16716_v58 = vld [vmem:[%s17784_s12 + $0x14e8] ss:$16 sps:$4 sm:$0xff]  }
 0x4a2   : > { %12184 = vmatpush2.bf16.msra.mxu0 %v16671_v27  ;;  %v16721_v27 = vld [vmem:[%s17784_s12 + $0x12cc] ss:$16 sps:$4 sm:$0xff]  }
 0x4a3   : > { %12225 = vmatpush2.bf16.msra.mxu1 %v16674_v33  ;;  %12185 = vmatprep.subr.bf16.mxu0 %v16679_v49  ;;  %v16724_v33 = vld [vmem:[%s17784_s12 + $0x14cc] ss:$16 sps:$4 sm:$0xff]  }
 0x4a4   : > { %12226 = vmatprep.subr.bf16.mxu1 %v16682_v8 }
 0x4a6   : > { %12186 = vmatpush2.bf16.msra.mxu0 %v16677_v51 }
 0x4a7   : > { %12227 = vmatpush2.bf16.msra.mxu1 %v16680_v11  ;;  %12187 = vmatprep.subr.bf16.mxu0 %v16685_v41  ;;  %v16719_v11 = vld [vmem:[%s17784_s12 + $0x12c8] ss:$16 sps:$4 sm:$0xff]  }
 0x4a8   : > { %12228 = vmatprep.subr.bf16.mxu1 %v16688_v30  ;;  %v16722_v41 = vld [vmem:[%s17784_s12 + $0x14c8] ss:$16 sps:$4 sm:$0xff]  }
 0x4aa   : > { %12188 = vmatpush2.bf16.msra.mxu0 %v16683_v59 }
 0x4ab   : > { %12229 = vmatpush2.bf16.msra.mxu1 %v16686_v13  ;;  %12189 = vmatprep.subr.bf16.mxu0 %v16691_v16  ;;  %v16727_v13 = vld [vmem:[%s17784_s12 + $0x12ac] ss:$16 sps:$4 sm:$0xff]  }
 0x4ac   : > { %12230 = vmatprep.subr.bf16.mxu1 %v16694_v28  ;;  %v16730_v16 = vld [vmem:[%s17784_s12 + $0x14ac] ss:$16 sps:$4 sm:$0xff]  }
 0x4ae   : > { %12190 = vmatpush2.bf16.msra.mxu0 %v16689_v9 }
 0x4af   : > { %12231 = vmatpush2.bf16.msra.mxu1 %v16692_v35  ;;  %12191 = vmatprep.subr.bf16.mxu0 %v16697_v50  ;;  %v16725_v35 = vld [vmem:[%s17784_s12 + $0x12a8] ss:$16 sps:$4 sm:$0xff]  }
 0x4b0   : > { %12232 = vmatprep.subr.bf16.mxu1 %v16700_v5  ;;  %v16728_v50 = vld [vmem:[%s17784_s12 + $0x14a8] ss:$16 sps:$4 sm:$0xff]  }
 0x4b2   : > { %12192 = vmatpush2.bf16.msra.mxu0 %v16695_v38 }
 0x4b3   : > { %12233 = vmatpush2.bf16.msra.mxu1 %v16698_v15  ;;  %12193 = vmatprep.subr.bf16.mxu0 %v16703_v24  ;;  %v16734_v15 = vld [vmem:[%s17784_s12 + $0x1488] ss:$16 sps:$4 sm:$0xff]   ;;  %v16739_v24 = vld [vmem:[%s17784_s12 + $0x126c] ss:$16 sps:$4 sm:$0xff]  }
 0x4b4   : > { %12234 = vmatprep.subr.bf16.mxu1 %v16706_v55  ;;  %v16742_v55 = vld [vmem:[%s17784_s12 + $0x146c] ss:$16 sps:$4 sm:$0xff]  }
 0x4b6   : > { %12194 = vmatpush2.bf16.msra.mxu0 %v16701_v34  ;;  %v16737_v34 = vld [vmem:[%s17784_s12 + $0x1268] ss:$16 sps:$4 sm:$0xff]  }
 0x4b7   : > { %12235 = vmatpush2.bf16.msra.mxu1 %v16704_v20  ;;  %12195 = vmatprep.subr.bf16.mxu0 %v16709_v10  ;;  %v16740_v20 = vld [vmem:[%s17784_s12 + $0x1468] ss:$16 sps:$4 sm:$0xff]   ;;  %v16745_v10 = vld [vmem:[%s17784_s12 + $0x124c] ss:$16 sps:$4 sm:$0xff]  }
 0x4b8   : > { %12236 = vmatprep.subr.bf16.mxu1 %v16712_v44  ;;  %v16748_v44 = vld [vmem:[%s17784_s12 + $0x144c] ss:$16 sps:$4 sm:$0xff]  }
 0x4ba   : > { %12196 = vmatpush2.bf16.msra.mxu0 %v16707_v3  ;;  %v16743_v3 = vld [vmem:[%s17784_s12 + $0x1248] ss:$16 sps:$4 sm:$0xff]  }
 0x4bb   : > { %12237 = vmatpush2.bf16.msra.mxu1 %v16710_v56  ;;  %12247 = vmatprep.subr.bf16.mxu0 %v16715_v21  ;;  %v16746_v56 = vld [vmem:[%s17784_s12 + $0x1448] ss:$16 sps:$4 sm:$0xff]   ;;  %v16751_v21 = vld [vmem:[%s17784_s12 + $0x122c] ss:$16 sps:$4 sm:$0xff]  }
 0x4bc   : > { %12288 = vmatprep.subr.bf16.mxu1 %v16718_v31  ;;  %v16754_v31 = vld [vmem:[%s17784_s12 + $0x142c] ss:$16 sps:$4 sm:$0xff]  }
 0x4bd   : > { %v11953_v49 = vpop.f32.mrf.mxu0  ;;  %12198 = vmatmul.mubr.bf16.vlgmr.msra.gmra.mxu0 %v18134_v4 }
 0x4be   : > { %v11994_v8 = vpop.f32.mrf.mxu1  ;;  %12239 = vmatmul.mubr.bf16.vlgmr.msra.gmra.mxu1 %v18214_v52  ;;  %v11954_v51 = vadd.f32 %v11953_v49, %v19220_v6  ;;  %12248 = vmatpush1.bf16.msra.mxu0 %v16713_v17  ;;  %v16749_v17 = vld [vmem:[%s17784_s12 + $0x1228] ss:$16 sps:$4 sm:$0xff]  }
 0x4bf   : > { %12289 = vmatpush1.bf16.msra.mxu1 %v16716_v58  ;;  %v11955_v30 = vpop.f32.mrf.mxu0  ;;  %12249 = vmatprep.subr.bf16.mxu0 %v16721_v27  ;;  %v16752_v58 = vld [vmem:[%s17784_s12 + $0x1428] ss:$16 sps:$4 sm:$0xff]   ;;  %v16757_v27 = vld [vmem:[%s17784_s12 + $0x120c] ss:$16 sps:$4 sm:$0xff]  }
 0x4c0   : > { %v11996_v59 = vpop.f32.mrf.mxu1  ;;  %12290 = vmatprep.subr.bf16.mxu1 %v16724_v33  ;;  %v19309_v28 = vadd.f32 %v11994_v8, %v11954_v51  ;;  %v11956_v4 = vadd.f32 %v11955_v30, %v19231_v22  ;;  %12279 = vmatprep.mubr.bf16.mxu0 %v18142_v12  ;;  %v16733_v12 = vld [vmem:[%s17784_s12 + $0x128c] ss:$16 sps:$4 sm:$0xff]   ;;  %v16731_v22 = vld [vmem:[%s17784_s12 + $0x1288] ss:$16 sps:$4 sm:$0xff]  }
 0x4c1   : > { %12320 = vmatprep.mubr.bf16.mxu1 %v18226_v63  ;;  %v11957_v52 = vpop.f32.mrf.mxu0  ;;  %v16736_v63 = vld [vmem:[%s17784_s12 + $0x148c] ss:$16 sps:$4 sm:$0xff]   ;;  %v16755_v49 = vld [vmem:[%s17784_s12 + $0x1208] ss:$16 sps:$4 sm:$0xff]  }
 0x4c2   : > { %v11998_v6 = vpop.f32.mrf.mxu1  ;;  %v19314_v9 = vadd.f32 %v11996_v59, %v11956_v4  ;;  %12250 = vmatpush1.bf16.msra.mxu0 %v16719_v11  ;;  %v16760_v33 = vld [vmem:[%s17784_s12 + $0x140c] ss:$16 sps:$4 sm:$0xff]   ;;  %v16758_v8 = vld [vmem:[%s17784_s12 + $0x1408] ss:$16 sps:$4 sm:$0xff]  }
 0x4c3   : > { %12291 = vmatpush1.bf16.msra.mxu1 %v16722_v41  ;;  %v11958_v5 = vpop.f32.mrf.mxu0  ;;  %12251 = vmatprep.subr.bf16.mxu0 %v16727_v13  ;;  %v16763_v51 = vld [vmem:[%s17784_s12 + $0x13ec] ss:$16 sps:$4 sm:$0xff]   ;;  %v16761_v41 = vld [vmem:[%s17784_s12 + $0x13e8] ss:$16 sps:$4 sm:$0xff]  }
 0x4c4   : > { %v11999_v38 = vpop.f32.mrf.mxu1  ;;  %12292 = vmatprep.subr.bf16.mxu1 %v16730_v16  ;;  %v16766_v11 = vld [vmem:[%s17784_s12 + $0x15ec] ss:$16 sps:$4 sm:$0xff]   ;;  %v16764_v30 = vld [vmem:[%s17784_s12 + $0x15e8] ss:$16 sps:$4 sm:$0xff]  }
 0x4c5   : > { %v16769_v59 = vld [vmem:[%s17784_s12 + $0x13cc] ss:$16 sps:$4 sm:$0xff]   ;;  %v16767_v16 = vld [vmem:[%s17784_s12 + $0x13c8] ss:$16 sps:$4 sm:$0xff]  }
 0x4c6   : > { %12252 = vmatpush1.bf16.msra.mxu0 %v16725_v35  ;;  %v16772_v13 = vld [vmem:[%s17784_s12 + $0x15cc] ss:$16 sps:$4 sm:$0xff]   ;;  %v16770_v4 = vld [vmem:[%s17784_s12 + $0x15c8] ss:$16 sps:$4 sm:$0xff]  }
 0x4c7   : > { %12293 = vmatpush1.bf16.msra.mxu1 %v16728_v50  ;;  %12253 = vmatprep.subr.bf16.mxu0 %v16733_v12  ;;  %v16775_v52 = vld [vmem:[%s17784_s12 + $0x13ac] ss:$16 sps:$4 sm:$0xff]   ;;  %v16773_v35 = vld [vmem:[%s17784_s12 + $0x13a8] ss:$16 sps:$4 sm:$0xff]  }
 0x4c8   : > { %12294 = vmatprep.subr.bf16.mxu1 %v16736_v63  ;;  %v16778_v6 = vld [vmem:[%s17784_s12 + $0x15ac] ss:$16 sps:$4 sm:$0xff]   ;;  %v16776_v50 = vld [vmem:[%s17784_s12 + $0x15a8] ss:$16 sps:$4 sm:$0xff]  }
 0x4c9   : > { %v16781_v5 = vld [vmem:[%s17784_s12 + $0x138c] ss:$16 sps:$4 sm:$0xff]   ;;  %v16779_v12 = vld [vmem:[%s17784_s12 + $0x1388] ss:$16 sps:$4 sm:$0xff]  }
 0x4ca   : > { %12254 = vmatpush1.bf16.msra.mxu0 %v16731_v22  ;;  %v16784_v38 = vld [vmem:[%s17784_s12 + $0x158c] ss:$16 sps:$4 sm:$0xff]   ;;  %v16782_v63 = vld [vmem:[%s17784_s12 + $0x1588] ss:$16 sps:$4 sm:$0xff]  }
 0x4cb   : > { %12295 = vmatpush1.bf16.msra.mxu1 %v16734_v15  ;;  %12255 = vmatprep.subr.bf16.mxu0 %v16739_v24  ;;  %v16787_v22 = vld [vmem:[%s17784_s12 + $0x136c] ss:$16 sps:$4 sm:$0xff]   ;;  %v16785_v24 = vld [vmem:[%s17784_s12 + $0x1368] ss:$16 sps:$4 sm:$0xff]  }
 0x4cc   : > { %12296 = vmatprep.subr.bf16.mxu1 %v16742_v55  ;;  %v16790_v15 = vld [vmem:[%s17784_s12 + $0x156c] ss:$16 sps:$4 sm:$0xff]   ;;  %v16788_v55 = vld [vmem:[%s17784_s12 + $0x1568] ss:$16 sps:$4 sm:$0xff]  }
 0x4ce   : > { %12256 = vmatpush1.bf16.msra.mxu0 %v16737_v34  ;;  %v16793_v34 = vld [vmem:[%s17784_s12 + $0x134c] ss:$16 sps:$4 sm:$0xff]  }
 0x4cf   : > { %12297 = vmatpush1.bf16.msra.mxu1 %v16740_v20  ;;  %12257 = vmatprep.subr.bf16.mxu0 %v16745_v10  ;;  %v16796_v20 = vld [vmem:[%s17784_s12 + $0x154c] ss:$16 sps:$4 sm:$0xff]   ;;  %v16791_v10 = vld [vmem:[%s17784_s12 + $0x1348] ss:$16 sps:$4 sm:$0xff]  }
 0x4d0   : > { %12298 = vmatprep.subr.bf16.mxu1 %v16748_v44  ;;  %v16794_v44 = vld [vmem:[%s17784_s12 + $0x1548] ss:$16 sps:$4 sm:$0xff]  }
 0x4d2   : > { %12258 = vmatpush1.bf16.msra.mxu0 %v16743_v3  ;;  %v16799_v3 = vld [vmem:[%s17784_s12 + $0x132c] ss:$16 sps:$4 sm:$0xff]  }
 0x4d3   : > { %12299 = vmatpush1.bf16.msra.mxu1 %v16746_v56  ;;  %12259 = vmatprep.subr.bf16.mxu0 %v16751_v21  ;;  %v16802_v56 = vld [vmem:[%s17784_s12 + $0x152c] ss:$16 sps:$4 sm:$0xff]   ;;  %v16797_v21 = vld [vmem:[%s17784_s12 + $0x1328] ss:$16 sps:$4 sm:$0xff]  }
 0x4d4   : > { %12300 = vmatprep.subr.bf16.mxu1 %v16754_v31  ;;  %v16800_v31 = vld [vmem:[%s17784_s12 + $0x1528] ss:$16 sps:$4 sm:$0xff]  }
 0x4d6   : > { %12260 = vmatpush1.bf16.msra.mxu0 %v16749_v17  ;;  %v16805_v17 = vld [vmem:[%s17784_s12 + $0x130c] ss:$16 sps:$4 sm:$0xff]  }
 0x4d7   : > { %12301 = vmatpush1.bf16.msra.mxu1 %v16752_v58  ;;  %12261 = vmatprep.subr.bf16.mxu0 %v16757_v27  ;;  %v16808_v58 = vld [vmem:[%s17784_s12 + $0x150c] ss:$16 sps:$4 sm:$0xff]   ;;  %v16803_v27 = vld [vmem:[%s17784_s12 + $0x1308] ss:$16 sps:$4 sm:$0xff]  }
 0x4d8   : > { %12302 = vmatprep.subr.bf16.mxu1 %v16760_v33  ;;  %v16806_v33 = vld [vmem:[%s17784_s12 + $0x1508] ss:$16 sps:$4 sm:$0xff]  }
 0x4da   : > { %12262 = vmatpush1.bf16.msra.mxu0 %v16755_v49  ;;  %v16811_v49 = vld [vmem:[%s17784_s12 + $0x16ec] ss:$16 sps:$4 sm:$0xff]  }
 0x4db   : > { %12303 = vmatpush1.bf16.msra.mxu1 %v16758_v8  ;;  %12263 = vmatprep.subr.bf16.mxu0 %v16763_v51  ;;  %v16814_v8 = vld [vmem:[%s17784_s12 + $0x18ec] ss:$16 sps:$4 sm:$0xff]   ;;  %v16809_v51 = vld [vmem:[%s17784_s12 + $0x16e8] ss:$16 sps:$4 sm:$0xff]  }
 0x4dc   : > { %12304 = vmatprep.subr.bf16.mxu1 %v16766_v11  ;;  %v16812_v11 = vld [vmem:[%s17784_s12 + $0x18e8] ss:$16 sps:$4 sm:$0xff]  }
 0x4de   : > { %12264 = vmatpush2.bf16.msra.mxu0 %v16761_v41  ;;  %v16817_v41 = vld [vmem:[%s17784_s12 + $0x16cc] ss:$16 sps:$4 sm:$0xff]  }
 0x4df   : > { %12305 = vmatpush2.bf16.msra.mxu1 %v16764_v30  ;;  %12265 = vmatprep.subr.bf16.mxu0 %v16769_v59  ;;  %v16820_v30 = vld [vmem:[%s17784_s12 + $0x18cc] ss:$16 sps:$4 sm:$0xff]  }
 0x4e0   : > { %12306 = vmatprep.subr.bf16.mxu1 %v16772_v13 }
 0x4e2   : > { %12266 = vmatpush2.bf16.msra.mxu0 %v16767_v16 }
 0x4e3   : > { %12307 = vmatpush2.bf16.msra.mxu1 %v16770_v4  ;;  %12267 = vmatprep.subr.bf16.mxu0 %v16775_v52  ;;  %v16815_v4 = vld [vmem:[%s17784_s12 + $0x16c8] ss:$16 sps:$4 sm:$0xff]  }
 0x4e4   : > { %12308 = vmatprep.subr.bf16.mxu1 %v16778_v6  ;;  %v16818_v52 = vld [vmem:[%s17784_s12 + $0x18c8] ss:$16 sps:$4 sm:$0xff]  }
 0x4e6   : > { %12268 = vmatpush2.bf16.msra.mxu0 %v16773_v35 }
 0x4e7   : > { %12309 = vmatpush2.bf16.msra.mxu1 %v16776_v50  ;;  %12269 = vmatprep.subr.bf16.mxu0 %v16781_v5  ;;  %v16823_v50 = vld [vmem:[%s17784_s12 + $0x16ac] ss:$16 sps:$4 sm:$0xff]  }
 0x4e8   : > { %12310 = vmatprep.subr.bf16.mxu1 %v16784_v38  ;;  %v16826_v5 = vld [vmem:[%s17784_s12 + $0x18ac] ss:$16 sps:$4 sm:$0xff]  }
 0x4ea   : > { %12270 = vmatpush2.bf16.msra.mxu0 %v16779_v12 }
 0x4eb   : > { %12311 = vmatpush2.bf16.msra.mxu1 %v16782_v63  ;;  %12271 = vmatprep.subr.bf16.mxu0 %v16787_v22  ;;  %v16821_v63 = vld [vmem:[%s17784_s12 + $0x16a8] ss:$16 sps:$4 sm:$0xff]  }
 0x4ec   : > { %12312 = vmatprep.subr.bf16.mxu1 %v16790_v15  ;;  %v16824_v22 = vld [vmem:[%s17784_s12 + $0x18a8] ss:$16 sps:$4 sm:$0xff]  }
 0x4ee   : > { %12272 = vmatpush2.bf16.msra.mxu0 %v16785_v24 }
 0x4ef   : > { %12313 = vmatpush2.bf16.msra.mxu1 %v16788_v55  ;;  %12273 = vmatprep.subr.bf16.mxu0 %v16793_v34  ;;  %v16830_v55 = vld [vmem:[%s17784_s12 + $0x1888] ss:$16 sps:$4 sm:$0xff]   ;;  %v16835_v34 = vld [vmem:[%s17784_s12 + $0x166c] ss:$16 sps:$4 sm:$0xff]  }
 0x4f0   : > { %12314 = vmatprep.subr.bf16.mxu1 %v16796_v20  ;;  %v16838_v20 = vld [vmem:[%s17784_s12 + $0x186c] ss:$16 sps:$4 sm:$0xff]  }
 0x4f2   : > { %12274 = vmatpush2.bf16.msra.mxu0 %v16791_v10  ;;  %v16833_v10 = vld [vmem:[%s17784_s12 + $0x1668] ss:$16 sps:$4 sm:$0xff]  }
 0x4f3   : > { %12315 = vmatpush2.bf16.msra.mxu1 %v16794_v44  ;;  %12275 = vmatprep.subr.bf16.mxu0 %v16799_v3  ;;  %v16836_v44 = vld [vmem:[%s17784_s12 + $0x1868] ss:$16 sps:$4 sm:$0xff]   ;;  %v16841_v3 = vld [vmem:[%s17784_s12 + $0x164c] ss:$16 sps:$4 sm:$0xff]  }
 0x4f4   : > { %12316 = vmatprep.subr.bf16.mxu1 %v16802_v56  ;;  %v16844_v56 = vld [vmem:[%s17784_s12 + $0x184c] ss:$16 sps:$4 sm:$0xff]  }
 0x4f6   : > { %12276 = vmatpush2.bf16.msra.mxu0 %v16797_v21  ;;  %v16839_v21 = vld [vmem:[%s17784_s12 + $0x1648] ss:$16 sps:$4 sm:$0xff]  }
 0x4f7   : > { %12317 = vmatpush2.bf16.msra.mxu1 %v16800_v31  ;;  %12277 = vmatprep.subr.bf16.mxu0 %v16805_v17  ;;  %v16842_v31 = vld [vmem:[%s17784_s12 + $0x1848] ss:$16 sps:$4 sm:$0xff]   ;;  %v16847_v17 = vld [vmem:[%s17784_s12 + $0x162c] ss:$16 sps:$4 sm:$0xff]  }
 0x4f8   : > { %12318 = vmatprep.subr.bf16.mxu1 %v16808_v58  ;;  %v16850_v58 = vld [vmem:[%s17784_s12 + $0x182c] ss:$16 sps:$4 sm:$0xff]  }
 0x4fa   : > { %12278 = vmatpush2.bf16.msra.mxu0 %v16803_v27  ;;  %v16845_v27 = vld [vmem:[%s17784_s12 + $0x1628] ss:$16 sps:$4 sm:$0xff]  }
 0x4fb   : > { %12319 = vmatpush2.bf16.msra.mxu1 %v16806_v33  ;;  %12329 = vmatprep.subr.bf16.mxu0 %v16811_v49  ;;  %v16848_v33 = vld [vmem:[%s17784_s12 + $0x1828] ss:$16 sps:$4 sm:$0xff]   ;;  %v16853_v49 = vld [vmem:[%s17784_s12 + $0x160c] ss:$16 sps:$4 sm:$0xff]  }
 0x4fc   : > { %12370 = vmatprep.subr.bf16.mxu1 %v16814_v8  ;;  %v16856_v8 = vld [vmem:[%s17784_s12 + $0x180c] ss:$16 sps:$4 sm:$0xff]  }
 0x4fd   : > { %v12035_v59 = vpop.f32.mrf.mxu0  ;;  %12280 = vmatmul.mubr.bf16.vlgmr.msra.gmra.mxu0 %v18216_v54 }
 0x4fe   : > { %v12076_v13 = vpop.f32.mrf.mxu1  ;;  %12321 = vmatmul.mubr.bf16.vlgmr.msra.gmra.mxu1 %v18300_v47  ;;  %v12036_v16 = vadd.f32 %v12035_v59, %v19309_v28  ;;  %12330 = vmatpush1.bf16.msra.mxu0 %v16809_v51  ;;  %v16851_v51 = vld [vmem:[%s17784_s12 + $0x1608] ss:$16 sps:$4 sm:$0xff]  }
 0x4ff   : > { %12371 = vmatpush1.bf16.msra.mxu1 %v16812_v11  ;;  %v12037_v6 = vpop.f32.mrf.mxu0  ;;  %12331 = vmatprep.subr.bf16.mxu0 %v16817_v41  ;;  %v16854_v11 = vld [vmem:[%s17784_s12 + $0x1808] ss:$16 sps:$4 sm:$0xff]   ;;  %v16859_v41 = vld [vmem:[%s17784_s12 + $0x17ec] ss:$16 sps:$4 sm:$0xff]  }
 0x500   : > { %v12078_v35 = vpop.f32.mrf.mxu1  ;;  %12372 = vmatprep.subr.bf16.mxu1 %v16820_v30  ;;  %v19383_v38 = vadd.f32 %v12076_v13, %v12036_v16  ;;  %v12038_v54 = vadd.f32 %v12037_v6, %v19314_v9  ;;  %12361 = vmatprep.mubr.bf16.mxu0 %v18228_v0  ;;  %v16829_v0 = vld [vmem:[%s17784_s12 + $0x168c] ss:$16 sps:$4 sm:$0xff]   ;;  %v16827_v9 = vld [vmem:[%s17784_s12 + $0x1688] ss:$16 sps:$4 sm:$0xff]  }
 0x501   : > { %12402 = vmatprep.mubr.bf16.mxu1 %v18312_v1  ;;  %v12039_v47 = vpop.f32.mrf.mxu0  ;;  %v16832_v1 = vld [vmem:[%s17784_s12 + $0x188c] ss:$16 sps:$4 sm:$0xff]   ;;  %v16857_v59 = vld [vmem:[%s17784_s12 + $0x17e8] ss:$16 sps:$4 sm:$0xff]  }
 0x502   : > { %v12080_v28 = vpop.f32.mrf.mxu1  ;;  %v19388_v12 = vadd.f32 %v12078_v35, %v12038_v54  ;;  %12332 = vmatpush1.bf16.msra.mxu0 %v16815_v4  ;;  %v16862_v30 = vld [vmem:[%s17784_s12 + $0x19ec] ss:$16 sps:$4 sm:$0xff]   ;;  %v16860_v13 = vld [vmem:[%s17784_s12 + $0x19e8] ss:$16 sps:$4 sm:$0xff]  }
 0x503   : > { %12373 = vmatpush1.bf16.msra.mxu1 %v16818_v52  ;;  %v12040_v15 = vpop.f32.mrf.mxu0  ;;  %12333 = vmatprep.subr.bf16.mxu0 %v16823_v50  ;;  %v16865_v16 = vld [vmem:[%s17784_s12 + $0x17cc] ss:$16 sps:$4 sm:$0xff]   ;;  %v16863_v52 = vld [vmem:[%s17784_s12 + $0x17c8] ss:$16 sps:$4 sm:$0xff]  }
 0x504   : > { %v12081_v24 = vpop.f32.mrf.mxu1  ;;  %12374 = vmatprep.subr.bf16.mxu1 %v16826_v5  ;;  %v16868_v4 = vld [vmem:[%s17784_s12 + $0x19cc] ss:$16 sps:$4 sm:$0xff]   ;;  %v16866_v6 = vld [vmem:[%s17784_s12 + $0x19c8] ss:$16 sps:$4 sm:$0xff]  }
 0x505   : > { %v16871_v35 = vld [vmem:[%s17784_s12 + $0x17ac] ss:$16 sps:$4 sm:$0xff]   ;;  %v16869_v5 = vld [vmem:[%s17784_s12 + $0x17a8] ss:$16 sps:$4 sm:$0xff]  }
 0x506   : > { %12334 = vmatpush1.bf16.msra.mxu0 %v16821_v63  ;;  %v16874_v50 = vld [vmem:[%s17784_s12 + $0x19ac] ss:$16 sps:$4 sm:$0xff]   ;;  %v16872_v54 = vld [vmem:[%s17784_s12 + $0x19a8] ss:$16 sps:$4 sm:$0xff]  }
 0x507   : > { %12375 = vmatpush1.bf16.msra.mxu1 %v16824_v22  ;;  %12335 = vmatprep.subr.bf16.mxu0 %v16829_v0  ;;  %v16877_v47 = vld [vmem:[%s17784_s12 + $0x178c] ss:$16 sps:$4 sm:$0xff]   ;;  %v16875_v63 = vld [vmem:[%s17784_s12 + $0x1788] ss:$16 sps:$4 sm:$0xff]  }
 0x508   : > { %12376 = vmatprep.subr.bf16.mxu1 %v16832_v1  ;;  %v16880_v28 = vld [vmem:[%s17784_s12 + $0x198c] ss:$16 sps:$4 sm:$0xff]   ;;  %v16878_v22 = vld [vmem:[%s17784_s12 + $0x1988] ss:$16 sps:$4 sm:$0xff]  }
 0x509   : > { %v16883_v15 = vld [vmem:[%s17784_s12 + $0x176c] ss:$16 sps:$4 sm:$0xff]   ;;  %v16881_v0 = vld [vmem:[%s17784_s12 + $0x1768] ss:$16 sps:$4 sm:$0xff]  }
 0x50a   : > { %12336 = vmatpush1.bf16.msra.mxu0 %v16827_v9  ;;  %v16886_v24 = vld [vmem:[%s17784_s12 + $0x196c] ss:$16 sps:$4 sm:$0xff]   ;;  %v16884_v1 = vld [vmem:[%s17784_s12 + $0x1968] ss:$16 sps:$4 sm:$0xff]  }
 0x50b   : > { %12377 = vmatpush1.bf16.msra.mxu1 %v16830_v55  ;;  %12337 = vmatprep.subr.bf16.mxu0 %v16835_v34  ;;  %v16889_v9 = vld [vmem:[%s17784_s12 + $0x174c] ss:$16 sps:$4 sm:$0xff]   ;;  %v16887_v34 = vld [vmem:[%s17784_s12 + $0x1748] ss:$16 sps:$4 sm:$0xff]  }
 0x50c   : > { %12378 = vmatprep.subr.bf16.mxu1 %v16838_v20  ;;  %v16892_v55 = vld [vmem:[%s17784_s12 + $0x194c] ss:$16 sps:$4 sm:$0xff]   ;;  %v16890_v20 = vld [vmem:[%s17784_s12 + $0x1948] ss:$16 sps:$4 sm:$0xff]  }
 0x50e   : > { %12338 = vmatpush1.bf16.msra.mxu0 %v16833_v10  ;;  %v16895_v10 = vld [vmem:[%s17784_s12 + $0x172c] ss:$16 sps:$4 sm:$0xff]  }
 0x50f   : > { %12379 = vmatpush1.bf16.msra.mxu1 %v16836_v44  ;;  %12339 = vmatprep.subr.bf16.mxu0 %v16841_v3  ;;  %v16898_v44 = vld [vmem:[%s17784_s12 + $0x192c] ss:$16 sps:$4 sm:$0xff]   ;;  %v16893_v3 = vld [vmem:[%s17784_s12 + $0x1728] ss:$16 sps:$4 sm:$0xff]  }
 0x510   : > { %12380 = vmatprep.subr.bf16.mxu1 %v16844_v56  ;;  %v16896_v56 = vld [vmem:[%s17784_s12 + $0x1928] ss:$16 sps:$4 sm:$0xff]  }
 0x512   : > { %12340 = vmatpush1.bf16.msra.mxu0 %v16839_v21  ;;  %v16901_v21 = vld [vmem:[%s17784_s12 + $0x170c] ss:$16 sps:$4 sm:$0xff]  }
 0x513   : > { %12381 = vmatpush1.bf16.msra.mxu1 %v16842_v31  ;;  %12341 = vmatprep.subr.bf16.mxu0 %v16847_v17  ;;  %v16904_v31 = vld [vmem:[%s17784_s12 + $0x190c] ss:$16 sps:$4 sm:$0xff]   ;;  %v16899_v17 = vld [vmem:[%s17784_s12 + $0x1708] ss:$16 sps:$4 sm:$0xff]  }
 0x514   : > { %12382 = vmatprep.subr.bf16.mxu1 %v16850_v58  ;;  %v16902_v58 = vld [vmem:[%s17784_s12 + $0x1908] ss:$16 sps:$4 sm:$0xff]  }
 0x516   : > { %12342 = vmatpush1.bf16.msra.mxu0 %v16845_v27  ;;  %v16907_v27 = vld [vmem:[%s17784_s12 + $0x1aec] ss:$16 sps:$4 sm:$0xff]  }
 0x517   : > { %12383 = vmatpush1.bf16.msra.mxu1 %v16848_v33  ;;  %12343 = vmatprep.subr.bf16.mxu0 %v16853_v49  ;;  %v16910_v33 = vld [vmem:[%s17784_s12 + $0x1cec] ss:$16 sps:$4 sm:$0xff]   ;;  %v16905_v49 = vld [vmem:[%s17784_s12 + $0x1ae8] ss:$16 sps:$4 sm:$0xff]  }
 0x518   : > { %12384 = vmatprep.subr.bf16.mxu1 %v16856_v8  ;;  %v16908_v8 = vld [vmem:[%s17784_s12 + $0x1ce8] ss:$16 sps:$4 sm:$0xff]  }
 0x51a   : > { %12344 = vmatpush1.bf16.msra.mxu0 %v16851_v51  ;;  %v16913_v51 = vld [vmem:[%s17784_s12 + $0x1acc] ss:$16 sps:$4 sm:$0xff]  }
 0x51b   : > { %12385 = vmatpush1.bf16.msra.mxu1 %v16854_v11  ;;  %12345 = vmatprep.subr.bf16.mxu0 %v16859_v41  ;;  %v16916_v11 = vld [vmem:[%s17784_s12 + $0x1ccc] ss:$16 sps:$4 sm:$0xff]  }
 0x51c   : > { %12386 = vmatprep.subr.bf16.mxu1 %v16862_v30 }
 0x51e   : > { %12346 = vmatpush2.bf16.msra.mxu0 %v16857_v59 }
 0x51f   : > { %12387 = vmatpush2.bf16.msra.mxu1 %v16860_v13  ;;  %12347 = vmatprep.subr.bf16.mxu0 %v16865_v16  ;;  %v16911_v13 = vld [vmem:[%s17784_s12 + $0x1ac8] ss:$16 sps:$4 sm:$0xff]  }
 0x520   : > { %12388 = vmatprep.subr.bf16.mxu1 %v16868_v4  ;;  %v16914_v16 = vld [vmem:[%s17784_s12 + $0x1cc8] ss:$16 sps:$4 sm:$0xff]  }
 0x522   : > { %12348 = vmatpush2.bf16.msra.mxu0 %v16863_v52 }
 0x523   : > { %12389 = vmatpush2.bf16.msra.mxu1 %v16866_v6  ;;  %12349 = vmatprep.subr.bf16.mxu0 %v16871_v35  ;;  %v16919_v6 = vld [vmem:[%s17784_s12 + $0x1aac] ss:$16 sps:$4 sm:$0xff]  }
 0x524   : > { %12390 = vmatprep.subr.bf16.mxu1 %v16874_v50  ;;  %v16922_v35 = vld [vmem:[%s17784_s12 + $0x1cac] ss:$16 sps:$4 sm:$0xff]  }
 0x526   : > { %12350 = vmatpush2.bf16.msra.mxu0 %v16869_v5 }
 0x527   : > { %12391 = vmatpush2.bf16.msra.mxu1 %v16872_v54  ;;  %12351 = vmatprep.subr.bf16.mxu0 %v16877_v47  ;;  %v16917_v54 = vld [vmem:[%s17784_s12 + $0x1aa8] ss:$16 sps:$4 sm:$0xff]  }
 0x528   : > { %12392 = vmatprep.subr.bf16.mxu1 %v16880_v28  ;;  %v16920_v47 = vld [vmem:[%s17784_s12 + $0x1ca8] ss:$16 sps:$4 sm:$0xff]  }
 0x52a   : > { %12352 = vmatpush2.bf16.msra.mxu0 %v16875_v63 }
 0x52b   : > { %12393 = vmatpush2.bf16.msra.mxu1 %v16878_v22  ;;  %12353 = vmatprep.subr.bf16.mxu0 %v16883_v15  ;;  %v16926_v22 = vld [vmem:[%s17784_s12 + $0x1c88] ss:$16 sps:$4 sm:$0xff]   ;;  %v16931_v15 = vld [vmem:[%s17784_s12 + $0x1a6c] ss:$16 sps:$4 sm:$0xff]  }
 0x52c   : > { %12394 = vmatprep.subr.bf16.mxu1 %v16886_v24  ;;  %v16934_v24 = vld [vmem:[%s17784_s12 + $0x1c6c] ss:$16 sps:$4 sm:$0xff]  }
 0x52e   : > { %12354 = vmatpush2.bf16.msra.mxu0 %v16881_v0  ;;  %v16929_v0 = vld [vmem:[%s17784_s12 + $0x1a68] ss:$16 sps:$4 sm:$0xff]  }
 0x52f   : > { %12395 = vmatpush2.bf16.msra.mxu1 %v16884_v1  ;;  %12355 = vmatprep.subr.bf16.mxu0 %v16889_v9  ;;  %v16932_v1 = vld [vmem:[%s17784_s12 + $0x1c68] ss:$16 sps:$4 sm:$0xff]   ;;  %v16937_v9 = vld [vmem:[%s17784_s12 + $0x1a4c] ss:$16 sps:$4 sm:$0xff]  }
 0x530   : > { %12396 = vmatprep.subr.bf16.mxu1 %v16892_v55  ;;  %v16940_v55 = vld [vmem:[%s17784_s12 + $0x1c4c] ss:$16 sps:$4 sm:$0xff]  }
 0x532   : > { %12356 = vmatpush2.bf16.msra.mxu0 %v16887_v34  ;;  %v16935_v34 = vld [vmem:[%s17784_s12 + $0x1a48] ss:$16 sps:$4 sm:$0xff]  }
 0x533   : > { %12397 = vmatpush2.bf16.msra.mxu1 %v16890_v20  ;;  %12357 = vmatprep.subr.bf16.mxu0 %v16895_v10  ;;  %v16938_v20 = vld [vmem:[%s17784_s12 + $0x1c48] ss:$16 sps:$4 sm:$0xff]   ;;  %v16943_v10 = vld [vmem:[%s17784_s12 + $0x1a2c] ss:$16 sps:$4 sm:$0xff]  }
 0x534   : > { %12398 = vmatprep.subr.bf16.mxu1 %v16898_v44  ;;  %v16946_v44 = vld [vmem:[%s17784_s12 + $0x1c2c] ss:$16 sps:$4 sm:$0xff]  }
 0x536   : > { %12358 = vmatpush2.bf16.msra.mxu0 %v16893_v3  ;;  %v16941_v3 = vld [vmem:[%s17784_s12 + $0x1a28] ss:$16 sps:$4 sm:$0xff]  }
 0x537   : > { %12399 = vmatpush2.bf16.msra.mxu1 %v16896_v56  ;;  %12359 = vmatprep.subr.bf16.mxu0 %v16901_v21  ;;  %v16944_v56 = vld [vmem:[%s17784_s12 + $0x1c28] ss:$16 sps:$4 sm:$0xff]   ;;  %v16949_v21 = vld [vmem:[%s17784_s12 + $0x1a0c] ss:$16 sps:$4 sm:$0xff]  }
 0x538   : > { %12400 = vmatprep.subr.bf16.mxu1 %v16904_v31  ;;  %v16952_v31 = vld [vmem:[%s17784_s12 + $0x1c0c] ss:$16 sps:$4 sm:$0xff]  }
 0x53a   : > { %12360 = vmatpush2.bf16.msra.mxu0 %v16899_v17  ;;  %v16947_v17 = vld [vmem:[%s17784_s12 + $0x1a08] ss:$16 sps:$4 sm:$0xff]  }
 0x53b   : > { %12401 = vmatpush2.bf16.msra.mxu1 %v16902_v58  ;;  %12411 = vmatprep.subr.bf16.mxu0 %v16907_v27  ;;  %v16950_v58 = vld [vmem:[%s17784_s12 + $0x1c08] ss:$16 sps:$4 sm:$0xff]   ;;  %v16955_v27 = vld [vmem:[%s17784_s12 + $0x1bec] ss:$16 sps:$4 sm:$0xff]  }
 0x53c   : > { %12452 = vmatprep.subr.bf16.mxu1 %v16910_v33  ;;  %v16958_v33 = vld [vmem:[%s17784_s12 + $0x1dec] ss:$16 sps:$4 sm:$0xff]  }
 0x53d   : > { %v12117_v41 = vpop.f32.mrf.mxu0  ;;  %12362 = vmatmul.mubr.bf16.vlgmr.msra.gmra.mxu0 %v18302_v48 }
 0x53e   : > { %v12158_v30 = vpop.f32.mrf.mxu1  ;;  %12403 = vmatmul.mubr.bf16.vlgmr.msra.gmra.mxu1 %v18386_v61  ;;  %v12118_v59 = vadd.f32 %v12117_v41, %v19383_v38  ;;  %12412 = vmatpush1.bf16.msra.mxu0 %v16905_v49  ;;  %v16953_v49 = vld [vmem:[%s17784_s12 + $0x1be8] ss:$16 sps:$4 sm:$0xff]  }
 0x53f   : > { %12453 = vmatpush1.bf16.msra.mxu1 %v16908_v8  ;;  %v12119_v4 = vpop.f32.mrf.mxu0  ;;  %12413 = vmatprep.subr.bf16.mxu0 %v16913_v51  ;;  %v16956_v8 = vld [vmem:[%s17784_s12 + $0x1de8] ss:$16 sps:$4 sm:$0xff]   ;;  %v16961_v51 = vld [vmem:[%s17784_s12 + $0x1bcc] ss:$16 sps:$4 sm:$0xff]  }
 0x540   : > { %v12160_v52 = vpop.f32.mrf.mxu1  ;;  %12454 = vmatprep.subr.bf16.mxu1 %v16916_v11  ;;  %v19457_v50 = vadd.f32 %v12158_v30, %v12118_v59  ;;  %v12120_v48 = vadd.f32 %v12119_v4, %v19388_v12  ;;  %12443 = vmatprep.mubr.bf16.mxu0 %v18314_v2  ;;  %v16925_v2 = vld [vmem:[%s17784_s12 + $0x1a8c] ss:$16 sps:$4 sm:$0xff]   ;;  %v16923_v12 = vld [vmem:[%s17784_s12 + $0x1a88] ss:$16 sps:$4 sm:$0xff]  }
 0x541   : > { %12484 = vmatprep.mubr.bf16.mxu1 %v18398_v19  ;;  %v12121_v61 = vpop.f32.mrf.mxu0  ;;  %v16928_v19 = vld [vmem:[%s17784_s12 + $0x1c8c] ss:$16 sps:$4 sm:$0xff]   ;;  %v16959_v41 = vld [vmem:[%s17784_s12 + $0x1bc8] ss:$16 sps:$4 sm:$0xff]  }
 0x542   : > { %v12162_v38 = vpop.f32.mrf.mxu1  ;;  %v19462_v5 = vadd.f32 %v12160_v52, %v12120_v48  ;;  %12414 = vmatpush1.bf16.msra.mxu0 %v16911_v13  ;;  %v16964_v11 = vld [vmem:[%s17784_s12 + $0x1dcc] ss:$16 sps:$4 sm:$0xff]   ;;  %v16962_v30 = vld [vmem:[%s17784_s12 + $0x1dc8] ss:$16 sps:$4 sm:$0xff]  }
 0x543   : > { %12455 = vmatpush1.bf16.msra.mxu1 %v16914_v16  ;;  %v12122_v28 = vpop.f32.mrf.mxu0  ;;  %12415 = vmatprep.subr.bf16.mxu0 %v16919_v6  ;;  %v16967_v59 = vld [vmem:[%s17784_s12 + $0x1bac] ss:$16 sps:$4 sm:$0xff]   ;;  %v16965_v16 = vld [vmem:[%s17784_s12 + $0x1ba8] ss:$16 sps:$4 sm:$0xff]  }
 0x544   : > { %v12163_v63 = vpop.f32.mrf.mxu1  ;;  %12456 = vmatprep.subr.bf16.mxu1 %v16922_v35  ;;  %v16970_v13 = vld [vmem:[%s17784_s12 + $0x1dac] ss:$16 sps:$4 sm:$0xff]   ;;  %v16968_v4 = vld [vmem:[%s17784_s12 + $0x1da8] ss:$16 sps:$4 sm:$0xff]  }
 0x545   : > { %v16973_v52 = vld [vmem:[%s17784_s12 + $0x1b8c] ss:$16 sps:$4 sm:$0xff]   ;;  %v16971_v35 = vld [vmem:[%s17784_s12 + $0x1b88] ss:$16 sps:$4 sm:$0xff]  }
 0x546   : > { %12416 = vmatpush1.bf16.msra.mxu0 %v16917_v54  ;;  %v16976_v6 = vld [vmem:[%s17784_s12 + $0x1d8c] ss:$16 sps:$4 sm:$0xff]   ;;  %v16974_v48 = vld [vmem:[%s17784_s12 + $0x1d88] ss:$16 sps:$4 sm:$0xff]  }
 0x547   : > { %12457 = vmatpush1.bf16.msra.mxu1 %v16920_v47  ;;  %12417 = vmatprep.subr.bf16.mxu0 %v16925_v2  ;;  %v16979_v61 = vld [vmem:[%s17784_s12 + $0x1b6c] ss:$16 sps:$4 sm:$0xff]   ;;  %v16977_v54 = vld [vmem:[%s17784_s12 + $0x1b68] ss:$16 sps:$4 sm:$0xff]  }
 0x548   : > { %12458 = vmatprep.subr.bf16.mxu1 %v16928_v19  ;;  %v16982_v38 = vld [vmem:[%s17784_s12 + $0x1d6c] ss:$16 sps:$4 sm:$0xff]   ;;  %v16980_v47 = vld [vmem:[%s17784_s12 + $0x1d68] ss:$16 sps:$4 sm:$0xff]  }
 0x549   : > { %v16985_v28 = vld [vmem:[%s17784_s12 + $0x1b4c] ss:$16 sps:$4 sm:$0xff]   ;;  %v16983_v2 = vld [vmem:[%s17784_s12 + $0x1b48] ss:$16 sps:$4 sm:$0xff]  }
 0x54a   : > { %12418 = vmatpush1.bf16.msra.mxu0 %v16923_v12  ;;  %v16988_v63 = vld [vmem:[%s17784_s12 + $0x1d4c] ss:$16 sps:$4 sm:$0xff]   ;;  %v16986_v19 = vld [vmem:[%s17784_s12 + $0x1d48] ss:$16 sps:$4 sm:$0xff]  }
 0x54b   : > { %12459 = vmatpush1.bf16.msra.mxu1 %v16926_v22  ;;  %12419 = vmatprep.subr.bf16.mxu0 %v16931_v15  ;;  %v16991_v12 = vld [vmem:[%s17784_s12 + $0x1b2c] ss:$16 sps:$4 sm:$0xff]   ;;  %v16989_v15 = vld [vmem:[%s17784_s12 + $0x1b28] ss:$16 sps:$4 sm:$0xff]  }
 0x54c   : > { %12460 = vmatprep.subr.bf16.mxu1 %v16934_v24  ;;  %v16994_v22 = vld [vmem:[%s17784_s12 + $0x1d2c] ss:$16 sps:$4 sm:$0xff]   ;;  %v16992_v24 = vld [vmem:[%s17784_s12 + $0x1d28] ss:$16 sps:$4 sm:$0xff]  }
 0x54e   : > { %12420 = vmatpush1.bf16.msra.mxu0 %v16929_v0  ;;  %v16997_v0 = vld [vmem:[%s17784_s12 + $0x1b0c] ss:$16 sps:$4 sm:$0xff]  }
 0x54f   : > { %12461 = vmatpush1.bf16.msra.mxu1 %v16932_v1  ;;  %12421 = vmatprep.subr.bf16.mxu0 %v16937_v9  ;;  %v17000_v1 = vld [vmem:[%s17784_s12 + $0x1d0c] ss:$16 sps:$4 sm:$0xff]   ;;  %v16995_v9 = vld [vmem:[%s17784_s12 + $0x1b08] ss:$16 sps:$4 sm:$0xff]  }
 0x550   : > { %12462 = vmatprep.subr.bf16.mxu1 %v16940_v55  ;;  %v16998_v55 = vld [vmem:[%s17784_s12 + $0x1d08] ss:$16 sps:$4 sm:$0xff]  }
 0x552   : > { %12422 = vmatpush1.bf16.msra.mxu0 %v16935_v34  ;;  %v17003_v34 = vld [vmem:[%s17784_s12 + $0x1eec] ss:$16 sps:$4 sm:$0xff]  }
 0x553   : > { %12463 = vmatpush1.bf16.msra.mxu1 %v16938_v20  ;;  %12423 = vmatprep.subr.bf16.mxu0 %v16943_v10  ;;  %v17006_v20 = vld [vmem:[%s17784_s12 + $0x20ec] ss:$16 sps:$4 sm:$0xff]   ;;  %v17001_v10 = vld [vmem:[%s17784_s12 + $0x1ee8] ss:$16 sps:$4 sm:$0xff]  }
 0x554   : > { %12464 = vmatprep.subr.bf16.mxu1 %v16946_v44  ;;  %v17004_v44 = vld [vmem:[%s17784_s12 + $0x20e8] ss:$16 sps:$4 sm:$0xff]  }
 0x556   : > { %12424 = vmatpush1.bf16.msra.mxu0 %v16941_v3  ;;  %v17009_v3 = vld [vmem:[%s17784_s12 + $0x1ecc] ss:$16 sps:$4 sm:$0xff]  }
 0x557   : > { %12465 = vmatpush1.bf16.msra.mxu1 %v16944_v56  ;;  %12425 = vmatprep.subr.bf16.mxu0 %v16949_v21  ;;  %v17012_v56 = vld [vmem:[%s17784_s12 + $0x20cc] ss:$16 sps:$4 sm:$0xff]  }
 0x558   : > { %12466 = vmatprep.subr.bf16.mxu1 %v16952_v31 }
 0x55a   : > { %12426 = vmatpush1.bf16.msra.mxu0 %v16947_v17 }
 0x55b   : > { %12467 = vmatpush1.bf16.msra.mxu1 %v16950_v58  ;;  %12427 = vmatprep.subr.bf16.mxu0 %v16955_v27  ;;  %v17007_v58 = vld [vmem:[%s17784_s12 + $0x1ec8] ss:$16 sps:$4 sm:$0xff]  }
 0x55c   : > { %12468 = vmatprep.subr.bf16.mxu1 %v16958_v33  ;;  %v17010_v27 = vld [vmem:[%s17784_s12 + $0x20c8] ss:$16 sps:$4 sm:$0xff]  }
 0x55e   : > { %12428 = vmatpush2.bf16.msra.mxu0 %v16953_v49 }
 0x55f   : > { %12469 = vmatpush2.bf16.msra.mxu1 %v16956_v8  ;;  %12429 = vmatprep.subr.bf16.mxu0 %v16961_v51  ;;  %v17015_v8 = vld [vmem:[%s17784_s12 + $0x1eac] ss:$16 sps:$4 sm:$0xff]  }
 0x560   : > { %12470 = vmatprep.subr.bf16.mxu1 %v16964_v11  ;;  %v17018_v51 = vld [vmem:[%s17784_s12 + $0x20ac] ss:$16 sps:$4 sm:$0xff]  }
 0x562   : > { %12430 = vmatpush2.bf16.msra.mxu0 %v16959_v41 }
 0x563   : > { %12471 = vmatpush2.bf16.msra.mxu1 %v16962_v30  ;;  %12431 = vmatprep.subr.bf16.mxu0 %v16967_v59  ;;  %v17013_v30 = vld [vmem:[%s17784_s12 + $0x1ea8] ss:$16 sps:$4 sm:$0xff]  }
 0x564   : > { %12472 = vmatprep.subr.bf16.mxu1 %v16970_v13  ;;  %v17016_v59 = vld [vmem:[%s17784_s12 + $0x20a8] ss:$16 sps:$4 sm:$0xff]  }
 0x566   : > { %12432 = vmatpush2.bf16.msra.mxu0 %v16965_v16 }
 0x567   : > { %12473 = vmatpush2.bf16.msra.mxu1 %v16968_v4  ;;  %12433 = vmatprep.subr.bf16.mxu0 %v16973_v52  ;;  %v17022_v4 = vld [vmem:[%s17784_s12 + $0x2088] ss:$16 sps:$4 sm:$0xff]   ;;  %v17027_v52 = vld [vmem:[%s17784_s12 + $0x1e6c] ss:$16 sps:$4 sm:$0xff]  }
 0x568   : > { %12474 = vmatprep.subr.bf16.mxu1 %v16976_v6  ;;  %v17030_v6 = vld [vmem:[%s17784_s12 + $0x206c] ss:$16 sps:$4 sm:$0xff]  }
 0x56a   : > { %12434 = vmatpush2.bf16.msra.mxu0 %v16971_v35  ;;  %v17025_v35 = vld [vmem:[%s17784_s12 + $0x1e68] ss:$16 sps:$4 sm:$0xff]  }
 0x56b   : > { %12475 = vmatpush2.bf16.msra.mxu1 %v16974_v48  ;;  %12435 = vmatprep.subr.bf16.mxu0 %v16979_v61  ;;  %v17028_v48 = vld [vmem:[%s17784_s12 + $0x2068] ss:$16 sps:$4 sm:$0xff]   ;;  %v17033_v61 = vld [vmem:[%s17784_s12 + $0x1e4c] ss:$16 sps:$4 sm:$0xff]  }
 0x56c   : > { %12476 = vmatprep.subr.bf16.mxu1 %v16982_v38  ;;  %v17036_v38 = vld [vmem:[%s17784_s12 + $0x204c] ss:$16 sps:$4 sm:$0xff]  }
 0x56e   : > { %12436 = vmatpush2.bf16.msra.mxu0 %v16977_v54  ;;  %v17031_v54 = vld [vmem:[%s17784_s12 + $0x1e48] ss:$16 sps:$4 sm:$0xff]  }
 0x56f   : > { %12477 = vmatpush2.bf16.msra.mxu1 %v16980_v47  ;;  %12437 = vmatprep.subr.bf16.mxu0 %v16985_v28  ;;  %v17034_v47 = vld [vmem:[%s17784_s12 + $0x2048] ss:$16 sps:$4 sm:$0xff]   ;;  %v17039_v28 = vld [vmem:[%s17784_s12 + $0x1e2c] ss:$16 sps:$4 sm:$0xff]  }
 0x570   : > { %12478 = vmatprep.subr.bf16.mxu1 %v16988_v63  ;;  %v17042_v63 = vld [vmem:[%s17784_s12 + $0x202c] ss:$16 sps:$4 sm:$0xff]  }
 0x572   : > { %12438 = vmatpush2.bf16.msra.mxu0 %v16983_v2  ;;  %v17037_v2 = vld [vmem:[%s17784_s12 + $0x1e28] ss:$16 sps:$4 sm:$0xff]  }
 0x573   : > { %12479 = vmatpush2.bf16.msra.mxu1 %v16986_v19  ;;  %12439 = vmatprep.subr.bf16.mxu0 %v16991_v12  ;;  %v17040_v19 = vld [vmem:[%s17784_s12 + $0x2028] ss:$16 sps:$4 sm:$0xff]   ;;  %v17045_v12 = vld [vmem:[%s17784_s12 + $0x1e0c] ss:$16 sps:$4 sm:$0xff]  }
 0x574   : > { %12480 = vmatprep.subr.bf16.mxu1 %v16994_v22  ;;  %v17048_v22 = vld [vmem:[%s17784_s12 + $0x200c] ss:$16 sps:$4 sm:$0xff]  }
 0x576   : > { %12440 = vmatpush2.bf16.msra.mxu0 %v16989_v15  ;;  %v17043_v15 = vld [vmem:[%s17784_s12 + $0x1e08] ss:$16 sps:$4 sm:$0xff]  }
 0x577   : > { %12481 = vmatpush2.bf16.msra.mxu1 %v16992_v24  ;;  %12441 = vmatprep.subr.bf16.mxu0 %v16997_v0  ;;  %v17046_v24 = vld [vmem:[%s17784_s12 + $0x2008] ss:$16 sps:$4 sm:$0xff]   ;;  %v17051_v0 = vld [vmem:[%s17784_s12 + $0x1fec] ss:$16 sps:$4 sm:$0xff]  }
 0x578   : > { %12482 = vmatprep.subr.bf16.mxu1 %v17000_v1  ;;  %v17054_v1 = vld [vmem:[%s17784_s12 + $0x21ec] ss:$16 sps:$4 sm:$0xff]  }
 0x57a   : > { %12442 = vmatpush2.bf16.msra.mxu0 %v16995_v9  ;;  %v17049_v9 = vld [vmem:[%s17784_s12 + $0x1fe8] ss:$16 sps:$4 sm:$0xff]  }
 0x57b   : > { %12483 = vmatpush2.bf16.msra.mxu1 %v16998_v55  ;;  %12493 = vmatprep.subr.bf16.mxu0 %v17003_v34  ;;  %v17052_v55 = vld [vmem:[%s17784_s12 + $0x21e8] ss:$16 sps:$4 sm:$0xff]   ;;  %v17057_v34 = vld [vmem:[%s17784_s12 + $0x1fcc] ss:$16 sps:$4 sm:$0xff]  }
 0x57c   : > { %12534 = vmatprep.subr.bf16.mxu1 %v17006_v20  ;;  %v17060_v20 = vld [vmem:[%s17784_s12 + $0x21cc] ss:$16 sps:$4 sm:$0xff]  }
 0x57d   : > { %v12199_v21 = vpop.f32.mrf.mxu0  ;;  %12444 = vmatmul.mubr.bf16.vlgmr.msra.gmra.mxu0 %v18388_v62 }
 0x57e   : > { %v12240_v31 = vpop.f32.mrf.mxu1  ;;  %12485 = vmatmul.mubr.bf16.vlgmr.msra.gmra.mxu1 %v18472_v29  ;;  %v12200_v17 = vadd.f32 %v12199_v21, %v19457_v50  ;;  %12494 = vmatpush1.bf16.msra.mxu0 %v17001_v10  ;;  %v17055_v10 = vld [vmem:[%s17784_s12 + $0x1fc8] ss:$16 sps:$4 sm:$0xff]  }
 0x57f   : > { %12535 = vmatpush1.bf16.msra.mxu1 %v17004_v44  ;;  %v12201_v33 = vpop.f32.mrf.mxu0  ;;  %12495 = vmatprep.subr.bf16.mxu0 %v17009_v3  ;;  %v17058_v44 = vld [vmem:[%s17784_s12 + $0x21c8] ss:$16 sps:$4 sm:$0xff]   ;;  %v17063_v3 = vld [vmem:[%s17784_s12 + $0x1fac] ss:$16 sps:$4 sm:$0xff]  }
 0x580   : > { %v12242_v49 = vpop.f32.mrf.mxu1  ;;  %12536 = vmatprep.subr.bf16.mxu1 %v17012_v56  ;;  %v19531_v11 = vadd.f32 %v12240_v31, %v12200_v17  ;;  %v12202_v62 = vadd.f32 %v12201_v33, %v19462_v5  ;;  %12525 = vmatprep.mubr.bf16.mxu0 %v18400_v23  ;;  %v17021_v23 = vld [vmem:[%s17784_s12 + $0x1e8c] ss:$16 sps:$4 sm:$0xff]   ;;  %v17019_v5 = vld [vmem:[%s17784_s12 + $0x1e88] ss:$16 sps:$4 sm:$0xff]  }
 0x581   : > { %12566 = vmatprep.mubr.bf16.mxu1 %v18484_v45  ;;  %v12203_v29 = vpop.f32.mrf.mxu0  ;;  %v17024_v45 = vld [vmem:[%s17784_s12 + $0x208c] ss:$16 sps:$4 sm:$0xff]   ;;  %v17061_v21 = vld [vmem:[%s17784_s12 + $0x1fa8] ss:$16 sps:$4 sm:$0xff]  }
 0x582   : > { %v12244_v50 = vpop.f32.mrf.mxu1  ;;  %v19536_v41 = vadd.f32 %v12242_v49, %v12202_v62  ;;  %12496 = vmatpush1.bf16.msra.mxu0 %v17007_v58  ;;  %v17066_v56 = vld [vmem:[%s17784_s12 + $0x21ac] ss:$16 sps:$4 sm:$0xff]   ;;  %v17064_v31 = vld [vmem:[%s17784_s12 + $0x21a8] ss:$16 sps:$4 sm:$0xff]  }
 0x583   : > { %12537 = vmatpush1.bf16.msra.mxu1 %v17010_v27  ;;  %v12204_v13 = vpop.f32.mrf.mxu0  ;;  %12497 = vmatprep.subr.bf16.mxu0 %v17015_v8  ;;  %v17069_v17 = vld [vmem:[%s17784_s12 + $0x1f8c] ss:$16 sps:$4 sm:$0xff]   ;;  %v17067_v27 = vld [vmem:[%s17784_s12 + $0x1f88] ss:$16 sps:$4 sm:$0xff]  }
 0x584   : > { %v12245_v16 = vpop.f32.mrf.mxu1  ;;  %12538 = vmatprep.subr.bf16.mxu1 %v17018_v51  ;;  %v17072_v58 = vld [vmem:[%s17784_s12 + $0x218c] ss:$16 sps:$4 sm:$0xff]   ;;  %v17070_v33 = vld [vmem:[%s17784_s12 + $0x2188] ss:$16 sps:$4 sm:$0xff]  }
 0x585   : > { %v17075_v49 = vld [vmem:[%s17784_s12 + $0x1f6c] ss:$16 sps:$4 sm:$0xff]   ;;  %v17073_v51 = vld [vmem:[%s17784_s12 + $0x1f68] ss:$16 sps:$4 sm:$0xff]  }
 0x586   : > { %12498 = vmatpush1.bf16.msra.mxu0 %v17013_v30  ;;  %v17078_v8 = vld [vmem:[%s17784_s12 + $0x216c] ss:$16 sps:$4 sm:$0xff]   ;;  %v17076_v62 = vld [vmem:[%s17784_s12 + $0x2168] ss:$16 sps:$4 sm:$0xff]  }
 0x587   : > { %12539 = vmatpush1.bf16.msra.mxu1 %v17016_v59  ;;  %12499 = vmatprep.subr.bf16.mxu0 %v17021_v23  ;;  %v17081_v29 = vld [vmem:[%s17784_s12 + $0x1f4c] ss:$16 sps:$4 sm:$0xff]   ;;  %v17079_v30 = vld [vmem:[%s17784_s12 + $0x1f48] ss:$16 sps:$4 sm:$0xff]  }
 0x588   : > { %12540 = vmatprep.subr.bf16.mxu1 %v17024_v45  ;;  %v17084_v50 = vld [vmem:[%s17784_s12 + $0x214c] ss:$16 sps:$4 sm:$0xff]   ;;  %v17082_v59 = vld [vmem:[%s17784_s12 + $0x2148] ss:$16 sps:$4 sm:$0xff]  }
 0x589   : > { %v17087_v13 = vld [vmem:[%s17784_s12 + $0x1f2c] ss:$16 sps:$4 sm:$0xff]   ;;  %v17085_v23 = vld [vmem:[%s17784_s12 + $0x1f28] ss:$16 sps:$4 sm:$0xff]  }
 0x58a   : > { %12500 = vmatpush1.bf16.msra.mxu0 %v17019_v5  ;;  %v17090_v16 = vld [vmem:[%s17784_s12 + $0x212c] ss:$16 sps:$4 sm:$0xff]   ;;  %v17088_v45 = vld [vmem:[%s17784_s12 + $0x2128] ss:$16 sps:$4 sm:$0xff]  }
 0x58b   : > { %12541 = vmatpush1.bf16.msra.mxu1 %v17022_v4  ;;  %12501 = vmatprep.subr.bf16.mxu0 %v17027_v52  ;;  %v17093_v5 = vld [vmem:[%s17784_s12 + $0x1f0c] ss:$16 sps:$4 sm:$0xff]   ;;  %v17091_v52 = vld [vmem:[%s17784_s12 + $0x1f08] ss:$16 sps:$4 sm:$0xff]  }
 0x58c   : > { %12542 = vmatprep.subr.bf16.mxu1 %v17030_v6  ;;  %v17096_v4 = vld [vmem:[%s17784_s12 + $0x210c] ss:$16 sps:$4 sm:$0xff]   ;;  %v17094_v6 = vld [vmem:[%s17784_s12 + $0x2108] ss:$16 sps:$4 sm:$0xff]  }
 0x58e   : > { %12502 = vmatpush1.bf16.msra.mxu0 %v17025_v35  ;;  %v17099_v35 = vld [vmem:[%s17784_s12 + $0x22ec] ss:$16 sps:$4 sm:$0xff]  }
 0x58f   : > { %12543 = vmatpush1.bf16.msra.mxu1 %v17028_v48  ;;  %12503 = vmatprep.subr.bf16.mxu0 %v17033_v61  ;;  %v17102_v48 = vld [vmem:[%s17784_s12 + $0x24ec] ss:$16 sps:$4 sm:$0xff]   ;;  %v17097_v61 = vld [vmem:[%s17784_s12 + $0x22e8] ss:$16 sps:$4 sm:$0xff]  }
 0x590   : > { %12544 = vmatprep.subr.bf16.mxu1 %v17036_v38  ;;  %v17100_v38 = vld [vmem:[%s17784_s12 + $0x24e8] ss:$16 sps:$4 sm:$0xff]  }
 0x592   : > { %12504 = vmatpush1.bf16.msra.mxu0 %v17031_v54  ;;  %v17105_v54 = vld [vmem:[%s17784_s12 + $0x22cc] ss:$16 sps:$4 sm:$0xff]  }
 0x593   : > { %12545 = vmatpush1.bf16.msra.mxu1 %v17034_v47  ;;  %12505 = vmatprep.subr.bf16.mxu0 %v17039_v28  ;;  %v17108_v47 = vld [vmem:[%s17784_s12 + $0x24cc] ss:$16 sps:$4 sm:$0xff]  }
 0x594   : > { %12546 = vmatprep.subr.bf16.mxu1 %v17042_v63 }
 0x596   : > { %12506 = vmatpush1.bf16.msra.mxu0 %v17037_v2 }
 0x597   : > { %12547 = vmatpush1.bf16.msra.mxu1 %v17040_v19  ;;  %12507 = vmatprep.subr.bf16.mxu0 %v17045_v12  ;;  %v17103_v19 = vld [vmem:[%s17784_s12 + $0x22c8] ss:$16 sps:$4 sm:$0xff]  }
 0x598   : > { %12548 = vmatprep.subr.bf16.mxu1 %v17048_v22  ;;  %v17106_v12 = vld [vmem:[%s17784_s12 + $0x24c8] ss:$16 sps:$4 sm:$0xff]  }
 0x59a   : > { %12508 = vmatpush1.bf16.msra.mxu0 %v17043_v15 }
 0x59b   : > { %12549 = vmatpush1.bf16.msra.mxu1 %v17046_v24  ;;  %12509 = vmatprep.subr.bf16.mxu0 %v17051_v0  ;;  %v17111_v24 = vld [vmem:[%s17784_s12 + $0x22ac] ss:$16 sps:$4 sm:$0xff]  }
 0x59c   : > { %12550 = vmatprep.subr.bf16.mxu1 %v17054_v1  ;;  %v17114_v0 = vld [vmem:[%s17784_s12 + $0x24ac] ss:$16 sps:$4 sm:$0xff]  }
 0x59e   : > { %12510 = vmatpush2.bf16.msra.mxu0 %v17049_v9 }
 0x59f   : > { %12551 = vmatpush2.bf16.msra.mxu1 %v17052_v55  ;;  %12511 = vmatprep.subr.bf16.mxu0 %v17057_v34  ;;  %v17109_v55 = vld [vmem:[%s17784_s12 + $0x22a8] ss:$16 sps:$4 sm:$0xff]  }
 0x5a0   : > { %12552 = vmatprep.subr.bf16.mxu1 %v17060_v20  ;;  %v17112_v34 = vld [vmem:[%s17784_s12 + $0x24a8] ss:$16 sps:$4 sm:$0xff]  }
 0x5a2   : > { %12512 = vmatpush2.bf16.msra.mxu0 %v17055_v10 }
 0x5a3   : > { %12553 = vmatpush2.bf16.msra.mxu1 %v17058_v44  ;;  %12513 = vmatprep.subr.bf16.mxu0 %v17063_v3  ;;  %v17118_v44 = vld [vmem:[%s17784_s12 + $0x2488] ss:$16 sps:$4 sm:$0xff]   ;;  %v17123_v3 = vld [vmem:[%s17784_s12 + $0x226c] ss:$16 sps:$4 sm:$0xff]  }
 0x5a4   : > { %12554 = vmatprep.subr.bf16.mxu1 %v17066_v56  ;;  %v17126_v56 = vld [vmem:[%s17784_s12 + $0x246c] ss:$16 sps:$4 sm:$0xff]  }
 0x5a6   : > { %12514 = vmatpush2.bf16.msra.mxu0 %v17061_v21  ;;  %v17121_v21 = vld [vmem:[%s17784_s12 + $0x2268] ss:$16 sps:$4 sm:$0xff]  }
 0x5a7   : > { %12555 = vmatpush2.bf16.msra.mxu1 %v17064_v31  ;;  %12515 = vmatprep.subr.bf16.mxu0 %v17069_v17  ;;  %v17124_v31 = vld [vmem:[%s17784_s12 + $0x2468] ss:$16 sps:$4 sm:$0xff]   ;;  %v17129_v17 = vld [vmem:[%s17784_s12 + $0x224c] ss:$16 sps:$4 sm:$0xff]  }
 0x5a8   : > { %12556 = vmatprep.subr.bf16.mxu1 %v17072_v58  ;;  %v17132_v58 = vld [vmem:[%s17784_s12 + $0x244c] ss:$16 sps:$4 sm:$0xff]  }
 0x5aa   : > { %12516 = vmatpush2.bf16.msra.mxu0 %v17067_v27  ;;  %v17127_v27 = vld [vmem:[%s17784_s12 + $0x2248] ss:$16 sps:$4 sm:$0xff]  }
 0x5ab   : > { %12557 = vmatpush2.bf16.msra.mxu1 %v17070_v33  ;;  %12517 = vmatprep.subr.bf16.mxu0 %v17075_v49  ;;  %v17130_v33 = vld [vmem:[%s17784_s12 + $0x2448] ss:$16 sps:$4 sm:$0xff]   ;;  %v17135_v49 = vld [vmem:[%s17784_s12 + $0x222c] ss:$16 sps:$4 sm:$0xff]  }
 0x5ac   : > { %12558 = vmatprep.subr.bf16.mxu1 %v17078_v8  ;;  %v17138_v8 = vld [vmem:[%s17784_s12 + $0x242c] ss:$16 sps:$4 sm:$0xff]  }
 0x5ae   : > { %12518 = vmatpush2.bf16.msra.mxu0 %v17073_v51  ;;  %v17133_v51 = vld [vmem:[%s17784_s12 + $0x2228] ss:$16 sps:$4 sm:$0xff]  }
 0x5af   : > { %12559 = vmatpush2.bf16.msra.mxu1 %v17076_v62  ;;  %12519 = vmatprep.subr.bf16.mxu0 %v17081_v29  ;;  %v17136_v62 = vld [vmem:[%s17784_s12 + $0x2428] ss:$16 sps:$4 sm:$0xff]   ;;  %v17141_v29 = vld [vmem:[%s17784_s12 + $0x220c] ss:$16 sps:$4 sm:$0xff]  }
 0x5b0   : > { %12560 = vmatprep.subr.bf16.mxu1 %v17084_v50  ;;  %v17144_v50 = vld [vmem:[%s17784_s12 + $0x240c] ss:$16 sps:$4 sm:$0xff]  }
 0x5b2   : > { %12520 = vmatpush2.bf16.msra.mxu0 %v17079_v30  ;;  %v17139_v30 = vld [vmem:[%s17784_s12 + $0x2208] ss:$16 sps:$4 sm:$0xff]  }
 0x5b3   : > { %12561 = vmatpush2.bf16.msra.mxu1 %v17082_v59  ;;  %12521 = vmatprep.subr.bf16.mxu0 %v17087_v13  ;;  %v17142_v59 = vld [vmem:[%s17784_s12 + $0x2408] ss:$16 sps:$4 sm:$0xff]   ;;  %v17147_v13 = vld [vmem:[%s17784_s12 + $0x23ec] ss:$16 sps:$4 sm:$0xff]  }
 0x5b4   : > { %12562 = vmatprep.subr.bf16.mxu1 %v17090_v16  ;;  %v17150_v16 = vld [vmem:[%s17784_s12 + $0x25ec] ss:$16 sps:$4 sm:$0xff]  }
 0x5b6   : > { %12522 = vmatpush2.bf16.msra.mxu0 %v17085_v23  ;;  %v17145_v23 = vld [vmem:[%s17784_s12 + $0x23e8] ss:$16 sps:$4 sm:$0xff]  }
 0x5b7   : > { %12563 = vmatpush2.bf16.msra.mxu1 %v17088_v45  ;;  %12523 = vmatprep.subr.bf16.mxu0 %v17093_v5  ;;  %v17148_v45 = vld [vmem:[%s17784_s12 + $0x25e8] ss:$16 sps:$4 sm:$0xff]   ;;  %v17153_v5 = vld [vmem:[%s17784_s12 + $0x23cc] ss:$16 sps:$4 sm:$0xff]  }
 0x5b8   : > { %12564 = vmatprep.subr.bf16.mxu1 %v17096_v4  ;;  %v17156_v4 = vld [vmem:[%s17784_s12 + $0x25cc] ss:$16 sps:$4 sm:$0xff]  }
 0x5ba   : > { %12524 = vmatpush2.bf16.msra.mxu0 %v17091_v52  ;;  %v17151_v52 = vld [vmem:[%s17784_s12 + $0x23c8] ss:$16 sps:$4 sm:$0xff]  }
 0x5bb   : > { %12565 = vmatpush2.bf16.msra.mxu1 %v17094_v6  ;;  %12575 = vmatprep.subr.bf16.mxu0 %v17099_v35  ;;  %v17154_v6 = vld [vmem:[%s17784_s12 + $0x25c8] ss:$16 sps:$4 sm:$0xff]   ;;  %v17159_v35 = vld [vmem:[%s17784_s12 + $0x23ac] ss:$16 sps:$4 sm:$0xff]  }
 0x5bc   : > { %12616 = vmatprep.subr.bf16.mxu1 %v17102_v48  ;;  %v17162_v48 = vld [vmem:[%s17784_s12 + $0x25ac] ss:$16 sps:$4 sm:$0xff]  }
 0x5bd   : > { %v12281_v28 = vpop.f32.mrf.mxu0  ;;  %12526 = vmatmul.mubr.bf16.vlgmr.msra.gmra.mxu0 %v18474_v32 }
 0x5be   : > { %v12322_v63 = vpop.f32.mrf.mxu1  ;;  %12567 = vmatmul.mubr.bf16.vlgmr.msra.gmra.mxu1 %v18558_v37  ;;  %v12282_v2 = vadd.f32 %v12281_v28, %v19531_v11  ;;  %12576 = vmatpush1.bf16.msra.mxu0 %v17097_v61  ;;  %v17157_v61 = vld [vmem:[%s17784_s12 + $0x23a8] ss:$16 sps:$4 sm:$0xff]  }
 0x5bf   : > { %12617 = vmatpush1.bf16.msra.mxu1 %v17100_v38  ;;  %v12283_v22 = vpop.f32.mrf.mxu0  ;;  %12577 = vmatprep.subr.bf16.mxu0 %v17105_v54  ;;  %v17160_v38 = vld [vmem:[%s17784_s12 + $0x25a8] ss:$16 sps:$4 sm:$0xff]   ;;  %v17165_v54 = vld [vmem:[%s17784_s12 + $0x238c] ss:$16 sps:$4 sm:$0xff]  }
 0x5c0   : > { %v12324_v15 = vpop.f32.mrf.mxu1  ;;  %12618 = vmatprep.subr.bf16.mxu1 %v17108_v47  ;;  %v19605_v1 = vadd.f32 %v12322_v63, %v12282_v2  ;;  %v12284_v32 = vadd.f32 %v12283_v22, %v19536_v41  ;;  %12607 = vmatprep.mubr.bf16.mxu0 %v18486_v46  ;;  %v17117_v46 = vld [vmem:[%s17784_s12 + $0x228c] ss:$16 sps:$4 sm:$0xff]   ;;  %v17115_v41 = vld [vmem:[%s17784_s12 + $0x2288] ss:$16 sps:$4 sm:$0xff]  }
 0x5c1   : > { %12648 = vmatprep.mubr.bf16.mxu1 %v18570_v39  ;;  %v12285_v37 = vpop.f32.mrf.mxu0  ;;  %v17120_v39 = vld [vmem:[%s17784_s12 + $0x248c] ss:$16 sps:$4 sm:$0xff]   ;;  %v17163_v28 = vld [vmem:[%s17784_s12 + $0x2388] ss:$16 sps:$4 sm:$0xff]  }
 0x5c2   : > { %v12326_v11 = vpop.f32.mrf.mxu1  ;;  %v19610_v9 = vadd.f32 %v12324_v15, %v12284_v32  ;;  %12578 = vmatpush1.bf16.msra.mxu0 %v17103_v19  ;;  %v17168_v47 = vld [vmem:[%s17784_s12 + $0x258c] ss:$16 sps:$4 sm:$0xff]   ;;  %v17166_v63 = vld [vmem:[%s17784_s12 + $0x2588] ss:$16 sps:$4 sm:$0xff]  }
 0x5c3   : > { %12619 = vmatpush1.bf16.msra.mxu1 %v17106_v12  ;;  %v12286_v20 = vpop.f32.mrf.mxu0  ;;  %12579 = vmatprep.subr.bf16.mxu0 %v17111_v24  ;;  %v17171_v2 = vld [vmem:[%s17784_s12 + $0x236c] ss:$16 sps:$4 sm:$0xff]   ;;  %v17169_v12 = vld [vmem:[%s17784_s12 + $0x2368] ss:$16 sps:$4 sm:$0xff]  }
 0x5c4   : > { %v12327_v10 = vpop.f32.mrf.mxu1  ;;  %12620 = vmatprep.subr.bf16.mxu1 %v17114_v0  ;;  %v17174_v19 = vld [vmem:[%s17784_s12 + $0x256c] ss:$16 sps:$4 sm:$0xff]   ;;  %v17172_v22 = vld [vmem:[%s17784_s12 + $0x2568] ss:$16 sps:$4 sm:$0xff]  }
 0x5c5   : > { %v17177_v15 = vld [vmem:[%s17784_s12 + $0x234c] ss:$16 sps:$4 sm:$0xff]   ;;  %v17175_v0 = vld [vmem:[%s17784_s12 + $0x2348] ss:$16 sps:$4 sm:$0xff]  }
 0x5c6   : > { %12580 = vmatpush1.bf16.msra.mxu0 %v17109_v55  ;;  %v17180_v24 = vld [vmem:[%s17784_s12 + $0x254c] ss:$16 sps:$4 sm:$0xff]   ;;  %v17178_v32 = vld [vmem:[%s17784_s12 + $0x2548] ss:$16 sps:$4 sm:$0xff]  }
 0x5c7   : > { %12621 = vmatpush1.bf16.msra.mxu1 %v17112_v34  ;;  %12581 = vmatprep.subr.bf16.mxu0 %v17117_v46  ;;  %v17183_v37 = vld [vmem:[%s17784_s12 + $0x232c] ss:$16 sps:$4 sm:$0xff]   ;;  %v17181_v55 = vld [vmem:[%s17784_s12 + $0x2328] ss:$16 sps:$4 sm:$0xff]  }
 0x5c8   : > { %12622 = vmatprep.subr.bf16.mxu1 %v17120_v39  ;;  %v17186_v11 = vld [vmem:[%s17784_s12 + $0x252c] ss:$16 sps:$4 sm:$0xff]   ;;  %v17184_v34 = vld [vmem:[%s17784_s12 + $0x2528] ss:$16 sps:$4 sm:$0xff]  }
 0x5c9   : > { %v17189_v20 = vld [vmem:[%s17784_s12 + $0x230c] ss:$16 sps:$4 sm:$0xff]   ;;  %v17187_v46 = vld [vmem:[%s17784_s12 + $0x2308] ss:$16 sps:$4 sm:$0xff]  }
 0x5ca   : > { %12582 = vmatpush1.bf16.msra.mxu0 %v17115_v41  ;;  %v17192_v10 = vld [vmem:[%s17784_s12 + $0x250c] ss:$16 sps:$4 sm:$0xff]   ;;  %v17190_v39 = vld [vmem:[%s17784_s12 + $0x2508] ss:$16 sps:$4 sm:$0xff]  }
 0x5cb   : > { %12623 = vmatpush1.bf16.msra.mxu1 %v17118_v44  ;;  %12583 = vmatprep.subr.bf16.mxu0 %v17123_v3  ;;  %v17195_v41 = vld [vmem:[%s17784_s12 + $0x26ec] ss:$16 sps:$4 sm:$0xff]   ;;  %v17193_v3 = vld [vmem:[%s17784_s12 + $0x26e8] ss:$16 sps:$4 sm:$0xff]  }
 0x5cc   : > { %12624 = vmatprep.subr.bf16.mxu1 %v17126_v56  ;;  %v17198_v44 = vld [vmem:[%s17784_s12 + $0x28ec] ss:$16 sps:$4 sm:$0xff]   ;;  %v17196_v56 = vld [vmem:[%s17784_s12 + $0x28e8] ss:$16 sps:$4 sm:$0xff]  }
 0x5ce   : > { %12584 = vmatpush1.bf16.msra.mxu0 %v17121_v21  ;;  %v17201_v21 = vld [vmem:[%s17784_s12 + $0x26cc] ss:$16 sps:$4 sm:$0xff]  }
 0x5cf   : > { %12625 = vmatpush1.bf16.msra.mxu1 %v17124_v31  ;;  %12585 = vmatprep.subr.bf16.mxu0 %v17129_v17  ;;  %v17204_v31 = vld [vmem:[%s17784_s12 + $0x28cc] ss:$16 sps:$4 sm:$0xff]  }
 0x5d0   : > { %12626 = vmatprep.subr.bf16.mxu1 %v17132_v58 }
 0x5d2   : > { %12586 = vmatpush1.bf16.msra.mxu0 %v17127_v27 }
 0x5d3   : > { %12627 = vmatpush1.bf16.msra.mxu1 %v17130_v33  ;;  %12587 = vmatprep.subr.bf16.mxu0 %v17135_v49  ;;  %v17199_v33 = vld [vmem:[%s17784_s12 + $0x26c8] ss:$16 sps:$4 sm:$0xff]  }
 0x5d4   : > { %12628 = vmatprep.subr.bf16.mxu1 %v17138_v8  ;;  %v17202_v49 = vld [vmem:[%s17784_s12 + $0x28c8] ss:$16 sps:$4 sm:$0xff]  }
 0x5d6   : > { %12588 = vmatpush1.bf16.msra.mxu0 %v17133_v51 }
 0x5d7   : > { %12629 = vmatpush1.bf16.msra.mxu1 %v17136_v62  ;;  %12589 = vmatprep.subr.bf16.mxu0 %v17141_v29  ;;  %v17207_v62 = vld [vmem:[%s17784_s12 + $0x26ac] ss:$16 sps:$4 sm:$0xff]  }
 0x5d8   : > { %12630 = vmatprep.subr.bf16.mxu1 %v17144_v50  ;;  %v17210_v29 = vld [vmem:[%s17784_s12 + $0x28ac] ss:$16 sps:$4 sm:$0xff]  }
 0x5da   : > { %12590 = vmatpush1.bf16.msra.mxu0 %v17139_v30 }
 0x5db   : > { %12631 = vmatpush1.bf16.msra.mxu1 %v17142_v59  ;;  %12591 = vmatprep.subr.bf16.mxu0 %v17147_v13  ;;  %v17205_v59 = vld [vmem:[%s17784_s12 + $0x26a8] ss:$16 sps:$4 sm:$0xff]  }
 0x5dc   : > { %12632 = vmatprep.subr.bf16.mxu1 %v17150_v16  ;;  %v17208_v13 = vld [vmem:[%s17784_s12 + $0x28a8] ss:$16 sps:$4 sm:$0xff]  }
 0x5de   : > { %12592 = vmatpush2.bf16.msra.mxu0 %v17145_v23 }
 0x5df   : > { %12633 = vmatpush2.bf16.msra.mxu1 %v17148_v45  ;;  %12593 = vmatprep.subr.bf16.mxu0 %v17153_v5  ;;  %v17214_v45 = vld [vmem:[%s17784_s12 + $0x2888] ss:$16 sps:$4 sm:$0xff]   ;;  %v17219_v5 = vld [vmem:[%s17784_s12 + $0x266c] ss:$16 sps:$4 sm:$0xff]  }
 0x5e0   : > { %12634 = vmatprep.subr.bf16.mxu1 %v17156_v4  ;;  %v17222_v4 = vld [vmem:[%s17784_s12 + $0x286c] ss:$16 sps:$4 sm:$0xff]  }
 0x5e2   : > { %12594 = vmatpush2.bf16.msra.mxu0 %v17151_v52  ;;  %v17217_v52 = vld [vmem:[%s17784_s12 + $0x2668] ss:$16 sps:$4 sm:$0xff]  }
 0x5e3   : > { %12635 = vmatpush2.bf16.msra.mxu1 %v17154_v6  ;;  %12595 = vmatprep.subr.bf16.mxu0 %v17159_v35  ;;  %v17220_v6 = vld [vmem:[%s17784_s12 + $0x2868] ss:$16 sps:$4 sm:$0xff]   ;;  %v17225_v35 = vld [vmem:[%s17784_s12 + $0x264c] ss:$16 sps:$4 sm:$0xff]  }
 0x5e4   : > { %12636 = vmatprep.subr.bf16.mxu1 %v17162_v48  ;;  %v17228_v48 = vld [vmem:[%s17784_s12 + $0x284c] ss:$16 sps:$4 sm:$0xff]  }
 0x5e6   : > { %12596 = vmatpush2.bf16.msra.mxu0 %v17157_v61  ;;  %v17223_v61 = vld [vmem:[%s17784_s12 + $0x2648] ss:$16 sps:$4 sm:$0xff]  }
 0x5e7   : > { %12637 = vmatpush2.bf16.msra.mxu1 %v17160_v38  ;;  %12597 = vmatprep.subr.bf16.mxu0 %v17165_v54  ;;  %v17226_v38 = vld [vmem:[%s17784_s12 + $0x2848] ss:$16 sps:$4 sm:$0xff]   ;;  %v17231_v54 = vld [vmem:[%s17784_s12 + $0x262c] ss:$16 sps:$4 sm:$0xff]  }
 0x5e8   : > { %12638 = vmatprep.subr.bf16.mxu1 %v17168_v47  ;;  %v17234_v47 = vld [vmem:[%s17784_s12 + $0x282c] ss:$16 sps:$4 sm:$0xff]  }
 0x5ea   : > { %12598 = vmatpush2.bf16.msra.mxu0 %v17163_v28  ;;  %v17229_v28 = vld [vmem:[%s17784_s12 + $0x2628] ss:$16 sps:$4 sm:$0xff]  }
 0x5eb   : > { %12639 = vmatpush2.bf16.msra.mxu1 %v17166_v63  ;;  %12599 = vmatprep.subr.bf16.mxu0 %v17171_v2  ;;  %v17232_v63 = vld [vmem:[%s17784_s12 + $0x2828] ss:$16 sps:$4 sm:$0xff]   ;;  %v17237_v2 = vld [vmem:[%s17784_s12 + $0x260c] ss:$16 sps:$4 sm:$0xff]  }
 0x5ec   : > { %12640 = vmatprep.subr.bf16.mxu1 %v17174_v19  ;;  %v17240_v19 = vld [vmem:[%s17784_s12 + $0x280c] ss:$16 sps:$4 sm:$0xff]  }
 0x5ee   : > { %12600 = vmatpush2.bf16.msra.mxu0 %v17169_v12  ;;  %v17235_v12 = vld [vmem:[%s17784_s12 + $0x2608] ss:$16 sps:$4 sm:$0xff]  }
 0x5ef   : > { %12641 = vmatpush2.bf16.msra.mxu1 %v17172_v22  ;;  %12601 = vmatprep.subr.bf16.mxu0 %v17177_v15  ;;  %v17238_v22 = vld [vmem:[%s17784_s12 + $0x2808] ss:$16 sps:$4 sm:$0xff]   ;;  %v17243_v15 = vld [vmem:[%s17784_s12 + $0x27ec] ss:$16 sps:$4 sm:$0xff]  }
 0x5f0   : > { %12642 = vmatprep.subr.bf16.mxu1 %v17180_v24  ;;  %v17246_v24 = vld [vmem:[%s17784_s12 + $0x29ec] ss:$16 sps:$4 sm:$0xff]  }
 0x5f2   : > { %12602 = vmatpush2.bf16.msra.mxu0 %v17175_v0  ;;  %v17241_v0 = vld [vmem:[%s17784_s12 + $0x27e8] ss:$16 sps:$4 sm:$0xff]  }
 0x5f3   : > { %12643 = vmatpush2.bf16.msra.mxu1 %v17178_v32  ;;  %12603 = vmatprep.subr.bf16.mxu0 %v17183_v37  ;;  %v17244_v32 = vld [vmem:[%s17784_s12 + $0x29e8] ss:$16 sps:$4 sm:$0xff]   ;;  %v17249_v37 = vld [vmem:[%s17784_s12 + $0x27cc] ss:$16 sps:$4 sm:$0xff]  }
 0x5f4   : > { %12644 = vmatprep.subr.bf16.mxu1 %v17186_v11  ;;  %v17252_v11 = vld [vmem:[%s17784_s12 + $0x29cc] ss:$16 sps:$4 sm:$0xff]  }
 0x5f6   : > { %12604 = vmatpush2.bf16.msra.mxu0 %v17181_v55  ;;  %v17247_v55 = vld [vmem:[%s17784_s12 + $0x27c8] ss:$16 sps:$4 sm:$0xff]  }
 0x5f7   : > { %12645 = vmatpush2.bf16.msra.mxu1 %v17184_v34  ;;  %12605 = vmatprep.subr.bf16.mxu0 %v17189_v20  ;;  %v17250_v34 = vld [vmem:[%s17784_s12 + $0x29c8] ss:$16 sps:$4 sm:$0xff]   ;;  %v17255_v20 = vld [vmem:[%s17784_s12 + $0x27ac] ss:$16 sps:$4 sm:$0xff]  }
 0x5f8   : > { %12646 = vmatprep.subr.bf16.mxu1 %v17192_v10  ;;  %v17258_v10 = vld [vmem:[%s17784_s12 + $0x29ac] ss:$16 sps:$4 sm:$0xff]  }
 0x5fa   : > { %12606 = vmatpush2.bf16.msra.mxu0 %v17187_v46  ;;  %v17253_v46 = vld [vmem:[%s17784_s12 + $0x27a8] ss:$16 sps:$4 sm:$0xff]  }
 0x5fb   : > { %12647 = vmatpush2.bf16.msra.mxu1 %v17190_v39  ;;  %12657 = vmatprep.subr.bf16.mxu0 %v17195_v41  ;;  %v17256_v39 = vld [vmem:[%s17784_s12 + $0x29a8] ss:$16 sps:$4 sm:$0xff]   ;;  %v17261_v41 = vld [vmem:[%s17784_s12 + $0x278c] ss:$16 sps:$4 sm:$0xff]  }
 0x5fc   : > { %12698 = vmatprep.subr.bf16.mxu1 %v17198_v44  ;;  %v17264_v44 = vld [vmem:[%s17784_s12 + $0x298c] ss:$16 sps:$4 sm:$0xff]  }
 0x5fd   : > { %v12363_v17 = vpop.f32.mrf.mxu0  ;;  %12608 = vmatmul.mubr.bf16.vlgmr.msra.gmra.mxu0 %v18560_v25 }
 0x5fe   : > { %v12404_v58 = vpop.f32.mrf.mxu1  ;;  %12649 = vmatmul.mubr.bf16.vlgmr.msra.gmra.mxu1 %v18644_v18  ;;  %v12364_v27 = vadd.f32 %v12363_v17, %v19605_v1  ;;  %12658 = vmatpush1.bf16.msra.mxu0 %v17193_v3  ;;  %v17259_v3 = vld [vmem:[%s17784_s12 + $0x2788] ss:$16 sps:$4 sm:$0xff]  }
 0x5ff   : > { %12699 = vmatpush1.bf16.msra.mxu1 %v17196_v56  ;;  %v12365_v8 = vpop.f32.mrf.mxu0  ;;  %12659 = vmatprep.subr.bf16.mxu0 %v17201_v21  ;;  %v17262_v56 = vld [vmem:[%s17784_s12 + $0x2988] ss:$16 sps:$4 sm:$0xff]   ;;  %v17267_v21 = vld [vmem:[%s17784_s12 + $0x276c] ss:$16 sps:$4 sm:$0xff]  }
 0x600   : > { %v12406_v51 = vpop.f32.mrf.mxu1  ;;  %12700 = vmatprep.subr.bf16.mxu1 %v17204_v31  ;;  %v19679_v50 = vadd.f32 %v12404_v58, %v12364_v27  ;;  %v12366_v25 = vadd.f32 %v12365_v8, %v19610_v9  ;;  %12689 = vmatprep.mubr.bf16.mxu0 %v18572_v40  ;;  %v17213_v40 = vld [vmem:[%s17784_s12 + $0x268c] ss:$16 sps:$4 sm:$0xff]   ;;  %v17211_v9 = vld [vmem:[%s17784_s12 + $0x2688] ss:$16 sps:$4 sm:$0xff]  }
 0x601   : > { %12730 = vmatprep.mubr.bf16.mxu1 %v18656_v7  ;;  %v12367_v18 = vpop.f32.mrf.mxu0  ;;  %v17216_v7 = vld [vmem:[%s17784_s12 + $0x288c] ss:$16 sps:$4 sm:$0xff]   ;;  %v17265_v17 = vld [vmem:[%s17784_s12 + $0x2768] ss:$16 sps:$4 sm:$0xff]  }
 0x602   : > { %v12408_v1 = vpop.f32.mrf.mxu1  ;;  %v19684_v30 = vadd.f32 %v12406_v51, %v12366_v25  ;;  %12660 = vmatpush1.bf16.msra.mxu0 %v17199_v33  ;;  %v17270_v31 = vld [vmem:[%s17784_s12 + $0x296c] ss:$16 sps:$4 sm:$0xff]   ;;  %v17268_v58 = vld [vmem:[%s17784_s12 + $0x2968] ss:$16 sps:$4 sm:$0xff]  }
 0x603   : > { %12701 = vmatpush1.bf16.msra.mxu1 %v17202_v49  ;;  %v12368_v16 = vpop.f32.mrf.mxu0  ;;  %12661 = vmatprep.subr.bf16.mxu0 %v17207_v62  ;;  %v17273_v27 = vld [vmem:[%s17784_s12 + $0x274c] ss:$16 sps:$4 sm:$0xff]   ;;  %v17271_v49 = vld [vmem:[%s17784_s12 + $0x2748] ss:$16 sps:$4 sm:$0xff]  }
 0x604   : > { %v12409_v23 = vpop.f32.mrf.mxu1  ;;  %12702 = vmatprep.subr.bf16.mxu1 %v17210_v29  ;;  %v17276_v33 = vld [vmem:[%s17784_s12 + $0x294c] ss:$16 sps:$4 sm:$0xff]   ;;  %v17274_v8 = vld [vmem:[%s17784_s12 + $0x2948] ss:$16 sps:$4 sm:$0xff]  }
 0x605   : > { %v17279_v51 = vld [vmem:[%s17784_s12 + $0x272c] ss:$16 sps:$4 sm:$0xff]   ;;  %v17277_v29 = vld [vmem:[%s17784_s12 + $0x2728] ss:$16 sps:$4 sm:$0xff]  }
 0x606   : > { %12662 = vmatpush1.bf16.msra.mxu0 %v17205_v59  ;;  %v17282_v62 = vld [vmem:[%s17784_s12 + $0x292c] ss:$16 sps:$4 sm:$0xff]   ;;  %v17280_v25 = vld [vmem:[%s17784_s12 + $0x2928] ss:$16 sps:$4 sm:$0xff]  }
 0x607   : > { %12703 = vmatpush1.bf16.msra.mxu1 %v17208_v13  ;;  %12663 = vmatprep.subr.bf16.mxu0 %v17213_v40  ;;  %v17285_v18 = vld [vmem:[%s17784_s12 + $0x270c] ss:$16 sps:$4 sm:$0xff]   ;;  %v17283_v59 = vld [vmem:[%s17784_s12 + $0x2708] ss:$16 sps:$4 sm:$0xff]  }
 0x608   : > { %12704 = vmatprep.subr.bf16.mxu1 %v17216_v7  ;;  %v17288_v1 = vld [vmem:[%s17784_s12 + $0x290c] ss:$16 sps:$4 sm:$0xff]   ;;  %v17286_v13 = vld [vmem:[%s17784_s12 + $0x2908] ss:$16 sps:$4 sm:$0xff]  }
 0x609   : > { %v17291_v16 = vld [vmem:[%s17784_s12 + $0x2aec] ss:$16 sps:$4 sm:$0xff]   ;;  %v17289_v40 = vld [vmem:[%s17784_s12 + $0x2ae8] ss:$16 sps:$4 sm:$0xff]  }
 0x60a   : > { %12664 = vmatpush1.bf16.msra.mxu0 %v17211_v9  ;;  %v17294_v23 = vld [vmem:[%s17784_s12 + $0x2cec] ss:$16 sps:$4 sm:$0xff]   ;;  %v17292_v7 = vld [vmem:[%s17784_s12 + $0x2ce8] ss:$16 sps:$4 sm:$0xff]  }
 0x60b   : > { %12705 = vmatpush1.bf16.msra.mxu1 %v17214_v45  ;;  %12665 = vmatprep.subr.bf16.mxu0 %v17219_v5  ;;  %v17297_v9 = vld [vmem:[%s17784_s12 + $0x2acc] ss:$16 sps:$4 sm:$0xff]  }
 0x60c   : > { %12706 = vmatprep.subr.bf16.mxu1 %v17222_v4  ;;  %v17300_v45 = vld [vmem:[%s17784_s12 + $0x2ccc] ss:$16 sps:$4 sm:$0xff]  }
 0x60e   : > { %12666 = vmatpush1.bf16.msra.mxu0 %v17217_v52 }
 0x60f   : > { %12707 = vmatpush1.bf16.msra.mxu1 %v17220_v6  ;;  %12667 = vmatprep.subr.bf16.mxu0 %v17225_v35  ;;  %v17295_v6 = vld [vmem:[%s17784_s12 + $0x2ac8] ss:$16 sps:$4 sm:$0xff]  }
 0x610   : > { %12708 = vmatprep.subr.bf16.mxu1 %v17228_v48  ;;  %v17298_v35 = vld [vmem:[%s17784_s12 + $0x2cc8] ss:$16 sps:$4 sm:$0xff]  }
 0x612   : > { %12668 = vmatpush1.bf16.msra.mxu0 %v17223_v61 }
 0x613   : > { %12709 = vmatpush1.bf16.msra.mxu1 %v17226_v38  ;;  %12669 = vmatprep.subr.bf16.mxu0 %v17231_v54  ;;  %v17303_v38 = vld [vmem:[%s17784_s12 + $0x2aac] ss:$16 sps:$4 sm:$0xff]  }
 0x614   : > { %12710 = vmatprep.subr.bf16.mxu1 %v17234_v47  ;;  %v17306_v54 = vld [vmem:[%s17784_s12 + $0x2cac] ss:$16 sps:$4 sm:$0xff]  }
 0x616   : > { %12670 = vmatpush1.bf16.msra.mxu0 %v17229_v28 }
 0x617   : > { %12711 = vmatpush1.bf16.msra.mxu1 %v17232_v63  ;;  %12671 = vmatprep.subr.bf16.mxu0 %v17237_v2 }
 0x618   : > { %12712 = vmatprep.subr.bf16.mxu1 %v17240_v19  ;;  %v17301_v19 = vld [vmem:[%s17784_s12 + $0x2aa8] ss:$16 sps:$4 sm:$0xff]  }
 0x61a   : > { %12672 = vmatpush1.bf16.msra.mxu0 %v17235_v12  ;;  %v17304_v12 = vld [vmem:[%s17784_s12 + $0x2ca8] ss:$16 sps:$4 sm:$0xff]  }
 0x61b   : > { %12713 = vmatpush1.bf16.msra.mxu1 %v17238_v22  ;;  %12673 = vmatprep.subr.bf16.mxu0 %v17243_v15 }
 0x61c   : > { %12714 = vmatprep.subr.bf16.mxu1 %v17246_v24  ;;  %v17312_v24 = vld [vmem:[%s17784_s12 + $0x2c8c] ss:$16 sps:$4 sm:$0xff]  }
 0x61e   : > { %12674 = vmatpush2.bf16.msra.mxu0 %v17241_v0  ;;  %v17307_v0 = vld [vmem:[%s17784_s12 + $0x2a88] ss:$16 sps:$4 sm:$0xff]  }
 0x61f   : > { %12715 = vmatpush2.bf16.msra.mxu1 %v17244_v32  ;;  %12675 = vmatprep.subr.bf16.mxu0 %v17249_v37  ;;  %v17310_v32 = vld [vmem:[%s17784_s12 + $0x2c88] ss:$16 sps:$4 sm:$0xff]   ;;  %v17315_v37 = vld [vmem:[%s17784_s12 + $0x2a6c] ss:$16 sps:$4 sm:$0xff]  }
 0x620   : > { %12716 = vmatprep.subr.bf16.mxu1 %v17252_v11  ;;  %v17318_v11 = vld [vmem:[%s17784_s12 + $0x2c6c] ss:$16 sps:$4 sm:$0xff]  }
 0x622   : > { %12676 = vmatpush2.bf16.msra.mxu0 %v17247_v55  ;;  %v17313_v55 = vld [vmem:[%s17784_s12 + $0x2a68] ss:$16 sps:$4 sm:$0xff]  }
 0x623   : > { %12717 = vmatpush2.bf16.msra.mxu1 %v17250_v34  ;;  %12677 = vmatprep.subr.bf16.mxu0 %v17255_v20  ;;  %v17316_v34 = vld [vmem:[%s17784_s12 + $0x2c68] ss:$16 sps:$4 sm:$0xff]   ;;  %v17321_v20 = vld [vmem:[%s17784_s12 + $0x2a4c] ss:$16 sps:$4 sm:$0xff]  }
 0x624   : > { %12718 = vmatprep.subr.bf16.mxu1 %v17258_v10  ;;  %v17324_v10 = vld [vmem:[%s17784_s12 + $0x2c4c] ss:$16 sps:$4 sm:$0xff]  }
 0x626   : > { %12678 = vmatpush2.bf16.msra.mxu0 %v17253_v46  ;;  %v17319_v46 = vld [vmem:[%s17784_s12 + $0x2a48] ss:$16 sps:$4 sm:$0xff]  }
 0x627   : > { %12719 = vmatpush2.bf16.msra.mxu1 %v17256_v39  ;;  %12679 = vmatprep.subr.bf16.mxu0 %v17261_v41  ;;  %v17322_v39 = vld [vmem:[%s17784_s12 + $0x2c48] ss:$16 sps:$4 sm:$0xff]   ;;  %v17327_v41 = vld [vmem:[%s17784_s12 + $0x2a2c] ss:$16 sps:$4 sm:$0xff]  }
 0x628   : > { %12720 = vmatprep.subr.bf16.mxu1 %v17264_v44  ;;  %v17330_v44 = vld [vmem:[%s17784_s12 + $0x2c2c] ss:$16 sps:$4 sm:$0xff]  }
 0x62a   : > { %12680 = vmatpush2.bf16.msra.mxu0 %v17259_v3  ;;  %v17325_v3 = vld [vmem:[%s17784_s12 + $0x2a28] ss:$16 sps:$4 sm:$0xff]  }
 0x62b   : > { %12721 = vmatpush2.bf16.msra.mxu1 %v17262_v56  ;;  %12681 = vmatprep.subr.bf16.mxu0 %v17267_v21  ;;  %v17328_v56 = vld [vmem:[%s17784_s12 + $0x2c28] ss:$16 sps:$4 sm:$0xff]   ;;  %v17333_v21 = vld [vmem:[%s17784_s12 + $0x2a0c] ss:$16 sps:$4 sm:$0xff]  }
 0x62c   : > { %12722 = vmatprep.subr.bf16.mxu1 %v17270_v31  ;;  %v17336_v31 = vld [vmem:[%s17784_s12 + $0x2c0c] ss:$16 sps:$4 sm:$0xff]  }
 0x62e   : > { %12682 = vmatpush2.bf16.msra.mxu0 %v17265_v17  ;;  %v17331_v17 = vld [vmem:[%s17784_s12 + $0x2a08] ss:$16 sps:$4 sm:$0xff]  }
 0x62f   : > { %12723 = vmatpush2.bf16.msra.mxu1 %v17268_v58  ;;  %12683 = vmatprep.subr.bf16.mxu0 %v17273_v27  ;;  %v17334_v58 = vld [vmem:[%s17784_s12 + $0x2c08] ss:$16 sps:$4 sm:$0xff]   ;;  %v17339_v27 = vld [vmem:[%s17784_s12 + $0x2bec] ss:$16 sps:$4 sm:$0xff]  }
 0x630   : > { %12724 = vmatprep.subr.bf16.mxu1 %v17276_v33  ;;  %v17342_v33 = vld [vmem:[%s17784_s12 + $0x2dec] ss:$16 sps:$4 sm:$0xff]  }
 0x632   : > { %12684 = vmatpush2.bf16.msra.mxu0 %v17271_v49  ;;  %v17337_v49 = vld [vmem:[%s17784_s12 + $0x2be8] ss:$16 sps:$4 sm:$0xff]  }
 0x633   : > { %12725 = vmatpush2.bf16.msra.mxu1 %v17274_v8  ;;  %12685 = vmatprep.subr.bf16.mxu0 %v17279_v51  ;;  %v17340_v8 = vld [vmem:[%s17784_s12 + $0x2de8] ss:$16 sps:$4 sm:$0xff]   ;;  %v17345_v51 = vld [vmem:[%s17784_s12 + $0x2bcc] ss:$16 sps:$4 sm:$0xff]  }
 0x634   : > { %12726 = vmatprep.subr.bf16.mxu1 %v17282_v62  ;;  %v17348_v62 = vld [vmem:[%s17784_s12 + $0x2dcc] ss:$16 sps:$4 sm:$0xff]  }
 0x636   : > { %12686 = vmatpush2.bf16.msra.mxu0 %v17277_v29  ;;  %v17343_v29 = vld [vmem:[%s17784_s12 + $0x2bc8] ss:$16 sps:$4 sm:$0xff]  }
 0x637   : > { %12727 = vmatpush2.bf16.msra.mxu1 %v17280_v25  ;;  %12687 = vmatprep.subr.bf16.mxu0 %v17285_v18  ;;  %v17346_v25 = vld [vmem:[%s17784_s12 + $0x2dc8] ss:$16 sps:$4 sm:$0xff]   ;;  %v17351_v18 = vld [vmem:[%s17784_s12 + $0x2bac] ss:$16 sps:$4 sm:$0xff]  }
 0x638   : > { %12728 = vmatprep.subr.bf16.mxu1 %v17288_v1  ;;  %v17354_v1 = vld [vmem:[%s17784_s12 + $0x2dac] ss:$16 sps:$4 sm:$0xff]  }
 0x63a   : > { %12688 = vmatpush2.bf16.msra.mxu0 %v17283_v59  ;;  %v17349_v59 = vld [vmem:[%s17784_s12 + $0x2ba8] ss:$16 sps:$4 sm:$0xff]  }
 0x63b   : > { %12729 = vmatpush2.bf16.msra.mxu1 %v17286_v13  ;;  %12739 = vmatprep.subr.bf16.mxu0 %v17291_v16  ;;  %v17352_v13 = vld [vmem:[%s17784_s12 + $0x2da8] ss:$16 sps:$4 sm:$0xff]   ;;  %v17357_v16 = vld [vmem:[%s17784_s12 + $0x2b8c] ss:$16 sps:$4 sm:$0xff]  }
 0x63c   : > { %12780 = vmatprep.subr.bf16.mxu1 %v17294_v23  ;;  %v17360_v23 = vld [vmem:[%s17784_s12 + $0x2d8c] ss:$16 sps:$4 sm:$0xff]  }
 0x63d   : > { %v12445_v5 = vpop.f32.mrf.mxu0  ;;  %12690 = vmatmul.mubr.bf16.vlgmr.msra.gmra.mxu0 %v18646_v36 }
 0x63e   : > { %v12486_v4 = vpop.f32.mrf.mxu1  ;;  %12731 = vmatmul.mubr.bf16.vlgmr.msra.gmra.mxu1 %v18730_v60  ;;  %v12446_v52 = vadd.f32 %v12445_v5, %v19679_v50  ;;  %12740 = vmatpush1.bf16.msra.mxu0 %v17289_v40  ;;  %v20031_v60 = vld [vmem:[#allocation5_spill] sm:$0xff]  ;;  %v20032_v50 = vld [vmem:[#allocation7_spill] sm:$0xff]  ;;  %v17355_v40 = vld [vmem:[%s17784_s12 + $0x2b88] ss:$16 sps:$4 sm:$0xff]  }
 0x63f   : > { %12781 = vmatpush1.bf16.msra.mxu1 %v17292_v7  ;;  %v12447_v48 = vpop.f32.mrf.mxu0  ;;  %12741 = vmatprep.subr.bf16.mxu0 %v17297_v9  ;;  %v17358_v7 = vld [vmem:[%s17784_s12 + $0x2d88] ss:$16 sps:$4 sm:$0xff]   ;;  %v17363_v9 = vld [vmem:[%s17784_s12 + $0x2b6c] ss:$16 sps:$4 sm:$0xff]  }
 0x640   : > { %v12488_v61 = vpop.f32.mrf.mxu1  ;;  %12782 = vmatprep.subr.bf16.mxu1 %v17300_v45  ;;  %v19753_v47 = vadd.f32 %v12486_v4, %v12446_v52  ;;  %v12448_v36 = vadd.f32 %v12447_v48, %v19684_v30  ;;  %12771 = vmatprep.mubr.bf16.mxu0 %v20031_v60  ;;  %v17309_v30 = vld [vmem:[%s17784_s12 + $0x2a8c] ss:$16 sps:$4 sm:$0xff]   ;;  %v17361_v5 = vld [vmem:[%s17784_s12 + $0x2b68] ss:$16 sps:$4 sm:$0xff]  }
 0x641   : > { %12812 = vmatprep.mubr.bf16.mxu1 %v20032_v50  ;;  %v12449_v28 = vpop.f32.mrf.mxu0  ;;  %v17366_v45 = vld [vmem:[%s17784_s12 + $0x2d6c] ss:$16 sps:$4 sm:$0xff]   ;;  %v17364_v4 = vld [vmem:[%s17784_s12 + $0x2d68] ss:$16 sps:$4 sm:$0xff]  }
 0x642   : > { %v12490_v63 = vpop.f32.mrf.mxu1  ;;  %v19758_v2 = vadd.f32 %v12488_v61, %v12448_v36  ;;  %12742 = vmatpush1.bf16.msra.mxu0 %v17295_v6  ;;  %v17369_v52 = vld [vmem:[%s17784_s12 + $0x2b4c] ss:$16 sps:$4 sm:$0xff]   ;;  %v17370_v48 = vld [vmem:[%s17784_s12 + $0x2d48] ss:$16 sps:$4 sm:$0xff]  }
 0x643   : > { %12783 = vmatpush1.bf16.msra.mxu1 %v17298_v35  ;;  %v12450_v22 = vpop.f32.mrf.mxu0  ;;  %12743 = vmatprep.subr.bf16.mxu0 %v17303_v38  ;;  %v17372_v6 = vld [vmem:[%s17784_s12 + $0x2d4c] ss:$16 sps:$4 sm:$0xff]   ;;  %v17367_v35 = vld [vmem:[%s17784_s12 + $0x2b48] ss:$16 sps:$4 sm:$0xff]  }
 0x644   : > { %v12491_v15 = vpop.f32.mrf.mxu1  ;;  %12784 = vmatprep.subr.bf16.mxu1 %v17306_v54  ;;  %v17375_v61 = vld [vmem:[%s17784_s12 + $0x2b2c] ss:$16 sps:$4 sm:$0xff]   ;;  %v17373_v54 = vld [vmem:[%s17784_s12 + $0x2b28] ss:$16 sps:$4 sm:$0xff]  }
 0x645   : > { %v17378_v38 = vld [vmem:[%s17784_s12 + $0x2d2c] ss:$16 sps:$4 sm:$0xff]   ;;  %v17376_v36 = vld [vmem:[%s17784_s12 + $0x2d28] ss:$16 sps:$4 sm:$0xff]  }
 0x646   : > { %12744 = vmatpush1.bf16.msra.mxu0 %v17301_v19  ;;  %v17381_v60 = vld [vmem:[%s17784_s12 + $0x2b0c] ss:$16 sps:$4 sm:$0xff]   ;;  %v17379_v28 = vld [vmem:[%s17784_s12 + $0x2b08] ss:$16 sps:$4 sm:$0xff]  }
 0x647   : > { %12785 = vmatpush1.bf16.msra.mxu1 %v17304_v12  ;;  %12745 = vmatprep.subr.bf16.mxu0 %v17309_v30  ;;  %v17384_v50 = vld [vmem:[%s17784_s12 + $0x2d0c] ss:$16 sps:$4 sm:$0xff]   ;;  %v17382_v63 = vld [vmem:[%s17784_s12 + $0x2d08] ss:$16 sps:$4 sm:$0xff]  }
 0x648   : > { %12786 = vmatprep.subr.bf16.mxu1 %v17312_v24  ;;  %v17387_v19 = vld [vmem:[%s17784_s12 + $0x2eec] ss:$16 sps:$4 sm:$0xff]   ;;  %v17385_v22 = vld [vmem:[%s17784_s12 + $0x2ee8] ss:$16 sps:$4 sm:$0xff]  }
 0x649   : > { %v17390_v12 = vld [vmem:[%s17784_s12 + $0x30ec] ss:$16 sps:$4 sm:$0xff]   ;;  %v17388_v15 = vld [vmem:[%s17784_s12 + $0x30e8] ss:$16 sps:$4 sm:$0xff]  }
 0x64a   : > { %12746 = vmatpush1.bf16.msra.mxu0 %v17307_v0  ;;  %v17393_v30 = vld [vmem:[%s17784_s12 + $0x2ecc] ss:$16 sps:$4 sm:$0xff]  }
 0x64b   : > { %12787 = vmatpush1.bf16.msra.mxu1 %v17310_v32  ;;  %12747 = vmatprep.subr.bf16.mxu0 %v17315_v37  ;;  %v17396_v24 = vld [vmem:[%s17784_s12 + $0x30cc] ss:$16 sps:$4 sm:$0xff]  }
 0x64c   : > { %12788 = vmatprep.subr.bf16.mxu1 %v17318_v11  ;;  %v20033_v37 = vld [vmem:[#allocation6_spill] sm:$0xff]  ;;  %v20034_v11 = vld [vmem:[#allocation9_spill] sm:$0xff] }
 0x64e   : > { %12748 = vmatpush1.bf16.msra.mxu0 %v17313_v55 }
 0x64f   : > { %12789 = vmatpush1.bf16.msra.mxu1 %v17316_v34  ;;  %12749 = vmatprep.subr.bf16.mxu0 %v17321_v20  ;;  %v17391_v34 = vld [vmem:[%s17784_s12 + $0x2ec8] ss:$16 sps:$4 sm:$0xff]  }
 0x650   : > { %12790 = vmatprep.subr.bf16.mxu1 %v17324_v10  ;;  %v17394_v20 = vld [vmem:[%s17784_s12 + $0x30c8] ss:$16 sps:$4 sm:$0xff]  }
 0x652   : > { %12750 = vmatpush1.bf16.msra.mxu0 %v17319_v46 }
 0x653   : > { %12791 = vmatpush1.bf16.msra.mxu1 %v17322_v39  ;;  %12751 = vmatprep.subr.bf16.mxu0 %v17327_v41  ;;  %v17399_v39 = vld [vmem:[%s17784_s12 + $0x2eac] ss:$16 sps:$4 sm:$0xff]  }
 0x654   : > { %12792 = vmatprep.subr.bf16.mxu1 %v17330_v44  ;;  %v17402_v41 = vld [vmem:[%s17784_s12 + $0x30ac] ss:$16 sps:$4 sm:$0xff]  }
 0x656   : > { %12752 = vmatpush1.bf16.msra.mxu0 %v17325_v3 }
 0x657   : > { %12793 = vmatpush1.bf16.msra.mxu1 %v17328_v56  ;;  %12753 = vmatprep.subr.bf16.mxu0 %v17333_v21  ;;  %v20035_v56 = vld [vmem:[#allocation8_spill] sm:$0xff] }
 0x658   : > { %12794 = vmatprep.subr.bf16.mxu1 %v17336_v31 }
 0x65a   : > { %12754 = vmatpush1.bf16.msra.mxu0 %v17331_v17  ;;  %v17397_v17 = vld [vmem:[%s17784_s12 + $0x2ea8] ss:$16 sps:$4 sm:$0xff]  }
 0x65b   : > { %12795 = vmatpush1.bf16.msra.mxu1 %v17334_v58  ;;  %12755 = vmatprep.subr.bf16.mxu0 %v17339_v27  ;;  %v17400_v58 = vld [vmem:[%s17784_s12 + $0x30a8] ss:$16 sps:$4 sm:$0xff]  }
 0x65c   : > { %12796 = vmatprep.subr.bf16.mxu1 %v17342_v33 }
 0x65e   : > { %12756 = vmatpush2.bf16.msra.mxu0 %v17337_v49  ;;  %v17403_v49 = vld [vmem:[%s17784_s12 + $0x2e88] ss:$16 sps:$4 sm:$0xff]  }
 0x65f   : > { %12797 = vmatpush2.bf16.msra.mxu1 %v17340_v8  ;;  %12757 = vmatprep.subr.bf16.mxu0 %v17345_v51  ;;  %v17406_v8 = vld [vmem:[%s17784_s12 + $0x3088] ss:$16 sps:$4 sm:$0xff]   ;;  %v17411_v51 = vld [vmem:[%s17784_s12 + $0x2e6c] ss:$16 sps:$4 sm:$0xff]  }
 0x660   : > { %12798 = vmatprep.subr.bf16.mxu1 %v17348_v62  ;;  %v17414_v62 = vld [vmem:[%s17784_s12 + $0x306c] ss:$16 sps:$4 sm:$0xff]  }
 0x662   : > { %12758 = vmatpush2.bf16.msra.mxu0 %v17343_v29  ;;  %v17409_v29 = vld [vmem:[%s17784_s12 + $0x2e68] ss:$16 sps:$4 sm:$0xff]  }
 0x663   : > { %12799 = vmatpush2.bf16.msra.mxu1 %v17346_v25  ;;  %12759 = vmatprep.subr.bf16.mxu0 %v17351_v18  ;;  %v17412_v25 = vld [vmem:[%s17784_s12 + $0x3068] ss:$16 sps:$4 sm:$0xff]   ;;  %v17417_v18 = vld [vmem:[%s17784_s12 + $0x2e4c] ss:$16 sps:$4 sm:$0xff]  }
 0x664   : > { %12800 = vmatprep.subr.bf16.mxu1 %v17354_v1  ;;  %v17420_v1 = vld [vmem:[%s17784_s12 + $0x304c] ss:$16 sps:$4 sm:$0xff]  }
 0x666   : > { %12760 = vmatpush2.bf16.msra.mxu0 %v17349_v59  ;;  %v17415_v59 = vld [vmem:[%s17784_s12 + $0x2e48] ss:$16 sps:$4 sm:$0xff]  }
 0x667   : > { %12801 = vmatpush2.bf16.msra.mxu1 %v17352_v13  ;;  %12761 = vmatprep.subr.bf16.mxu0 %v17357_v16  ;;  %v17418_v13 = vld [vmem:[%s17784_s12 + $0x3048] ss:$16 sps:$4 sm:$0xff]   ;;  %v17423_v16 = vld [vmem:[%s17784_s12 + $0x2e2c] ss:$16 sps:$4 sm:$0xff]  }
 0x668   : > { %12802 = vmatprep.subr.bf16.mxu1 %v17360_v23  ;;  %v17426_v23 = vld [vmem:[%s17784_s12 + $0x302c] ss:$16 sps:$4 sm:$0xff]  }
 0x66a   : > { %12762 = vmatpush2.bf16.msra.mxu0 %v17355_v40  ;;  %v17421_v40 = vld [vmem:[%s17784_s12 + $0x2e28] ss:$16 sps:$4 sm:$0xff]  }
 0x66b   : > { %12803 = vmatpush2.bf16.msra.mxu1 %v17358_v7  ;;  %12763 = vmatprep.subr.bf16.mxu0 %v17363_v9  ;;  %v17424_v7 = vld [vmem:[%s17784_s12 + $0x3028] ss:$16 sps:$4 sm:$0xff]   ;;  %v17429_v9 = vld [vmem:[%s17784_s12 + $0x2e0c] ss:$16 sps:$4 sm:$0xff]  }
 0x66c   : > { %12804 = vmatprep.subr.bf16.mxu1 %v17366_v45  ;;  %v17432_v45 = vld [vmem:[%s17784_s12 + $0x300c] ss:$16 sps:$4 sm:$0xff]  }
 0x66e   : > { %12764 = vmatpush2.bf16.msra.mxu0 %v17361_v5  ;;  %v17427_v5 = vld [vmem:[%s17784_s12 + $0x2e08] ss:$16 sps:$4 sm:$0xff]  }
 0x66f   : > { %12805 = vmatpush2.bf16.msra.mxu1 %v17364_v4  ;;  %12765 = vmatprep.subr.bf16.mxu0 %v17369_v52  ;;  %v17430_v4 = vld [vmem:[%s17784_s12 + $0x3008] ss:$16 sps:$4 sm:$0xff]   ;;  %v17435_v52 = vld [vmem:[%s17784_s12 + $0x2fec] ss:$16 sps:$4 sm:$0xff]  }
 0x670   : > { %12806 = vmatprep.subr.bf16.mxu1 %v17372_v6  ;;  %v17438_v6 = vld [vmem:[%s17784_s12 + $0x31ec] ss:$16 sps:$4 sm:$0xff]  }
 0x672   : > { %12766 = vmatpush2.bf16.msra.mxu0 %v17367_v35  ;;  %v17433_v35 = vld [vmem:[%s17784_s12 + $0x2fe8] ss:$16 sps:$4 sm:$0xff]  }
 0x673   : > { %12807 = vmatpush2.bf16.msra.mxu1 %v17370_v48  ;;  %12767 = vmatprep.subr.bf16.mxu0 %v17375_v61  ;;  %v17436_v48 = vld [vmem:[%s17784_s12 + $0x31e8] ss:$16 sps:$4 sm:$0xff]   ;;  %v17441_v61 = vld [vmem:[%s17784_s12 + $0x2fcc] ss:$16 sps:$4 sm:$0xff]  }
 0x674   : > { %12808 = vmatprep.subr.bf16.mxu1 %v17378_v38  ;;  %v17444_v38 = vld [vmem:[%s17784_s12 + $0x31cc] ss:$16 sps:$4 sm:$0xff]  }
 0x676   : > { %12768 = vmatpush2.bf16.msra.mxu0 %v17373_v54  ;;  %v17439_v54 = vld [vmem:[%s17784_s12 + $0x2fc8] ss:$16 sps:$4 sm:$0xff]  }
 0x677   : > { %12809 = vmatpush2.bf16.msra.mxu1 %v17376_v36  ;;  %12769 = vmatprep.subr.bf16.mxu0 %v17381_v60  ;;  %v17442_v36 = vld [vmem:[%s17784_s12 + $0x31c8] ss:$16 sps:$4 sm:$0xff]   ;;  %v17447_v60 = vld [vmem:[%s17784_s12 + $0x2fac] ss:$16 sps:$4 sm:$0xff]  }
 0x678   : > { %12810 = vmatprep.subr.bf16.mxu1 %v17384_v50  ;;  %v17450_v50 = vld [vmem:[%s17784_s12 + $0x31ac] ss:$16 sps:$4 sm:$0xff]  }
 0x67a   : > { %12770 = vmatpush2.bf16.msra.mxu0 %v17379_v28  ;;  %v17445_v28 = vld [vmem:[%s17784_s12 + $0x2fa8] ss:$16 sps:$4 sm:$0xff]  }
 0x67b   : > { %12811 = vmatpush2.bf16.msra.mxu1 %v17382_v63  ;;  %12821 = vmatprep.subr.bf16.mxu0 %v17387_v19  ;;  %v17448_v63 = vld [vmem:[%s17784_s12 + $0x31a8] ss:$16 sps:$4 sm:$0xff]   ;;  %v17453_v19 = vld [vmem:[%s17784_s12 + $0x2f8c] ss:$16 sps:$4 sm:$0xff]  }
 0x67c   : > { %12862 = vmatprep.subr.bf16.mxu1 %v17390_v12  ;;  %v17456_v12 = vld [vmem:[%s17784_s12 + $0x318c] ss:$16 sps:$4 sm:$0xff]  }
 0x67d   : > { %v12527_v0 = vpop.f32.mrf.mxu0  ;;  %12772 = vmatmul.mubr.bf16.vlgmr.msra.gmra.mxu0 %v20033_v37  ;;  %v17465_v37 = vld [vmem:[%s17784_s12 + $0x2f4c] ss:$16 sps:$4 sm:$0xff]  }
 0x67e   : > { %v12568_v32 = vpop.f32.mrf.mxu1  ;;  %12813 = vmatmul.mubr.bf16.vlgmr.msra.gmra.mxu1 %v20034_v11  ;;  %v12528_v55 = vadd.f32 %v12527_v0, %v19753_v47  ;;  %12822 = vmatpush1.bf16.msra.mxu0 %v17385_v22  ;;  %v17451_v22 = vld [vmem:[%s17784_s12 + $0x2f88] ss:$16 sps:$4 sm:$0xff]   ;;  %v17468_v11 = vld [vmem:[%s17784_s12 + $0x314c] ss:$16 sps:$4 sm:$0xff]  }
 0x67f   : > { %12863 = vmatpush1.bf16.msra.mxu1 %v17388_v15  ;;  %v12529_v10 = vpop.f32.mrf.mxu0  ;;  %12823 = vmatprep.subr.bf16.mxu0 %v17393_v30  ;;  %v17454_v15 = vld [vmem:[%s17784_s12 + $0x3188] ss:$16 sps:$4 sm:$0xff]   ;;  %v17459_v30 = vld [vmem:[%s17784_s12 + $0x2f6c] ss:$16 sps:$4 sm:$0xff]  }
 0x680   : > { %v12570_v46 = vpop.f32.mrf.mxu1  ;;  %12864 = vmatprep.subr.bf16.mxu1 %v17396_v24  ;;  %v19827_v44 = vadd.f32 %v12568_v32, %v12528_v55  ;;  %v12530_v3 = vadd.f32 %v12529_v10, %v19758_v2  ;;  %12853 = vmatprep.mubr.bf16.mxu0 %v20035_v56  ;;  %v17405_v2 = vld [vmem:[%s17784_s12 + $0x2e8c] ss:$16 sps:$4 sm:$0xff]   ;;  %v17457_v0 = vld [vmem:[%s17784_s12 + $0x2f68] ss:$16 sps:$4 sm:$0xff]  }
 0x681   : > { %12894 = vmatprep.mubr.bf16.mxu1 %v18828_v57  ;;  %v12531_v47 = vpop.f32.mrf.mxu0  ;;  %v17408_v57 = vld [vmem:[%s17784_s12 + $0x308c] ss:$16 sps:$4 sm:$0xff]   ;;  %v17460_v32 = vld [vmem:[%s17784_s12 + $0x3168] ss:$16 sps:$4 sm:$0xff]  }
 0x682   : > { %v12572_v21 = vpop.f32.mrf.mxu1  ;;  %v19832_v31 = vadd.f32 %v12570_v46, %v12530_v3  ;;  %12824 = vmatpush1.bf16.msra.mxu0 %v17391_v34  ;;  %v17462_v24 = vld [vmem:[%s17784_s12 + $0x316c] ss:$16 sps:$4 sm:$0xff]   ;;  %v17463_v55 = vld [vmem:[%s17784_s12 + $0x2f48] ss:$16 sps:$4 sm:$0xff]  }
 0x683   : > { %12865 = vmatpush1.bf16.msra.mxu1 %v17394_v20  ;;  %v12532_v27 = vpop.f32.mrf.mxu0  ;;  %12825 = vmatprep.subr.bf16.mxu0 %v17399_v39  ;;  %v17466_v34 = vld [vmem:[%s17784_s12 + $0x3148] ss:$16 sps:$4 sm:$0xff]   ;;  %v17471_v20 = vld [vmem:[%s17784_s12 + $0x2f2c] ss:$16 sps:$4 sm:$0xff]  }
 0x684   : > { %v12573_v33 = vpop.f32.mrf.mxu1  ;;  %12866 = vmatprep.subr.bf16.mxu1 %v17402_v41  ;;  %v17474_v10 = vld [vmem:[%s17784_s12 + $0x312c] ss:$16 sps:$4 sm:$0xff]   ;;  %v17469_v46 = vld [vmem:[%s17784_s12 + $0x2f28] ss:$16 sps:$4 sm:$0xff]  }
 0x685   : > { %v17472_v39 = vld [vmem:[%s17784_s12 + $0x3128] ss:$16 sps:$4 sm:$0xff]   ;;  %v17477_v41 = vld [vmem:[%s17784_s12 + $0x2f0c] ss:$16 sps:$4 sm:$0xff]  }
 0x686   : > { %12826 = vmatpush1.bf16.msra.mxu0 %v17397_v17  ;;  %v17480_v3 = vld [vmem:[%s17784_s12 + $0x310c] ss:$16 sps:$4 sm:$0xff]   ;;  %v17475_v56 = vld [vmem:[%s17784_s12 + $0x2f08] ss:$16 sps:$4 sm:$0xff]  }
 0x687   : > { %12867 = vmatpush1.bf16.msra.mxu1 %v17400_v58  ;;  %12827 = vmatprep.subr.bf16.mxu0 %v17405_v2  ;;  %v17478_v47 = vld [vmem:[%s17784_s12 + $0x3108] ss:$16 sps:$4 sm:$0xff]   ;;  %v17483_v21 = vld [vmem:[%s17784_s12 + $0x32ec] ss:$16 sps:$4 sm:$0xff]  }
 0x688   : > { %12868 = vmatprep.subr.bf16.mxu1 %v17408_v57  ;;  %v17486_v17 = vld [vmem:[%s17784_s12 + $0x34ec] ss:$16 sps:$4 sm:$0xff]   ;;  %v17481_v58 = vld [vmem:[%s17784_s12 + $0x32e8] ss:$16 sps:$4 sm:$0xff]  }
 0x689   : > { %v17484_v27 = vld [vmem:[%s17784_s12 + $0x34e8] ss:$16 sps:$4 sm:$0xff]   ;;  %v17489_v33 = vld [vmem:[%s17784_s12 + $0x32cc] ss:$16 sps:$4 sm:$0xff]  }
 0x68a   : > { %12828 = vmatpush1.bf16.msra.mxu0 %v17403_v49  ;;  %v17492_v2 = vld [vmem:[%s17784_s12 + $0x34cc] ss:$16 sps:$4 sm:$0xff]  }
 0x68b   : > { %12869 = vmatpush1.bf16.msra.mxu1 %v17406_v8  ;;  %12829 = vmatprep.subr.bf16.mxu0 %v17411_v51  ;;  %v20036_v8 = vld [vmem:[#allocation10_spill] sm:$0xff]  ;;  %v20037_v51 = vld [vmem:[#allocation12_spill] sm:$0xff] }
 0x68c   : > { %12870 = vmatprep.subr.bf16.mxu1 %v17414_v62 }
 0x68e   : > { %12830 = vmatpush1.bf16.msra.mxu0 %v17409_v29  ;;  %v17487_v29 = vld [vmem:[%s17784_s12 + $0x32c8] ss:$16 sps:$4 sm:$0xff]  }
 0x68f   : > { %12871 = vmatpush1.bf16.msra.mxu1 %v17412_v25  ;;  %12831 = vmatprep.subr.bf16.mxu0 %v17417_v18  ;;  %v17490_v25 = vld [vmem:[%s17784_s12 + $0x34c8] ss:$16 sps:$4 sm:$0xff]  }
 0x690   : > { %12872 = vmatprep.subr.bf16.mxu1 %v17420_v1 }
 0x692   : > { %12832 = vmatpush1.bf16.msra.mxu0 %v17415_v59  ;;  %v17495_v59 = vld [vmem:[%s17784_s12 + $0x32ac] ss:$16 sps:$4 sm:$0xff]  }
 0x693   : > { %12873 = vmatpush1.bf16.msra.mxu1 %v17418_v13  ;;  %12833 = vmatprep.subr.bf16.mxu0 %v17423_v16  ;;  %v17498_v13 = vld [vmem:[%s17784_s12 + $0x34ac] ss:$16 sps:$4 sm:$0xff]  }
 0x694   : > { %12874 = vmatprep.subr.bf16.mxu1 %v17426_v23 }
 0x696   : > { %12834 = vmatpush1.bf16.msra.mxu0 %v17421_v40  ;;  %v20038_v40 = vld [vmem:[#allocation11_spill] sm:$0xff] }
 0x697   : > { %12875 = vmatpush1.bf16.msra.mxu1 %v17424_v7  ;;  %12835 = vmatprep.subr.bf16.mxu0 %v17429_v9 }
 0x698   : > { %12876 = vmatprep.subr.bf16.mxu1 %v17432_v45  ;;  %v17493_v45 = vld [vmem:[%s17784_s12 + $0x32a8] ss:$16 sps:$4 sm:$0xff]  }
 0x69a   : > { %12836 = vmatpush1.bf16.msra.mxu0 %v17427_v5  ;;  %v17496_v5 = vld [vmem:[%s17784_s12 + $0x34a8] ss:$16 sps:$4 sm:$0xff]  }
 0x69b   : > { %12877 = vmatpush1.bf16.msra.mxu1 %v17430_v4  ;;  %12837 = vmatprep.subr.bf16.mxu0 %v17435_v52 }
 0x69c   : > { %12878 = vmatprep.subr.bf16.mxu1 %v17438_v6  ;;  %v17499_v6 = vld [vmem:[%s17784_s12 + $0x3288] ss:$16 sps:$4 sm:$0xff]  }
 0x69e   : > { %12838 = vmatpush2.bf16.msra.mxu0 %v17433_v35  ;;  %v17502_v35 = vld [vmem:[%s17784_s12 + $0x3488] ss:$16 sps:$4 sm:$0xff]  }
 0x69f   : > { %12879 = vmatpush2.bf16.msra.mxu1 %v17436_v48  ;;  %12839 = vmatprep.subr.bf16.mxu0 %v17441_v61  ;;  %v17507_v48 = vld [vmem:[%s17784_s12 + $0x326c] ss:$16 sps:$4 sm:$0xff]  }
 0x6a0   : > { %12880 = vmatprep.subr.bf16.mxu1 %v17444_v38  ;;  %v17510_v61 = vld [vmem:[%s17784_s12 + $0x346c] ss:$16 sps:$4 sm:$0xff]   ;;  %v17505_v38 = vld [vmem:[%s17784_s12 + $0x3268] ss:$16 sps:$4 sm:$0xff]  }
 0x6a2   : > { %12840 = vmatpush2.bf16.msra.mxu0 %v17439_v54  ;;  %v17508_v54 = vld [vmem:[%s17784_s12 + $0x3468] ss:$16 sps:$4 sm:$0xff]  }
 0x6a3   : > { %12881 = vmatpush2.bf16.msra.mxu1 %v17442_v36  ;;  %12841 = vmatprep.subr.bf16.mxu0 %v17447_v60  ;;  %v17513_v36 = vld [vmem:[%s17784_s12 + $0x324c] ss:$16 sps:$4 sm:$0xff]  }
 0x6a4   : > { %12882 = vmatprep.subr.bf16.mxu1 %v17450_v50  ;;  %v17516_v60 = vld [vmem:[%s17784_s12 + $0x344c] ss:$16 sps:$4 sm:$0xff]   ;;  %v17511_v50 = vld [vmem:[%s17784_s12 + $0x3248] ss:$16 sps:$4 sm:$0xff]  }
 0x6a6   : > { %12842 = vmatpush2.bf16.msra.mxu0 %v17445_v28  ;;  %v17514_v28 = vld [vmem:[%s17784_s12 + $0x3448] ss:$16 sps:$4 sm:$0xff]  }
 0x6a7   : > { %12883 = vmatpush2.bf16.msra.mxu1 %v17448_v63  ;;  %12843 = vmatprep.subr.bf16.mxu0 %v17453_v19  ;;  %v17519_v63 = vld [vmem:[%s17784_s12 + $0x322c] ss:$16 sps:$4 sm:$0xff]  }
 0x6a8   : > { %12884 = vmatprep.subr.bf16.mxu1 %v17456_v12  ;;  %v17522_v19 = vld [vmem:[%s17784_s12 + $0x342c] ss:$16 sps:$4 sm:$0xff]   ;;  %v17517_v12 = vld [vmem:[%s17784_s12 + $0x3228] ss:$16 sps:$4 sm:$0xff]  }
 0x6aa   : > { %12844 = vmatpush2.bf16.msra.mxu0 %v17451_v22  ;;  %v17520_v22 = vld [vmem:[%s17784_s12 + $0x3428] ss:$16 sps:$4 sm:$0xff]  }
 0x6ab   : > { %12885 = vmatpush2.bf16.msra.mxu1 %v17454_v15  ;;  %12845 = vmatprep.subr.bf16.mxu0 %v17459_v30  ;;  %v17525_v15 = vld [vmem:[%s17784_s12 + $0x320c] ss:$16 sps:$4 sm:$0xff]  }
 0x6ac   : > { %12886 = vmatprep.subr.bf16.mxu1 %v17462_v24  ;;  %v17528_v30 = vld [vmem:[%s17784_s12 + $0x340c] ss:$16 sps:$4 sm:$0xff]   ;;  %v17523_v24 = vld [vmem:[%s17784_s12 + $0x3208] ss:$16 sps:$4 sm:$0xff]  }
 0x6ae   : > { %12846 = vmatpush2.bf16.msra.mxu0 %v17457_v0  ;;  %v17526_v0 = vld [vmem:[%s17784_s12 + $0x3408] ss:$16 sps:$4 sm:$0xff]  }
 0x6af   : > { %12887 = vmatpush2.bf16.msra.mxu1 %v17460_v32  ;;  %12847 = vmatprep.subr.bf16.mxu0 %v17465_v37  ;;  %v17531_v32 = vld [vmem:[%s17784_s12 + $0x33ec] ss:$16 sps:$4 sm:$0xff]  }
 0x6b0   : > { %12888 = vmatprep.subr.bf16.mxu1 %v17468_v11  ;;  %v17534_v37 = vld [vmem:[%s17784_s12 + $0x35ec] ss:$16 sps:$4 sm:$0xff]   ;;  %v17529_v11 = vld [vmem:[%s17784_s12 + $0x33e8] ss:$16 sps:$4 sm:$0xff]  }
 0x6b2   : > { %12848 = vmatpush2.bf16.msra.mxu0 %v17463_v55  ;;  %v17532_v55 = vld [vmem:[%s17784_s12 + $0x35e8] ss:$16 sps:$4 sm:$0xff]  }
 0x6b3   : > { %12889 = vmatpush2.bf16.msra.mxu1 %v17466_v34  ;;  %12849 = vmatprep.subr.bf16.mxu0 %v17471_v20  ;;  %v17537_v34 = vld [vmem:[%s17784_s12 + $0x33cc] ss:$16 sps:$4 sm:$0xff]  }
 0x6b4   : > { %12890 = vmatprep.subr.bf16.mxu1 %v17474_v10  ;;  %v17540_v20 = vld [vmem:[%s17784_s12 + $0x35cc] ss:$16 sps:$4 sm:$0xff]   ;;  %v17535_v10 = vld [vmem:[%s17784_s12 + $0x33c8] ss:$16 sps:$4 sm:$0xff]  }
 0x6b6   : > { %12850 = vmatpush2.bf16.msra.mxu0 %v17469_v46  ;;  %v17538_v46 = vld [vmem:[%s17784_s12 + $0x35c8] ss:$16 sps:$4 sm:$0xff]  }
 0x6b7   : > { %12891 = vmatpush2.bf16.msra.mxu1 %v17472_v39  ;;  %12851 = vmatprep.subr.bf16.mxu0 %v17477_v41  ;;  %v17543_v39 = vld [vmem:[%s17784_s12 + $0x33ac] ss:$16 sps:$4 sm:$0xff]  }
 0x6b8   : > { %12892 = vmatprep.subr.bf16.mxu1 %v17480_v3  ;;  %v17546_v41 = vld [vmem:[%s17784_s12 + $0x35ac] ss:$16 sps:$4 sm:$0xff]   ;;  %v17541_v3 = vld [vmem:[%s17784_s12 + $0x33a8] ss:$16 sps:$4 sm:$0xff]  }
 0x6ba   : > { %12852 = vmatpush2.bf16.msra.mxu0 %v17475_v56  ;;  %v17544_v56 = vld [vmem:[%s17784_s12 + $0x35a8] ss:$16 sps:$4 sm:$0xff]  }
 0x6bb   : > { %12893 = vmatpush2.bf16.msra.mxu1 %v17478_v47  ;;  %12903 = vmatprep.subr.bf16.mxu0 %v17483_v21  ;;  %v17549_v47 = vld [vmem:[%s17784_s12 + $0x338c] ss:$16 sps:$4 sm:$0xff]  }
 0x6bc   : > { %12944 = vmatprep.subr.bf16.mxu1 %v17486_v17  ;;  %v17552_v21 = vld [vmem:[%s17784_s12 + $0x358c] ss:$16 sps:$4 sm:$0xff]   ;;  %v17547_v17 = vld [vmem:[%s17784_s12 + $0x3388] ss:$16 sps:$4 sm:$0xff]  }
 0x6bd   : > { %v12609_v57 = vpop.f32.mrf.mxu0  ;;  %12854 = vmatmul.mubr.bf16.vlgmr.msra.gmra.mxu0 %v20036_v8  ;;  %v17564_v8 = vld [vmem:[%s17784_s12 + $0x354c] ss:$16 sps:$4 sm:$0xff]  }
 0x6be   : > { %v12650_v49 = vpop.f32.mrf.mxu1  ;;  %12895 = vmatmul.mubr.bf16.vlgmr.msra.gmra.mxu1 %v20037_v51  ;;  %v12610_v62 = vadd.f32 %v12609_v57, %v19827_v44  ;;  %12904 = vmatpush1.bf16.msra.mxu0 %v17481_v58  ;;  %v17550_v58 = vld [vmem:[%s17784_s12 + $0x3588] ss:$16 sps:$4 sm:$0xff]  }
 0x6bf   : > { %12945 = vmatpush1.bf16.msra.mxu1 %v17484_v27  ;;  %v12611_v18 = vpop.f32.mrf.mxu0  ;;  %12905 = vmatprep.subr.bf16.mxu0 %v17489_v33  ;;  %v17555_v27 = vld [vmem:[%s17784_s12 + $0x336c] ss:$16 sps:$4 sm:$0xff]   ;;  %v17556_v57 = vld [vmem:[%s17784_s12 + $0x3568] ss:$16 sps:$4 sm:$0xff]  }
 0x6c0   : > { %v12652_v1 = vpop.f32.mrf.mxu1  ;;  %12946 = vmatprep.subr.bf16.mxu1 %v17492_v2  ;;  %v19901_v16 = vadd.f32 %v12650_v49, %v12610_v62  ;;  %v12612_v23 = vadd.f32 %v12611_v18, %v19832_v31  ;;  %12935 = vmatprep.mubr.bf16.mxu0 %v20038_v40  ;;  %v17501_v31 = vld [vmem:[%s17784_s12 + $0x328c] ss:$16 sps:$4 sm:$0xff]   ;;  %v17553_v2 = vld [vmem:[%s17784_s12 + $0x3368] ss:$16 sps:$4 sm:$0xff]  }
 0x6c1   : > { %12976 = vmatprep.mubr.bf16.mxu1 %v18913_v14  ;;  %v12613_v44 = vpop.f32.mrf.mxu0  ;;  %v17504_v14 = vld [vmem:[%s17784_s12 + $0x348c] ss:$16 sps:$4 sm:$0xff]   ;;  %v17559_v51 = vld [vmem:[%s17784_s12 + $0x3348] ss:$16 sps:$4 sm:$0xff]  }
 0x6c2   : > { %v12654_v7 = vpop.f32.mrf.mxu1  ;;  %v19906_v9 = vadd.f32 %v12652_v1, %v12612_v23  ;;  %12906 = vmatpush1.bf16.msra.mxu0 %v17487_v29  ;;  %v17558_v33 = vld [vmem:[%s17784_s12 + $0x356c] ss:$16 sps:$4 sm:$0xff]   ;;  %v17562_v62 = vld [vmem:[%s17784_s12 + $0x3548] ss:$16 sps:$4 sm:$0xff]  }
 0x6c3   : > { %12947 = vmatpush1.bf16.msra.mxu1 %v17490_v25  ;;  %v12614_v4 = vpop.f32.mrf.mxu0  ;;  %12907 = vmatprep.subr.bf16.mxu0 %v17495_v59  ;;  %v17561_v49 = vld [vmem:[%s17784_s12 + $0x334c] ss:$16 sps:$4 sm:$0xff]   ;;  %v17565_v18 = vld [vmem:[%s17784_s12 + $0x3328] ss:$16 sps:$4 sm:$0xff]  }
 0x6c4   : > { %v12655_v52 = vpop.f32.mrf.mxu1  ;;  %12948 = vmatprep.subr.bf16.mxu1 %v17498_v13  ;;  %v17567_v29 = vld [vmem:[%s17784_s12 + $0x332c] ss:$16 sps:$4 sm:$0xff]   ;;  %v17568_v1 = vld [vmem:[%s17784_s12 + $0x3528] ss:$16 sps:$4 sm:$0xff]  }
 0x6c5   : > { %v17570_v25 = vld [vmem:[%s17784_s12 + $0x352c] ss:$16 sps:$4 sm:$0xff]   ;;  %v17571_v23 = vld [vmem:[%s17784_s12 + $0x3308] ss:$16 sps:$4 sm:$0xff]  }
 0x6c6   : > { %12908 = vmatpush1.bf16.msra.mxu0 %v17493_v45  ;;  %v17573_v59 = vld [vmem:[%s17784_s12 + $0x330c] ss:$16 sps:$4 sm:$0xff]   ;;  %v17574_v40 = vld [vmem:[%s17784_s12 + $0x3508] ss:$16 sps:$4 sm:$0xff]  }
 0x6c7   : > { %12949 = vmatpush1.bf16.msra.mxu1 %v17496_v5  ;;  %12909 = vmatprep.subr.bf16.mxu0 %v17501_v31  ;;  %v17576_v13 = vld [vmem:[%s17784_s12 + $0x350c] ss:$16 sps:$4 sm:$0xff]  }
 0x6c8   : > { %12950 = vmatprep.subr.bf16.mxu1 %v17504_v14 }
 0x6ca   : > { %12910 = vmatpush1.bf16.msra.mxu0 %v17499_v6 }
 0x6cb   : > { %12951 = vmatpush1.bf16.msra.mxu1 %v17502_v35  ;;  %12911 = vmatprep.subr.bf16.mxu0 %v17507_v48 }
 0x6cc   : > { %12952 = vmatprep.subr.bf16.mxu1 %v17510_v61 }
 0x6ce   : > { %12912 = vmatpush1.bf16.msra.mxu0 %v17505_v38 }
 0x6cf   : > { %12953 = vmatpush1.bf16.msra.mxu1 %v17508_v54  ;;  %12913 = vmatprep.subr.bf16.mxu0 %v17513_v36 }
 0x6d0   : > { %12954 = vmatprep.subr.bf16.mxu1 %v17516_v60 }
 0x6d2   : > { %12914 = vmatpush1.bf16.msra.mxu0 %v17511_v50 }
 0x6d3   : > { %12955 = vmatpush1.bf16.msra.mxu1 %v17514_v28  ;;  %12915 = vmatprep.subr.bf16.mxu0 %v17519_v63 }
 0x6d4   : > { %12956 = vmatprep.subr.bf16.mxu1 %v17522_v19 }
 0x6d6   : > { %12916 = vmatpush1.bf16.msra.mxu0 %v17517_v12 }
 0x6d7   : > { %12957 = vmatpush1.bf16.msra.mxu1 %v17520_v22  ;;  %12917 = vmatprep.subr.bf16.mxu0 %v17525_v15 }
 0x6d8   : > { %12958 = vmatprep.subr.bf16.mxu1 %v17528_v30 }
 0x6da   : > { %12918 = vmatpush1.bf16.msra.mxu0 %v17523_v24 }
 0x6db   : > { %12959 = vmatpush1.bf16.msra.mxu1 %v17526_v0  ;;  %12919 = vmatprep.subr.bf16.mxu0 %v17531_v32 }
 0x6dc   : > { %12960 = vmatprep.subr.bf16.mxu1 %v17534_v37 }
 0x6de   : > { %12920 = vmatpush2.bf16.msra.mxu0 %v17529_v11 }
 0x6df   : > { %12961 = vmatpush2.bf16.msra.mxu1 %v17532_v55  ;;  %12921 = vmatprep.subr.bf16.mxu0 %v17537_v34 }
 0x6e0   : > { %12962 = vmatprep.subr.bf16.mxu1 %v17540_v20 }
 0x6e2   : > { %12922 = vmatpush2.bf16.msra.mxu0 %v17535_v10 }
 0x6e3   : > { %12963 = vmatpush2.bf16.msra.mxu1 %v17538_v46  ;;  %12923 = vmatprep.subr.bf16.mxu0 %v17543_v39 }
 0x6e4   : > { %12964 = vmatprep.subr.bf16.mxu1 %v17546_v41 }
 0x6e6   : > { %12924 = vmatpush2.bf16.msra.mxu0 %v17541_v3 }
 0x6e7   : > { %12965 = vmatpush2.bf16.msra.mxu1 %v17544_v56  ;;  %12925 = vmatprep.subr.bf16.mxu0 %v17549_v47 }
 0x6e8   : > { %12966 = vmatprep.subr.bf16.mxu1 %v17552_v21 }
 0x6ea   : > { %12926 = vmatpush2.bf16.msra.mxu0 %v17547_v17 }
 0x6eb   : > { %12967 = vmatpush2.bf16.msra.mxu1 %v17550_v58  ;;  %12927 = vmatprep.subr.bf16.mxu0 %v17555_v27 }
 0x6ec   : > { %12968 = vmatprep.subr.bf16.mxu1 %v17558_v33 }
 0x6ee   : > { %12928 = vmatpush2.bf16.msra.mxu0 %v17553_v2 }
 0x6ef   : > { %12969 = vmatpush2.bf16.msra.mxu1 %v17556_v57  ;;  %12929 = vmatprep.subr.bf16.mxu0 %v17561_v49 }
 0x6f0   : > { %12970 = vmatprep.subr.bf16.mxu1 %v17564_v8 }
 0x6f2   : > { %12930 = vmatpush2.bf16.msra.mxu0 %v17559_v51 }
 0x6f3   : > { %12971 = vmatpush2.bf16.msra.mxu1 %v17562_v62  ;;  %12931 = vmatprep.subr.bf16.mxu0 %v17567_v29 }
 0x6f4   : > { %12972 = vmatprep.subr.bf16.mxu1 %v17570_v25 }
 0x6f6   : > { %12932 = vmatpush2.bf16.msra.mxu0 %v17565_v18 }
 0x6f7   : > { %12973 = vmatpush2.bf16.msra.mxu1 %v17568_v1  ;;  %12933 = vmatprep.subr.bf16.mxu0 %v17573_v59 }
 0x6f8   : > { %12974 = vmatprep.subr.bf16.mxu1 %v17576_v13 }
 0x6fa   : > { %12934 = vmatpush2.bf16.msra.mxu0 %v17571_v23 }
 0x6fb   : > { %12975 = vmatpush2.bf16.msra.mxu1 %v17574_v40 }
 0x6fd   : > { %v12691_v44 = vpop.f32.mrf.mxu0  ;;  %12936 = vmatmul.mubr.bf16.vlgmr.msra.gmra.mxu0 %v18907_v26 }
 0x6fe   : > { %v12732_v7 = vpop.f32.mrf.mxu1  ;;  %12977 = vmatmul.mubr.bf16.vlgmr.msra.gmra.mxu1 %v18986_v42  ;;  %v12692_v45 = vadd.f32 %v12691_v44, %v19901_v16 }
 0x6ff   : > { %v12693_v5 = vpop.f32.mrf.mxu0 }
 0x700   : > { %v12734_v4 = vpop.f32.mrf.mxu1  ;;  %v12733_v52 = vadd.f32 %v12732_v7, %v12692_v45  ;;  %v12694_v31 = vadd.f32 %v12693_v5, %v19906_v9 }
 0x701   : > { %v12695_v14 = vpop.f32.mrf.mxu0 }
 0x702   : > { %v12736_v6 = vpop.f32.mrf.mxu1  ;;  %v12735_v35 = vadd.f32 %v12734_v4, %v12694_v31 }
 0x703   : > { %v12696_v48 = vpop.f32.mrf.mxu0 }
 0x704   : > { %v12737_v61 = vpop.f32.mrf.mxu1 }
 0x73d   : > { %v12773_v38 = vpop.f32.mrf.mxu0 }
 0x73e   : > { %v12814_v54 = vpop.f32.mrf.mxu1  ;;  %v12774_v36 = vadd.f32 %v12773_v38, %v12733_v52 }
 0x73f   : > { %v12775_v60 = vpop.f32.mrf.mxu0 }
 0x740   : > { %v12816_v50 = vpop.f32.mrf.mxu1  ;;  %v12815_v26 = vadd.f32 %v12814_v54, %v12774_v36  ;;  %v12776_v28 = vadd.f32 %v12775_v60, %v12735_v35 }
 0x741   : > { %v12777_v42 = vpop.f32.mrf.mxu0 }
 0x742   : > { %v12818_v63 = vpop.f32.mrf.mxu1  ;;  %v12817_v16 = vadd.f32 %v12816_v50, %v12776_v28 }
 0x743   : > { %v12778_v19 = vpop.f32.mrf.mxu0 }
 0x744   : > { %v12819_v12 = vpop.f32.mrf.mxu1 }
 0x77d   : > { %v12855_v22 = vpop.f32.mrf.mxu0 }
 0x77e   : > { %v12896_v15 = vpop.f32.mrf.mxu1  ;;  %v12856_v11 = vadd.f32 %v12855_v22, %v12815_v26 }
 0x77f   : > { %v12857_v9 = vpop.f32.mrf.mxu0 }
 0x780   : > { %v12898_v30 = vpop.f32.mrf.mxu1  ;;  %v12858_v55 = vadd.f32 %v12857_v9, %v12817_v16  ;;  %v12897_v34 = vadd.f32 %v12896_v15, %v12856_v11 }
 0x781   : > { %v12859_v24 = vpop.f32.mrf.mxu0 }
 0x782   : > { %v12900_v0 = vpop.f32.mrf.mxu1  ;;  %v12899_v46 = vadd.f32 %v12898_v30, %v12858_v55 }
 0x783   : > { %v12860_v32 = vpop.f32.mrf.mxu0 }
 0x784   : > { %v12901_v37 = vpop.f32.mrf.mxu1 }
 0x7bd   : > { %v12937_v20 = vpop.f32.mrf.mxu0 }
 0x7be   : > { %v12978_v10 = vpop.f32.mrf.mxu1  ;;  %v12938_v39 = vadd.f32 %v12937_v20, %v12897_v34 }
 0x7bf   : > { %v12939_v41 = vpop.f32.mrf.mxu0 }
 0x7c0   : > { %v12980_v3 = vpop.f32.mrf.mxu1  ;;  %v12979_v56 = vadd.f32 %v12978_v10, %v12938_v39  ;;  %v12940_v47 = vadd.f32 %v12939_v41, %v12899_v46 }
 0x7c1   : > { %v12941_v21 = vpop.f32.mrf.mxu0 }
 0x7c2   : > { %v12982_v17 = vpop.f32.mrf.mxu1  ;;  %v12987_v58 = vadd.f32 %v12979_v56, %v19229_v53  ;;  %v12981_v27 = vadd.f32 %v12980_v3, %v12940_v47  ;;  %12996 = sbr.rel (%p14904_p11) target bundleno = 2005 (0x7d5), region = 44 }
 0x7c3   : > { %v12942_v33 = vpop.f32.mrf.mxu0 }
 0x7c4   : > { %v12983_v2 = vpop.f32.mrf.mxu1  ;;  %v12988_v57 = vadd.f32 %v12981_v27, %v19236_v43  ;;  %12991 = vst [vmem:[%s17802_s30 + $0x10] sm:$0xff] %v12987_v58 }
 0x7c6   : > { %12992 = vst [vmem:[%s17802_s30 + $0x18] sm:$0xff] %v12988_v57 }
 0x7c7   : > { %v13003_v49 = vlaneseq  ;;  %v13001_v53 = vld [vmem:[%s271_s27] sm:$0xf]  ;;  %v12998_v18 = vld [vmem:[%s17802_s30 + $0x8] sm:$0xff] }
 0x7c8   : > { %v12997_v51 = vld [vmem:[%s17802_s30] sm:$0xff] }
 0x7c9   : > { %v13004_v8 = vshrl.u32 %v13003_v49, 7 }
 0x7cb   : > { %v13005_v62 = vsub.s32 0, %v13004_v8  ;;  %v13009_v43 = vsub.s32 1, %v13004_v8  ;;  %v13013_v29 = vsub.s32 2, %v13004_v8  ;;  %v13017_v25 = vsub.s32 3, %v13004_v8  ;;  %v12999_v1 = vld [vmem:[%s17802_s30 + $0x10] sm:$0xff] }
 0x7cd   : > { %v13000_v59 = vld [vmem:[%s17802_s30 + $0x18] sm:$0xff]  ;;  %v13006_v13 = vrot.slane %v13001_v53, %v13005_v62  ;;  %v13010_v23 = vrot.slane %v13001_v53, %v13009_v43  ;;  %v13014_v40 = vrot.slane %v13001_v53, %v13013_v29  ;;  %v13018_v44 = vrot.slane %v13001_v53, %v13017_v25 }
 0x7cf   : > { %v13023_v7 = vadd.f32 %v13006_v13, %v12997_v51  ;;  %v13024_v45 = vadd.f32 %v13010_v23, %v12998_v18  ;;  %v13025_v5 = vadd.f32 %v13014_v40, %v12999_v1  ;;  %v13026_v4 = vadd.f32 %v13018_v44, %v13000_v59 }
 0x7d1   : > { %v13027_v52 = vmax.f32 %v13023_v7, 0.0  ;;  %v13028_v31 = vmax.f32 %v13024_v45, 0.0  ;;  %v13029_v14 = vmax.f32 %v13025_v5, 0.0  ;;  %v13030_v6 = vmax.f32 %v13026_v4, 0.0 }
 0x7d3   : > { %13031 = vst [vmem:[%s17802_s30] sm:$0xff] %v13027_v52  ;;  %13032 = vst [vmem:[%s17802_s30 + $0x8] sm:$0xff] %v13028_v31 }
 0x7d4   : > { %13033 = vst [vmem:[%s17802_s30 + $0x10] sm:$0xff] %v13029_v14  ;;  %13034 = vst [vmem:[%s17802_s30 + $0x18] sm:$0xff] %v13030_v6 }
 0x7d5 PF: > { %s16_s19 = sadd.s32 1, %s17671_s19   ;;  %s20039_s12 = smov %s17647_s13 }
 0x7d6   : > { %p13_p12 = scmp.ge.s32.totalorder %s16_s19, 20   ;;  %s20040_s13 = smov %s17651_s14 }
 0x7d7   : > { %s20041_s14 = smov %s17765_s5  ;;  %s20042_s15 = smov %s17663_s17 }
 0x7d8   : > { %s20043_s16 = smov %s17667_s18  ;;  %s20044_s17 = smov %s20047_s21 }
 0x7d9   : > { %s20045_s18 = smov %s20051_s22  ;;  %15 = sbr.rel (!%p13_p12) target bundleno = 5 (0x5), region = 86 }
 0x7de   :  { %13065 = vsyncpa [#allocation3], 1 }
 0x7df   :  { %13067 = vsyncpa [#allocation3 + $0x1], 1 }

</bundles_post_ra>
